<compile_context>
chip_gen: v7x
topology: tpu7x:2x2x1
jax: 0.10.0
libtpu: 0.0.40
codegen_flags: <defaults>
</compile_context>

<pallas_src>
import functools

import jax
import jax.numpy as jnp
from jax import lax
from jax.experimental import pallas as pl
from jax.experimental.pallas import tpu as pltpu


def _round_up(x, m):
    return (x + m - 1) // m * m


def _cap_time_chunk(time_chunk, bp, hp, budget_bytes=40 << 20):
    """Cap the time chunk so double-buffered bf16 gates_x/out blocks fit a
    conservative VMEM budget (keeps headroom under v7x's 64 MiB VMEM)."""
    while time_chunk > 1:
        work = (2 * time_chunk * bp * 4 * hp * 2     # gates_x, 2 bufs, bf16
                + 2 * time_chunk * bp * hp * 2)      # out,     2 bufs, bf16
        if work <= budget_bytes:
            break
        time_chunk //= 2
    return max(time_chunk, 1)


def _prep_gate_cols(w_t, h, hp):
    """(rows, 4H) in PyTorch gate order (i,f,g,o) -> (rows, 4*Hp) in kernel
    gate order (i,f,o,g), each gate block zero-padded from H to Hp columns."""
    rows = w_t.shape[0]
    w4 = w_t.reshape(rows, 4, h)
    w4 = w4[:, jnp.array([0, 1, 3, 2]), :]           # (i,f,g,o) -> (i,f,o,g)
    w4 = jnp.pad(w4, ((0, 0), (0, 0), (0, hp - h)))
    return w4.reshape(rows, 4 * hp)


def bilstm_layer(gates_x, whh, batch_sizes, *, time_chunk):
    """Both directions of one BiLSTM layer.

    gates_x:     (2, T_pad, Bp, 4*Hp) bf16  precomputed x @ W_ih + b
    whh:         (2, Hp, 4*Hp)        bf16  recurrent weights (transposed)
    batch_sizes: (T_pad,)             int32 packed batch size per time step
    returns out (T_pad,Bp,2*Hp) bf16, hN (2,Bp,Hp) f32, cN (2,Bp,Hp) f32
    """
    _, t_pad, bp, g4 = gates_x.shape
    hp = g4 // 4
    n_chunks = t_pad // time_chunk

    def tblk(d, ci):
        # forward visits time blocks 0..n-1, backward n-1..0
        return jnp.where(d == 0, ci, n_chunks - 1 - ci)

    def kernel(bs_ref, gx_ref, whh_ref, out_ref, hN_ref, cN_ref, h_scr, c_scr):
        d = pl.program_id(0)
        ci = pl.program_id(1)

        @pl.when(ci == 0)
        def _():
            h_scr[...] = jnp.zeros_like(h_scr)
            c_scr[...] = jnp.zeros_like(c_scr)

        w_hh = whh_ref[...]                                    # (Hp, 4Hp) bf16
        row_ids = lax.broadcasted_iota(jnp.int32, (bp, hp), 0)

        def run_chunk(step_order, t_base):
            # (h, c) carried in registers across the statically-unrolled
            # chunk; VMEM scratch is touched once before / once after.
            h = h_scr[...]
            c = c_scr[...]
            for local_t in step_order:                         # static index
                gx = gx_ref[local_t].astype(jnp.float32)       # (Bp, 4Hp)
                gates = gx + jnp.dot(h.astype(jnp.bfloat16), w_hh,
                                     preferred_element_type=jnp.float32)
                # gate layout (i, f, o, g): one wide sigmoid + one tanh.
                sig = jax.nn.sigmoid(gates[:, :3 * hp])
                i_g = sig[:, 0 * hp:1 * hp]
                f_g = sig[:, 1 * hp:2 * hp]
                o_g = sig[:, 2 * hp:3 * hp]
                g_g = jnp.tanh(gates[:, 3 * hp:])
                c_new = f_g * c + i_g * g_g
                h_new = o_g * jnp.tanh(c_new)
                # PackedSequence semantics: only the first batch_sizes[t]
                # rows are live at step t (sorted by length, descending).
                bs = bs_ref[t_base + local_t]                  # SMEM scalar
                active = row_ids < bs
                h = jnp.where(active, h_new, h)
                c = jnp.where(active, c_new, c)
                out_ref[local_t] = h.astype(out_ref.dtype)
            h_scr[...] = h
            c_scr[...] = c

        @pl.when(d == 0)   # forward: walk the chunk 0 .. Tc-1
        def _():
            run_chunk(range(time_chunk), ci * time_chunk)

        @pl.when(d != 0)   # backward: walk the chunk Tc-1 .. 0
        def _():
            run_chunk(range(time_chunk - 1, -1, -1),
                      (n_chunks - 1 - ci) * time_chunk)

        @pl.when(ci == n_chunks - 1)
        def _():
            hN_ref[...] = h_scr[...]
            cN_ref[...] = c_scr[...]

    # Explicit VMEM budget so larger time chunks double-buffer even under the
    # small default scoped limits (16 MiB v5e / 32 MiB v6e,v7x), while staying
    # well under v7x's 64 MiB physical VMEM.
    vmem_need = (2 * time_chunk * bp * g4 * 2      # gates_x (2 bufs, bf16)
                 + 2 * hp * g4 * 2                 # whh     (2 bufs, bf16)
                 + 2 * time_chunk * bp * hp * 2    # out     (2 bufs, bf16)
                 + 4 * bp * hp * 4                 # hN + cN (2 bufs each, f32)
                 + 2 * bp * hp * 4)                # h/c scratch (f32)
    vmem_limit = int(min(max(vmem_need + (4 << 20), 16 << 20), 48 << 20))

    grid_spec = pltpu.PrefetchScalarGridSpec(
        num_scalar_prefetch=1,
        grid=(2, n_chunks),
        in_specs=[
            # gates_x: backward time-block reversal lives in the index_map.
            pl.BlockSpec((None, time_chunk, bp, g4),
                         lambda d, ci, bs: (d, tblk(d, ci), 0, 0)),
            # recurrent weights: constant block index -> stays resident.
            pl.BlockSpec((None, hp, g4), lambda d, ci, bs: (d, 0, 0)),
        ],
        out_specs=[
            # fused direction concat: direction d writes columns [d*Hp,(d+1)*Hp)
            pl.BlockSpec((time_chunk, bp, hp),
                         lambda d, ci, bs: (tblk(d, ci), 0, d)),
            pl.BlockSpec((None, bp, hp), lambda d, ci, bs: (d, 0, 0)),
            pl.BlockSpec((None, bp, hp), lambda d, ci, bs: (d, 0, 0)),
        ],
        scratch_shapes=[pltpu.VMEM((bp, hp), jnp.float32),
                        pltpu.VMEM((bp, hp), jnp.float32)],
    )

    out, h_n, c_n = pl.pallas_call(
        kernel,
        out_shape=(jax.ShapeDtypeStruct((t_pad, bp, 2 * hp), jnp.bfloat16),
                   jax.ShapeDtypeStruct((2, bp, hp), jnp.float32),
                   jax.ShapeDtypeStruct((2, bp, hp), jnp.float32)),
        grid_spec=grid_spec,
        compiler_params=pltpu.CompilerParams(
            # NOTE: on v7x this axis can be promoted to pltpu.CORE_PARALLEL to
            # split the two directions across TensorCores; kept "parallel"
            # here for portability (identical codegen on v5e/v6e).
            dimension_semantics=("parallel", "arbitrary"),
            vmem_limit_bytes=vmem_limit),
    )(batch_sizes, gates_x, whh)
    return out, h_n, c_n


def orthogonal(key, rows, cols):
    # Mirrors nn.init.orthogonal_ (QR of a Gaussian, sign-corrected).
    n, m = max(rows, cols), min(rows, cols)
    a = jax.random.normal(key, (n, m), dtype=jnp.float32)
    q, r = jnp.linalg.qr(a)
    q = q * jnp.sign(jnp.diag(r))[None, :]
    if rows < cols:
        q = q.T
    return q


def init_bilstm_params(key, input_size, hidden_size, num_layers):
    """LSTMCell weights (orthogonal init, zero biases), pre-padded, gate-
    reordered to (i,f,o,g) and transposed to lane-dense (Din_pad, 4*Hp) /
    (Hp, 4*Hp) bf16 layouts, stacked over the two directions."""
    h = hidden_size
    hp = _round_up(h, 128)
    params = []
    din_real = input_size
    for layer_idx in range(num_layers):
        wih_dirs, whh_dirs, bias_dirs = [], [], []
        for _ in range(2):                            # forward, backward
            key, k1, k2 = jax.random.split(key, 3)
            w_ih = orthogonal(k1, 4 * h, din_real)    # (4H, Din)
            w_hh = orthogonal(k2, 4 * h, h)           # (4H, H)

            wih_t = w_ih.T                            # (Din, 4H)
            if layer_idx > 0:
                # Layers >= 1 consume the padded (2*Hp) layer output:
                # fwd features live in rows [0:H], bwd in rows [Hp:Hp+H].
                buf = jnp.zeros((2 * hp, 4 * h), jnp.float32)
                buf = buf.at[:h].set(wih_t[:h])
                buf = buf.at[hp:hp + h].set(wih_t[h:2 * h])
                wih_t = buf
            wih_t = _prep_gate_cols(wih_t, h, hp)     # (Din_pad, 4Hp)

            whh_t = jnp.zeros((hp, 4 * h), jnp.float32).at[:h].set(w_hh.T)
            whh_t = _prep_gate_cols(whh_t, h, hp)     # (Hp, 4Hp)

            bias = jnp.zeros((4 * hp,), jnp.float32)  # b_ih + b_hh = 0

            wih_dirs.append(wih_t.astype(jnp.bfloat16))
            whh_dirs.append(whh_t.astype(jnp.bfloat16))
            bias_dirs.append(bias)
        params.append({"wih": jnp.stack(wih_dirs),    # (2, Din_pad, 4Hp)
                       "whh": jnp.stack(whh_dirs),    # (2, Hp, 4Hp)
                       "bias": jnp.stack(bias_dirs)}) # (2, 4Hp)
        din_real = 2 * h
    return params


def bilstm_forward(x_pad, lengths, params, *, hidden_size, time_chunk=16):
    """x_pad: (T, B, D) time-major padded input (rows zeroed past lengths),
    lengths: (B,) int32 sorted descending (PackedSequence assumption)."""
    # TODO(synk): training-mode SharedDropout masks are not implemented
    # (module evaluated with training=False / dropout=0).
    t, b, _ = x_pad.shape
    h = hidden_size
    hp = _round_up(h, 128)
    bp = _round_up(b, 16)          # 16-row multiple: clean bf16 MXU LHS tiles
    time_chunk = _cap_time_chunk(time_chunk, bp, hp)
    t_pad = _round_up(t, time_chunk)

    x = jnp.pad(x_pad, ((0, t_pad - t), (0, bp - b), (0, 0))).astype(jnp.bfloat16)
    t_idx = jnp.arange(t_pad, dtype=jnp.int32)
    batch_sizes = jnp.sum(
        t_idx[:, None] < lengths[None, :].astype(jnp.int32), axis=1
    ).astype(jnp.int32)                                       # (T_pad,)

    h_n, c_n = [], []
    for layer in params:
        wih, whh, bias = layer["wih"], layer["whh"], layer["bias"]
        din_l = wih.shape[1]
        # Hoisted input projection: one batched MXU matmul over both
        # directions, bias folded into the same epilogue, single bf16 write.
        xf = x.reshape(t_pad * bp, din_l)
        gx = jnp.einsum('nd,zdg->zng', xf, wih,
                        preferred_element_type=jnp.float32)   # (2,T*Bp,4Hp)
        gates_x = (gx + bias[:, None, :]).astype(jnp.bfloat16) \
            .reshape(2, t_pad, bp, 4 * hp)

        out, hN, cN = bilstm_layer(gates_x, whh, batch_sizes,
                                   time_chunk=time_chunk)
        x = out                                               # (T_pad,Bp,2Hp) bf16
        h_n.append(hN[:, :b, :h])
        c_n.append(cN[:, :b, :h])

    # Un-pad: real features of the last layer are cols [0:H] and [Hp:Hp+H].
    out = jnp.concatenate((x[:t, :b, :h], x[:t, :b, hp:hp + h]),
                          axis=-1).astype(jnp.float32)
    h_n = jnp.concatenate(h_n, axis=0)                        # (2L, B, H)
    c_n = jnp.concatenate(c_n, axis=0)
    return out, (h_n, c_n)


if __name__ == "__main__":
    key = jax.random.PRNGKey(0)
    B, T, D, H, L = 4, 16, 16, 32, 2
    TIME_CHUNK = 8                               # -> 2 time chunks per direction
    lengths = jnp.array([16, 12, 9, 5], dtype=jnp.int32)   # sorted, descending
    batch_sizes_py = [int((lengths >= (t + 1)).sum()) for t in range(T)]

    key, kx, kp = jax.random.split(key, 3)
    x_pad = jax.random.normal(kx, (T, B, D), dtype=jnp.float32)
    valid = (jnp.arange(T)[:, None] < lengths[None, :]).astype(jnp.float32)
    x_pad = x_pad * valid[:, :, None]            # padded packed data

    params = init_bilstm_params(kp, D, H, L)

    fwd = jax.jit(functools.partial(bilstm_forward, hidden_size=H,
                                    time_chunk=TIME_CHUNK))
    out_pad, (h_n, c_n) = fwd(x_pad, lengths, params)

    # Re-pack the output like PackedSequence.data: (sum(batch_sizes), 2H).
    packed = jnp.concatenate(
        [out_pad[t, :batch_sizes_py[t]] for t in range(T)], axis=0)
    jax.block_until_ready((packed, h_n, c_n))

    assert packed.shape == (sum(batch_sizes_py), 2 * H)
    assert h_n.shape == (2 * L, B, H)
    assert c_n.shape == (2 * L, B, H)
    assert bool(jnp.all(jnp.isfinite(packed)))
    assert bool(jnp.all(jnp.isfinite(h_n))) and bool(jnp.all(jnp.isfinite(c_n)))
    print("KERNEL_OK")
</pallas_src>

<mosaic_0001>
module attributes {stable_mosaic.version = 11 : i64} {
  func.func @kernel(%arg0: i32, %arg1: i32, %arg2: memref<16xi32, #tpu.memory_space<smem>>, %arg3: memref<1x8x16x512xbf16, #tpu.memory_space<vmem>>, %arg4: memref<1x128x512xbf16, #tpu.memory_space<vmem>>, %arg5: memref<8x16x128xbf16, #tpu.memory_space<vmem>>, %arg6: memref<1x16x128xf32, #tpu.memory_space<vmem>>, %arg7: memref<1x16x128xf32, #tpu.memory_space<vmem>>, %arg8: memref<16x128xf32, #tpu.memory_space<vmem>>, %arg9: memref<16x128xf32, #tpu.memory_space<vmem>>) attributes {dimension_semantics = [#tpu.dimension_semantics<parallel>, #tpu.dimension_semantics<arbitrary>], iteration_bounds = array<i64: 2, 2>, scalar_prefetch = 1 : i64, scratch_operands = 2 : i64, tpu.core_type = #tpu.core_type<tc>, window_params = [{transform_indices = @transform_0, window_bounds = array<i64: 1, 8, 16, 512>}, {transform_indices = @transform_1, window_bounds = array<i64: 1, 128, 512>}, {transform_indices = @transform_2, window_bounds = array<i64: 8, 16, 128>}, {transform_indices = @transform_3, window_bounds = array<i64: 1, 16, 128>}, {transform_indices = @transform_4, window_bounds = array<i64: 1, 16, 128>}]} {
    %c0_i32 = arith.constant 0 : i32
    %0 = arith.cmpi eq, %arg1, %c0_i32 : i32
    %1 = arith.extui %0 : i1 to i32
    %c0_i32_0 = arith.constant 0 : i32
    %2 = arith.cmpi ne, %1, %c0_i32_0 : i32
    scf.if %2 {
      %cst = arith.constant 0.000000e+00 : f32
      %15 = vector.broadcast %cst : f32 to vector<16x128xf32>
      %c0_8 = arith.constant 0 : index
      %c0_9 = arith.constant 0 : index
      %16 = vector.load %arg8[%c0_8, %c0_9] : memref<16x128xf32, #tpu.memory_space<vmem>>, vector<16x128xf32>
      tpu.vector_store %arg8[%c0_8, %c0_9], %15 {strides = array<i32>} : memref<16x128xf32, #tpu.memory_space<vmem>>, vector<16x128xf32>,
      %cst_10 = arith.constant 0.000000e+00 : f32
      %17 = vector.broadcast %cst_10 : f32 to vector<16x128xf32>
      %c0_11 = arith.constant 0 : index
      %c0_12 = arith.constant 0 : index
      %18 = vector.load %arg9[%c0_11, %c0_12] : memref<16x128xf32, #tpu.memory_space<vmem>>, vector<16x128xf32>
      tpu.vector_store %arg9[%c0_11, %c0_12], %17 {strides = array<i32>} : memref<16x128xf32, #tpu.memory_space<vmem>>, vector<16x128xf32>,
    } else {
    }
    %c0 = arith.constant 0 : index
    %c0_1 = arith.constant 0 : index
    %c0_2 = arith.constant 0 : index
    %3 = vector.load %arg4[%c0, %c0_1, %c0_2] : memref<1x128x512xbf16, #tpu.memory_space<vmem>>, vector<1x128x512xbf16>
    %4 = vector.shape_cast %3 : vector<1x128x512xbf16> to vector<128x512xbf16>
    %5 = tpu.iota {dimensions = array<i32: 0>} : vector<16x128xi32>
    %c0_i32_3 = arith.constant 0 : i32
    %6 = arith.cmpi eq, %arg0, %c0_i32_3 : i32
    %7 = arith.extui %6 : i1 to i32
    %c0_i32_4 = arith.constant 0 : i32
    %8 = arith.cmpi ne, %7, %c0_i32_4 : i32
    scf.if %8 {
      %c8_i32 = arith.constant 8 : i32
      %15 = arith.muli %arg1, %c8_i32 : i32
      %c0_8 = arith.constant 0 : index
      %c0_9 = arith.constant 0 : index
      %16 = vector.load %arg8[%c0_8, %c0_9] : memref<16x128xf32, #tpu.memory_space<vmem>>, vector<16x128xf32>
      %c0_10 = arith.constant 0 : index
      %c0_11 = arith.constant 0 : index
      %17 = vector.load %arg9[%c0_10, %c0_11] : memref<16x128xf32, #tpu.memory_space<vmem>>, vector<16x128xf32>
      %c0_12 = arith.constant 0 : index
      %c0_13 = arith.constant 0 : index
      %c0_14 = arith.constant 0 : index
      %c0_15 = arith.constant 0 : index
      %18 = vector.load %arg3[%c0_12, %c0_13, %c0_14, %c0_15] : memref<1x8x16x512xbf16, #tpu.memory_space<vmem>>, vector<1x1x16x512xbf16>
      %19 = vector.shape_cast %18 : vector<1x1x16x512xbf16> to vector<16x512xbf16>
      %20 = arith.extf %19 : vector<16x512xbf16> to vector<16x512xf32>
      %21 = arith.truncf %16 : vector<16x128xf32> to vector<16x128xbf16>
      %cst = arith.constant dense<0.000000e+00> : vector<16x512xf32>
      %22 = tpu.matmul %21, %4, %cst {dimension_numbers = #tpu.dot_dimension_numbers<[1], [0], [0], [1], [0, 0, 1, 1], [], []>} : vector<16x128xbf16>, vector<128x512xbf16>, vector<16x512xf32> -> vector<16x512xf32>
      %23 = arith.addf %20, %22 : vector<16x512xf32>
      %24 = vector.extract_strided_slice %23 {offsets = [0, 0], sizes = [16, 384], strides = [1, 1]} : vector<16x512xf32> to vector<16x384xf32>
      %25 = arith.negf %24 : vector<16x384xf32>
      %26 = math.exp %25 : vector<16x384xf32>
      %cst_16 = arith.constant 1.000000e+00 : f32
      %27 = vector.broadcast %cst_16 : f32 to vector<16x384xf32>
      %28 = arith.addf %27, %26 : vector<16x384xf32>
      %29 = arith.divf %27, %28 : vector<16x384xf32>
      %30 = vector.extract_strided_slice %29 {offsets = [0, 0], sizes = [16, 128], strides = [1, 1]} : vector<16x384xf32> to vector<16x128xf32>
      %31 = vector.extract_strided_slice %29 {offsets = [0, 128], sizes = [16, 128], strides = [1, 1]} : vector<16x384xf32> to vector<16x128xf32>
      %32 = vector.extract_strided_slice %29 {offsets = [0, 256], sizes = [16, 128], strides = [1, 1]} : vector<16x384xf32> to vector<16x128xf32>
      %33 = vector.extract_strided_slice %23 {offsets = [0, 384], sizes = [16, 128], strides = [1, 1]} : vector<16x512xf32> to vector<16x128xf32>
      %34 = math.tanh %33 : vector<16x128xf32>
      %35 = arith.mulf %31, %17 : vector<16x128xf32>
      %36 = arith.mulf %30, %34 : vector<16x128xf32>
      %37 = arith.addf %35, %36 : vector<16x128xf32>
      %38 = math.tanh %37 : vector<16x128xf32>
      %39 = arith.mulf %32, %38 : vector<16x128xf32>
      %c0_i32_17 = arith.constant 0 : i32
      %40 = arith.addi %15, %c0_i32_17 : i32
      %41 = arith.index_cast %40 : i32 to index
      %42 = memref.load %arg2[%41] : memref<16xi32, #tpu.memory_space<smem>>
      %43 = vector.broadcast %42 : i32 to vector<16x128xi32>
      %44 = arith.cmpi slt, %5, %43 : vector<16x128xi32>
      %45 = arith.select %44, %39, %16 : vector<16x128xi1>, vector<16x128xf32>
      %46 = arith.select %44, %37, %17 : vector<16x128xi1>, vector<16x128xf32>
      %47 = arith.truncf %45 : vector<16x128xf32> to vector<16x128xbf16>
      %c0_18 = arith.constant 0 : index
      %c0_19 = arith.constant 0 : index
      %c0_20 = arith.constant 0 : index
      %48 = vector.load %arg5[%c0_18, %c0_19, %c0_20] : memref<8x16x128xbf16, #tpu.memory_space<vmem>>, vector<1x16x128xbf16>
      %49 = vector.shape_cast %48 : vector<1x16x128xbf16> to vector<16x128xbf16>
      %50 = vector.shape_cast %47 : vector<16x128xbf16> to vector<1x16x128xbf16>
      tpu.vector_store %arg5[%c0_18, %c0_19, %c0_20], %50 {strides = array<i32>} : memref<8x16x128xbf16, #tpu.memory_space<vmem>>, vector<1x16x128xbf16>,
      %c0_21 = arith.constant 0 : index
      %c1 = arith.constant 1 : index
      %c0_22 = arith.constant 0 : index
      %c0_23 = arith.constant 0 : index
      %51 = vector.load %arg3[%c0_21, %c1, %c0_22, %c0_23] : memref<1x8x16x512xbf16, #tpu.memory_space<vmem>>, vector<1x1x16x512xbf16>
      %52 = vector.shape_cast %51 : vector<1x1x16x512xbf16> to vector<16x512xbf16>
      %53 = arith.extf %52 : vector<16x512xbf16> to vector<16x512xf32>
      %54 = arith.truncf %45 : vector<16x128xf32> to vector<16x128xbf16>
      %cst_24 = arith.constant dense<0.000000e+00> : vector<16x512xf32>
      %55 = tpu.matmul %54, %4, %cst_24 {dimension_numbers = #tpu.dot_dimension_numbers<[1], [0], [0], [1], [0, 0, 1, 1], [], []>} : vector<16x128xbf16>, vector<128x512xbf16>, vector<16x512xf32> -> vector<16x512xf32>
      %56 = arith.addf %53, %55 : vector<16x512xf32>
      %57 = vector.extract_strided_slice %56 {offsets = [0, 0], sizes = [16, 384], strides = [1, 1]} : vector<16x512xf32> to vector<16x384xf32>
      %58 = arith.negf %57 : vector<16x384xf32>
      %59 = math.exp %58 : vector<16x384xf32>
      %cst_25 = arith.constant 1.000000e+00 : f32
      %60 = vector.broadcast %cst_25 : f32 to vector<16x384xf32>
      %61 = arith.addf %60, %59 : vector<16x384xf32>
      %62 = arith.divf %60, %61 : vector<16x384xf32>
      %63 = vector.extract_strided_slice %62 {offsets = [0, 0], sizes = [16, 128], strides = [1, 1]} : vector<16x384xf32> to vector<16x128xf32>
      %64 = vector.extract_strided_slice %62 {offsets = [0, 128], sizes = [16, 128], strides = [1, 1]} : vector<16x384xf32> to vector<16x128xf32>
      %65 = vector.extract_strided_slice %62 {offsets = [0, 256], sizes = [16, 128], strides = [1, 1]} : vector<16x384xf32> to vector<16x128xf32>
      %66 = vector.extract_strided_slice %56 {offsets = [0, 384], sizes = [16, 128], strides = [1, 1]} : vector<16x512xf32> to vector<16x128xf32>
      %67 = math.tanh %66 : vector<16x128xf32>
      %68 = arith.mulf %64, %46 : vector<16x128xf32>
      %69 = arith.mulf %63, %67 : vector<16x128xf32>
      %70 = arith.addf %68, %69 : vector<16x128xf32>
      %71 = math.tanh %70 : vector<16x128xf32>
      %72 = arith.mulf %65, %71 : vector<16x128xf32>
      %c1_i32_26 = arith.constant 1 : i32
      %73 = arith.addi %15, %c1_i32_26 : i32
      %74 = arith.index_cast %73 : i32 to index
      %75 = memref.load %arg2[%74] : memref<16xi32, #tpu.memory_space<smem>>
      %76 = vector.broadcast %75 : i32 to vector<16x128xi32>
      %77 = arith.cmpi slt, %5, %76 : vector<16x128xi32>
      %78 = arith.select %77, %72, %45 : vector<16x128xi1>, vector<16x128xf32>
      %79 = arith.select %77, %70, %46 : vector<16x128xi1>, vector<16x128xf32>
      %80 = arith.truncf %78 : vector<16x128xf32> to vector<16x128xbf16>
      %c1_27 = arith.constant 1 : index
      %c0_28 = arith.constant 0 : index
      %c0_29 = arith.constant 0 : index
      %81 = vector.load %arg5[%c1_27, %c0_28, %c0_29] : memref<8x16x128xbf16, #tpu.memory_space<vmem>>, vector<1x16x128xbf16>
      %82 = vector.shape_cast %81 : vector<1x16x128xbf16> to vector<16x128xbf16>
      %83 = vector.shape_cast %80 : vector<16x128xbf16> to vector<1x16x128xbf16>
      tpu.vector_store %arg5[%c1_27, %c0_28, %c0_29], %83 {strides = array<i32>} : memref<8x16x128xbf16, #tpu.memory_space<vmem>>, vector<1x16x128xbf16>,
      %c0_30 = arith.constant 0 : index
      %c2 = arith.constant 2 : index
      %c0_31 = arith.constant 0 : index
      %c0_32 = arith.constant 0 : index
      %84 = vector.load %arg3[%c0_30, %c2, %c0_31, %c0_32] : memref<1x8x16x512xbf16, #tpu.memory_space<vmem>>, vector<1x1x16x512xbf16>
      %85 = vector.shape_cast %84 : vector<1x1x16x512xbf16> to vector<16x512xbf16>
      %86 = arith.extf %85 : vector<16x512xbf16> to vector<16x512xf32>
      %87 = arith.truncf %78 : vector<16x128xf32> to vector<16x128xbf16>
      %cst_33 = arith.constant dense<0.000000e+00> : vector<16x512xf32>
      %88 = tpu.matmul %87, %4, %cst_33 {dimension_numbers = #tpu.dot_dimension_numbers<[1], [0], [0], [1], [0, 0, 1, 1], [], []>} : vector<16x128xbf16>, vector<128x512xbf16>, vector<16x512xf32> -> vector<16x512xf32>
      %89 = arith.addf %86, %88 : vector<16x512xf32>
      %90 = vector.extract_strided_slice %89 {offsets = [0, 0], sizes = [16, 384], strides = [1, 1]} : vector<16x512xf32> to vector<16x384xf32>
      %91 = arith.negf %90 : vector<16x384xf32>
      %92 = math.exp %91 : vector<16x384xf32>
      %cst_34 = arith.constant 1.000000e+00 : f32
      %93 = vector.broadcast %cst_34 : f32 to vector<16x384xf32>
      %94 = arith.addf %93, %92 : vector<16x384xf32>
      %95 = arith.divf %93, %94 : vector<16x384xf32>
      %96 = vector.extract_strided_slice %95 {offsets = [0, 0], sizes = [16, 128], strides = [1, 1]} : vector<16x384xf32> to vector<16x128xf32>
      %97 = vector.extract_strided_slice %95 {offsets = [0, 128], sizes = [16, 128], strides = [1, 1]} : vector<16x384xf32> to vector<16x128xf32>
      %98 = vector.extract_strided_slice %95 {offsets = [0, 256], sizes = [16, 128], strides = [1, 1]} : vector<16x384xf32> to vector<16x128xf32>
      %99 = vector.extract_strided_slice %89 {offsets = [0, 384], sizes = [16, 128], strides = [1, 1]} : vector<16x512xf32> to vector<16x128xf32>
      %100 = math.tanh %99 : vector<16x128xf32>
      %101 = arith.mulf %97, %79 : vector<16x128xf32>
      %102 = arith.mulf %96, %100 : vector<16x128xf32>
      %103 = arith.addf %101, %102 : vector<16x128xf32>
      %104 = math.tanh %103 : vector<16x128xf32>
      %105 = arith.mulf %98, %104 : vector<16x128xf32>
      %c2_i32 = arith.constant 2 : i32
      %106 = arith.addi %15, %c2_i32 : i32
      %107 = arith.index_cast %106 : i32 to index
      %108 = memref.load %arg2[%107] : memref<16xi32, #tpu.memory_space<smem>>
      %109 = vector.broadcast %108 : i32 to vector<16x128xi32>
      %110 = arith.cmpi slt, %5, %109 : vector<16x128xi32>
      %111 = arith.select %110, %105, %78 : vector<16x128xi1>, vector<16x128xf32>
      %112 = arith.select %110, %103, %79 : vector<16x128xi1>, vector<16x128xf32>
      %113 = arith.truncf %111 : vector<16x128xf32> to vector<16x128xbf16>
      %c2_35 = arith.constant 2 : index
      %c0_36 = arith.constant 0 : index
      %c0_37 = arith.constant 0 : index
      %114 = vector.load %arg5[%c2_35, %c0_36, %c0_37] : memref<8x16x128xbf16, #tpu.memory_space<vmem>>, vector<1x16x128xbf16>
      %115 = vector.shape_cast %114 : vector<1x16x128xbf16> to vector<16x128xbf16>
      %116 = vector.shape_cast %113 : vector<16x128xbf16> to vector<1x16x128xbf16>
      tpu.vector_store %arg5[%c2_35, %c0_36, %c0_37], %116 {strides = array<i32>} : memref<8x16x128xbf16, #tpu.memory_space<vmem>>, vector<1x16x128xbf16>,
      %c0_38 = arith.constant 0 : index
      %c3 = arith.constant 3 : index
      %c0_39 = arith.constant 0 : index
      %c0_40 = arith.constant 0 : index
      %117 = vector.load %arg3[%c0_38, %c3, %c0_39, %c0_40] : memref<1x8x16x512xbf16, #tpu.memory_space<vmem>>, vector<1x1x16x512xbf16>
      %118 = vector.shape_cast %117 : vector<1x1x16x512xbf16> to vector<16x512xbf16>
      %119 = arith.extf %118 : vector<16x512xbf16> to vector<16x512xf32>
      %120 = arith.truncf %111 : vector<16x128xf32> to vector<16x128xbf16>
      %cst_41 = arith.constant dense<0.000000e+00> : vector<16x512xf32>
      %121 = tpu.matmul %120, %4, %cst_41 {dimension_numbers = #tpu.dot_dimension_numbers<[1], [0], [0], [1], [0, 0, 1, 1], [], []>} : vector<16x128xbf16>, vector<128x512xbf16>, vector<16x512xf32> -> vector<16x512xf32>
      %122 = arith.addf %119, %121 : vector<16x512xf32>
      %123 = vector.extract_strided_slice %122 {offsets = [0, 0], sizes = [16, 384], strides = [1, 1]} : vector<16x512xf32> to vector<16x384xf32>
      %124 = arith.negf %123 : vector<16x384xf32>
      %125 = math.exp %124 : vector<16x384xf32>
      %cst_42 = arith.constant 1.000000e+00 : f32
      %126 = vector.broadcast %cst_42 : f32 to vector<16x384xf32>
      %127 = arith.addf %126, %125 : vector<16x384xf32>
      %128 = arith.divf %126, %127 : vector<16x384xf32>
      %129 = vector.extract_strided_slice %128 {offsets = [0, 0], sizes = [16, 128], strides = [1, 1]} : vector<16x384xf32> to vector<16x128xf32>
      %130 = vector.extract_strided_slice %128 {offsets = [0, 128], sizes = [16, 128], strides = [1, 1]} : vector<16x384xf32> to vector<16x128xf32>
      %131 = vector.extract_strided_slice %128 {offsets = [0, 256], sizes = [16, 128], strides = [1, 1]} : vector<16x384xf32> to vector<16x128xf32>
      %132 = vector.extract_strided_slice %122 {offsets = [0, 384], sizes = [16, 128], strides = [1, 1]} : vector<16x512xf32> to vector<16x128xf32>
      %133 = math.tanh %132 : vector<16x128xf32>
      %134 = arith.mulf %130, %112 : vector<16x128xf32>
      %135 = arith.mulf %129, %133 : vector<16x128xf32>
      %136 = arith.addf %134, %135 : vector<16x128xf32>
      %137 = math.tanh %136 : vector<16x128xf32>
      %138 = arith.mulf %131, %137 : vector<16x128xf32>
      %c3_i32 = arith.constant 3 : i32
      %139 = arith.addi %15, %c3_i32 : i32
      %140 = arith.index_cast %139 : i32 to index
      %141 = memref.load %arg2[%140] : memref<16xi32, #tpu.memory_space<smem>>
      %142 = vector.broadcast %141 : i32 to vector<16x128xi32>
      %143 = arith.cmpi slt, %5, %142 : vector<16x128xi32>
      %144 = arith.select %143, %138, %111 : vector<16x128xi1>, vector<16x128xf32>
      %145 = arith.select %143, %136, %112 : vector<16x128xi1>, vector<16x128xf32>
      %146 = arith.truncf %144 : vector<16x128xf32> to vector<16x128xbf16>
      %c3_43 = arith.constant 3 : index
      %c0_44 = arith.constant 0 : index
      %c0_45 = arith.constant 0 : index
      %147 = vector.load %arg5[%c3_43, %c0_44, %c0_45] : memref<8x16x128xbf16, #tpu.memory_space<vmem>>, vector<1x16x128xbf16>
      %148 = vector.shape_cast %147 : vector<1x16x128xbf16> to vector<16x128xbf16>
      %149 = vector.shape_cast %146 : vector<16x128xbf16> to vector<1x16x128xbf16>
      tpu.vector_store %arg5[%c3_43, %c0_44, %c0_45], %149 {strides = array<i32>} : memref<8x16x128xbf16, #tpu.memory_space<vmem>>, vector<1x16x128xbf16>,
      %c0_46 = arith.constant 0 : index
      %c4 = arith.constant 4 : index
      %c0_47 = arith.constant 0 : index
      %c0_48 = arith.constant 0 : index
      %150 = vector.load %arg3[%c0_46, %c4, %c0_47, %c0_48] : memref<1x8x16x512xbf16, #tpu.memory_space<vmem>>, vector<1x1x16x512xbf16>
      %151 = vector.shape_cast %150 : vector<1x1x16x512xbf16> to vector<16x512xbf16>
      %152 = arith.extf %151 : vector<16x512xbf16> to vector<16x512xf32>
      %153 = arith.truncf %144 : vector<16x128xf32> to vector<16x128xbf16>
      %cst_49 = arith.constant dense<0.000000e+00> : vector<16x512xf32>
      %154 = tpu.matmul %153, %4, %cst_49 {dimension_numbers = #tpu.dot_dimension_numbers<[1], [0], [0], [1], [0, 0, 1, 1], [], []>} : vector<16x128xbf16>, vector<128x512xbf16>, vector<16x512xf32> -> vector<16x512xf32>
      %155 = arith.addf %152, %154 : vector<16x512xf32>
      %156 = vector.extract_strided_slice %155 {offsets = [0, 0], sizes = [16, 384], strides = [1, 1]} : vector<16x512xf32> to vector<16x384xf32>
      %157 = arith.negf %156 : vector<16x384xf32>
      %158 = math.exp %157 : vector<16x384xf32>
      %cst_50 = arith.constant 1.000000e+00 : f32
      %159 = vector.broadcast %cst_50 : f32 to vector<16x384xf32>
      %160 = arith.addf %159, %158 : vector<16x384xf32>
      %161 = arith.divf %159, %160 : vector<16x384xf32>
      %162 = vector.extract_strided_slice %161 {offsets = [0, 0], sizes = [16, 128], strides = [1, 1]} : vector<16x384xf32> to vector<16x128xf32>
      %163 = vector.extract_strided_slice %161 {offsets = [0, 128], sizes = [16, 128], strides = [1, 1]} : vector<16x384xf32> to vector<16x128xf32>
      %164 = vector.extract_strided_slice %161 {offsets = [0, 256], sizes = [16, 128], strides = [1, 1]} : vector<16x384xf32> to vector<16x128xf32>
      %165 = vector.extract_strided_slice %155 {offsets = [0, 384], sizes = [16, 128], strides = [1, 1]} : vector<16x512xf32> to vector<16x128xf32>
      %166 = math.tanh %165 : vector<16x128xf32>
      %167 = arith.mulf %163, %145 : vector<16x128xf32>
      %168 = arith.mulf %162, %166 : vector<16x128xf32>
      %169 = arith.addf %167, %168 : vector<16x128xf32>
      %170 = math.tanh %169 : vector<16x128xf32>
      %171 = arith.mulf %164, %170 : vector<16x128xf32>
      %c4_i32 = arith.constant 4 : i32
      %172 = arith.addi %15, %c4_i32 : i32
      %173 = arith.index_cast %172 : i32 to index
      %174 = memref.load %arg2[%173] : memref<16xi32, #tpu.memory_space<smem>>
      %175 = vector.broadcast %174 : i32 to vector<16x128xi32>
      %176 = arith.cmpi slt, %5, %175 : vector<16x128xi32>
      %177 = arith.select %176, %171, %144 : vector<16x128xi1>, vector<16x128xf32>
      %178 = arith.select %176, %169, %145 : vector<16x128xi1>, vector<16x128xf32>
      %179 = arith.truncf %177 : vector<16x128xf32> to vector<16x128xbf16>
      %c4_51 = arith.constant 4 : index
      %c0_52 = arith.constant 0 : index
      %c0_53 = arith.constant 0 : index
      %180 = vector.load %arg5[%c4_51, %c0_52, %c0_53] : memref<8x16x128xbf16, #tpu.memory_space<vmem>>, vector<1x16x128xbf16>
      %181 = vector.shape_cast %180 : vector<1x16x128xbf16> to vector<16x128xbf16>
      %182 = vector.shape_cast %179 : vector<16x128xbf16> to vector<1x16x128xbf16>
      tpu.vector_store %arg5[%c4_51, %c0_52, %c0_53], %182 {strides = array<i32>} : memref<8x16x128xbf16, #tpu.memory_space<vmem>>, vector<1x16x128xbf16>,
      %c0_54 = arith.constant 0 : index
      %c5 = arith.constant 5 : index
      %c0_55 = arith.constant 0 : index
      %c0_56 = arith.constant 0 : index
      %183 = vector.load %arg3[%c0_54, %c5, %c0_55, %c0_56] : memref<1x8x16x512xbf16, #tpu.memory_space<vmem>>, vector<1x1x16x512xbf16>
      %184 = vector.shape_cast %183 : vector<1x1x16x512xbf16> to vector<16x512xbf16>
      %185 = arith.extf %184 : vector<16x512xbf16> to vector<16x512xf32>
      %186 = arith.truncf %177 : vector<16x128xf32> to vector<16x128xbf16>
      %cst_57 = arith.constant dense<0.000000e+00> : vector<16x512xf32>
      %187 = tpu.matmul %186, %4, %cst_57 {dimension_numbers = #tpu.dot_dimension_numbers<[1], [0], [0], [1], [0, 0, 1, 1], [], []>} : vector<16x128xbf16>, vector<128x512xbf16>, vector<16x512xf32> -> vector<16x512xf32>
      %188 = arith.addf %185, %187 : vector<16x512xf32>
      %189 = vector.extract_strided_slice %188 {offsets = [0, 0], sizes = [16, 384], strides = [1, 1]} : vector<16x512xf32> to vector<16x384xf32>
      %190 = arith.negf %189 : vector<16x384xf32>
      %191 = math.exp %190 : vector<16x384xf32>
      %cst_58 = arith.constant 1.000000e+00 : f32
      %192 = vector.broadcast %cst_58 : f32 to vector<16x384xf32>
      %193 = arith.addf %192, %191 : vector<16x384xf32>
      %194 = arith.divf %192, %193 : vector<16x384xf32>
      %195 = vector.extract_strided_slice %194 {offsets = [0, 0], sizes = [16, 128], strides = [1, 1]} : vector<16x384xf32> to vector<16x128xf32>
      %196 = vector.extract_strided_slice %194 {offsets = [0, 128], sizes = [16, 128], strides = [1, 1]} : vector<16x384xf32> to vector<16x128xf32>
      %197 = vector.extract_strided_slice %194 {offsets = [0, 256], sizes = [16, 128], strides = [1, 1]} : vector<16x384xf32> to vector<16x128xf32>
      %198 = vector.extract_strided_slice %188 {offsets = [0, 384], sizes = [16, 128], strides = [1, 1]} : vector<16x512xf32> to vector<16x128xf32>
      %199 = math.tanh %198 : vector<16x128xf32>
      %200 = arith.mulf %196, %178 : vector<16x128xf32>
      %201 = arith.mulf %195, %199 : vector<16x128xf32>
      %202 = arith.addf %200, %201 : vector<16x128xf32>
      %203 = math.tanh %202 : vector<16x128xf32>
      %204 = arith.mulf %197, %203 : vector<16x128xf32>
      %c5_i32 = arith.constant 5 : i32
      %205 = arith.addi %15, %c5_i32 : i32
      %206 = arith.index_cast %205 : i32 to index
      %207 = memref.load %arg2[%206] : memref<16xi32, #tpu.memory_space<smem>>
      %208 = vector.broadcast %207 : i32 to vector<16x128xi32>
      %209 = arith.cmpi slt, %5, %208 : vector<16x128xi32>
      %210 = arith.select %209, %204, %177 : vector<16x128xi1>, vector<16x128xf32>
      %211 = arith.select %209, %202, %178 : vector<16x128xi1>, vector<16x128xf32>
      %212 = arith.truncf %210 : vector<16x128xf32> to vector<16x128xbf16>
      %c5_59 = arith.constant 5 : index
      %c0_60 = arith.constant 0 : index
      %c0_61 = arith.constant 0 : index
      %213 = vector.load %arg5[%c5_59, %c0_60, %c0_61] : memref<8x16x128xbf16, #tpu.memory_space<vmem>>, vector<1x16x128xbf16>
      %214 = vector.shape_cast %213 : vector<1x16x128xbf16> to vector<16x128xbf16>
      %215 = vector.shape_cast %212 : vector<16x128xbf16> to vector<1x16x128xbf16>
      tpu.vector_store %arg5[%c5_59, %c0_60, %c0_61], %215 {strides = array<i32>} : memref<8x16x128xbf16, #tpu.memory_space<vmem>>, vector<1x16x128xbf16>,
      %c0_62 = arith.constant 0 : index
      %c6 = arith.constant 6 : index
      %c0_63 = arith.constant 0 : index
      %c0_64 = arith.constant 0 : index
      %216 = vector.load %arg3[%c0_62, %c6, %c0_63, %c0_64] : memref<1x8x16x512xbf16, #tpu.memory_space<vmem>>, vector<1x1x16x512xbf16>
      %217 = vector.shape_cast %216 : vector<1x1x16x512xbf16> to vector<16x512xbf16>
      %218 = arith.extf %217 : vector<16x512xbf16> to vector<16x512xf32>
      %219 = arith.truncf %210 : vector<16x128xf32> to vector<16x128xbf16>
      %cst_65 = arith.constant dense<0.000000e+00> : vector<16x512xf32>
      %220 = tpu.matmul %219, %4, %cst_65 {dimension_numbers = #tpu.dot_dimension_numbers<[1], [0], [0], [1], [0, 0, 1, 1], [], []>} : vector<16x128xbf16>, vector<128x512xbf16>, vector<16x512xf32> -> vector<16x512xf32>
      %221 = arith.addf %218, %220 : vector<16x512xf32>
      %222 = vector.extract_strided_slice %221 {offsets = [0, 0], sizes = [16, 384], strides = [1, 1]} : vector<16x512xf32> to vector<16x384xf32>
      %223 = arith.negf %222 : vector<16x384xf32>
      %224 = math.exp %223 : vector<16x384xf32>
      %cst_66 = arith.constant 1.000000e+00 : f32
      %225 = vector.broadcast %cst_66 : f32 to vector<16x384xf32>
      %226 = arith.addf %225, %224 : vector<16x384xf32>
      %227 = arith.divf %225, %226 : vector<16x384xf32>
      %228 = vector.extract_strided_slice %227 {offsets = [0, 0], sizes = [16, 128], strides = [1, 1]} : vector<16x384xf32> to vector<16x128xf32>
      %229 = vector.extract_strided_slice %227 {offsets = [0, 128], sizes = [16, 128], strides = [1, 1]} : vector<16x384xf32> to vector<16x128xf32>
      %230 = vector.extract_strided_slice %227 {offsets = [0, 256], sizes = [16, 128], strides = [1, 1]} : vector<16x384xf32> to vector<16x128xf32>
      %231 = vector.extract_strided_slice %221 {offsets = [0, 384], sizes = [16, 128], strides = [1, 1]} : vector<16x512xf32> to vector<16x128xf32>
      %232 = math.tanh %231 : vector<16x128xf32>
      %233 = arith.mulf %229, %211 : vector<16x128xf32>
      %234 = arith.mulf %228, %232 : vector<16x128xf32>
      %235 = arith.addf %233, %234 : vector<16x128xf32>
      %236 = math.tanh %235 : vector<16x128xf32>
      %237 = arith.mulf %230, %236 : vector<16x128xf32>
      %c6_i32 = arith.constant 6 : i32
      %238 = arith.addi %15, %c6_i32 : i32
      %239 = arith.index_cast %238 : i32 to index
      %240 = memref.load %arg2[%239] : memref<16xi32, #tpu.memory_space<smem>>
      %241 = vector.broadcast %240 : i32 to vector<16x128xi32>
      %242 = arith.cmpi slt, %5, %241 : vector<16x128xi32>
      %243 = arith.select %242, %237, %210 : vector<16x128xi1>, vector<16x128xf32>
      %244 = arith.select %242, %235, %211 : vector<16x128xi1>, vector<16x128xf32>
      %245 = arith.truncf %243 : vector<16x128xf32> to vector<16x128xbf16>
      %c6_67 = arith.constant 6 : index
      %c0_68 = arith.constant 0 : index
      %c0_69 = arith.constant 0 : index
      %246 = vector.load %arg5[%c6_67, %c0_68, %c0_69] : memref<8x16x128xbf16, #tpu.memory_space<vmem>>, vector<1x16x128xbf16>
      %247 = vector.shape_cast %246 : vector<1x16x128xbf16> to vector<16x128xbf16>
      %248 = vector.shape_cast %245 : vector<16x128xbf16> to vector<1x16x128xbf16>
      tpu.vector_store %arg5[%c6_67, %c0_68, %c0_69], %248 {strides = array<i32>} : memref<8x16x128xbf16, #tpu.memory_space<vmem>>, vector<1x16x128xbf16>,
      %c0_70 = arith.constant 0 : index
      %c7 = arith.constant 7 : index
      %c0_71 = arith.constant 0 : index
      %c0_72 = arith.constant 0 : index
      %249 = vector.load %arg3[%c0_70, %c7, %c0_71, %c0_72] : memref<1x8x16x512xbf16, #tpu.memory_space<vmem>>, vector<1x1x16x512xbf16>
      %250 = vector.shape_cast %249 : vector<1x1x16x512xbf16> to vector<16x512xbf16>
      %251 = arith.extf %250 : vector<16x512xbf16> to vector<16x512xf32>
      %252 = arith.truncf %243 : vector<16x128xf32> to vector<16x128xbf16>
      %cst_73 = arith.constant dense<0.000000e+00> : vector<16x512xf32>
      %253 = tpu.matmul %252, %4, %cst_73 {dimension_numbers = #tpu.dot_dimension_numbers<[1], [0], [0], [1], [0, 0, 1, 1], [], []>} : vector<16x128xbf16>, vector<128x512xbf16>, vector<16x512xf32> -> vector<16x512xf32>
      %254 = arith.addf %251, %253 : vector<16x512xf32>
      %255 = vector.extract_strided_slice %254 {offsets = [0, 0], sizes = [16, 384], strides = [1, 1]} : vector<16x512xf32> to vector<16x384xf32>
      %256 = arith.negf %255 : vector<16x384xf32>
      %257 = math.exp %256 : vector<16x384xf32>
      %cst_74 = arith.constant 1.000000e+00 : f32
      %258 = vector.broadcast %cst_74 : f32 to vector<16x384xf32>
      %259 = arith.addf %258, %257 : vector<16x384xf32>
      %260 = arith.divf %258, %259 : vector<16x384xf32>
      %261 = vector.extract_strided_slice %260 {offsets = [0, 0], sizes = [16, 128], strides = [1, 1]} : vector<16x384xf32> to vector<16x128xf32>
      %262 = vector.extract_strided_slice %260 {offsets = [0, 128], sizes = [16, 128], strides = [1, 1]} : vector<16x384xf32> to vector<16x128xf32>
      %263 = vector.extract_strided_slice %260 {offsets = [0, 256], sizes = [16, 128], strides = [1, 1]} : vector<16x384xf32> to vector<16x128xf32>
      %264 = vector.extract_strided_slice %254 {offsets = [0, 384], sizes = [16, 128], strides = [1, 1]} : vector<16x512xf32> to vector<16x128xf32>
      %265 = math.tanh %264 : vector<16x128xf32>
      %266 = arith.mulf %262, %244 : vector<16x128xf32>
      %267 = arith.mulf %261, %265 : vector<16x128xf32>
      %268 = arith.addf %266, %267 : vector<16x128xf32>
      %269 = math.tanh %268 : vector<16x128xf32>
      %270 = arith.mulf %263, %269 : vector<16x128xf32>
      %c7_i32 = arith.constant 7 : i32
      %271 = arith.addi %15, %c7_i32 : i32
      %272 = arith.index_cast %271 : i32 to index
      %273 = memref.load %arg2[%272] : memref<16xi32, #tpu.memory_space<smem>>
      %274 = vector.broadcast %273 : i32 to vector<16x128xi32>
      %275 = arith.cmpi slt, %5, %274 : vector<16x128xi32>
      %276 = arith.select %275, %270, %243 : vector<16x128xi1>, vector<16x128xf32>
      %277 = arith.select %275, %268, %244 : vector<16x128xi1>, vector<16x128xf32>
      %278 = arith.truncf %276 : vector<16x128xf32> to vector<16x128xbf16>
      %c7_75 = arith.constant 7 : index
      %c0_76 = arith.constant 0 : index
      %c0_77 = arith.constant 0 : index
      %279 = vector.load %arg5[%c7_75, %c0_76, %c0_77] : memref<8x16x128xbf16, #tpu.memory_space<vmem>>, vector<1x16x128xbf16>
      %280 = vector.shape_cast %279 : vector<1x16x128xbf16> to vector<16x128xbf16>
      %281 = vector.shape_cast %278 : vector<16x128xbf16> to vector<1x16x128xbf16>
      tpu.vector_store %arg5[%c7_75, %c0_76, %c0_77], %281 {strides = array<i32>} : memref<8x16x128xbf16, #tpu.memory_space<vmem>>, vector<1x16x128xbf16>,
      %c0_78 = arith.constant 0 : index
      %c0_79 = arith.constant 0 : index
      %282 = vector.load %arg8[%c0_78, %c0_79] : memref<16x128xf32, #tpu.memory_space<vmem>>, vector<16x128xf32>
      tpu.vector_store %arg8[%c0_78, %c0_79], %276 {strides = array<i32>} : memref<16x128xf32, #tpu.memory_space<vmem>>, vector<16x128xf32>,
      %c0_80 = arith.constant 0 : index
      %c0_81 = arith.constant 0 : index
      %283 = vector.load %arg9[%c0_80, %c0_81] : memref<16x128xf32, #tpu.memory_space<vmem>>, vector<16x128xf32>
      tpu.vector_store %arg9[%c0_80, %c0_81], %277 {strides = array<i32>} : memref<16x128xf32, #tpu.memory_space<vmem>>, vector<16x128xf32>,
    } else {
    }
    %c0_i32_5 = arith.constant 0 : i32
    %9 = arith.cmpi ne, %arg0, %c0_i32_5 : i32
    %10 = arith.extui %9 : i1 to i32
    %c0_i32_6 = arith.constant 0 : i32
    %11 = arith.cmpi ne, %10, %c0_i32_6 : i32
    scf.if %11 {
      %c1_i32_8 = arith.constant 1 : i32
      %15 = arith.subi %c1_i32_8, %arg1 : i32
      %c8_i32 = arith.constant 8 : i32
      %16 = arith.muli %15, %c8_i32 : i32
      %c0_9 = arith.constant 0 : index
      %c0_10 = arith.constant 0 : index
      %17 = vector.load %arg8[%c0_9, %c0_10] : memref<16x128xf32, #tpu.memory_space<vmem>>, vector<16x128xf32>
      %c0_11 = arith.constant 0 : index
      %c0_12 = arith.constant 0 : index
      %18 = vector.load %arg9[%c0_11, %c0_12] : memref<16x128xf32, #tpu.memory_space<vmem>>, vector<16x128xf32>
      %c0_13 = arith.constant 0 : index
      %c7 = arith.constant 7 : index
      %c0_14 = arith.constant 0 : index
      %c0_15 = arith.constant 0 : index
      %19 = vector.load %arg3[%c0_13, %c7, %c0_14, %c0_15] : memref<1x8x16x512xbf16, #tpu.memory_space<vmem>>, vector<1x1x16x512xbf16>
      %20 = vector.shape_cast %19 : vector<1x1x16x512xbf16> to vector<16x512xbf16>
      %21 = arith.extf %20 : vector<16x512xbf16> to vector<16x512xf32>
      %22 = arith.truncf %17 : vector<16x128xf32> to vector<16x128xbf16>
      %cst = arith.constant dense<0.000000e+00> : vector<16x512xf32>
      %23 = tpu.matmul %22, %4, %cst {dimension_numbers = #tpu.dot_dimension_numbers<[1], [0], [0], [1], [0, 0, 1, 1], [], []>} : vector<16x128xbf16>, vector<128x512xbf16>, vector<16x512xf32> -> vector<16x512xf32>
      %24 = arith.addf %21, %23 : vector<16x512xf32>
      %25 = vector.extract_strided_slice %24 {offsets = [0, 0], sizes = [16, 384], strides = [1, 1]} : vector<16x512xf32> to vector<16x384xf32>
      %26 = arith.negf %25 : vector<16x384xf32>
      %27 = math.exp %26 : vector<16x384xf32>
      %cst_16 = arith.constant 1.000000e+00 : f32
      %28 = vector.broadcast %cst_16 : f32 to vector<16x384xf32>
      %29 = arith.addf %28, %27 : vector<16x384xf32>
      %30 = arith.divf %28, %29 : vector<16x384xf32>
      %31 = vector.extract_strided_slice %30 {offsets = [0, 0], sizes = [16, 128], strides = [1, 1]} : vector<16x384xf32> to vector<16x128xf32>
      %32 = vector.extract_strided_slice %30 {offsets = [0, 128], sizes = [16, 128], strides = [1, 1]} : vector<16x384xf32> to vector<16x128xf32>
      %33 = vector.extract_strided_slice %30 {offsets = [0, 256], sizes = [16, 128], strides = [1, 1]} : vector<16x384xf32> to vector<16x128xf32>
      %34 = vector.extract_strided_slice %24 {offsets = [0, 384], sizes = [16, 128], strides = [1, 1]} : vector<16x512xf32> to vector<16x128xf32>
      %35 = math.tanh %34 : vector<16x128xf32>
      %36 = arith.mulf %32, %18 : vector<16x128xf32>
      %37 = arith.mulf %31, %35 : vector<16x128xf32>
      %38 = arith.addf %36, %37 : vector<16x128xf32>
      %39 = math.tanh %38 : vector<16x128xf32>
      %40 = arith.mulf %33, %39 : vector<16x128xf32>
      %c7_i32 = arith.constant 7 : i32
      %41 = arith.addi %16, %c7_i32 : i32
      %42 = arith.index_cast %41 : i32 to index
      %43 = memref.load %arg2[%42] : memref<16xi32, #tpu.memory_space<smem>>
      %44 = vector.broadcast %43 : i32 to vector<16x128xi32>
      %45 = arith.cmpi slt, %5, %44 : vector<16x128xi32>
      %46 = arith.select %45, %40, %17 : vector<16x128xi1>, vector<16x128xf32>
      %47 = arith.select %45, %38, %18 : vector<16x128xi1>, vector<16x128xf32>
      %48 = arith.truncf %46 : vector<16x128xf32> to vector<16x128xbf16>
      %c7_17 = arith.constant 7 : index
      %c0_18 = arith.constant 0 : index
      %c0_19 = arith.constant 0 : index
      %49 = vector.load %arg5[%c7_17, %c0_18, %c0_19] : memref<8x16x128xbf16, #tpu.memory_space<vmem>>, vector<1x16x128xbf16>
      %50 = vector.shape_cast %49 : vector<1x16x128xbf16> to vector<16x128xbf16>
      %51 = vector.shape_cast %48 : vector<16x128xbf16> to vector<1x16x128xbf16>
      tpu.vector_store %arg5[%c7_17, %c0_18, %c0_19], %51 {strides = array<i32>} : memref<8x16x128xbf16, #tpu.memory_space<vmem>>, vector<1x16x128xbf16>,
      %c0_20 = arith.constant 0 : index
      %c6 = arith.constant 6 : index
      %c0_21 = arith.constant 0 : index
      %c0_22 = arith.constant 0 : index
      %52 = vector.load %arg3[%c0_20, %c6, %c0_21, %c0_22] : memref<1x8x16x512xbf16, #tpu.memory_space<vmem>>, vector<1x1x16x512xbf16>
      %53 = vector.shape_cast %52 : vector<1x1x16x512xbf16> to vector<16x512xbf16>
      %54 = arith.extf %53 : vector<16x512xbf16> to vector<16x512xf32>
      %55 = arith.truncf %46 : vector<16x128xf32> to vector<16x128xbf16>
      %cst_23 = arith.constant dense<0.000000e+00> : vector<16x512xf32>
      %56 = tpu.matmul %55, %4, %cst_23 {dimension_numbers = #tpu.dot_dimension_numbers<[1], [0], [0], [1], [0, 0, 1, 1], [], []>} : vector<16x128xbf16>, vector<128x512xbf16>, vector<16x512xf32> -> vector<16x512xf32>
      %57 = arith.addf %54, %56 : vector<16x512xf32>
      %58 = vector.extract_strided_slice %57 {offsets = [0, 0], sizes = [16, 384], strides = [1, 1]} : vector<16x512xf32> to vector<16x384xf32>
      %59 = arith.negf %58 : vector<16x384xf32>
      %60 = math.exp %59 : vector<16x384xf32>
      %cst_24 = arith.constant 1.000000e+00 : f32
      %61 = vector.broadcast %cst_24 : f32 to vector<16x384xf32>
      %62 = arith.addf %61, %60 : vector<16x384xf32>
      %63 = arith.divf %61, %62 : vector<16x384xf32>
      %64 = vector.extract_strided_slice %63 {offsets = [0, 0], sizes = [16, 128], strides = [1, 1]} : vector<16x384xf32> to vector<16x128xf32>
      %65 = vector.extract_strided_slice %63 {offsets = [0, 128], sizes = [16, 128], strides = [1, 1]} : vector<16x384xf32> to vector<16x128xf32>
      %66 = vector.extract_strided_slice %63 {offsets = [0, 256], sizes = [16, 128], strides = [1, 1]} : vector<16x384xf32> to vector<16x128xf32>
      %67 = vector.extract_strided_slice %57 {offsets = [0, 384], sizes = [16, 128], strides = [1, 1]} : vector<16x512xf32> to vector<16x128xf32>
      %68 = math.tanh %67 : vector<16x128xf32>
      %69 = arith.mulf %65, %47 : vector<16x128xf32>
      %70 = arith.mulf %64, %68 : vector<16x128xf32>
      %71 = arith.addf %69, %70 : vector<16x128xf32>
      %72 = math.tanh %71 : vector<16x128xf32>
      %73 = arith.mulf %66, %72 : vector<16x128xf32>
      %c6_i32 = arith.constant 6 : i32
      %74 = arith.addi %16, %c6_i32 : i32
      %75 = arith.index_cast %74 : i32 to index
      %76 = memref.load %arg2[%75] : memref<16xi32, #tpu.memory_space<smem>>
      %77 = vector.broadcast %76 : i32 to vector<16x128xi32>
      %78 = arith.cmpi slt, %5, %77 : vector<16x128xi32>
      %79 = arith.select %78, %73, %46 : vector<16x128xi1>, vector<16x128xf32>
      %80 = arith.select %78, %71, %47 : vector<16x128xi1>, vector<16x128xf32>
      %81 = arith.truncf %79 : vector<16x128xf32> to vector<16x128xbf16>
      %c6_25 = arith.constant 6 : index
      %c0_26 = arith.constant 0 : index
      %c0_27 = arith.constant 0 : index
      %82 = vector.load %arg5[%c6_25, %c0_26, %c0_27] : memref<8x16x128xbf16, #tpu.memory_space<vmem>>, vector<1x16x128xbf16>
      %83 = vector.shape_cast %82 : vector<1x16x128xbf16> to vector<16x128xbf16>
      %84 = vector.shape_cast %81 : vector<16x128xbf16> to vector<1x16x128xbf16>
      tpu.vector_store %arg5[%c6_25, %c0_26, %c0_27], %84 {strides = array<i32>} : memref<8x16x128xbf16, #tpu.memory_space<vmem>>, vector<1x16x128xbf16>,
      %c0_28 = arith.constant 0 : index
      %c5 = arith.constant 5 : index
      %c0_29 = arith.constant 0 : index
      %c0_30 = arith.constant 0 : index
      %85 = vector.load %arg3[%c0_28, %c5, %c0_29, %c0_30] : memref<1x8x16x512xbf16, #tpu.memory_space<vmem>>, vector<1x1x16x512xbf16>
      %86 = vector.shape_cast %85 : vector<1x1x16x512xbf16> to vector<16x512xbf16>
      %87 = arith.extf %86 : vector<16x512xbf16> to vector<16x512xf32>
      %88 = arith.truncf %79 : vector<16x128xf32> to vector<16x128xbf16>
      %cst_31 = arith.constant dense<0.000000e+00> : vector<16x512xf32>
      %89 = tpu.matmul %88, %4, %cst_31 {dimension_numbers = #tpu.dot_dimension_numbers<[1], [0], [0], [1], [0, 0, 1, 1], [], []>} : vector<16x128xbf16>, vector<128x512xbf16>, vector<16x512xf32> -> vector<16x512xf32>
      %90 = arith.addf %87, %89 : vector<16x512xf32>
      %91 = vector.extract_strided_slice %90 {offsets = [0, 0], sizes = [16, 384], strides = [1, 1]} : vector<16x512xf32> to vector<16x384xf32>
      %92 = arith.negf %91 : vector<16x384xf32>
      %93 = math.exp %92 : vector<16x384xf32>
      %cst_32 = arith.constant 1.000000e+00 : f32
      %94 = vector.broadcast %cst_32 : f32 to vector<16x384xf32>
      %95 = arith.addf %94, %93 : vector<16x384xf32>
      %96 = arith.divf %94, %95 : vector<16x384xf32>
      %97 = vector.extract_strided_slice %96 {offsets = [0, 0], sizes = [16, 128], strides = [1, 1]} : vector<16x384xf32> to vector<16x128xf32>
      %98 = vector.extract_strided_slice %96 {offsets = [0, 128], sizes = [16, 128], strides = [1, 1]} : vector<16x384xf32> to vector<16x128xf32>
      %99 = vector.extract_strided_slice %96 {offsets = [0, 256], sizes = [16, 128], strides = [1, 1]} : vector<16x384xf32> to vector<16x128xf32>
      %100 = vector.extract_strided_slice %90 {offsets = [0, 384], sizes = [16, 128], strides = [1, 1]} : vector<16x512xf32> to vector<16x128xf32>
      %101 = math.tanh %100 : vector<16x128xf32>
      %102 = arith.mulf %98, %80 : vector<16x128xf32>
      %103 = arith.mulf %97, %101 : vector<16x128xf32>
      %104 = arith.addf %102, %103 : vector<16x128xf32>
      %105 = math.tanh %104 : vector<16x128xf32>
      %106 = arith.mulf %99, %105 : vector<16x128xf32>
      %c5_i32 = arith.constant 5 : i32
      %107 = arith.addi %16, %c5_i32 : i32
      %108 = arith.index_cast %107 : i32 to index
      %109 = memref.load %arg2[%108] : memref<16xi32, #tpu.memory_space<smem>>
      %110 = vector.broadcast %109 : i32 to vector<16x128xi32>
      %111 = arith.cmpi slt, %5, %110 : vector<16x128xi32>
      %112 = arith.select %111, %106, %79 : vector<16x128xi1>, vector<16x128xf32>
      %113 = arith.select %111, %104, %80 : vector<16x128xi1>, vector<16x128xf32>
      %114 = arith.truncf %112 : vector<16x128xf32> to vector<16x128xbf16>
      %c5_33 = arith.constant 5 : index
      %c0_34 = arith.constant 0 : index
      %c0_35 = arith.constant 0 : index
      %115 = vector.load %arg5[%c5_33, %c0_34, %c0_35] : memref<8x16x128xbf16, #tpu.memory_space<vmem>>, vector<1x16x128xbf16>
      %116 = vector.shape_cast %115 : vector<1x16x128xbf16> to vector<16x128xbf16>
      %117 = vector.shape_cast %114 : vector<16x128xbf16> to vector<1x16x128xbf16>
      tpu.vector_store %arg5[%c5_33, %c0_34, %c0_35], %117 {strides = array<i32>} : memref<8x16x128xbf16, #tpu.memory_space<vmem>>, vector<1x16x128xbf16>,
      %c0_36 = arith.constant 0 : index
      %c4 = arith.constant 4 : index
      %c0_37 = arith.constant 0 : index
      %c0_38 = arith.constant 0 : index
      %118 = vector.load %arg3[%c0_36, %c4, %c0_37, %c0_38] : memref<1x8x16x512xbf16, #tpu.memory_space<vmem>>, vector<1x1x16x512xbf16>
      %119 = vector.shape_cast %118 : vector<1x1x16x512xbf16> to vector<16x512xbf16>
      %120 = arith.extf %119 : vector<16x512xbf16> to vector<16x512xf32>
      %121 = arith.truncf %112 : vector<16x128xf32> to vector<16x128xbf16>
      %cst_39 = arith.constant dense<0.000000e+00> : vector<16x512xf32>
      %122 = tpu.matmul %121, %4, %cst_39 {dimension_numbers = #tpu.dot_dimension_numbers<[1], [0], [0], [1], [0, 0, 1, 1], [], []>} : vector<16x128xbf16>, vector<128x512xbf16>, vector<16x512xf32> -> vector<16x512xf32>
      %123 = arith.addf %120, %122 : vector<16x512xf32>
      %124 = vector.extract_strided_slice %123 {offsets = [0, 0], sizes = [16, 384], strides = [1, 1]} : vector<16x512xf32> to vector<16x384xf32>
      %125 = arith.negf %124 : vector<16x384xf32>
      %126 = math.exp %125 : vector<16x384xf32>
      %cst_40 = arith.constant 1.000000e+00 : f32
      %127 = vector.broadcast %cst_40 : f32 to vector<16x384xf32>
      %128 = arith.addf %127, %126 : vector<16x384xf32>
      %129 = arith.divf %127, %128 : vector<16x384xf32>
      %130 = vector.extract_strided_slice %129 {offsets = [0, 0], sizes = [16, 128], strides = [1, 1]} : vector<16x384xf32> to vector<16x128xf32>
      %131 = vector.extract_strided_slice %129 {offsets = [0, 128], sizes = [16, 128], strides = [1, 1]} : vector<16x384xf32> to vector<16x128xf32>
      %132 = vector.extract_strided_slice %129 {offsets = [0, 256], sizes = [16, 128], strides = [1, 1]} : vector<16x384xf32> to vector<16x128xf32>
      %133 = vector.extract_strided_slice %123 {offsets = [0, 384], sizes = [16, 128], strides = [1, 1]} : vector<16x512xf32> to vector<16x128xf32>
      %134 = math.tanh %133 : vector<16x128xf32>
      %135 = arith.mulf %131, %113 : vector<16x128xf32>
      %136 = arith.mulf %130, %134 : vector<16x128xf32>
      %137 = arith.addf %135, %136 : vector<16x128xf32>
      %138 = math.tanh %137 : vector<16x128xf32>
      %139 = arith.mulf %132, %138 : vector<16x128xf32>
      %c4_i32 = arith.constant 4 : i32
      %140 = arith.addi %16, %c4_i32 : i32
      %141 = arith.index_cast %140 : i32 to index
      %142 = memref.load %arg2[%141] : memref<16xi32, #tpu.memory_space<smem>>
      %143 = vector.broadcast %142 : i32 to vector<16x128xi32>
      %144 = arith.cmpi slt, %5, %143 : vector<16x128xi32>
      %145 = arith.select %144, %139, %112 : vector<16x128xi1>, vector<16x128xf32>
      %146 = arith.select %144, %137, %113 : vector<16x128xi1>, vector<16x128xf32>
      %147 = arith.truncf %145 : vector<16x128xf32> to vector<16x128xbf16>
      %c4_41 = arith.constant 4 : index
      %c0_42 = arith.constant 0 : index
      %c0_43 = arith.constant 0 : index
      %148 = vector.load %arg5[%c4_41, %c0_42, %c0_43] : memref<8x16x128xbf16, #tpu.memory_space<vmem>>, vector<1x16x128xbf16>
      %149 = vector.shape_cast %148 : vector<1x16x128xbf16> to vector<16x128xbf16>
      %150 = vector.shape_cast %147 : vector<16x128xbf16> to vector<1x16x128xbf16>
      tpu.vector_store %arg5[%c4_41, %c0_42, %c0_43], %150 {strides = array<i32>} : memref<8x16x128xbf16, #tpu.memory_space<vmem>>, vector<1x16x128xbf16>,
      %c0_44 = arith.constant 0 : index
      %c3 = arith.constant 3 : index
      %c0_45 = arith.constant 0 : index
      %c0_46 = arith.constant 0 : index
      %151 = vector.load %arg3[%c0_44, %c3, %c0_45, %c0_46] : memref<1x8x16x512xbf16, #tpu.memory_space<vmem>>, vector<1x1x16x512xbf16>
      %152 = vector.shape_cast %151 : vector<1x1x16x512xbf16> to vector<16x512xbf16>
      %153 = arith.extf %152 : vector<16x512xbf16> to vector<16x512xf32>
      %154 = arith.truncf %145 : vector<16x128xf32> to vector<16x128xbf16>
      %cst_47 = arith.constant dense<0.000000e+00> : vector<16x512xf32>
      %155 = tpu.matmul %154, %4, %cst_47 {dimension_numbers = #tpu.dot_dimension_numbers<[1], [0], [0], [1], [0, 0, 1, 1], [], []>} : vector<16x128xbf16>, vector<128x512xbf16>, vector<16x512xf32> -> vector<16x512xf32>
      %156 = arith.addf %153, %155 : vector<16x512xf32>
      %157 = vector.extract_strided_slice %156 {offsets = [0, 0], sizes = [16, 384], strides = [1, 1]} : vector<16x512xf32> to vector<16x384xf32>
      %158 = arith.negf %157 : vector<16x384xf32>
      %159 = math.exp %158 : vector<16x384xf32>
      %cst_48 = arith.constant 1.000000e+00 : f32
      %160 = vector.broadcast %cst_48 : f32 to vector<16x384xf32>
      %161 = arith.addf %160, %159 : vector<16x384xf32>
      %162 = arith.divf %160, %161 : vector<16x384xf32>
      %163 = vector.extract_strided_slice %162 {offsets = [0, 0], sizes = [16, 128], strides = [1, 1]} : vector<16x384xf32> to vector<16x128xf32>
      %164 = vector.extract_strided_slice %162 {offsets = [0, 128], sizes = [16, 128], strides = [1, 1]} : vector<16x384xf32> to vector<16x128xf32>
      %165 = vector.extract_strided_slice %162 {offsets = [0, 256], sizes = [16, 128], strides = [1, 1]} : vector<16x384xf32> to vector<16x128xf32>
      %166 = vector.extract_strided_slice %156 {offsets = [0, 384], sizes = [16, 128], strides = [1, 1]} : vector<16x512xf32> to vector<16x128xf32>
      %167 = math.tanh %166 : vector<16x128xf32>
      %168 = arith.mulf %164, %146 : vector<16x128xf32>
      %169 = arith.mulf %163, %167 : vector<16x128xf32>
      %170 = arith.addf %168, %169 : vector<16x128xf32>
      %171 = math.tanh %170 : vector<16x128xf32>
      %172 = arith.mulf %165, %171 : vector<16x128xf32>
      %c3_i32 = arith.constant 3 : i32
      %173 = arith.addi %16, %c3_i32 : i32
      %174 = arith.index_cast %173 : i32 to index
      %175 = memref.load %arg2[%174] : memref<16xi32, #tpu.memory_space<smem>>
      %176 = vector.broadcast %175 : i32 to vector<16x128xi32>
      %177 = arith.cmpi slt, %5, %176 : vector<16x128xi32>
      %178 = arith.select %177, %172, %145 : vector<16x128xi1>, vector<16x128xf32>
      %179 = arith.select %177, %170, %146 : vector<16x128xi1>, vector<16x128xf32>
      %180 = arith.truncf %178 : vector<16x128xf32> to vector<16x128xbf16>
      %c3_49 = arith.constant 3 : index
      %c0_50 = arith.constant 0 : index
      %c0_51 = arith.constant 0 : index
      %181 = vector.load %arg5[%c3_49, %c0_50, %c0_51] : memref<8x16x128xbf16, #tpu.memory_space<vmem>>, vector<1x16x128xbf16>
      %182 = vector.shape_cast %181 : vector<1x16x128xbf16> to vector<16x128xbf16>
      %183 = vector.shape_cast %180 : vector<16x128xbf16> to vector<1x16x128xbf16>
      tpu.vector_store %arg5[%c3_49, %c0_50, %c0_51], %183 {strides = array<i32>} : memref<8x16x128xbf16, #tpu.memory_space<vmem>>, vector<1x16x128xbf16>,
      %c0_52 = arith.constant 0 : index
      %c2 = arith.constant 2 : index
      %c0_53 = arith.constant 0 : index
      %c0_54 = arith.constant 0 : index
      %184 = vector.load %arg3[%c0_52, %c2, %c0_53, %c0_54] : memref<1x8x16x512xbf16, #tpu.memory_space<vmem>>, vector<1x1x16x512xbf16>
      %185 = vector.shape_cast %184 : vector<1x1x16x512xbf16> to vector<16x512xbf16>
      %186 = arith.extf %185 : vector<16x512xbf16> to vector<16x512xf32>
      %187 = arith.truncf %178 : vector<16x128xf32> to vector<16x128xbf16>
      %cst_55 = arith.constant dense<0.000000e+00> : vector<16x512xf32>
      %188 = tpu.matmul %187, %4, %cst_55 {dimension_numbers = #tpu.dot_dimension_numbers<[1], [0], [0], [1], [0, 0, 1, 1], [], []>} : vector<16x128xbf16>, vector<128x512xbf16>, vector<16x512xf32> -> vector<16x512xf32>
      %189 = arith.addf %186, %188 : vector<16x512xf32>
      %190 = vector.extract_strided_slice %189 {offsets = [0, 0], sizes = [16, 384], strides = [1, 1]} : vector<16x512xf32> to vector<16x384xf32>
      %191 = arith.negf %190 : vector<16x384xf32>
      %192 = math.exp %191 : vector<16x384xf32>
      %cst_56 = arith.constant 1.000000e+00 : f32
      %193 = vector.broadcast %cst_56 : f32 to vector<16x384xf32>
      %194 = arith.addf %193, %192 : vector<16x384xf32>
      %195 = arith.divf %193, %194 : vector<16x384xf32>
      %196 = vector.extract_strided_slice %195 {offsets = [0, 0], sizes = [16, 128], strides = [1, 1]} : vector<16x384xf32> to vector<16x128xf32>
      %197 = vector.extract_strided_slice %195 {offsets = [0, 128], sizes = [16, 128], strides = [1, 1]} : vector<16x384xf32> to vector<16x128xf32>
      %198 = vector.extract_strided_slice %195 {offsets = [0, 256], sizes = [16, 128], strides = [1, 1]} : vector<16x384xf32> to vector<16x128xf32>
      %199 = vector.extract_strided_slice %189 {offsets = [0, 384], sizes = [16, 128], strides = [1, 1]} : vector<16x512xf32> to vector<16x128xf32>
      %200 = math.tanh %199 : vector<16x128xf32>
      %201 = arith.mulf %197, %179 : vector<16x128xf32>
      %202 = arith.mulf %196, %200 : vector<16x128xf32>
      %203 = arith.addf %201, %202 : vector<16x128xf32>
      %204 = math.tanh %203 : vector<16x128xf32>
      %205 = arith.mulf %198, %204 : vector<16x128xf32>
      %c2_i32 = arith.constant 2 : i32
      %206 = arith.addi %16, %c2_i32 : i32
      %207 = arith.index_cast %206 : i32 to index
      %208 = memref.load %arg2[%207] : memref<16xi32, #tpu.memory_space<smem>>
      %209 = vector.broadcast %208 : i32 to vector<16x128xi32>
      %210 = arith.cmpi slt, %5, %209 : vector<16x128xi32>
      %211 = arith.select %210, %205, %178 : vector<16x128xi1>, vector<16x128xf32>
      %212 = arith.select %210, %203, %179 : vector<16x128xi1>, vector<16x128xf32>
      %213 = arith.truncf %211 : vector<16x128xf32> to vector<16x128xbf16>
      %c2_57 = arith.constant 2 : index
      %c0_58 = arith.constant 0 : index
      %c0_59 = arith.constant 0 : index
      %214 = vector.load %arg5[%c2_57, %c0_58, %c0_59] : memref<8x16x128xbf16, #tpu.memory_space<vmem>>, vector<1x16x128xbf16>
      %215 = vector.shape_cast %214 : vector<1x16x128xbf16> to vector<16x128xbf16>
      %216 = vector.shape_cast %213 : vector<16x128xbf16> to vector<1x16x128xbf16>
      tpu.vector_store %arg5[%c2_57, %c0_58, %c0_59], %216 {strides = array<i32>} : memref<8x16x128xbf16, #tpu.memory_space<vmem>>, vector<1x16x128xbf16>,
      %c0_60 = arith.constant 0 : index
      %c1 = arith.constant 1 : index
      %c0_61 = arith.constant 0 : index
      %c0_62 = arith.constant 0 : index
      %217 = vector.load %arg3[%c0_60, %c1, %c0_61, %c0_62] : memref<1x8x16x512xbf16, #tpu.memory_space<vmem>>, vector<1x1x16x512xbf16>
      %218 = vector.shape_cast %217 : vector<1x1x16x512xbf16> to vector<16x512xbf16>
      %219 = arith.extf %218 : vector<16x512xbf16> to vector<16x512xf32>
      %220 = arith.truncf %211 : vector<16x128xf32> to vector<16x128xbf16>
      %cst_63 = arith.constant dense<0.000000e+00> : vector<16x512xf32>
      %221 = tpu.matmul %220, %4, %cst_63 {dimension_numbers = #tpu.dot_dimension_numbers<[1], [0], [0], [1], [0, 0, 1, 1], [], []>} : vector<16x128xbf16>, vector<128x512xbf16>, vector<16x512xf32> -> vector<16x512xf32>
      %222 = arith.addf %219, %221 : vector<16x512xf32>
      %223 = vector.extract_strided_slice %222 {offsets = [0, 0], sizes = [16, 384], strides = [1, 1]} : vector<16x512xf32> to vector<16x384xf32>
      %224 = arith.negf %223 : vector<16x384xf32>
      %225 = math.exp %224 : vector<16x384xf32>
      %cst_64 = arith.constant 1.000000e+00 : f32
      %226 = vector.broadcast %cst_64 : f32 to vector<16x384xf32>
      %227 = arith.addf %226, %225 : vector<16x384xf32>
      %228 = arith.divf %226, %227 : vector<16x384xf32>
      %229 = vector.extract_strided_slice %228 {offsets = [0, 0], sizes = [16, 128], strides = [1, 1]} : vector<16x384xf32> to vector<16x128xf32>
      %230 = vector.extract_strided_slice %228 {offsets = [0, 128], sizes = [16, 128], strides = [1, 1]} : vector<16x384xf32> to vector<16x128xf32>
      %231 = vector.extract_strided_slice %228 {offsets = [0, 256], sizes = [16, 128], strides = [1, 1]} : vector<16x384xf32> to vector<16x128xf32>
      %232 = vector.extract_strided_slice %222 {offsets = [0, 384], sizes = [16, 128], strides = [1, 1]} : vector<16x512xf32> to vector<16x128xf32>
      %233 = math.tanh %232 : vector<16x128xf32>
      %234 = arith.mulf %230, %212 : vector<16x128xf32>
      %235 = arith.mulf %229, %233 : vector<16x128xf32>
      %236 = arith.addf %234, %235 : vector<16x128xf32>
      %237 = math.tanh %236 : vector<16x128xf32>
      %238 = arith.mulf %231, %237 : vector<16x128xf32>
      %c1_i32_65 = arith.constant 1 : i32
      %239 = arith.addi %16, %c1_i32_65 : i32
      %240 = arith.index_cast %239 : i32 to index
      %241 = memref.load %arg2[%240] : memref<16xi32, #tpu.memory_space<smem>>
      %242 = vector.broadcast %241 : i32 to vector<16x128xi32>
      %243 = arith.cmpi slt, %5, %242 : vector<16x128xi32>
      %244 = arith.select %243, %238, %211 : vector<16x128xi1>, vector<16x128xf32>
      %245 = arith.select %243, %236, %212 : vector<16x128xi1>, vector<16x128xf32>
      %246 = arith.truncf %244 : vector<16x128xf32> to vector<16x128xbf16>
      %c1_66 = arith.constant 1 : index
      %c0_67 = arith.constant 0 : index
      %c0_68 = arith.constant 0 : index
      %247 = vector.load %arg5[%c1_66, %c0_67, %c0_68] : memref<8x16x128xbf16, #tpu.memory_space<vmem>>, vector<1x16x128xbf16>
      %248 = vector.shape_cast %247 : vector<1x16x128xbf16> to vector<16x128xbf16>
      %249 = vector.shape_cast %246 : vector<16x128xbf16> to vector<1x16x128xbf16>
      tpu.vector_store %arg5[%c1_66, %c0_67, %c0_68], %249 {strides = array<i32>} : memref<8x16x128xbf16, #tpu.memory_space<vmem>>, vector<1x16x128xbf16>,
      %c0_69 = arith.constant 0 : index
      %c0_70 = arith.constant 0 : index
      %c0_71 = arith.constant 0 : index
      %c0_72 = arith.constant 0 : index
      %250 = vector.load %arg3[%c0_69, %c0_70, %c0_71, %c0_72] : memref<1x8x16x512xbf16, #tpu.memory_space<vmem>>, vector<1x1x16x512xbf16>
      %251 = vector.shape_cast %250 : vector<1x1x16x512xbf16> to vector<16x512xbf16>
      %252 = arith.extf %251 : vector<16x512xbf16> to vector<16x512xf32>
      %253 = arith.truncf %244 : vector<16x128xf32> to vector<16x128xbf16>
      %cst_73 = arith.constant dense<0.000000e+00> : vector<16x512xf32>
      %254 = tpu.matmul %253, %4, %cst_73 {dimension_numbers = #tpu.dot_dimension_numbers<[1], [0], [0], [1], [0, 0, 1, 1], [], []>} : vector<16x128xbf16>, vector<128x512xbf16>, vector<16x512xf32> -> vector<16x512xf32>
      %255 = arith.addf %252, %254 : vector<16x512xf32>
      %256 = vector.extract_strided_slice %255 {offsets = [0, 0], sizes = [16, 384], strides = [1, 1]} : vector<16x512xf32> to vector<16x384xf32>
      %257 = arith.negf %256 : vector<16x384xf32>
      %258 = math.exp %257 : vector<16x384xf32>
      %cst_74 = arith.constant 1.000000e+00 : f32
      %259 = vector.broadcast %cst_74 : f32 to vector<16x384xf32>
      %260 = arith.addf %259, %258 : vector<16x384xf32>
      %261 = arith.divf %259, %260 : vector<16x384xf32>
      %262 = vector.extract_strided_slice %261 {offsets = [0, 0], sizes = [16, 128], strides = [1, 1]} : vector<16x384xf32> to vector<16x128xf32>
      %263 = vector.extract_strided_slice %261 {offsets = [0, 128], sizes = [16, 128], strides = [1, 1]} : vector<16x384xf32> to vector<16x128xf32>
      %264 = vector.extract_strided_slice %261 {offsets = [0, 256], sizes = [16, 128], strides = [1, 1]} : vector<16x384xf32> to vector<16x128xf32>
      %265 = vector.extract_strided_slice %255 {offsets = [0, 384], sizes = [16, 128], strides = [1, 1]} : vector<16x512xf32> to vector<16x128xf32>
      %266 = math.tanh %265 : vector<16x128xf32>
      %267 = arith.mulf %263, %245 : vector<16x128xf32>
      %268 = arith.mulf %262, %266 : vector<16x128xf32>
      %269 = arith.addf %267, %268 : vector<16x128xf32>
      %270 = math.tanh %269 : vector<16x128xf32>
      %271 = arith.mulf %264, %270 : vector<16x128xf32>
      %c0_i32_75 = arith.constant 0 : i32
      %272 = arith.addi %16, %c0_i32_75 : i32
      %273 = arith.index_cast %272 : i32 to index
      %274 = memref.load %arg2[%273] : memref<16xi32, #tpu.memory_space<smem>>
      %275 = vector.broadcast %274 : i32 to vector<16x128xi32>
      %276 = arith.cmpi slt, %5, %275 : vector<16x128xi32>
      %277 = arith.select %276, %271, %244 : vector<16x128xi1>, vector<16x128xf32>
      %278 = arith.select %276, %269, %245 : vector<16x128xi1>, vector<16x128xf32>
      %279 = arith.truncf %277 : vector<16x128xf32> to vector<16x128xbf16>
      %c0_76 = arith.constant 0 : index
      %c0_77 = arith.constant 0 : index
      %c0_78 = arith.constant 0 : index
      %280 = vector.load %arg5[%c0_76, %c0_77, %c0_78] : memref<8x16x128xbf16, #tpu.memory_space<vmem>>, vector<1x16x128xbf16>
      %281 = vector.shape_cast %280 : vector<1x16x128xbf16> to vector<16x128xbf16>
      %282 = vector.shape_cast %279 : vector<16x128xbf16> to vector<1x16x128xbf16>
      tpu.vector_store %arg5[%c0_76, %c0_77, %c0_78], %282 {strides = array<i32>} : memref<8x16x128xbf16, #tpu.memory_space<vmem>>, vector<1x16x128xbf16>,
      %c0_79 = arith.constant 0 : index
      %c0_80 = arith.constant 0 : index
      %283 = vector.load %arg8[%c0_79, %c0_80] : memref<16x128xf32, #tpu.memory_space<vmem>>, vector<16x128xf32>
      tpu.vector_store %arg8[%c0_79, %c0_80], %277 {strides = array<i32>} : memref<16x128xf32, #tpu.memory_space<vmem>>, vector<16x128xf32>,
      %c0_81 = arith.constant 0 : index
      %c0_82 = arith.constant 0 : index
      %284 = vector.load %arg9[%c0_81, %c0_82] : memref<16x128xf32, #tpu.memory_space<vmem>>, vector<16x128xf32>
      tpu.vector_store %arg9[%c0_81, %c0_82], %278 {strides = array<i32>} : memref<16x128xf32, #tpu.memory_space<vmem>>, vector<16x128xf32>,
    } else {
    }
    %c1_i32 = arith.constant 1 : i32
    %12 = arith.cmpi eq, %arg1, %c1_i32 : i32
    %13 = arith.extui %12 : i1 to i32
    %c0_i32_7 = arith.constant 0 : i32
    %14 = arith.cmpi ne, %13, %c0_i32_7 : i32
    scf.if %14 {
      %c0_8 = arith.constant 0 : index
      %c0_9 = arith.constant 0 : index
      %15 = vector.load %arg8[%c0_8, %c0_9] : memref<16x128xf32, #tpu.memory_space<vmem>>, vector<16x128xf32>
      %c0_10 = arith.constant 0 : index
      %c0_11 = arith.constant 0 : index
      %c0_12 = arith.constant 0 : index
      %16 = vector.load %arg6[%c0_10, %c0_11, %c0_12] : memref<1x16x128xf32, #tpu.memory_space<vmem>>, vector<1x16x128xf32>
      %17 = vector.shape_cast %16 : vector<1x16x128xf32> to vector<16x128xf32>
      %18 = vector.shape_cast %15 : vector<16x128xf32> to vector<1x16x128xf32>
      tpu.vector_store %arg6[%c0_10, %c0_11, %c0_12], %18 {strides = array<i32>} : memref<1x16x128xf32, #tpu.memory_space<vmem>>, vector<1x16x128xf32>,
      %c0_13 = arith.constant 0 : index
      %c0_14 = arith.constant 0 : index
      %19 = vector.load %arg9[%c0_13, %c0_14] : memref<16x128xf32, #tpu.memory_space<vmem>>, vector<16x128xf32>
      %c0_15 = arith.constant 0 : index
      %c0_16 = arith.constant 0 : index
      %c0_17 = arith.constant 0 : index
      %20 = vector.load %arg7[%c0_15, %c0_16, %c0_17] : memref<1x16x128xf32, #tpu.memory_space<vmem>>, vector<1x16x128xf32>
      %21 = vector.shape_cast %20 : vector<1x16x128xf32> to vector<16x128xf32>
      %22 = vector.shape_cast %19 : vector<16x128xf32> to vector<1x16x128xf32>
      tpu.vector_store %arg7[%c0_15, %c0_16, %c0_17], %22 {strides = array<i32>} : memref<1x16x128xf32, #tpu.memory_space<vmem>>, vector<1x16x128xf32>,
    } else {
    }
    return
  }
  func.func @transform_0(%arg0: i32, %arg1: i32, %arg2: memref<16xi32, #tpu.memory_space<smem>>) -> (i32, i32, i32, i32) {
    %c0_i32 = arith.constant 0 : i32
    %0 = arith.cmpi eq, %arg0, %c0_i32 : i32
    %c1_i32 = arith.constant 1 : i32
    %1 = arith.subi %c1_i32, %arg1 : i32
    %2 = arith.select %0, %arg1, %1 : i32
    %c0_i32_0 = arith.constant 0 : i32
    %c0_i32_1 = arith.constant 0 : i32
    %c0_i32_2 = arith.constant 0 : i32
    return %arg0, %2, %c0_i32_0, %c0_i32_1 : i32, i32, i32, i32
  }
  func.func @transform_1(%arg0: i32, %arg1: i32, %arg2: memref<16xi32, #tpu.memory_space<smem>>) -> (i32, i32, i32) {
    %c0_i32 = arith.constant 0 : i32
    %c0_i32_0 = arith.constant 0 : i32
    %c0_i32_1 = arith.constant 0 : i32
    return %arg0, %c0_i32, %c0_i32_0 : i32, i32, i32
  }
  func.func @transform_2(%arg0: i32, %arg1: i32, %arg2: memref<16xi32, #tpu.memory_space<smem>>) -> (i32, i32, i32) {
    %c0_i32 = arith.constant 0 : i32
    %0 = arith.cmpi eq, %arg0, %c0_i32 : i32
    %c1_i32 = arith.constant 1 : i32
    %1 = arith.subi %c1_i32, %arg1 : i32
    %2 = arith.select %0, %arg1, %1 : i32
    %c0_i32_0 = arith.constant 0 : i32
    %c0_i32_1 = arith.constant 0 : i32
    return %2, %c0_i32_0, %arg0 : i32, i32, i32
  }
  func.func @transform_3(%arg0: i32, %arg1: i32, %arg2: memref<16xi32, #tpu.memory_space<smem>>) -> (i32, i32, i32) {
    %c0_i32 = arith.constant 0 : i32
    %c0_i32_0 = arith.constant 0 : i32
    %c0_i32_1 = arith.constant 0 : i32
    return %arg0, %c0_i32, %c0_i32_0 : i32, i32, i32
  }
  func.func @transform_4(%arg0: i32, %arg1: i32, %arg2: memref<16xi32, #tpu.memory_space<smem>>) -> (i32, i32, i32) {
    %c0_i32 = arith.constant 0 : i32
    %c0_i32_0 = arith.constant 0 : i32
    %c0_i32_1 = arith.constant 0 : i32
    return %arg0, %c0_i32, %c0_i32_0 : i32, i32, i32
  }
}

module attributes {stable_mosaic.version = 11 : i64} {
  func.func @kernel(%arg0: i32, %arg1: i32, %arg2: memref<16xi32, #tpu.memory_space<smem>>, %arg3: memref<1x8x16x512xbf16, #tpu.memory_space<vmem>>, %arg4: memref<1x128x512xbf16, #tpu.memory_space<vmem>>, %arg5: memref<8x16x128xbf16, #tpu.memory_space<vmem>>, %arg6: memref<1x16x128xf32, #tpu.memory_space<vmem>>, %arg7: memref<1x16x128xf32, #tpu.memory_space<vmem>>, %arg8: memref<16x128xf32, #tpu.memory_space<vmem>>, %arg9: memref<16x128xf32, #tpu.memory_space<vmem>>) attributes {dimension_semantics = [#tpu.dimension_semantics<parallel>, #tpu.dimension_semantics<arbitrary>], iteration_bounds = array<i64: 2, 2>, scalar_prefetch = 1 : i64, scratch_operands = 2 : i64, tpu.core_type = #tpu.core_type<tc>, window_params = [{transform_indices = @transform_0, window_bounds = array<i64: 1, 8, 16, 512>}, {transform_indices = @transform_1, window_bounds = array<i64: 1, 128, 512>}, {transform_indices = @transform_2, window_bounds = array<i64: 8, 16, 128>}, {transform_indices = @transform_3, window_bounds = array<i64: 1, 16, 128>}, {transform_indices = @transform_4, window_bounds = array<i64: 1, 16, 128>}]} {
    %c0_i32 = arith.constant 0 : i32
    %0 = arith.cmpi eq, %arg1, %c0_i32 : i32
    %1 = arith.extui %0 : i1 to i32
    %c0_i32_0 = arith.constant 0 : i32
    %2 = arith.cmpi ne, %1, %c0_i32_0 : i32
    scf.if %2 {
      %cst = arith.constant 0.000000e+00 : f32
      %15 = vector.broadcast %cst : f32 to vector<16x128xf32>
      %c0_8 = arith.constant 0 : index
      %c0_9 = arith.constant 0 : index
      %16 = vector.load %arg8[%c0_8, %c0_9] : memref<16x128xf32, #tpu.memory_space<vmem>>, vector<16x128xf32>
      tpu.vector_store %arg8[%c0_8, %c0_9], %15 {strides = array<i32>} : memref<16x128xf32, #tpu.memory_space<vmem>>, vector<16x128xf32>,
      %cst_10 = arith.constant 0.000000e+00 : f32
      %17 = vector.broadcast %cst_10 : f32 to vector<16x128xf32>
      %c0_11 = arith.constant 0 : index
      %c0_12 = arith.constant 0 : index
      %18 = vector.load %arg9[%c0_11, %c0_12] : memref<16x128xf32, #tpu.memory_space<vmem>>, vector<16x128xf32>
      tpu.vector_store %arg9[%c0_11, %c0_12], %17 {strides = array<i32>} : memref<16x128xf32, #tpu.memory_space<vmem>>, vector<16x128xf32>,
    } else {
    }
    %c0 = arith.constant 0 : index
    %c0_1 = arith.constant 0 : index
    %c0_2 = arith.constant 0 : index
    %3 = vector.load %arg4[%c0, %c0_1, %c0_2] : memref<1x128x512xbf16, #tpu.memory_space<vmem>>, vector<1x128x512xbf16>
    %4 = vector.shape_cast %3 : vector<1x128x512xbf16> to vector<128x512xbf16>
    %5 = tpu.iota {dimensions = array<i32: 0>} : vector<16x128xi32>
    %c0_i32_3 = arith.constant 0 : i32
    %6 = arith.cmpi eq, %arg0, %c0_i32_3 : i32
    %7 = arith.extui %6 : i1 to i32
    %c0_i32_4 = arith.constant 0 : i32
    %8 = arith.cmpi ne, %7, %c0_i32_4 : i32
    scf.if %8 {
      %c8_i32 = arith.constant 8 : i32
      %15 = arith.muli %arg1, %c8_i32 : i32
      %c0_8 = arith.constant 0 : index
      %c0_9 = arith.constant 0 : index
      %16 = vector.load %arg8[%c0_8, %c0_9] : memref<16x128xf32, #tpu.memory_space<vmem>>, vector<16x128xf32>
      %c0_10 = arith.constant 0 : index
      %c0_11 = arith.constant 0 : index
      %17 = vector.load %arg9[%c0_10, %c0_11] : memref<16x128xf32, #tpu.memory_space<vmem>>, vector<16x128xf32>
      %c0_12 = arith.constant 0 : index
      %c0_13 = arith.constant 0 : index
      %c0_14 = arith.constant 0 : index
      %c0_15 = arith.constant 0 : index
      %18 = vector.load %arg3[%c0_12, %c0_13, %c0_14, %c0_15] : memref<1x8x16x512xbf16, #tpu.memory_space<vmem>>, vector<1x1x16x512xbf16>
      %19 = vector.shape_cast %18 : vector<1x1x16x512xbf16> to vector<16x512xbf16>
      %20 = arith.extf %19 : vector<16x512xbf16> to vector<16x512xf32>
      %21 = arith.truncf %16 : vector<16x128xf32> to vector<16x128xbf16>
      %cst = arith.constant dense<0.000000e+00> : vector<16x512xf32>
      %22 = tpu.matmul %21, %4, %cst {dimension_numbers = #tpu.dot_dimension_numbers<[1], [0], [0], [1], [0, 0, 1, 1], [], []>} : vector<16x128xbf16>, vector<128x512xbf16>, vector<16x512xf32> -> vector<16x512xf32>
      %23 = arith.addf %20, %22 : vector<16x512xf32>
      %24 = vector.extract_strided_slice %23 {offsets = [0, 0], sizes = [16, 384], strides = [1, 1]} : vector<16x512xf32> to vector<16x384xf32>
      %25 = arith.negf %24 : vector<16x384xf32>
      %26 = math.exp %25 : vector<16x384xf32>
      %cst_16 = arith.constant 1.000000e+00 : f32
      %27 = vector.broadcast %cst_16 : f32 to vector<16x384xf32>
      %28 = arith.addf %27, %26 : vector<16x384xf32>
      %29 = arith.divf %27, %28 : vector<16x384xf32>
      %30 = vector.extract_strided_slice %29 {offsets = [0, 0], sizes = [16, 128], strides = [1, 1]} : vector<16x384xf32> to vector<16x128xf32>
      %31 = vector.extract_strided_slice %29 {offsets = [0, 128], sizes = [16, 128], strides = [1, 1]} : vector<16x384xf32> to vector<16x128xf32>
      %32 = vector.extract_strided_slice %29 {offsets = [0, 256], sizes = [16, 128], strides = [1, 1]} : vector<16x384xf32> to vector<16x128xf32>
      %33 = vector.extract_strided_slice %23 {offsets = [0, 384], sizes = [16, 128], strides = [1, 1]} : vector<16x512xf32> to vector<16x128xf32>
      %34 = math.tanh %33 : vector<16x128xf32>
      %35 = arith.mulf %31, %17 : vector<16x128xf32>
      %36 = arith.mulf %30, %34 : vector<16x128xf32>
      %37 = arith.addf %35, %36 : vector<16x128xf32>
      %38 = math.tanh %37 : vector<16x128xf32>
      %39 = arith.mulf %32, %38 : vector<16x128xf32>
      %c0_i32_17 = arith.constant 0 : i32
      %40 = arith.addi %15, %c0_i32_17 : i32
      %41 = arith.index_cast %40 : i32 to index
      %42 = memref.load %arg2[%41] : memref<16xi32, #tpu.memory_space<smem>>
      %43 = vector.broadcast %42 : i32 to vector<16x128xi32>
      %44 = arith.cmpi slt, %5, %43 : vector<16x128xi32>
      %45 = arith.select %44, %39, %16 : vector<16x128xi1>, vector<16x128xf32>
      %46 = arith.select %44, %37, %17 : vector<16x128xi1>, vector<16x128xf32>
      %47 = arith.truncf %45 : vector<16x128xf32> to vector<16x128xbf16>
      %c0_18 = arith.constant 0 : index
      %c0_19 = arith.constant 0 : index
      %c0_20 = arith.constant 0 : index
      %48 = vector.load %arg5[%c0_18, %c0_19, %c0_20] : memref<8x16x128xbf16, #tpu.memory_space<vmem>>, vector<1x16x128xbf16>
      %49 = vector.shape_cast %48 : vector<1x16x128xbf16> to vector<16x128xbf16>
      %50 = vector.shape_cast %47 : vector<16x128xbf16> to vector<1x16x128xbf16>
      tpu.vector_store %arg5[%c0_18, %c0_19, %c0_20], %50 {strides = array<i32>} : memref<8x16x128xbf16, #tpu.memory_space<vmem>>, vector<1x16x128xbf16>,
      %c0_21 = arith.constant 0 : index
      %c1 = arith.constant 1 : index
      %c0_22 = arith.constant 0 : index
      %c0_23 = arith.constant 0 : index
      %51 = vector.load %arg3[%c0_21, %c1, %c0_22, %c0_23] : memref<1x8x16x512xbf16, #tpu.memory_space<vmem>>, vector<1x1x16x512xbf16>
      %52 = vector.shape_cast %51 : vector<1x1x16x512xbf16> to vector<16x512xbf16>
      %53 = arith.extf %52 : vector<16x512xbf16> to vector<16x512xf32>
      %54 = arith.truncf %45 : vector<16x128xf32> to vector<16x128xbf16>
      %cst_24 = arith.constant dense<0.000000e+00> : vector<16x512xf32>
      %55 = tpu.matmul %54, %4, %cst_24 {dimension_numbers = #tpu.dot_dimension_numbers<[1], [0], [0], [1], [0, 0, 1, 1], [], []>} : vector<16x128xbf16>, vector<128x512xbf16>, vector<16x512xf32> -> vector<16x512xf32>
      %56 = arith.addf %53, %55 : vector<16x512xf32>
      %57 = vector.extract_strided_slice %56 {offsets = [0, 0], sizes = [16, 384], strides = [1, 1]} : vector<16x512xf32> to vector<16x384xf32>
      %58 = arith.negf %57 : vector<16x384xf32>
      %59 = math.exp %58 : vector<16x384xf32>
      %cst_25 = arith.constant 1.000000e+00 : f32
      %60 = vector.broadcast %cst_25 : f32 to vector<16x384xf32>
      %61 = arith.addf %60, %59 : vector<16x384xf32>
      %62 = arith.divf %60, %61 : vector<16x384xf32>
      %63 = vector.extract_strided_slice %62 {offsets = [0, 0], sizes = [16, 128], strides = [1, 1]} : vector<16x384xf32> to vector<16x128xf32>
      %64 = vector.extract_strided_slice %62 {offsets = [0, 128], sizes = [16, 128], strides = [1, 1]} : vector<16x384xf32> to vector<16x128xf32>
      %65 = vector.extract_strided_slice %62 {offsets = [0, 256], sizes = [16, 128], strides = [1, 1]} : vector<16x384xf32> to vector<16x128xf32>
      %66 = vector.extract_strided_slice %56 {offsets = [0, 384], sizes = [16, 128], strides = [1, 1]} : vector<16x512xf32> to vector<16x128xf32>
      %67 = math.tanh %66 : vector<16x128xf32>
      %68 = arith.mulf %64, %46 : vector<16x128xf32>
      %69 = arith.mulf %63, %67 : vector<16x128xf32>
      %70 = arith.addf %68, %69 : vector<16x128xf32>
      %71 = math.tanh %70 : vector<16x128xf32>
      %72 = arith.mulf %65, %71 : vector<16x128xf32>
      %c1_i32_26 = arith.constant 1 : i32
      %73 = arith.addi %15, %c1_i32_26 : i32
      %74 = arith.index_cast %73 : i32 to index
      %75 = memref.load %arg2[%74] : memref<16xi32, #tpu.memory_space<smem>>
      %76 = vector.broadcast %75 : i32 to vector<16x128xi32>
      %77 = arith.cmpi slt, %5, %76 : vector<16x128xi32>
      %78 = arith.select %77, %72, %45 : vector<16x128xi1>, vector<16x128xf32>
      %79 = arith.select %77, %70, %46 : vector<16x128xi1>, vector<16x128xf32>
      %80 = arith.truncf %78 : vector<16x128xf32> to vector<16x128xbf16>
      %c1_27 = arith.constant 1 : index
      %c0_28 = arith.constant 0 : index
      %c0_29 = arith.constant 0 : index
      %81 = vector.load %arg5[%c1_27, %c0_28, %c0_29] : memref<8x16x128xbf16, #tpu.memory_space<vmem>>, vector<1x16x128xbf16>
      %82 = vector.shape_cast %81 : vector<1x16x128xbf16> to vector<16x128xbf16>
      %83 = vector.shape_cast %80 : vector<16x128xbf16> to vector<1x16x128xbf16>
      tpu.vector_store %arg5[%c1_27, %c0_28, %c0_29], %83 {strides = array<i32>} : memref<8x16x128xbf16, #tpu.memory_space<vmem>>, vector<1x16x128xbf16>,
      %c0_30 = arith.constant 0 : index
      %c2 = arith.constant 2 : index
      %c0_31 = arith.constant 0 : index
      %c0_32 = arith.constant 0 : index
      %84 = vector.load %arg3[%c0_30, %c2, %c0_31, %c0_32] : memref<1x8x16x512xbf16, #tpu.memory_space<vmem>>, vector<1x1x16x512xbf16>
      %85 = vector.shape_cast %84 : vector<1x1x16x512xbf16> to vector<16x512xbf16>
      %86 = arith.extf %85 : vector<16x512xbf16> to vector<16x512xf32>
      %87 = arith.truncf %78 : vector<16x128xf32> to vector<16x128xbf16>
      %cst_33 = arith.constant dense<0.000000e+00> : vector<16x512xf32>
      %88 = tpu.matmul %87, %4, %cst_33 {dimension_numbers = #tpu.dot_dimension_numbers<[1], [0], [0], [1], [0, 0, 1, 1], [], []>} : vector<16x128xbf16>, vector<128x512xbf16>, vector<16x512xf32> -> vector<16x512xf32>
      %89 = arith.addf %86, %88 : vector<16x512xf32>
      %90 = vector.extract_strided_slice %89 {offsets = [0, 0], sizes = [16, 384], strides = [1, 1]} : vector<16x512xf32> to vector<16x384xf32>
      %91 = arith.negf %90 : vector<16x384xf32>
      %92 = math.exp %91 : vector<16x384xf32>
      %cst_34 = arith.constant 1.000000e+00 : f32
      %93 = vector.broadcast %cst_34 : f32 to vector<16x384xf32>
      %94 = arith.addf %93, %92 : vector<16x384xf32>
      %95 = arith.divf %93, %94 : vector<16x384xf32>
      %96 = vector.extract_strided_slice %95 {offsets = [0, 0], sizes = [16, 128], strides = [1, 1]} : vector<16x384xf32> to vector<16x128xf32>
      %97 = vector.extract_strided_slice %95 {offsets = [0, 128], sizes = [16, 128], strides = [1, 1]} : vector<16x384xf32> to vector<16x128xf32>
      %98 = vector.extract_strided_slice %95 {offsets = [0, 256], sizes = [16, 128], strides = [1, 1]} : vector<16x384xf32> to vector<16x128xf32>
      %99 = vector.extract_strided_slice %89 {offsets = [0, 384], sizes = [16, 128], strides = [1, 1]} : vector<16x512xf32> to vector<16x128xf32>
      %100 = math.tanh %99 : vector<16x128xf32>
      %101 = arith.mulf %97, %79 : vector<16x128xf32>
      %102 = arith.mulf %96, %100 : vector<16x128xf32>
      %103 = arith.addf %101, %102 : vector<16x128xf32>
      %104 = math.tanh %103 : vector<16x128xf32>
      %105 = arith.mulf %98, %104 : vector<16x128xf32>
      %c2_i32 = arith.constant 2 : i32
      %106 = arith.addi %15, %c2_i32 : i32
      %107 = arith.index_cast %106 : i32 to index
      %108 = memref.load %arg2[%107] : memref<16xi32, #tpu.memory_space<smem>>
      %109 = vector.broadcast %108 : i32 to vector<16x128xi32>
      %110 = arith.cmpi slt, %5, %109 : vector<16x128xi32>
      %111 = arith.select %110, %105, %78 : vector<16x128xi1>, vector<16x128xf32>
      %112 = arith.select %110, %103, %79 : vector<16x128xi1>, vector<16x128xf32>
      %113 = arith.truncf %111 : vector<16x128xf32> to vector<16x128xbf16>
      %c2_35 = arith.constant 2 : index
      %c0_36 = arith.constant 0 : index
      %c0_37 = arith.constant 0 : index
      %114 = vector.load %arg5[%c2_35, %c0_36, %c0_37] : memref<8x16x128xbf16, #tpu.memory_space<vmem>>, vector<1x16x128xbf16>
      %115 = vector.shape_cast %114 : vector<1x16x128xbf16> to vector<16x128xbf16>
      %116 = vector.shape_cast %113 : vector<16x128xbf16> to vector<1x16x128xbf16>
      tpu.vector_store %arg5[%c2_35, %c0_36, %c0_37], %116 {strides = array<i32>} : memref<8x16x128xbf16, #tpu.memory_space<vmem>>, vector<1x16x128xbf16>,
      %c0_38 = arith.constant 0 : index
      %c3 = arith.constant 3 : index
      %c0_39 = arith.constant 0 : index
      %c0_40 = arith.constant 0 : index
      %117 = vector.load %arg3[%c0_38, %c3, %c0_39, %c0_40] : memref<1x8x16x512xbf16, #tpu.memory_space<vmem>>, vector<1x1x16x512xbf16>
      %118 = vector.shape_cast %117 : vector<1x1x16x512xbf16> to vector<16x512xbf16>
      %119 = arith.extf %118 : vector<16x512xbf16> to vector<16x512xf32>
      %120 = arith.truncf %111 : vector<16x128xf32> to vector<16x128xbf16>
      %cst_41 = arith.constant dense<0.000000e+00> : vector<16x512xf32>
      %121 = tpu.matmul %120, %4, %cst_41 {dimension_numbers = #tpu.dot_dimension_numbers<[1], [0], [0], [1], [0, 0, 1, 1], [], []>} : vector<16x128xbf16>, vector<128x512xbf16>, vector<16x512xf32> -> vector<16x512xf32>
      %122 = arith.addf %119, %121 : vector<16x512xf32>
      %123 = vector.extract_strided_slice %122 {offsets = [0, 0], sizes = [16, 384], strides = [1, 1]} : vector<16x512xf32> to vector<16x384xf32>
      %124 = arith.negf %123 : vector<16x384xf32>
      %125 = math.exp %124 : vector<16x384xf32>
      %cst_42 = arith.constant 1.000000e+00 : f32
      %126 = vector.broadcast %cst_42 : f32 to vector<16x384xf32>
      %127 = arith.addf %126, %125 : vector<16x384xf32>
      %128 = arith.divf %126, %127 : vector<16x384xf32>
      %129 = vector.extract_strided_slice %128 {offsets = [0, 0], sizes = [16, 128], strides = [1, 1]} : vector<16x384xf32> to vector<16x128xf32>
      %130 = vector.extract_strided_slice %128 {offsets = [0, 128], sizes = [16, 128], strides = [1, 1]} : vector<16x384xf32> to vector<16x128xf32>
      %131 = vector.extract_strided_slice %128 {offsets = [0, 256], sizes = [16, 128], strides = [1, 1]} : vector<16x384xf32> to vector<16x128xf32>
      %132 = vector.extract_strided_slice %122 {offsets = [0, 384], sizes = [16, 128], strides = [1, 1]} : vector<16x512xf32> to vector<16x128xf32>
      %133 = math.tanh %132 : vector<16x128xf32>
      %134 = arith.mulf %130, %112 : vector<16x128xf32>
      %135 = arith.mulf %129, %133 : vector<16x128xf32>
      %136 = arith.addf %134, %135 : vector<16x128xf32>
      %137 = math.tanh %136 : vector<16x128xf32>
      %138 = arith.mulf %131, %137 : vector<16x128xf32>
      %c3_i32 = arith.constant 3 : i32
      %139 = arith.addi %15, %c3_i32 : i32
      %140 = arith.index_cast %139 : i32 to index
      %141 = memref.load %arg2[%140] : memref<16xi32, #tpu.memory_space<smem>>
      %142 = vector.broadcast %141 : i32 to vector<16x128xi32>
      %143 = arith.cmpi slt, %5, %142 : vector<16x128xi32>
      %144 = arith.select %143, %138, %111 : vector<16x128xi1>, vector<16x128xf32>
      %145 = arith.select %143, %136, %112 : vector<16x128xi1>, vector<16x128xf32>
      %146 = arith.truncf %144 : vector<16x128xf32> to vector<16x128xbf16>
      %c3_43 = arith.constant 3 : index
      %c0_44 = arith.constant 0 : index
      %c0_45 = arith.constant 0 : index
      %147 = vector.load %arg5[%c3_43, %c0_44, %c0_45] : memref<8x16x128xbf16, #tpu.memory_space<vmem>>, vector<1x16x128xbf16>
      %148 = vector.shape_cast %147 : vector<1x16x128xbf16> to vector<16x128xbf16>
      %149 = vector.shape_cast %146 : vector<16x128xbf16> to vector<1x16x128xbf16>
      tpu.vector_store %arg5[%c3_43, %c0_44, %c0_45], %149 {strides = array<i32>} : memref<8x16x128xbf16, #tpu.memory_space<vmem>>, vector<1x16x128xbf16>,
      %c0_46 = arith.constant 0 : index
      %c4 = arith.constant 4 : index
      %c0_47 = arith.constant 0 : index
      %c0_48 = arith.constant 0 : index
      %150 = vector.load %arg3[%c0_46, %c4, %c0_47, %c0_48] : memref<1x8x16x512xbf16, #tpu.memory_space<vmem>>, vector<1x1x16x512xbf16>
      %151 = vector.shape_cast %150 : vector<1x1x16x512xbf16> to vector<16x512xbf16>
      %152 = arith.extf %151 : vector<16x512xbf16> to vector<16x512xf32>
      %153 = arith.truncf %144 : vector<16x128xf32> to vector<16x128xbf16>
      %cst_49 = arith.constant dense<0.000000e+00> : vector<16x512xf32>
      %154 = tpu.matmul %153, %4, %cst_49 {dimension_numbers = #tpu.dot_dimension_numbers<[1], [0], [0], [1], [0, 0, 1, 1], [], []>} : vector<16x128xbf16>, vector<128x512xbf16>, vector<16x512xf32> -> vector<16x512xf32>
      %155 = arith.addf %152, %154 : vector<16x512xf32>
      %156 = vector.extract_strided_slice %155 {offsets = [0, 0], sizes = [16, 384], strides = [1, 1]} : vector<16x512xf32> to vector<16x384xf32>
      %157 = arith.negf %156 : vector<16x384xf32>
      %158 = math.exp %157 : vector<16x384xf32>
      %cst_50 = arith.constant 1.000000e+00 : f32
      %159 = vector.broadcast %cst_50 : f32 to vector<16x384xf32>
      %160 = arith.addf %159, %158 : vector<16x384xf32>
      %161 = arith.divf %159, %160 : vector<16x384xf32>
      %162 = vector.extract_strided_slice %161 {offsets = [0, 0], sizes = [16, 128], strides = [1, 1]} : vector<16x384xf32> to vector<16x128xf32>
      %163 = vector.extract_strided_slice %161 {offsets = [0, 128], sizes = [16, 128], strides = [1, 1]} : vector<16x384xf32> to vector<16x128xf32>
      %164 = vector.extract_strided_slice %161 {offsets = [0, 256], sizes = [16, 128], strides = [1, 1]} : vector<16x384xf32> to vector<16x128xf32>
      %165 = vector.extract_strided_slice %155 {offsets = [0, 384], sizes = [16, 128], strides = [1, 1]} : vector<16x512xf32> to vector<16x128xf32>
      %166 = math.tanh %165 : vector<16x128xf32>
      %167 = arith.mulf %163, %145 : vector<16x128xf32>
      %168 = arith.mulf %162, %166 : vector<16x128xf32>
      %169 = arith.addf %167, %168 : vector<16x128xf32>
      %170 = math.tanh %169 : vector<16x128xf32>
      %171 = arith.mulf %164, %170 : vector<16x128xf32>
      %c4_i32 = arith.constant 4 : i32
      %172 = arith.addi %15, %c4_i32 : i32
      %173 = arith.index_cast %172 : i32 to index
      %174 = memref.load %arg2[%173] : memref<16xi32, #tpu.memory_space<smem>>
      %175 = vector.broadcast %174 : i32 to vector<16x128xi32>
      %176 = arith.cmpi slt, %5, %175 : vector<16x128xi32>
      %177 = arith.select %176, %171, %144 : vector<16x128xi1>, vector<16x128xf32>
      %178 = arith.select %176, %169, %145 : vector<16x128xi1>, vector<16x128xf32>
      %179 = arith.truncf %177 : vector<16x128xf32> to vector<16x128xbf16>
      %c4_51 = arith.constant 4 : index
      %c0_52 = arith.constant 0 : index
      %c0_53 = arith.constant 0 : index
      %180 = vector.load %arg5[%c4_51, %c0_52, %c0_53] : memref<8x16x128xbf16, #tpu.memory_space<vmem>>, vector<1x16x128xbf16>
      %181 = vector.shape_cast %180 : vector<1x16x128xbf16> to vector<16x128xbf16>
      %182 = vector.shape_cast %179 : vector<16x128xbf16> to vector<1x16x128xbf16>
      tpu.vector_store %arg5[%c4_51, %c0_52, %c0_53], %182 {strides = array<i32>} : memref<8x16x128xbf16, #tpu.memory_space<vmem>>, vector<1x16x128xbf16>,
      %c0_54 = arith.constant 0 : index
      %c5 = arith.constant 5 : index
      %c0_55 = arith.constant 0 : index
      %c0_56 = arith.constant 0 : index
      %183 = vector.load %arg3[%c0_54, %c5, %c0_55, %c0_56] : memref<1x8x16x512xbf16, #tpu.memory_space<vmem>>, vector<1x1x16x512xbf16>
      %184 = vector.shape_cast %183 : vector<1x1x16x512xbf16> to vector<16x512xbf16>
      %185 = arith.extf %184 : vector<16x512xbf16> to vector<16x512xf32>
      %186 = arith.truncf %177 : vector<16x128xf32> to vector<16x128xbf16>
      %cst_57 = arith.constant dense<0.000000e+00> : vector<16x512xf32>
      %187 = tpu.matmul %186, %4, %cst_57 {dimension_numbers = #tpu.dot_dimension_numbers<[1], [0], [0], [1], [0, 0, 1, 1], [], []>} : vector<16x128xbf16>, vector<128x512xbf16>, vector<16x512xf32> -> vector<16x512xf32>
      %188 = arith.addf %185, %187 : vector<16x512xf32>
      %189 = vector.extract_strided_slice %188 {offsets = [0, 0], sizes = [16, 384], strides = [1, 1]} : vector<16x512xf32> to vector<16x384xf32>
      %190 = arith.negf %189 : vector<16x384xf32>
      %191 = math.exp %190 : vector<16x384xf32>
      %cst_58 = arith.constant 1.000000e+00 : f32
      %192 = vector.broadcast %cst_58 : f32 to vector<16x384xf32>
      %193 = arith.addf %192, %191 : vector<16x384xf32>
      %194 = arith.divf %192, %193 : vector<16x384xf32>
      %195 = vector.extract_strided_slice %194 {offsets = [0, 0], sizes = [16, 128], strides = [1, 1]} : vector<16x384xf32> to vector<16x128xf32>
      %196 = vector.extract_strided_slice %194 {offsets = [0, 128], sizes = [16, 128], strides = [1, 1]} : vector<16x384xf32> to vector<16x128xf32>
      %197 = vector.extract_strided_slice %194 {offsets = [0, 256], sizes = [16, 128], strides = [1, 1]} : vector<16x384xf32> to vector<16x128xf32>
      %198 = vector.extract_strided_slice %188 {offsets = [0, 384], sizes = [16, 128], strides = [1, 1]} : vector<16x512xf32> to vector<16x128xf32>
      %199 = math.tanh %198 : vector<16x128xf32>
      %200 = arith.mulf %196, %178 : vector<16x128xf32>
      %201 = arith.mulf %195, %199 : vector<16x128xf32>
      %202 = arith.addf %200, %201 : vector<16x128xf32>
      %203 = math.tanh %202 : vector<16x128xf32>
      %204 = arith.mulf %197, %203 : vector<16x128xf32>
      %c5_i32 = arith.constant 5 : i32
      %205 = arith.addi %15, %c5_i32 : i32
      %206 = arith.index_cast %205 : i32 to index
      %207 = memref.load %arg2[%206] : memref<16xi32, #tpu.memory_space<smem>>
      %208 = vector.broadcast %207 : i32 to vector<16x128xi32>
      %209 = arith.cmpi slt, %5, %208 : vector<16x128xi32>
      %210 = arith.select %209, %204, %177 : vector<16x128xi1>, vector<16x128xf32>
      %211 = arith.select %209, %202, %178 : vector<16x128xi1>, vector<16x128xf32>
      %212 = arith.truncf %210 : vector<16x128xf32> to vector<16x128xbf16>
      %c5_59 = arith.constant 5 : index
      %c0_60 = arith.constant 0 : index
      %c0_61 = arith.constant 0 : index
      %213 = vector.load %arg5[%c5_59, %c0_60, %c0_61] : memref<8x16x128xbf16, #tpu.memory_space<vmem>>, vector<1x16x128xbf16>
      %214 = vector.shape_cast %213 : vector<1x16x128xbf16> to vector<16x128xbf16>
      %215 = vector.shape_cast %212 : vector<16x128xbf16> to vector<1x16x128xbf16>
      tpu.vector_store %arg5[%c5_59, %c0_60, %c0_61], %215 {strides = array<i32>} : memref<8x16x128xbf16, #tpu.memory_space<vmem>>, vector<1x16x128xbf16>,
      %c0_62 = arith.constant 0 : index
      %c6 = arith.constant 6 : index
      %c0_63 = arith.constant 0 : index
      %c0_64 = arith.constant 0 : index
      %216 = vector.load %arg3[%c0_62, %c6, %c0_63, %c0_64] : memref<1x8x16x512xbf16, #tpu.memory_space<vmem>>, vector<1x1x16x512xbf16>
      %217 = vector.shape_cast %216 : vector<1x1x16x512xbf16> to vector<16x512xbf16>
      %218 = arith.extf %217 : vector<16x512xbf16> to vector<16x512xf32>
      %219 = arith.truncf %210 : vector<16x128xf32> to vector<16x128xbf16>
      %cst_65 = arith.constant dense<0.000000e+00> : vector<16x512xf32>
      %220 = tpu.matmul %219, %4, %cst_65 {dimension_numbers = #tpu.dot_dimension_numbers<[1], [0], [0], [1], [0, 0, 1, 1], [], []>} : vector<16x128xbf16>, vector<128x512xbf16>, vector<16x512xf32> -> vector<16x512xf32>
      %221 = arith.addf %218, %220 : vector<16x512xf32>
      %222 = vector.extract_strided_slice %221 {offsets = [0, 0], sizes = [16, 384], strides = [1, 1]} : vector<16x512xf32> to vector<16x384xf32>
      %223 = arith.negf %222 : vector<16x384xf32>
      %224 = math.exp %223 : vector<16x384xf32>
      %cst_66 = arith.constant 1.000000e+00 : f32
      %225 = vector.broadcast %cst_66 : f32 to vector<16x384xf32>
      %226 = arith.addf %225, %224 : vector<16x384xf32>
      %227 = arith.divf %225, %226 : vector<16x384xf32>
      %228 = vector.extract_strided_slice %227 {offsets = [0, 0], sizes = [16, 128], strides = [1, 1]} : vector<16x384xf32> to vector<16x128xf32>
      %229 = vector.extract_strided_slice %227 {offsets = [0, 128], sizes = [16, 128], strides = [1, 1]} : vector<16x384xf32> to vector<16x128xf32>
      %230 = vector.extract_strided_slice %227 {offsets = [0, 256], sizes = [16, 128], strides = [1, 1]} : vector<16x384xf32> to vector<16x128xf32>
      %231 = vector.extract_strided_slice %221 {offsets = [0, 384], sizes = [16, 128], strides = [1, 1]} : vector<16x512xf32> to vector<16x128xf32>
      %232 = math.tanh %231 : vector<16x128xf32>
      %233 = arith.mulf %229, %211 : vector<16x128xf32>
      %234 = arith.mulf %228, %232 : vector<16x128xf32>
      %235 = arith.addf %233, %234 : vector<16x128xf32>
      %236 = math.tanh %235 : vector<16x128xf32>
      %237 = arith.mulf %230, %236 : vector<16x128xf32>
      %c6_i32 = arith.constant 6 : i32
      %238 = arith.addi %15, %c6_i32 : i32
      %239 = arith.index_cast %238 : i32 to index
      %240 = memref.load %arg2[%239] : memref<16xi32, #tpu.memory_space<smem>>
      %241 = vector.broadcast %240 : i32 to vector<16x128xi32>
      %242 = arith.cmpi slt, %5, %241 : vector<16x128xi32>
      %243 = arith.select %242, %237, %210 : vector<16x128xi1>, vector<16x128xf32>
      %244 = arith.select %242, %235, %211 : vector<16x128xi1>, vector<16x128xf32>
      %245 = arith.truncf %243 : vector<16x128xf32> to vector<16x128xbf16>
      %c6_67 = arith.constant 6 : index
      %c0_68 = arith.constant 0 : index
      %c0_69 = arith.constant 0 : index
      %246 = vector.load %arg5[%c6_67, %c0_68, %c0_69] : memref<8x16x128xbf16, #tpu.memory_space<vmem>>, vector<1x16x128xbf16>
      %247 = vector.shape_cast %246 : vector<1x16x128xbf16> to vector<16x128xbf16>
      %248 = vector.shape_cast %245 : vector<16x128xbf16> to vector<1x16x128xbf16>
      tpu.vector_store %arg5[%c6_67, %c0_68, %c0_69], %248 {strides = array<i32>} : memref<8x16x128xbf16, #tpu.memory_space<vmem>>, vector<1x16x128xbf16>,
      %c0_70 = arith.constant 0 : index
      %c7 = arith.constant 7 : index
      %c0_71 = arith.constant 0 : index
      %c0_72 = arith.constant 0 : index
      %249 = vector.load %arg3[%c0_70, %c7, %c0_71, %c0_72] : memref<1x8x16x512xbf16, #tpu.memory_space<vmem>>, vector<1x1x16x512xbf16>
      %250 = vector.shape_cast %249 : vector<1x1x16x512xbf16> to vector<16x512xbf16>
      %251 = arith.extf %250 : vector<16x512xbf16> to vector<16x512xf32>
      %252 = arith.truncf %243 : vector<16x128xf32> to vector<16x128xbf16>
      %cst_73 = arith.constant dense<0.000000e+00> : vector<16x512xf32>
      %253 = tpu.matmul %252, %4, %cst_73 {dimension_numbers = #tpu.dot_dimension_numbers<[1], [0], [0], [1], [0, 0, 1, 1], [], []>} : vector<16x128xbf16>, vector<128x512xbf16>, vector<16x512xf32> -> vector<16x512xf32>
      %254 = arith.addf %251, %253 : vector<16x512xf32>
      %255 = vector.extract_strided_slice %254 {offsets = [0, 0], sizes = [16, 384], strides = [1, 1]} : vector<16x512xf32> to vector<16x384xf32>
      %256 = arith.negf %255 : vector<16x384xf32>
      %257 = math.exp %256 : vector<16x384xf32>
      %cst_74 = arith.constant 1.000000e+00 : f32
      %258 = vector.broadcast %cst_74 : f32 to vector<16x384xf32>
      %259 = arith.addf %258, %257 : vector<16x384xf32>
      %260 = arith.divf %258, %259 : vector<16x384xf32>
      %261 = vector.extract_strided_slice %260 {offsets = [0, 0], sizes = [16, 128], strides = [1, 1]} : vector<16x384xf32> to vector<16x128xf32>
      %262 = vector.extract_strided_slice %260 {offsets = [0, 128], sizes = [16, 128], strides = [1, 1]} : vector<16x384xf32> to vector<16x128xf32>
      %263 = vector.extract_strided_slice %260 {offsets = [0, 256], sizes = [16, 128], strides = [1, 1]} : vector<16x384xf32> to vector<16x128xf32>
      %264 = vector.extract_strided_slice %254 {offsets = [0, 384], sizes = [16, 128], strides = [1, 1]} : vector<16x512xf32> to vector<16x128xf32>
      %265 = math.tanh %264 : vector<16x128xf32>
      %266 = arith.mulf %262, %244 : vector<16x128xf32>
      %267 = arith.mulf %261, %265 : vector<16x128xf32>
      %268 = arith.addf %266, %267 : vector<16x128xf32>
      %269 = math.tanh %268 : vector<16x128xf32>
      %270 = arith.mulf %263, %269 : vector<16x128xf32>
      %c7_i32 = arith.constant 7 : i32
      %271 = arith.addi %15, %c7_i32 : i32
      %272 = arith.index_cast %271 : i32 to index
      %273 = memref.load %arg2[%272] : memref<16xi32, #tpu.memory_space<smem>>
      %274 = vector.broadcast %273 : i32 to vector<16x128xi32>
      %275 = arith.cmpi slt, %5, %274 : vector<16x128xi32>
      %276 = arith.select %275, %270, %243 : vector<16x128xi1>, vector<16x128xf32>
      %277 = arith.select %275, %268, %244 : vector<16x128xi1>, vector<16x128xf32>
      %278 = arith.truncf %276 : vector<16x128xf32> to vector<16x128xbf16>
      %c7_75 = arith.constant 7 : index
      %c0_76 = arith.constant 0 : index
      %c0_77 = arith.constant 0 : index
      %279 = vector.load %arg5[%c7_75, %c0_76, %c0_77] : memref<8x16x128xbf16, #tpu.memory_space<vmem>>, vector<1x16x128xbf16>
      %280 = vector.shape_cast %279 : vector<1x16x128xbf16> to vector<16x128xbf16>
      %281 = vector.shape_cast %278 : vector<16x128xbf16> to vector<1x16x128xbf16>
      tpu.vector_store %arg5[%c7_75, %c0_76, %c0_77], %281 {strides = array<i32>} : memref<8x16x128xbf16, #tpu.memory_space<vmem>>, vector<1x16x128xbf16>,
      %c0_78 = arith.constant 0 : index
      %c0_79 = arith.constant 0 : index
      %282 = vector.load %arg8[%c0_78, %c0_79] : memref<16x128xf32, #tpu.memory_space<vmem>>, vector<16x128xf32>
      tpu.vector_store %arg8[%c0_78, %c0_79], %276 {strides = array<i32>} : memref<16x128xf32, #tpu.memory_space<vmem>>, vector<16x128xf32>,
      %c0_80 = arith.constant 0 : index
      %c0_81 = arith.constant 0 : index
      %283 = vector.load %arg9[%c0_80, %c0_81] : memref<16x128xf32, #tpu.memory_space<vmem>>, vector<16x128xf32>
      tpu.vector_store %arg9[%c0_80, %c0_81], %277 {strides = array<i32>} : memref<16x128xf32, #tpu.memory_space<vmem>>, vector<16x128xf32>,
    } else {
    }
    %c0_i32_5 = arith.constant 0 : i32
    %9 = arith.cmpi ne, %arg0, %c0_i32_5 : i32
    %10 = arith.extui %9 : i1 to i32
    %c0_i32_6 = arith.constant 0 : i32
    %11 = arith.cmpi ne, %10, %c0_i32_6 : i32
    scf.if %11 {
      %c1_i32_8 = arith.constant 1 : i32
      %15 = arith.subi %c1_i32_8, %arg1 : i32
      %c8_i32 = arith.constant 8 : i32
      %16 = arith.muli %15, %c8_i32 : i32
      %c0_9 = arith.constant 0 : index
      %c0_10 = arith.constant 0 : index
      %17 = vector.load %arg8[%c0_9, %c0_10] : memref<16x128xf32, #tpu.memory_space<vmem>>, vector<16x128xf32>
      %c0_11 = arith.constant 0 : index
      %c0_12 = arith.constant 0 : index
      %18 = vector.load %arg9[%c0_11, %c0_12] : memref<16x128xf32, #tpu.memory_space<vmem>>, vector<16x128xf32>
      %c0_13 = arith.constant 0 : index
      %c7 = arith.constant 7 : index
      %c0_14 = arith.constant 0 : index
      %c0_15 = arith.constant 0 : index
      %19 = vector.load %arg3[%c0_13, %c7, %c0_14, %c0_15] : memref<1x8x16x512xbf16, #tpu.memory_space<vmem>>, vector<1x1x16x512xbf16>
      %20 = vector.shape_cast %19 : vector<1x1x16x512xbf16> to vector<16x512xbf16>
      %21 = arith.extf %20 : vector<16x512xbf16> to vector<16x512xf32>
      %22 = arith.truncf %17 : vector<16x128xf32> to vector<16x128xbf16>
      %cst = arith.constant dense<0.000000e+00> : vector<16x512xf32>
      %23 = tpu.matmul %22, %4, %cst {dimension_numbers = #tpu.dot_dimension_numbers<[1], [0], [0], [1], [0, 0, 1, 1], [], []>} : vector<16x128xbf16>, vector<128x512xbf16>, vector<16x512xf32> -> vector<16x512xf32>
      %24 = arith.addf %21, %23 : vector<16x512xf32>
      %25 = vector.extract_strided_slice %24 {offsets = [0, 0], sizes = [16, 384], strides = [1, 1]} : vector<16x512xf32> to vector<16x384xf32>
      %26 = arith.negf %25 : vector<16x384xf32>
      %27 = math.exp %26 : vector<16x384xf32>
      %cst_16 = arith.constant 1.000000e+00 : f32
      %28 = vector.broadcast %cst_16 : f32 to vector<16x384xf32>
      %29 = arith.addf %28, %27 : vector<16x384xf32>
      %30 = arith.divf %28, %29 : vector<16x384xf32>
      %31 = vector.extract_strided_slice %30 {offsets = [0, 0], sizes = [16, 128], strides = [1, 1]} : vector<16x384xf32> to vector<16x128xf32>
      %32 = vector.extract_strided_slice %30 {offsets = [0, 128], sizes = [16, 128], strides = [1, 1]} : vector<16x384xf32> to vector<16x128xf32>
      %33 = vector.extract_strided_slice %30 {offsets = [0, 256], sizes = [16, 128], strides = [1, 1]} : vector<16x384xf32> to vector<16x128xf32>
      %34 = vector.extract_strided_slice %24 {offsets = [0, 384], sizes = [16, 128], strides = [1, 1]} : vector<16x512xf32> to vector<16x128xf32>
      %35 = math.tanh %34 : vector<16x128xf32>
      %36 = arith.mulf %32, %18 : vector<16x128xf32>
      %37 = arith.mulf %31, %35 : vector<16x128xf32>
      %38 = arith.addf %36, %37 : vector<16x128xf32>
      %39 = math.tanh %38 : vector<16x128xf32>
      %40 = arith.mulf %33, %39 : vector<16x128xf32>
      %c7_i32 = arith.constant 7 : i32
      %41 = arith.addi %16, %c7_i32 : i32
      %42 = arith.index_cast %41 : i32 to index
      %43 = memref.load %arg2[%42] : memref<16xi32, #tpu.memory_space<smem>>
      %44 = vector.broadcast %43 : i32 to vector<16x128xi32>
      %45 = arith.cmpi slt, %5, %44 : vector<16x128xi32>
      %46 = arith.select %45, %40, %17 : vector<16x128xi1>, vector<16x128xf32>
      %47 = arith.select %45, %38, %18 : vector<16x128xi1>, vector<16x128xf32>
      %48 = arith.truncf %46 : vector<16x128xf32> to vector<16x128xbf16>
      %c7_17 = arith.constant 7 : index
      %c0_18 = arith.constant 0 : index
      %c0_19 = arith.constant 0 : index
      %49 = vector.load %arg5[%c7_17, %c0_18, %c0_19] : memref<8x16x128xbf16, #tpu.memory_space<vmem>>, vector<1x16x128xbf16>
      %50 = vector.shape_cast %49 : vector<1x16x128xbf16> to vector<16x128xbf16>
      %51 = vector.shape_cast %48 : vector<16x128xbf16> to vector<1x16x128xbf16>
      tpu.vector_store %arg5[%c7_17, %c0_18, %c0_19], %51 {strides = array<i32>} : memref<8x16x128xbf16, #tpu.memory_space<vmem>>, vector<1x16x128xbf16>,
      %c0_20 = arith.constant 0 : index
      %c6 = arith.constant 6 : index
      %c0_21 = arith.constant 0 : index
      %c0_22 = arith.constant 0 : index
      %52 = vector.load %arg3[%c0_20, %c6, %c0_21, %c0_22] : memref<1x8x16x512xbf16, #tpu.memory_space<vmem>>, vector<1x1x16x512xbf16>
      %53 = vector.shape_cast %52 : vector<1x1x16x512xbf16> to vector<16x512xbf16>
      %54 = arith.extf %53 : vector<16x512xbf16> to vector<16x512xf32>
      %55 = arith.truncf %46 : vector<16x128xf32> to vector<16x128xbf16>
      %cst_23 = arith.constant dense<0.000000e+00> : vector<16x512xf32>
      %56 = tpu.matmul %55, %4, %cst_23 {dimension_numbers = #tpu.dot_dimension_numbers<[1], [0], [0], [1], [0, 0, 1, 1], [], []>} : vector<16x128xbf16>, vector<128x512xbf16>, vector<16x512xf32> -> vector<16x512xf32>
      %57 = arith.addf %54, %56 : vector<16x512xf32>
      %58 = vector.extract_strided_slice %57 {offsets = [0, 0], sizes = [16, 384], strides = [1, 1]} : vector<16x512xf32> to vector<16x384xf32>
      %59 = arith.negf %58 : vector<16x384xf32>
      %60 = math.exp %59 : vector<16x384xf32>
      %cst_24 = arith.constant 1.000000e+00 : f32
      %61 = vector.broadcast %cst_24 : f32 to vector<16x384xf32>
      %62 = arith.addf %61, %60 : vector<16x384xf32>
      %63 = arith.divf %61, %62 : vector<16x384xf32>
      %64 = vector.extract_strided_slice %63 {offsets = [0, 0], sizes = [16, 128], strides = [1, 1]} : vector<16x384xf32> to vector<16x128xf32>
      %65 = vector.extract_strided_slice %63 {offsets = [0, 128], sizes = [16, 128], strides = [1, 1]} : vector<16x384xf32> to vector<16x128xf32>
      %66 = vector.extract_strided_slice %63 {offsets = [0, 256], sizes = [16, 128], strides = [1, 1]} : vector<16x384xf32> to vector<16x128xf32>
      %67 = vector.extract_strided_slice %57 {offsets = [0, 384], sizes = [16, 128], strides = [1, 1]} : vector<16x512xf32> to vector<16x128xf32>
      %68 = math.tanh %67 : vector<16x128xf32>
      %69 = arith.mulf %65, %47 : vector<16x128xf32>
      %70 = arith.mulf %64, %68 : vector<16x128xf32>
      %71 = arith.addf %69, %70 : vector<16x128xf32>
      %72 = math.tanh %71 : vector<16x128xf32>
      %73 = arith.mulf %66, %72 : vector<16x128xf32>
      %c6_i32 = arith.constant 6 : i32
      %74 = arith.addi %16, %c6_i32 : i32
      %75 = arith.index_cast %74 : i32 to index
      %76 = memref.load %arg2[%75] : memref<16xi32, #tpu.memory_space<smem>>
      %77 = vector.broadcast %76 : i32 to vector<16x128xi32>
      %78 = arith.cmpi slt, %5, %77 : vector<16x128xi32>
      %79 = arith.select %78, %73, %46 : vector<16x128xi1>, vector<16x128xf32>
      %80 = arith.select %78, %71, %47 : vector<16x128xi1>, vector<16x128xf32>
      %81 = arith.truncf %79 : vector<16x128xf32> to vector<16x128xbf16>
      %c6_25 = arith.constant 6 : index
      %c0_26 = arith.constant 0 : index
      %c0_27 = arith.constant 0 : index
      %82 = vector.load %arg5[%c6_25, %c0_26, %c0_27] : memref<8x16x128xbf16, #tpu.memory_space<vmem>>, vector<1x16x128xbf16>
      %83 = vector.shape_cast %82 : vector<1x16x128xbf16> to vector<16x128xbf16>
      %84 = vector.shape_cast %81 : vector<16x128xbf16> to vector<1x16x128xbf16>
      tpu.vector_store %arg5[%c6_25, %c0_26, %c0_27], %84 {strides = array<i32>} : memref<8x16x128xbf16, #tpu.memory_space<vmem>>, vector<1x16x128xbf16>,
      %c0_28 = arith.constant 0 : index
      %c5 = arith.constant 5 : index
      %c0_29 = arith.constant 0 : index
      %c0_30 = arith.constant 0 : index
      %85 = vector.load %arg3[%c0_28, %c5, %c0_29, %c0_30] : memref<1x8x16x512xbf16, #tpu.memory_space<vmem>>, vector<1x1x16x512xbf16>
      %86 = vector.shape_cast %85 : vector<1x1x16x512xbf16> to vector<16x512xbf16>
      %87 = arith.extf %86 : vector<16x512xbf16> to vector<16x512xf32>
      %88 = arith.truncf %79 : vector<16x128xf32> to vector<16x128xbf16>
      %cst_31 = arith.constant dense<0.000000e+00> : vector<16x512xf32>
      %89 = tpu.matmul %88, %4, %cst_31 {dimension_numbers = #tpu.dot_dimension_numbers<[1], [0], [0], [1], [0, 0, 1, 1], [], []>} : vector<16x128xbf16>, vector<128x512xbf16>, vector<16x512xf32> -> vector<16x512xf32>
      %90 = arith.addf %87, %89 : vector<16x512xf32>
      %91 = vector.extract_strided_slice %90 {offsets = [0, 0], sizes = [16, 384], strides = [1, 1]} : vector<16x512xf32> to vector<16x384xf32>
      %92 = arith.negf %91 : vector<16x384xf32>
      %93 = math.exp %92 : vector<16x384xf32>
      %cst_32 = arith.constant 1.000000e+00 : f32
      %94 = vector.broadcast %cst_32 : f32 to vector<16x384xf32>
      %95 = arith.addf %94, %93 : vector<16x384xf32>
      %96 = arith.divf %94, %95 : vector<16x384xf32>
      %97 = vector.extract_strided_slice %96 {offsets = [0, 0], sizes = [16, 128], strides = [1, 1]} : vector<16x384xf32> to vector<16x128xf32>
      %98 = vector.extract_strided_slice %96 {offsets = [0, 128], sizes = [16, 128], strides = [1, 1]} : vector<16x384xf32> to vector<16x128xf32>
      %99 = vector.extract_strided_slice %96 {offsets = [0, 256], sizes = [16, 128], strides = [1, 1]} : vector<16x384xf32> to vector<16x128xf32>
      %100 = vector.extract_strided_slice %90 {offsets = [0, 384], sizes = [16, 128], strides = [1, 1]} : vector<16x512xf32> to vector<16x128xf32>
      %101 = math.tanh %100 : vector<16x128xf32>
      %102 = arith.mulf %98, %80 : vector<16x128xf32>
      %103 = arith.mulf %97, %101 : vector<16x128xf32>
      %104 = arith.addf %102, %103 : vector<16x128xf32>
      %105 = math.tanh %104 : vector<16x128xf32>
      %106 = arith.mulf %99, %105 : vector<16x128xf32>
      %c5_i32 = arith.constant 5 : i32
      %107 = arith.addi %16, %c5_i32 : i32
      %108 = arith.index_cast %107 : i32 to index
      %109 = memref.load %arg2[%108] : memref<16xi32, #tpu.memory_space<smem>>
      %110 = vector.broadcast %109 : i32 to vector<16x128xi32>
      %111 = arith.cmpi slt, %5, %110 : vector<16x128xi32>
      %112 = arith.select %111, %106, %79 : vector<16x128xi1>, vector<16x128xf32>
      %113 = arith.select %111, %104, %80 : vector<16x128xi1>, vector<16x128xf32>
      %114 = arith.truncf %112 : vector<16x128xf32> to vector<16x128xbf16>
      %c5_33 = arith.constant 5 : index
      %c0_34 = arith.constant 0 : index
      %c0_35 = arith.constant 0 : index
      %115 = vector.load %arg5[%c5_33, %c0_34, %c0_35] : memref<8x16x128xbf16, #tpu.memory_space<vmem>>, vector<1x16x128xbf16>
      %116 = vector.shape_cast %115 : vector<1x16x128xbf16> to vector<16x128xbf16>
      %117 = vector.shape_cast %114 : vector<16x128xbf16> to vector<1x16x128xbf16>
      tpu.vector_store %arg5[%c5_33, %c0_34, %c0_35], %117 {strides = array<i32>} : memref<8x16x128xbf16, #tpu.memory_space<vmem>>, vector<1x16x128xbf16>,
      %c0_36 = arith.constant 0 : index
      %c4 = arith.constant 4 : index
      %c0_37 = arith.constant 0 : index
      %c0_38 = arith.constant 0 : index
      %118 = vector.load %arg3[%c0_36, %c4, %c0_37, %c0_38] : memref<1x8x16x512xbf16, #tpu.memory_space<vmem>>, vector<1x1x16x512xbf16>
      %119 = vector.shape_cast %118 : vector<1x1x16x512xbf16> to vector<16x512xbf16>
      %120 = arith.extf %119 : vector<16x512xbf16> to vector<16x512xf32>
      %121 = arith.truncf %112 : vector<16x128xf32> to vector<16x128xbf16>
      %cst_39 = arith.constant dense<0.000000e+00> : vector<16x512xf32>
      %122 = tpu.matmul %121, %4, %cst_39 {dimension_numbers = #tpu.dot_dimension_numbers<[1], [0], [0], [1], [0, 0, 1, 1], [], []>} : vector<16x128xbf16>, vector<128x512xbf16>, vector<16x512xf32> -> vector<16x512xf32>
      %123 = arith.addf %120, %122 : vector<16x512xf32>
      %124 = vector.extract_strided_slice %123 {offsets = [0, 0], sizes = [16, 384], strides = [1, 1]} : vector<16x512xf32> to vector<16x384xf32>
      %125 = arith.negf %124 : vector<16x384xf32>
      %126 = math.exp %125 : vector<16x384xf32>
      %cst_40 = arith.constant 1.000000e+00 : f32
      %127 = vector.broadcast %cst_40 : f32 to vector<16x384xf32>
      %128 = arith.addf %127, %126 : vector<16x384xf32>
      %129 = arith.divf %127, %128 : vector<16x384xf32>
      %130 = vector.extract_strided_slice %129 {offsets = [0, 0], sizes = [16, 128], strides = [1, 1]} : vector<16x384xf32> to vector<16x128xf32>
      %131 = vector.extract_strided_slice %129 {offsets = [0, 128], sizes = [16, 128], strides = [1, 1]} : vector<16x384xf32> to vector<16x128xf32>
      %132 = vector.extract_strided_slice %129 {offsets = [0, 256], sizes = [16, 128], strides = [1, 1]} : vector<16x384xf32> to vector<16x128xf32>
      %133 = vector.extract_strided_slice %123 {offsets = [0, 384], sizes = [16, 128], strides = [1, 1]} : vector<16x512xf32> to vector<16x128xf32>
      %134 = math.tanh %133 : vector<16x128xf32>
      %135 = arith.mulf %131, %113 : vector<16x128xf32>
      %136 = arith.mulf %130, %134 : vector<16x128xf32>
      %137 = arith.addf %135, %136 : vector<16x128xf32>
      %138 = math.tanh %137 : vector<16x128xf32>
      %139 = arith.mulf %132, %138 : vector<16x128xf32>
      %c4_i32 = arith.constant 4 : i32
      %140 = arith.addi %16, %c4_i32 : i32
      %141 = arith.index_cast %140 : i32 to index
      %142 = memref.load %arg2[%141] : memref<16xi32, #tpu.memory_space<smem>>
      %143 = vector.broadcast %142 : i32 to vector<16x128xi32>
      %144 = arith.cmpi slt, %5, %143 : vector<16x128xi32>
      %145 = arith.select %144, %139, %112 : vector<16x128xi1>, vector<16x128xf32>
      %146 = arith.select %144, %137, %113 : vector<16x128xi1>, vector<16x128xf32>
      %147 = arith.truncf %145 : vector<16x128xf32> to vector<16x128xbf16>
      %c4_41 = arith.constant 4 : index
      %c0_42 = arith.constant 0 : index
      %c0_43 = arith.constant 0 : index
      %148 = vector.load %arg5[%c4_41, %c0_42, %c0_43] : memref<8x16x128xbf16, #tpu.memory_space<vmem>>, vector<1x16x128xbf16>
      %149 = vector.shape_cast %148 : vector<1x16x128xbf16> to vector<16x128xbf16>
      %150 = vector.shape_cast %147 : vector<16x128xbf16> to vector<1x16x128xbf16>
      tpu.vector_store %arg5[%c4_41, %c0_42, %c0_43], %150 {strides = array<i32>} : memref<8x16x128xbf16, #tpu.memory_space<vmem>>, vector<1x16x128xbf16>,
      %c0_44 = arith.constant 0 : index
      %c3 = arith.constant 3 : index
      %c0_45 = arith.constant 0 : index
      %c0_46 = arith.constant 0 : index
      %151 = vector.load %arg3[%c0_44, %c3, %c0_45, %c0_46] : memref<1x8x16x512xbf16, #tpu.memory_space<vmem>>, vector<1x1x16x512xbf16>
      %152 = vector.shape_cast %151 : vector<1x1x16x512xbf16> to vector<16x512xbf16>
      %153 = arith.extf %152 : vector<16x512xbf16> to vector<16x512xf32>
      %154 = arith.truncf %145 : vector<16x128xf32> to vector<16x128xbf16>
      %cst_47 = arith.constant dense<0.000000e+00> : vector<16x512xf32>
      %155 = tpu.matmul %154, %4, %cst_47 {dimension_numbers = #tpu.dot_dimension_numbers<[1], [0], [0], [1], [0, 0, 1, 1], [], []>} : vector<16x128xbf16>, vector<128x512xbf16>, vector<16x512xf32> -> vector<16x512xf32>
      %156 = arith.addf %153, %155 : vector<16x512xf32>
      %157 = vector.extract_strided_slice %156 {offsets = [0, 0], sizes = [16, 384], strides = [1, 1]} : vector<16x512xf32> to vector<16x384xf32>
      %158 = arith.negf %157 : vector<16x384xf32>
      %159 = math.exp %158 : vector<16x384xf32>
      %cst_48 = arith.constant 1.000000e+00 : f32
      %160 = vector.broadcast %cst_48 : f32 to vector<16x384xf32>
      %161 = arith.addf %160, %159 : vector<16x384xf32>
      %162 = arith.divf %160, %161 : vector<16x384xf32>
      %163 = vector.extract_strided_slice %162 {offsets = [0, 0], sizes = [16, 128], strides = [1, 1]} : vector<16x384xf32> to vector<16x128xf32>
      %164 = vector.extract_strided_slice %162 {offsets = [0, 128], sizes = [16, 128], strides = [1, 1]} : vector<16x384xf32> to vector<16x128xf32>
      %165 = vector.extract_strided_slice %162 {offsets = [0, 256], sizes = [16, 128], strides = [1, 1]} : vector<16x384xf32> to vector<16x128xf32>
      %166 = vector.extract_strided_slice %156 {offsets = [0, 384], sizes = [16, 128], strides = [1, 1]} : vector<16x512xf32> to vector<16x128xf32>
      %167 = math.tanh %166 : vector<16x128xf32>
      %168 = arith.mulf %164, %146 : vector<16x128xf32>
      %169 = arith.mulf %163, %167 : vector<16x128xf32>
      %170 = arith.addf %168, %169 : vector<16x128xf32>
      %171 = math.tanh %170 : vector<16x128xf32>
      %172 = arith.mulf %165, %171 : vector<16x128xf32>
      %c3_i32 = arith.constant 3 : i32
      %173 = arith.addi %16, %c3_i32 : i32
      %174 = arith.index_cast %173 : i32 to index
      %175 = memref.load %arg2[%174] : memref<16xi32, #tpu.memory_space<smem>>
      %176 = vector.broadcast %175 : i32 to vector<16x128xi32>
      %177 = arith.cmpi slt, %5, %176 : vector<16x128xi32>
      %178 = arith.select %177, %172, %145 : vector<16x128xi1>, vector<16x128xf32>
      %179 = arith.select %177, %170, %146 : vector<16x128xi1>, vector<16x128xf32>
      %180 = arith.truncf %178 : vector<16x128xf32> to vector<16x128xbf16>
      %c3_49 = arith.constant 3 : index
      %c0_50 = arith.constant 0 : index
      %c0_51 = arith.constant 0 : index
      %181 = vector.load %arg5[%c3_49, %c0_50, %c0_51] : memref<8x16x128xbf16, #tpu.memory_space<vmem>>, vector<1x16x128xbf16>
      %182 = vector.shape_cast %181 : vector<1x16x128xbf16> to vector<16x128xbf16>
      %183 = vector.shape_cast %180 : vector<16x128xbf16> to vector<1x16x128xbf16>
      tpu.vector_store %arg5[%c3_49, %c0_50, %c0_51], %183 {strides = array<i32>} : memref<8x16x128xbf16, #tpu.memory_space<vmem>>, vector<1x16x128xbf16>,
      %c0_52 = arith.constant 0 : index
      %c2 = arith.constant 2 : index
      %c0_53 = arith.constant 0 : index
      %c0_54 = arith.constant 0 : index
      %184 = vector.load %arg3[%c0_52, %c2, %c0_53, %c0_54] : memref<1x8x16x512xbf16, #tpu.memory_space<vmem>>, vector<1x1x16x512xbf16>
      %185 = vector.shape_cast %184 : vector<1x1x16x512xbf16> to vector<16x512xbf16>
      %186 = arith.extf %185 : vector<16x512xbf16> to vector<16x512xf32>
      %187 = arith.truncf %178 : vector<16x128xf32> to vector<16x128xbf16>
      %cst_55 = arith.constant dense<0.000000e+00> : vector<16x512xf32>
      %188 = tpu.matmul %187, %4, %cst_55 {dimension_numbers = #tpu.dot_dimension_numbers<[1], [0], [0], [1], [0, 0, 1, 1], [], []>} : vector<16x128xbf16>, vector<128x512xbf16>, vector<16x512xf32> -> vector<16x512xf32>
      %189 = arith.addf %186, %188 : vector<16x512xf32>
      %190 = vector.extract_strided_slice %189 {offsets = [0, 0], sizes = [16, 384], strides = [1, 1]} : vector<16x512xf32> to vector<16x384xf32>
      %191 = arith.negf %190 : vector<16x384xf32>
      %192 = math.exp %191 : vector<16x384xf32>
      %cst_56 = arith.constant 1.000000e+00 : f32
      %193 = vector.broadcast %cst_56 : f32 to vector<16x384xf32>
      %194 = arith.addf %193, %192 : vector<16x384xf32>
      %195 = arith.divf %193, %194 : vector<16x384xf32>
      %196 = vector.extract_strided_slice %195 {offsets = [0, 0], sizes = [16, 128], strides = [1, 1]} : vector<16x384xf32> to vector<16x128xf32>
      %197 = vector.extract_strided_slice %195 {offsets = [0, 128], sizes = [16, 128], strides = [1, 1]} : vector<16x384xf32> to vector<16x128xf32>
      %198 = vector.extract_strided_slice %195 {offsets = [0, 256], sizes = [16, 128], strides = [1, 1]} : vector<16x384xf32> to vector<16x128xf32>
      %199 = vector.extract_strided_slice %189 {offsets = [0, 384], sizes = [16, 128], strides = [1, 1]} : vector<16x512xf32> to vector<16x128xf32>
      %200 = math.tanh %199 : vector<16x128xf32>
      %201 = arith.mulf %197, %179 : vector<16x128xf32>
      %202 = arith.mulf %196, %200 : vector<16x128xf32>
      %203 = arith.addf %201, %202 : vector<16x128xf32>
      %204 = math.tanh %203 : vector<16x128xf32>
      %205 = arith.mulf %198, %204 : vector<16x128xf32>
      %c2_i32 = arith.constant 2 : i32
      %206 = arith.addi %16, %c2_i32 : i32
      %207 = arith.index_cast %206 : i32 to index
      %208 = memref.load %arg2[%207] : memref<16xi32, #tpu.memory_space<smem>>
      %209 = vector.broadcast %208 : i32 to vector<16x128xi32>
      %210 = arith.cmpi slt, %5, %209 : vector<16x128xi32>
      %211 = arith.select %210, %205, %178 : vector<16x128xi1>, vector<16x128xf32>
      %212 = arith.select %210, %203, %179 : vector<16x128xi1>, vector<16x128xf32>
      %213 = arith.truncf %211 : vector<16x128xf32> to vector<16x128xbf16>
      %c2_57 = arith.constant 2 : index
      %c0_58 = arith.constant 0 : index
      %c0_59 = arith.constant 0 : index
      %214 = vector.load %arg5[%c2_57, %c0_58, %c0_59] : memref<8x16x128xbf16, #tpu.memory_space<vmem>>, vector<1x16x128xbf16>
      %215 = vector.shape_cast %214 : vector<1x16x128xbf16> to vector<16x128xbf16>
      %216 = vector.shape_cast %213 : vector<16x128xbf16> to vector<1x16x128xbf16>
      tpu.vector_store %arg5[%c2_57, %c0_58, %c0_59], %216 {strides = array<i32>} : memref<8x16x128xbf16, #tpu.memory_space<vmem>>, vector<1x16x128xbf16>,
      %c0_60 = arith.constant 0 : index
      %c1 = arith.constant 1 : index
      %c0_61 = arith.constant 0 : index
      %c0_62 = arith.constant 0 : index
      %217 = vector.load %arg3[%c0_60, %c1, %c0_61, %c0_62] : memref<1x8x16x512xbf16, #tpu.memory_space<vmem>>, vector<1x1x16x512xbf16>
      %218 = vector.shape_cast %217 : vector<1x1x16x512xbf16> to vector<16x512xbf16>
      %219 = arith.extf %218 : vector<16x512xbf16> to vector<16x512xf32>
      %220 = arith.truncf %211 : vector<16x128xf32> to vector<16x128xbf16>
      %cst_63 = arith.constant dense<0.000000e+00> : vector<16x512xf32>
      %221 = tpu.matmul %220, %4, %cst_63 {dimension_numbers = #tpu.dot_dimension_numbers<[1], [0], [0], [1], [0, 0, 1, 1], [], []>} : vector<16x128xbf16>, vector<128x512xbf16>, vector<16x512xf32> -> vector<16x512xf32>
      %222 = arith.addf %219, %221 : vector<16x512xf32>
      %223 = vector.extract_strided_slice %222 {offsets = [0, 0], sizes = [16, 384], strides = [1, 1]} : vector<16x512xf32> to vector<16x384xf32>
      %224 = arith.negf %223 : vector<16x384xf32>
      %225 = math.exp %224 : vector<16x384xf32>
      %cst_64 = arith.constant 1.000000e+00 : f32
      %226 = vector.broadcast %cst_64 : f32 to vector<16x384xf32>
      %227 = arith.addf %226, %225 : vector<16x384xf32>
      %228 = arith.divf %226, %227 : vector<16x384xf32>
      %229 = vector.extract_strided_slice %228 {offsets = [0, 0], sizes = [16, 128], strides = [1, 1]} : vector<16x384xf32> to vector<16x128xf32>
      %230 = vector.extract_strided_slice %228 {offsets = [0, 128], sizes = [16, 128], strides = [1, 1]} : vector<16x384xf32> to vector<16x128xf32>
      %231 = vector.extract_strided_slice %228 {offsets = [0, 256], sizes = [16, 128], strides = [1, 1]} : vector<16x384xf32> to vector<16x128xf32>
      %232 = vector.extract_strided_slice %222 {offsets = [0, 384], sizes = [16, 128], strides = [1, 1]} : vector<16x512xf32> to vector<16x128xf32>
      %233 = math.tanh %232 : vector<16x128xf32>
      %234 = arith.mulf %230, %212 : vector<16x128xf32>
      %235 = arith.mulf %229, %233 : vector<16x128xf32>
      %236 = arith.addf %234, %235 : vector<16x128xf32>
      %237 = math.tanh %236 : vector<16x128xf32>
      %238 = arith.mulf %231, %237 : vector<16x128xf32>
      %c1_i32_65 = arith.constant 1 : i32
      %239 = arith.addi %16, %c1_i32_65 : i32
      %240 = arith.index_cast %239 : i32 to index
      %241 = memref.load %arg2[%240] : memref<16xi32, #tpu.memory_space<smem>>
      %242 = vector.broadcast %241 : i32 to vector<16x128xi32>
      %243 = arith.cmpi slt, %5, %242 : vector<16x128xi32>
      %244 = arith.select %243, %238, %211 : vector<16x128xi1>, vector<16x128xf32>
      %245 = arith.select %243, %236, %212 : vector<16x128xi1>, vector<16x128xf32>
      %246 = arith.truncf %244 : vector<16x128xf32> to vector<16x128xbf16>
      %c1_66 = arith.constant 1 : index
      %c0_67 = arith.constant 0 : index
      %c0_68 = arith.constant 0 : index
      %247 = vector.load %arg5[%c1_66, %c0_67, %c0_68] : memref<8x16x128xbf16, #tpu.memory_space<vmem>>, vector<1x16x128xbf16>
      %248 = vector.shape_cast %247 : vector<1x16x128xbf16> to vector<16x128xbf16>
      %249 = vector.shape_cast %246 : vector<16x128xbf16> to vector<1x16x128xbf16>
      tpu.vector_store %arg5[%c1_66, %c0_67, %c0_68], %249 {strides = array<i32>} : memref<8x16x128xbf16, #tpu.memory_space<vmem>>, vector<1x16x128xbf16>,
      %c0_69 = arith.constant 0 : index
      %c0_70 = arith.constant 0 : index
      %c0_71 = arith.constant 0 : index
      %c0_72 = arith.constant 0 : index
      %250 = vector.load %arg3[%c0_69, %c0_70, %c0_71, %c0_72] : memref<1x8x16x512xbf16, #tpu.memory_space<vmem>>, vector<1x1x16x512xbf16>
      %251 = vector.shape_cast %250 : vector<1x1x16x512xbf16> to vector<16x512xbf16>
      %252 = arith.extf %251 : vector<16x512xbf16> to vector<16x512xf32>
      %253 = arith.truncf %244 : vector<16x128xf32> to vector<16x128xbf16>
      %cst_73 = arith.constant dense<0.000000e+00> : vector<16x512xf32>
      %254 = tpu.matmul %253, %4, %cst_73 {dimension_numbers = #tpu.dot_dimension_numbers<[1], [0], [0], [1], [0, 0, 1, 1], [], []>} : vector<16x128xbf16>, vector<128x512xbf16>, vector<16x512xf32> -> vector<16x512xf32>
      %255 = arith.addf %252, %254 : vector<16x512xf32>
      %256 = vector.extract_strided_slice %255 {offsets = [0, 0], sizes = [16, 384], strides = [1, 1]} : vector<16x512xf32> to vector<16x384xf32>
      %257 = arith.negf %256 : vector<16x384xf32>
      %258 = math.exp %257 : vector<16x384xf32>
      %cst_74 = arith.constant 1.000000e+00 : f32
      %259 = vector.broadcast %cst_74 : f32 to vector<16x384xf32>
      %260 = arith.addf %259, %258 : vector<16x384xf32>
      %261 = arith.divf %259, %260 : vector<16x384xf32>
      %262 = vector.extract_strided_slice %261 {offsets = [0, 0], sizes = [16, 128], strides = [1, 1]} : vector<16x384xf32> to vector<16x128xf32>
      %263 = vector.extract_strided_slice %261 {offsets = [0, 128], sizes = [16, 128], strides = [1, 1]} : vector<16x384xf32> to vector<16x128xf32>
      %264 = vector.extract_strided_slice %261 {offsets = [0, 256], sizes = [16, 128], strides = [1, 1]} : vector<16x384xf32> to vector<16x128xf32>
      %265 = vector.extract_strided_slice %255 {offsets = [0, 384], sizes = [16, 128], strides = [1, 1]} : vector<16x512xf32> to vector<16x128xf32>
      %266 = math.tanh %265 : vector<16x128xf32>
      %267 = arith.mulf %263, %245 : vector<16x128xf32>
      %268 = arith.mulf %262, %266 : vector<16x128xf32>
      %269 = arith.addf %267, %268 : vector<16x128xf32>
      %270 = math.tanh %269 : vector<16x128xf32>
      %271 = arith.mulf %264, %270 : vector<16x128xf32>
      %c0_i32_75 = arith.constant 0 : i32
      %272 = arith.addi %16, %c0_i32_75 : i32
      %273 = arith.index_cast %272 : i32 to index
      %274 = memref.load %arg2[%273] : memref<16xi32, #tpu.memory_space<smem>>
      %275 = vector.broadcast %274 : i32 to vector<16x128xi32>
      %276 = arith.cmpi slt, %5, %275 : vector<16x128xi32>
      %277 = arith.select %276, %271, %244 : vector<16x128xi1>, vector<16x128xf32>
      %278 = arith.select %276, %269, %245 : vector<16x128xi1>, vector<16x128xf32>
      %279 = arith.truncf %277 : vector<16x128xf32> to vector<16x128xbf16>
      %c0_76 = arith.constant 0 : index
      %c0_77 = arith.constant 0 : index
      %c0_78 = arith.constant 0 : index
      %280 = vector.load %arg5[%c0_76, %c0_77, %c0_78] : memref<8x16x128xbf16, #tpu.memory_space<vmem>>, vector<1x16x128xbf16>
      %281 = vector.shape_cast %280 : vector<1x16x128xbf16> to vector<16x128xbf16>
      %282 = vector.shape_cast %279 : vector<16x128xbf16> to vector<1x16x128xbf16>
      tpu.vector_store %arg5[%c0_76, %c0_77, %c0_78], %282 {strides = array<i32>} : memref<8x16x128xbf16, #tpu.memory_space<vmem>>, vector<1x16x128xbf16>,
      %c0_79 = arith.constant 0 : index
      %c0_80 = arith.constant 0 : index
      %283 = vector.load %arg8[%c0_79, %c0_80] : memref<16x128xf32, #tpu.memory_space<vmem>>, vector<16x128xf32>
      tpu.vector_store %arg8[%c0_79, %c0_80], %277 {strides = array<i32>} : memref<16x128xf32, #tpu.memory_space<vmem>>, vector<16x128xf32>,
      %c0_81 = arith.constant 0 : index
      %c0_82 = arith.constant 0 : index
      %284 = vector.load %arg9[%c0_81, %c0_82] : memref<16x128xf32, #tpu.memory_space<vmem>>, vector<16x128xf32>
      tpu.vector_store %arg9[%c0_81, %c0_82], %278 {strides = array<i32>} : memref<16x128xf32, #tpu.memory_space<vmem>>, vector<16x128xf32>,
    } else {
    }
    %c1_i32 = arith.constant 1 : i32
    %12 = arith.cmpi eq, %arg1, %c1_i32 : i32
    %13 = arith.extui %12 : i1 to i32
    %c0_i32_7 = arith.constant 0 : i32
    %14 = arith.cmpi ne, %13, %c0_i32_7 : i32
    scf.if %14 {
      %c0_8 = arith.constant 0 : index
      %c0_9 = arith.constant 0 : index
      %15 = vector.load %arg8[%c0_8, %c0_9] : memref<16x128xf32, #tpu.memory_space<vmem>>, vector<16x128xf32>
      %c0_10 = arith.constant 0 : index
      %c0_11 = arith.constant 0 : index
      %c0_12 = arith.constant 0 : index
      %16 = vector.load %arg6[%c0_10, %c0_11, %c0_12] : memref<1x16x128xf32, #tpu.memory_space<vmem>>, vector<1x16x128xf32>
      %17 = vector.shape_cast %16 : vector<1x16x128xf32> to vector<16x128xf32>
      %18 = vector.shape_cast %15 : vector<16x128xf32> to vector<1x16x128xf32>
      tpu.vector_store %arg6[%c0_10, %c0_11, %c0_12], %18 {strides = array<i32>} : memref<1x16x128xf32, #tpu.memory_space<vmem>>, vector<1x16x128xf32>,
      %c0_13 = arith.constant 0 : index
      %c0_14 = arith.constant 0 : index
      %19 = vector.load %arg9[%c0_13, %c0_14] : memref<16x128xf32, #tpu.memory_space<vmem>>, vector<16x128xf32>
      %c0_15 = arith.constant 0 : index
      %c0_16 = arith.constant 0 : index
      %c0_17 = arith.constant 0 : index
      %20 = vector.load %arg7[%c0_15, %c0_16, %c0_17] : memref<1x16x128xf32, #tpu.memory_space<vmem>>, vector<1x16x128xf32>
      %21 = vector.shape_cast %20 : vector<1x16x128xf32> to vector<16x128xf32>
      %22 = vector.shape_cast %19 : vector<16x128xf32> to vector<1x16x128xf32>
      tpu.vector_store %arg7[%c0_15, %c0_16, %c0_17], %22 {strides = array<i32>} : memref<1x16x128xf32, #tpu.memory_space<vmem>>, vector<1x16x128xf32>,
    } else {
    }
    return
  }
  func.func @transform_0(%arg0: i32, %arg1: i32, %arg2: memref<16xi32, #tpu.memory_space<smem>>) -> (i32, i32, i32, i32) {
    %c0_i32 = arith.constant 0 : i32
    %0 = arith.cmpi eq, %arg0, %c0_i32 : i32
    %c1_i32 = arith.constant 1 : i32
    %1 = arith.subi %c1_i32, %arg1 : i32
    %2 = arith.select %0, %arg1, %1 : i32
    %c0_i32_0 = arith.constant 0 : i32
    %c0_i32_1 = arith.constant 0 : i32
    %c0_i32_2 = arith.constant 0 : i32
    return %arg0, %2, %c0_i32_0, %c0_i32_1 : i32, i32, i32, i32
  }
  func.func @transform_1(%arg0: i32, %arg1: i32, %arg2: memref<16xi32, #tpu.memory_space<smem>>) -> (i32, i32, i32) {
    %c0_i32 = arith.constant 0 : i32
    %c0_i32_0 = arith.constant 0 : i32
    %c0_i32_1 = arith.constant 0 : i32
    return %arg0, %c0_i32, %c0_i32_0 : i32, i32, i32
  }
  func.func @transform_2(%arg0: i32, %arg1: i32, %arg2: memref<16xi32, #tpu.memory_space<smem>>) -> (i32, i32, i32) {
    %c0_i32 = arith.constant 0 : i32
    %0 = arith.cmpi eq, %arg0, %c0_i32 : i32
    %c1_i32 = arith.constant 1 : i32
    %1 = arith.subi %c1_i32, %arg1 : i32
    %2 = arith.select %0, %arg1, %1 : i32
    %c0_i32_0 = arith.constant 0 : i32
    %c0_i32_1 = arith.constant 0 : i32
    return %2, %c0_i32_0, %arg0 : i32, i32, i32
  }
  func.func @transform_3(%arg0: i32, %arg1: i32, %arg2: memref<16xi32, #tpu.memory_space<smem>>) -> (i32, i32, i32) {
    %c0_i32 = arith.constant 0 : i32
    %c0_i32_0 = arith.constant 0 : i32
    %c0_i32_1 = arith.constant 0 : i32
    return %arg0, %c0_i32, %c0_i32_0 : i32, i32, i32
  }
  func.func @transform_4(%arg0: i32, %arg1: i32, %arg2: memref<16xi32, #tpu.memory_space<smem>>) -> (i32, i32, i32) {
    %c0_i32 = arith.constant 0 : i32
    %c0_i32_0 = arith.constant 0 : i32
    %c0_i32_1 = arith.constant 0 : i32
    return %arg0, %c0_i32, %c0_i32_0 : i32, i32, i32
  }
}

</mosaic_0001>

<bundles_post_ra>
// kernel: bilstm_forward.3
= control target key start
LH: loop header
LB: loop body
LE: loop exit
PB: predicated region body
PF: predicated region fallthrough
CT: control target
= control target key end

     0   :  { %s6440_s0 = inlined_call_operand.vmem [shape: s32[16], index: 0, kind: input, shape index: {}]   ;;  %s6441_s1 = inlined_call_operand.vmem [shape: bf16[2,16,16,512], index: 1, kind: input, shape index: {}]   ;;  %s6442_s2 = inlined_call_operand.vmem [shape: bf16[2,128,512], index: 2, kind: input, shape index: {}]   ;;  %s6443_s3 = inlined_call_operand.vmem [shape: bf16[16,16,256], index: 3, kind: output, shape index: {0}]   ;;  %s6444_s4 = inlined_call_operand.vmem [shape: f32[2,16,128], index: 4, kind: output, shape index: {1}]   ;;  %s6445_s5 = inlined_call_operand.vmem [shape: f32[2,16,128], index: 5, kind: output, shape index: {2}]  }
   0x1   :  { %s11_s20 = sshll.u32 %s6440_s0, 4  ;;  %s12_s20 = int_to_ptr.vmem [resolvable:$true] %s11_s20 }
   0x2   :  { %s4778_s21 = scalar_lea.vmem %s12_s20, 16  ;;  %p4783_p1 = scmp.lt.s32.totalorder %s12_s20, %s12_s20 }
   0x3   :  { %p4779_p0 = scmp.ne.s32.totalorder %s12_s20, %s4778_s21  ;;  %p4784_p2 = scmp.lt.s32.totalorder %s4778_s21, %s4778_s21 }
   0x5   :  { %p4785_p3 = por %p4784_p2, %p4783_p1 }
   0x7   :  { %p4786_p4 = pnand %p4785_p3, %p4779_p0 }
   0x9   :  { %4789 = shalt.err (!%p4786_p4)  }
   0xa   :  { %s4848_s22 = smov [#allocation5]  }
   0xb   :  { %14 = dma.vmem_to_smem %s12_s20, 16, %s4848_s22, [#allocation4] }
   0xc   :  { %4818 = dma.done.wait [#allocation4], 16 }
   0xd   :  { %4819 = vsyncadd [#allocation4], 4294967280 }
   0xe   :  { %16 = sfence }
   0xf   :  { %s4885_s23 = smov 0   ;;  %s4887_s24 = smov 0  }
  0x10   :  { %s4889_s25 = smov 0   ;;  %s4891_s0 = smov 0  }
  0x11   :  { %s4893_s26 = smov 0   ;;  %s4895_s27 = smov 0  }
  0x12   :  { %s4897_s28 = smov 0  }
  0x13 LB: > { %6523 = sst [smem:[#allocation8_spill]] %s4838_s26  ;;  %s31_s29 = sadd.s32 1, %s4838_s26  ;;  %s4846_s28 = sphi %s4897_s28, %s22_s28   ;;  %s4842_s27 = sphi %s4895_s27, %s6641_s27   ;;  %s4838_s26 = sphi %s4893_s26, %s6640_s26   ;;  %s4834_s0 = sphi %s4891_s0, %s6644_s0   ;;  %s4830_s25 = sphi %s4889_s25, %s6638_s25   ;;  %s4826_s24 = sphi %s4887_s24, %s6643_s24   ;;  %s4822_s23 = sphi %s4885_s23, %s6642_s23  }
  0x14   : > { %6524 = sst [smem:[#allocation9_spill]] %s4842_s27  ;;  %p32_p5 = scmp.ge.s32.totalorder %s31_s29, 2 }
  0x15   : > { %s34_s30 = sadd.s32 1, %s4842_s27  ;;  %p98_p6 = scmp.eq.s32.totalorder %s4842_s27, 0 }
  0x16   : > { %s99_s6 = ssub.s32 1, %s4838_s26  ;;  %s6646_s29 = smov (%p32_p5, %s31_s29), 0 }
  0x17   : > { %6525 = sst [smem:[#allocation10_spill]] %s6646_s29  ;;  %s6648_s30 = smov (!%p32_p5, %s34_s30), %s4842_s27 }
  0x18   : > { %s100_s7 = scalar_select %p98_p6, %s4838_s26, %s99_s6 }
  0x19   : > { %s3772_s8 = sadd.s32 4294967295, %s4846_s28   ;;  %p36_p7 = scmp.ge.s32.totalorder %s6648_s30, 2 }
  0x1a   : > { %s102_s9 = ssub.s32 1, %s6646_s29  ;;  %p119_p8 = scmp.ne.s32.totalorder %s4826_s24, %s4822_s23 }
  0x1b   : > { %s6650_s30 = smov (%p36_p7, %s6648_s30), 0  ;;  %p120_p9 = scmp.eq.s32.totalorder %s3772_s8, 3 }
  0x1c   : > { %6526 = sst [smem:[#allocation11_spill]] %s6650_s30  ;;  %p3776_p10 = scmp.ge.s32.totalorder %s4846_s28, 1 }
  0x1d   : > { %p101_p11 = scmp.eq.s32.totalorder %s6650_s30, 0  ;;  %s105_s10 = ssub.s32 %s4842_s27, %s6650_s30 }
  0x1e   : > { %p4938_p12 = por %p120_p9, %p119_p8  ;;  %p224_p13 = scmp.lt.s32.totalorder %s4846_s28, 5 }
  0x1f   : > { %s103_s12 = scalar_select %p101_p11, %s6646_s29, %s102_s9 }
  0x20   : > { %p225_p0 = pnand %p3776_p10, %p224_p13  ;;  %s109_s15 = sadd.s32 1, %s4826_s24 }
  0x21   : > { %s104_s13 = ssub.s32 %s100_s7, %s103_s12 }
  0x22   : > { %s106_s14 = sor.u32 %s105_s10, %s104_s13  ;;  %228 = sbr.rel (%p225_p0) target bundleno = 4398 (0x112e), region = 28 }
  0x23   : > { %p107_p1 = scmp.eq.s32.totalorder %s106_s14, 0 }
  0x25   : > { %s4946_s16 = scalar_select %p107_p1, %s4826_s24, %s109_s15  }
  0x27   : > { %6528 = sst [smem:[#allocation12_spill]] %s4946_s16 }
  0x29   : > { %s255_s17 = sand.u32 1, %s4822_s23   ;;  %p272_p2 = scmp.eq.s32.totalorder %s4834_s0, 0 }
  0x2a   : > { %s3777_s18 = sshll.u32 %s255_s17, 6  ;;  %s6446_s19 = ssub.s32 1, %s4830_s25 }
  0x2b   : > { %p276_p3 = scmp.lt.s32.totalorder %s4834_s0, 1  ;;  %p3788_p5 = scmp.ne.s32.totalorder %s4830_s25, 0 }
  0x2c   : > { %s4957_s20 = scalar_select %p272_p2, %s4830_s25, %s6446_s19 }
  0x2d   : > { %s277_s21 = scalar_select %p276_p3, %s4834_s0, 1 }
  0x2e   : > { %s3778_s22 = sshll.u32 %s4957_s20, 3  ;;  %v4849_v0 = vmov (!%p3788_p5), 0.0  }
  0x2f   : > { %p278_p4 = scmp.lt.s32.totalorder %s3778_s22, 15  ;;  %s3780_s6 = sshll.u32 %s277_s21, 7  ;;  %313 = vst [vmem:[#allocation2] sm:$0xff] (!%p3788_p5), %v4849_v0  ;;  %314 = vst [vmem:[#allocation2 + $0x8] sm:$0xff] (!%p3788_p5), %v4849_v0 }
  0x30   : > { %s4076_s7 = sshll.u32 %s277_s21, 8  ;;  %s4077_s8 = sshll.u32 %s277_s21, 4  ;;  %315 = vst [vmem:[#allocation3] sm:$0xff] (!%p3788_p5), %v4849_v0  ;;  %316 = vst [vmem:[#allocation3 + $0x8] sm:$0xff] (!%p3788_p5), %v4849_v0 }
  0x31   : > { %s6652_s22 = smov (!%p278_p4, %s3778_s22), 15  ;;  %s4964_s23 = scalar_lea.vmem %s6442_s2, %s4076_s7 }
  0x32   : > { %s4969_s14 = scalar_lea.vmem %s6444_s4, %s4077_s8  ;;  %s3779_s15 = sshll.u32 %s6652_s22, 3 }
  0x33   : > { %s4974_s30 = scalar_lea.vmem %s6445_s5, %s4077_s8  ;;  %s282_s29 = sadd.s32 %s3780_s6, %s3779_s15 }
  0x34   : > { %s3781_s27 = sshll.u32 %s282_s29, 2  ;;  %s4981_s7 = scalar_lea.vmem [#allocation6], %s3777_s18 }
  0x35   : > { %s4979_s16 = scalar_lea.vmem %s6441_s1, %s3781_s27  ;;  %312 = sbr.rel (%p3788_p5) target bundleno = 60 (0x3c), region = 32 }
  0x3c PF: > { %v4985_v1 = vld [vmem:[%s4964_s23] sm:$0xff]  ;;  %v4988_v2 = vld [vmem:[%s4964_s23 + $0x8] sm:$0xff]  ;;  %v4991_v3 = vld [vmem:[%s4964_s23 + $0x10] sm:$0xff]  ;;  %v349_v4 = vlaneseq  ;;  %p3789_p6 = scmp.ne.s32.totalorder %s4834_s0, 0 }
  0x3d   : > { %6529 = vst [vmem:[#allocation13_spill] sm:$0xff] %v4985_v1  ;;  %6530 = vst [vmem:[#allocation14_spill] sm:$0xff] %v4988_v2  ;;  %v4994_v5 = vld [vmem:[%s4964_s23 + $0x18] sm:$0xff]  ;;  %v4997_v6 = vld [vmem:[%s4964_s23 + $0x20] sm:$0xff] }
  0x3e   : > { %6531 = vst [vmem:[#allocation15_spill] sm:$0xff] %v4991_v3  ;;  %6532 = vst [vmem:[#allocation16_spill] sm:$0xff] %v4994_v5  ;;  %v5000_v7 = vld [vmem:[%s4964_s23 + $0x28] sm:$0xff]  ;;  %v5003_v8 = vld [vmem:[%s4964_s23 + $0x30] sm:$0xff]  ;;  %v5011_v11 = vshrl.u32 %v349_v4, 7 }
  0x3f   : > { %6533 = vst [vmem:[#allocation17_spill] sm:$0xff] %v4997_v6  ;;  %6534 = vst [vmem:[#allocation18_spill] sm:$0xff] %v5000_v7  ;;  %v5006_v9 = vld [vmem:[%s4964_s23 + $0x38] sm:$0xff]  ;;  %v5009_v10 = vld [vmem:[%s4964_s23 + $0x40] sm:$0xff] }
  0x40   : > { %6535 = vst [vmem:[#allocation19_spill] sm:$0xff] %v5003_v8  ;;  %6536 = vst [vmem:[#allocation20_spill] sm:$0xff] %v5006_v9  ;;  %v5014_v12 = vld [vmem:[%s4964_s23 + $0x48] sm:$0xff]  ;;  %v5017_v13 = vld [vmem:[%s4964_s23 + $0x50] sm:$0xff]  ;;  %v5032_v18 = vadd.s32 8, %v5011_v11 }
  0x41   : > { %6537 = vst [vmem:[#allocation21_spill] sm:$0xff] %v5009_v10  ;;  %6538 = vst [vmem:[#allocation22_spill] sm:$0xff] %v5014_v12  ;;  %v5020_v14 = vld [vmem:[%s4964_s23 + $0x58] sm:$0xff]  ;;  %v5023_v15 = vld [vmem:[%s4964_s23 + $0x60] sm:$0xff] }
  0x42   : > { %6539 = vst [vmem:[#allocation23_spill] sm:$0xff] %v5017_v13  ;;  %6540 = vst [vmem:[#allocation24_spill] sm:$0xff] %v5020_v14  ;;  %v5026_v16 = vld [vmem:[%s4964_s23 + $0x68] sm:$0xff]  ;;  %v5029_v17 = vld [vmem:[%s4964_s23 + $0x70] sm:$0xff] }
  0x43   : > { %6541 = vst [vmem:[#allocation25_spill] sm:$0xff] %v5023_v15  ;;  %6542 = vst [vmem:[#allocation26_spill] sm:$0xff] %v5026_v16  ;;  %v5035_v19 = vld [vmem:[%s4964_s23 + $0x78] sm:$0xff]  ;;  %v5038_v20 = vld [vmem:[%s4964_s23 + $0x80] sm:$0xff] }
  0x44   : > { %6543 = vst [vmem:[#allocation27_spill] sm:$0xff] %v5029_v17  ;;  %6544 = vst [vmem:[#allocation28_spill] sm:$0xff] %v5035_v19  ;;  %v5041_v21 = vld [vmem:[%s4964_s23 + $0x88] sm:$0xff]  ;;  %v5044_v22 = vld [vmem:[%s4964_s23 + $0x90] sm:$0xff] }
  0x45   : > { %6545 = vst [vmem:[#allocation29_spill] sm:$0xff] %v5038_v20  ;;  %6546 = vst [vmem:[#allocation30_spill] sm:$0xff] %v5041_v21  ;;  %v5047_v23 = vld [vmem:[%s4964_s23 + $0x98] sm:$0xff]  ;;  %v5050_v24 = vld [vmem:[%s4964_s23 + $0xa0] sm:$0xff] }
  0x46   : > { %6547 = vst [vmem:[#allocation31_spill] sm:$0xff] %v5044_v22  ;;  %6548 = vst [vmem:[#allocation32_spill] sm:$0xff] %v5047_v23  ;;  %v5053_v25 = vld [vmem:[%s4964_s23 + $0xa8] sm:$0xff]  ;;  %v5056_v26 = vld [vmem:[%s4964_s23 + $0xb0] sm:$0xff]  ;;  %355 = sbr.rel (%p3789_p6) target bundleno = 2223 (0x8af), region = 36 }
  0x47   : > { %6549 = vst [vmem:[#allocation33_spill] sm:$0xff] %v5050_v24  ;;  %6550 = vst [vmem:[#allocation34_spill] sm:$0xff] %v5053_v25  ;;  %v5059_v27 = vld [vmem:[%s4964_s23 + $0xb8] sm:$0xff]  ;;  %v5062_v28 = vld [vmem:[%s4964_s23 + $0xc0] sm:$0xff] }
  0x48   : > { %6551 = vst [vmem:[#allocation35_spill] sm:$0xff] %v5056_v26  ;;  %6552 = vst [vmem:[#allocation36_spill] sm:$0xff] %v5059_v27  ;;  %v5065_v29 = vld [vmem:[%s4964_s23 + $0xc8] sm:$0xff]  ;;  %v5068_v30 = vld [vmem:[%s4964_s23 + $0xd0] sm:$0xff] }
  0x49   : > { %6553 = vst [vmem:[#allocation37_spill] sm:$0xff] %v5062_v28  ;;  %6554 = vst [vmem:[#allocation38_spill] sm:$0xff] %v5065_v29  ;;  %v5071_v31 = vld [vmem:[%s4964_s23 + $0xd8] sm:$0xff]  ;;  %v5074_v32 = vld [vmem:[%s4964_s23 + $0xe0] sm:$0xff] }
  0x4a   : > { %6555 = vst [vmem:[#allocation39_spill] sm:$0xff] %v5068_v30  ;;  %6556 = vst [vmem:[#allocation40_spill] sm:$0xff] %v5071_v31  ;;  %v5077_v33 = vld [vmem:[%s4964_s23 + $0xe8] sm:$0xff]  ;;  %v5080_v34 = vld [vmem:[%s4964_s23 + $0xf0] sm:$0xff] }
  0x4b   : > { %6557 = vst [vmem:[#allocation41_spill] sm:$0xff] %v5074_v32  ;;  %6558 = vst [vmem:[#allocation42_spill] sm:$0xff] %v5077_v33  ;;  %v5083_v35 = vld [vmem:[%s4964_s23 + $0xf8] sm:$0xff] }
  0x4c   : > { %6559 = vst [vmem:[#allocation43_spill] sm:$0xff] %v5080_v34  ;;  %6560 = vst [vmem:[#allocation44_spill] sm:$0xff] %v5083_v35 }
  0x4d   : > { %v5088_v36 = vcombine.high %v4985_v1, %v4991_v3  ;;  %v5092_v37 = vcombine.low %v4985_v1, %v4991_v3  ;;  %v5096_v38 = vcombine.high %v4997_v6, %v5003_v8  ;;  %v5100_v39 = vcombine.high %v4988_v2, %v4994_v5  ;;  %s5295_s26 = sshll.u32 %s4830_s25, 3 }
  0x4e   : > { %v5105_v40 = vcombine.low %v4988_v2, %v4994_v5  ;;  %v5109_v41 = vcombine.high %v5000_v7, %v5006_v9  ;;  %v5114_v42 = vcombine.low %v4997_v6, %v5003_v8  ;;  %v5120_v43 = vcombine.high %v5009_v10, %v5017_v13  ;;  %s676_s27 = sld [smem:[#allocation5 + %s5295_s26]]  ;;  %s849_s29 = sadd.s32 1, %s5295_s26 }
  0x4f   : > { %6561 = vst [vmem:[#allocation45_spill] sm:$0xff] %v5100_v39  ;;  %534 = vmatprep.subr.bf16.mxu0 %v5088_v36  ;;  %577 = vmatprep.subr.bf16.mxu1 %v5100_v39  ;;  %v5125_v44 = vcombine.low %v5000_v7, %v5006_v9  ;;  %v5130_v45 = vcombine.high %v5014_v12, %v5020_v14  ;;  %v6451_v46 = vmov 0   ;;  %s850_s18 = sld [smem:[#allocation5 + %s849_s29]]  ;;  %s1024_s19 = sadd.s32 2, %s5295_s26 }
  0x50   : > { %535 = vmatpush1.bf16.msra.mxu0 %v5092_v37  ;;  %578 = vmatpush1.bf16.msra.mxu1 %v5105_v40  ;;  %v5136_v47 = vcombine.low %v5009_v10, %v5017_v13  ;;  %v5141_v48 = vcombine.high %v5023_v15, %v5029_v17  ;;  %v5146_v49 = vcombine.low %v5014_v12, %v5020_v14  ;;  %s1025_s22 = sld [smem:[#allocation5 + %s1024_s19]]  ;;  %s1199_s6 = sadd.s32 3, %s5295_s26 }
  0x51   : > { %536 = vmatprep.subr.bf16.mxu0 %v5096_v38  ;;  %579 = vmatprep.subr.bf16.mxu1 %v5109_v41  ;;  %v5151_v50 = vcombine.high %v5026_v16, %v5035_v19  ;;  %v5157_v51 = vcombine.low %v5023_v15, %v5029_v17  ;;  %v5162_v52 = vcombine.high %v5038_v20, %v5044_v22  ;;  %s1200_s8 = sld [smem:[#allocation5 + %s1199_s6]]  ;;  %s1374_s9 = sadd.s32 4, %s5295_s26 }
  0x52   : > { %566 = vmatprep.mubr.bf16.mxu0 %v6451_v46  ;;  %609 = vmatprep.mubr.bf16.mxu1 %v6451_v46  ;;  %v5167_v53 = vcombine.low %v5026_v16, %v5035_v19  ;;  %v5172_v54 = vcombine.high %v5041_v21, %v5047_v23  ;;  %v5177_v55 = vcombine.low %v5038_v20, %v5044_v22  ;;  %v364_v16 = vld [vmem:[%s4979_s16 + $0x18] sm:$0xff]  ;;  %s1375_s10 = sld [smem:[#allocation5 + %s1374_s9]]  ;;  %s1549_s23 = sadd.s32 5, %s5295_s26 }
  0x53   : > { %v5182_v56 = vcombine.high %v5050_v24, %v5056_v26  ;;  %v5187_v57 = vcombine.low %v5041_v21, %v5047_v23  ;;  %v5192_v58 = vcombine.high %v5053_v25, %v5059_v27  ;;  %v5197_v59 = vcombine.low %v5050_v24, %v5056_v26  ;;  %v362_v24 = vld [vmem:[%s4979_s16 + $0x8] sm:$0xff]  ;;  %s1550_s12 = sld [smem:[#allocation5 + %s1549_s23]]  ;;  %s1724_s13 = sadd.s32 6, %s5295_s26 }
  0x54   : > { %537 = vmatpush1.bf16.msra.mxu0 %v5114_v42  ;;  %580 = vmatpush1.bf16.msra.mxu1 %v5125_v44  ;;  %v5202_v60 = vcombine.high %v5062_v28, %v5068_v30  ;;  %v5207_v61 = vcombine.low %v5053_v25, %v5059_v27  ;;  %v5212_v62 = vcombine.high %v5065_v29, %v5071_v31  ;;  %v5241_v25 = vld [vmem:[#allocation2 + $0x8] sm:$0xff]  ;;  %v367_v17 = vunpack.c.l.bf16 %v362_v24  ;;  %s1725_s15 = sld [smem:[#allocation5 + %s1724_s13]]  ;;  %s1899_s17 = sadd.s32 7, %s5295_s26 }
  0x55   : > { %538 = vmatprep.subr.bf16.mxu0 %v5120_v43  ;;  %581 = vmatprep.subr.bf16.mxu1 %v5130_v45  ;;  %v5217_v63 = vcombine.low %v5062_v28, %v5068_v30  ;;  %v5222_v0 = vcombine.high %v5074_v32, %v5080_v34  ;;  %v5227_v4 = vcombine.low %v5065_v29, %v5071_v31  ;;  %v5239_v30 = vld [vmem:[#allocation2] sm:$0xff]  ;;  %v371_v5 = vunpack.c.l.bf16 %v364_v16  ;;  %s1900_s21 = sld [smem:[#allocation5 + %s1899_s17]] }
  0x56   : > { %v5232_v46 = vcombine.high %v5077_v33, %v5083_v35  ;;  %v5237_v28 = vcombine.low %v5074_v32, %v5080_v34  ;;  %v5247_v29 = vcombine.low %v5077_v33, %v5083_v35  ;;  %v373_v31 = vpack.c.bf16 %v5241_v25, %v5239_v30  ;;  %v363_v35 = vld [vmem:[%s4979_s16 + $0x10] sm:$0xff] }
  0x57   : > { %v6562_v33 = vmov 0   ;;  %v369_v27 = vunpack.c.l.bf16 %v363_v35  ;;  %v370_v21 = vunpack.c.h.bf16 %v363_v35 }
  0x58   : > { %539 = vmatpush1.bf16.msra.mxu0 %v5136_v47  ;;  %582 = vmatpush1.bf16.msra.mxu1 %v5146_v49 }
  0x59   : > { %540 = vmatprep.subr.bf16.mxu0 %v5141_v48  ;;  %583 = vmatprep.subr.bf16.mxu1 %v5151_v50 }
  0x5c   : > { %541 = vmatpush1.bf16.msra.mxu0 %v5157_v51  ;;  %584 = vmatpush1.bf16.msra.mxu1 %v5167_v53 }
  0x5d   : > { %542 = vmatprep.subr.bf16.mxu0 %v5162_v52  ;;  %585 = vmatprep.subr.bf16.mxu1 %v5172_v54 }
  0x60   : > { %543 = vmatpush1.bf16.msra.mxu0 %v5177_v55  ;;  %586 = vmatpush1.bf16.msra.mxu1 %v5187_v57 }
  0x61   : > { %544 = vmatprep.subr.bf16.mxu0 %v5182_v56  ;;  %587 = vmatprep.subr.bf16.mxu1 %v5192_v58 }
  0x64   : > { %545 = vmatpush1.bf16.msra.mxu0 %v5197_v59  ;;  %588 = vmatpush1.bf16.msra.mxu1 %v5207_v61 }
  0x65   : > { %546 = vmatprep.subr.bf16.mxu0 %v5202_v60  ;;  %589 = vmatprep.subr.bf16.mxu1 %v5212_v62 }
  0x68   : > { %547 = vmatpush1.bf16.msra.mxu0 %v5217_v63  ;;  %590 = vmatpush1.bf16.msra.mxu1 %v5227_v4 }
  0x69   : > { %548 = vmatprep.subr.bf16.mxu0 %v5222_v0  ;;  %591 = vmatprep.subr.bf16.mxu1 %v5232_v46 }
  0x6c   : > { %549 = vmatpush1.bf16.msra.mxu0 %v5237_v28  ;;  %592 = vmatpush1.bf16.msra.mxu1 %v5247_v29 }
  0x6d   : > { %707 = vmatprep.subr.bf16.mxu0 %v5088_v36  ;;  %750 = vmatprep.subr.bf16.mxu1 %v5100_v39 }
  0x6f   : > { %567 = vmatmul.mubr.bf16.vlgmr.msra.gmra.mrb[0].mxu0 %v373_v31  ;;  %610 = vmatmul.mubr.bf16.vlgmr.msra.gmra.mrb[0].mxu1 %v373_v31  ;;  %v361_v31 = vld [vmem:[%s4979_s16] sm:$0xff] }
  0x70   : > { %708 = vmatpush1.bf16.msra.mxu0 %v5092_v37  ;;  %751 = vmatpush1.bf16.msra.mxu1 %v5105_v40  ;;  %v365_v32 = vunpack.c.l.bf16 %v361_v31  ;;  %v366_v34 = vunpack.c.h.bf16 %v361_v31 }
  0x71   : > { %709 = vmatprep.subr.bf16.mxu0 %v5096_v38  ;;  %752 = vmatprep.subr.bf16.mxu1 %v5109_v41 }
  0x72   : > { %739 = vmatprep.mubr.bf16.mxu0 %v6562_v33  ;;  %782 = vmatprep.mubr.bf16.mxu1 %v6562_v33 }
  0x74   : > { %710 = vmatpush1.bf16.msra.mxu0 %v5114_v42  ;;  %753 = vmatpush1.bf16.msra.mxu1 %v5125_v44 }
  0x75   : > { %711 = vmatprep.subr.bf16.mxu0 %v5120_v43  ;;  %754 = vmatprep.subr.bf16.mxu1 %v5130_v45 }
  0x78   : > { %712 = vmatpush1.bf16.msra.mxu0 %v5136_v47  ;;  %755 = vmatpush1.bf16.msra.mxu1 %v5146_v49 }
  0x79   : > { %713 = vmatprep.subr.bf16.mxu0 %v5141_v48  ;;  %756 = vmatprep.subr.bf16.mxu1 %v5151_v50 }
  0x7c   : > { %714 = vmatpush1.bf16.msra.mxu0 %v5157_v51  ;;  %757 = vmatpush1.bf16.msra.mxu1 %v5167_v53 }
  0x7d   : > { %715 = vmatprep.subr.bf16.mxu0 %v5162_v52  ;;  %758 = vmatprep.subr.bf16.mxu1 %v5172_v54 }
  0x80   : > { %716 = vmatpush1.bf16.msra.mxu0 %v5177_v55  ;;  %759 = vmatpush1.bf16.msra.mxu1 %v5187_v57 }
  0x81   : > { %717 = vmatprep.subr.bf16.mxu0 %v5182_v56  ;;  %760 = vmatprep.subr.bf16.mxu1 %v5192_v58 }
  0x84   : > { %718 = vmatpush1.bf16.msra.mxu0 %v5197_v59  ;;  %761 = vmatpush1.bf16.msra.mxu1 %v5207_v61 }
  0x85   : > { %719 = vmatprep.subr.bf16.mxu0 %v5202_v60  ;;  %762 = vmatprep.subr.bf16.mxu1 %v5212_v62 }
  0x88   : > { %720 = vmatpush1.bf16.msra.mxu0 %v5217_v63  ;;  %763 = vmatpush1.bf16.msra.mxu1 %v5227_v4 }
  0x89   : > { %721 = vmatprep.subr.bf16.mxu0 %v5222_v0  ;;  %764 = vmatprep.subr.bf16.mxu1 %v5232_v46 }
  0x8c   : > { %722 = vmatpush1.bf16.msra.mxu0 %v5237_v28  ;;  %765 = vmatpush1.bf16.msra.mxu1 %v5247_v29 }
  0x8d   : > { %882 = vmatprep.subr.bf16.mxu0 %v5088_v36  ;;  %925 = vmatprep.subr.bf16.mxu1 %v5100_v39 }
 0x142   : > { %v568_v26 = vpop.f32.mrb[0].mxu0  ;;  %v611_v22 = vpop.f32.mrb[0].mxu1 }
 0x143   : > { %v620_v23 = vadd.f32 %v568_v26, %v365_v32  ;;  %v570_v20 = vpop.f32.mrb[1].mxu0  ;;  %v613_v12 = vpop.f32.mrb[1].mxu1  ;;  %v622_v26 = vadd.f32 %v611_v22, %v367_v17  ;;  %v368_v32 = vunpack.c.h.bf16 %v362_v24  ;;  %v677_v24 = vstv %s676_s27 }
 0x144   : > { %v621_v19 = vadd.f32 %v570_v20, %v366_v34  ;;  %v572_v15 = vpop.f32.mrb[2].mxu0  ;;  %v615_v7 = vpop.f32.mrb[2].mxu1  ;;  %v372_v34 = vunpack.c.h.bf16 %v364_v16  ;;  %v359_v16 = vld [vmem:[#allocation3] sm:$0xff]  ;;  %vm5299_vm0 = vcmp.lt.s32.totalorder %v5011_v11, %v677_v24  ;;  %vm679_vm1 = vcmp.lt.s32.totalorder %v5032_v18, %v677_v24 }
 0x145   : > { %v3823_v14 = vmul.f32 -1.442695, %v620_v23  ;;  %v624_v10 = vadd.f32 %v572_v15, %v369_v27  ;;  %v574_v13 = vpop.f32.mrb[3].mxu0  ;;  %v617_v31 = vpop.f32.mrb[3].mxu1  ;;  %v626_v20 = vadd.f32 %v615_v7, %v371_v5  ;;  %v3825_v8 = vmul.f32 -1.442695, %v622_v26 }
 0x146   : > { %v3824_v9 = vmul.f32 -1.442695, %v621_v19  ;;  %v625_v2 = vadd.f32 %v574_v13, %v370_v21  ;;  %v623_v23 = vadd.f32 %v613_v12, %v368_v32  ;;  %v627_v27 = vadd.f32 %v617_v31, %v372_v34  ;;  %v360_v26 = vld [vmem:[#allocation3 + $0x8] sm:$0xff] }
 0x147   : > { %4266 = vpow2.f32 %v3823_v14  ;;  %v3826_v6 = vmul.f32 -1.442695, %v624_v10  ;;  %v3828_v15 = vmul.f32 -1.442695, %v626_v20 }
 0x148   : > { %4268 = vpow2.f32 %v3824_v9  ;;  %v3827_v35 = vmul.f32 -1.442695, %v625_v2 }
 0x149   : > { %4270 = vpow2.f32 %v3826_v6 }
 0x14a   : > { %4272 = vpow2.f32 %v3827_v35 }
 0x14b   : > { %4274 = vpow2.f32 %v3825_v8 }
 0x14c   : > { %4276 = vtanh.f32 %v623_v23 }
 0x14d   : > { %4278 = vpow2.f32 %v3828_v15 }
 0x14e   : > { %4280 = vtanh.f32 %v627_v27 }
 0x151   : > { %v4267_v19 = vpop.eup %4266 }
 0x152   : > { %v4269_v13 = vpop.eup %4268  ;;  %v646_v21 = vadd.f32 1.0, %v4267_v19 }
 0x153   : > { %v4271_v10 = vpop.eup %4270  ;;  %v647_v9 = vadd.f32 1.0, %v4269_v13 }
 0x154   : > { %v4273_v2 = vpop.eup %4272  ;;  %4282 = vrcp.f32 %v646_v21  ;;  %v649_v5 = vadd.f32 1.0, %v4271_v10 }
 0x155   : > { %4284 = vrcp.f32 %v647_v9  ;;  %v650_v6 = vadd.f32 1.0, %v4273_v2  ;;  %v4275_v7 = vpop.eup %4274 }
 0x156   : > { %4286 = vrcp.f32 %v649_v5  ;;  %v4277_v8 = vpop.eup %4276  ;;  %v648_v22 = vadd.f32 1.0, %v4275_v7 }
 0x157   : > { %4288 = vrcp.f32 %v650_v6  ;;  %v4279_v12 = vpop.eup %4278 }
 0x158   : > { %v4281_v14 = vpop.eup %4280  ;;  %v651_v23 = vadd.f32 1.0, %v4279_v12  ;;  %4290 = vrcp.f32 %v648_v22 }
 0x15e   : > { %v4283_v17 = vpop.eup %4282 }
 0x15f   : > { %v4285_v31 = vpop.eup %4284  ;;  %v668_v35 = vmul.f32 %v4283_v17, %v4277_v8 }
 0x160   : > { %v4287_v32 = vpop.eup %4286  ;;  %v666_v20 = vmul.f32 %v4285_v31, %v359_v16 }
 0x161   : > { %v4289_v34 = vpop.eup %4288  ;;  %v669_v15 = vmul.f32 %v4287_v32, %v4281_v14 }
 0x162   : > { %v670_v19 = vadd.f32 %v668_v35, %v666_v20  ;;  %v667_v13 = vmul.f32 %v4289_v34, %v360_v26  ;;  %v4291_v2 = vpop.eup %4290  ;;  %v3832_v34 = vld [vmem:[%s4979_s16 + $0x28] sm:$0xff] }
 0x164   : > { %4292 = vtanh.f32 %v670_v19  ;;  %v671_v21 = vadd.f32 %v669_v15, %v667_v13  ;;  %v5306_v10 = vsel %vm5299_vm0, %v670_v19, %v359_v16  ;;  %v3834_v13 = vld [vmem:[%s4979_s16 + $0x38] sm:$0xff] }
 0x165   : > { %4294 = vrcp.f32 %v651_v23  ;;  %v705_v1 = vunpack.c.l.bf16 %v3834_v13 }
 0x166   : > { %4296 = vtanh.f32 %v671_v21  ;;  %v5308_v9 = vsel %vm679_vm1, %v671_v21, %v360_v26 }
 0x16e   : > { %v4293_v5 = vpop.eup %4292 }
 0x16f   : > { %v4295_v6 = vpop.eup %4294  ;;  %v674_v7 = vmul.f32 %v4293_v5, %v4291_v2 }
 0x170   : > { %v4297_v8 = vpop.eup %4296 }
 0x171   : > { %v675_v12 = vmul.f32 %v4297_v8, %v4295_v6  ;;  %v5313_v14 = vsel %vm5299_vm0, %v674_v7, %v5239_v30  ;;  %v3833_v30 = vld [vmem:[%s4979_s16 + $0x30] sm:$0xff]  ;;  %v701_v8 = vunpack.c.l.bf16 %v3832_v34 }
 0x172   : > { %v703_v31 = vunpack.c.l.bf16 %v3833_v30  ;;  %v704_v32 = vunpack.c.h.bf16 %v3833_v30  ;;  %v702_v30 = vunpack.c.h.bf16 %v3832_v34 }
 0x173   : > { %v5316_v17 = vsel %vm679_vm1, %v675_v12, %v5241_v25  ;;  %v3831_v25 = vld [vmem:[%s4979_s16 + $0x20] sm:$0xff] }
 0x174   : > { %v684_v16 = vpack.c.bf16 %v5316_v17, %v5313_v14  ;;  %v699_v22 = vunpack.c.l.bf16 %v3831_v25  ;;  %v700_v24 = vunpack.c.h.bf16 %v3831_v25 }
 0x176   : > { %4116 = vst [vmem:[%s4981_s7] sm:$0xff] %v684_v16   ;;  %740 = vmatmul.mubr.bf16.vlgmr.msra.gmra.mrb[4].mxu0 %v684_v16  ;;  %783 = vmatmul.mubr.bf16.vlgmr.msra.gmra.mrb[4].mxu1 %v684_v16 }
 0x177   : > { %883 = vmatpush1.bf16.msra.mxu0 %v5092_v37  ;;  %926 = vmatpush1.bf16.msra.mxu1 %v5105_v40 }
 0x178   : > { %884 = vmatprep.subr.bf16.mxu0 %v5096_v38  ;;  %927 = vmatprep.subr.bf16.mxu1 %v5109_v41 }
 0x179   : > { %914 = vmatprep.mubr.bf16.mxu0 %v6562_v33  ;;  %957 = vmatprep.mubr.bf16.mxu1 %v6562_v33 }
 0x17b   : > { %885 = vmatpush1.bf16.msra.mxu0 %v5114_v42  ;;  %928 = vmatpush1.bf16.msra.mxu1 %v5125_v44 }
 0x17c   : > { %886 = vmatprep.subr.bf16.mxu0 %v5120_v43  ;;  %929 = vmatprep.subr.bf16.mxu1 %v5130_v45 }
 0x17f   : > { %887 = vmatpush1.bf16.msra.mxu0 %v5136_v47  ;;  %930 = vmatpush1.bf16.msra.mxu1 %v5146_v49 }
 0x180   : > { %888 = vmatprep.subr.bf16.mxu0 %v5141_v48  ;;  %931 = vmatprep.subr.bf16.mxu1 %v5151_v50 }
 0x183   : > { %889 = vmatpush1.bf16.msra.mxu0 %v5157_v51  ;;  %932 = vmatpush1.bf16.msra.mxu1 %v5167_v53 }
 0x184   : > { %890 = vmatprep.subr.bf16.mxu0 %v5162_v52  ;;  %933 = vmatprep.subr.bf16.mxu1 %v5172_v54 }
 0x187   : > { %891 = vmatpush1.bf16.msra.mxu0 %v5177_v55  ;;  %934 = vmatpush1.bf16.msra.mxu1 %v5187_v57 }
 0x188   : > { %892 = vmatprep.subr.bf16.mxu0 %v5182_v56  ;;  %935 = vmatprep.subr.bf16.mxu1 %v5192_v58 }
 0x18b   : > { %893 = vmatpush1.bf16.msra.mxu0 %v5197_v59  ;;  %936 = vmatpush1.bf16.msra.mxu1 %v5207_v61 }
 0x18c   : > { %894 = vmatprep.subr.bf16.mxu0 %v5202_v60  ;;  %937 = vmatprep.subr.bf16.mxu1 %v5212_v62 }
 0x18f   : > { %895 = vmatpush1.bf16.msra.mxu0 %v5217_v63  ;;  %938 = vmatpush1.bf16.msra.mxu1 %v5227_v4 }
 0x190   : > { %896 = vmatprep.subr.bf16.mxu0 %v5222_v0  ;;  %939 = vmatprep.subr.bf16.mxu1 %v5232_v46 }
 0x193   : > { %897 = vmatpush1.bf16.msra.mxu0 %v5237_v28  ;;  %940 = vmatpush1.bf16.msra.mxu1 %v5247_v29 }
 0x194   : > { %1057 = vmatprep.subr.bf16.mxu0 %v5088_v36  ;;  %1100 = vmatprep.subr.bf16.mxu1 %v5100_v39 }
 0x249   : > { %v741_v35 = vpop.f32.mrb[4].mxu0  ;;  %v784_v26 = vpop.f32.mrb[4].mxu1 }
 0x24a   : > { %v793_v20 = vadd.f32 %v741_v35, %v699_v22  ;;  %v743_v23 = vpop.f32.mrb[5].mxu0  ;;  %v786_v15 = vpop.f32.mrb[5].mxu1  ;;  %v795_v22 = vadd.f32 %v784_v26, %v701_v8  ;;  %v851_v8 = vstv %s850_s18 }
 0x24b   : > { %v794_v27 = vadd.f32 %v743_v23, %v700_v24  ;;  %v745_v19 = vpop.f32.mrb[6].mxu0  ;;  %v788_v21 = vpop.f32.mrb[6].mxu1  ;;  %v796_v24 = vadd.f32 %v786_v15, %v702_v30  ;;  %v706_v23 = vunpack.c.h.bf16 %v3834_v13  ;;  %vm5362_vm2 = vcmp.lt.s32.totalorder %v5011_v11, %v851_v8 }
 0x24c   : > { %v3835_v2 = vmul.f32 -1.442695, %v793_v20  ;;  %v797_v5 = vadd.f32 %v745_v19, %v703_v31  ;;  %v747_v6 = vpop.f32.mrb[7].mxu0  ;;  %v790_v7 = vpop.f32.mrb[7].mxu1  ;;  %v799_v35 = vadd.f32 %v788_v21, %v705_v1  ;;  %v3837_v20 = vmul.f32 -1.442695, %v795_v22 }
 0x24d   : > { %v3836_v12 = vmul.f32 -1.442695, %v794_v27  ;;  %v798_v16 = vadd.f32 %v747_v6, %v704_v32  ;;  %v800_v39 = vadd.f32 %v790_v7, %v706_v23  ;;  %vm853_vm3 = vcmp.lt.s32.totalorder %v5032_v18, %v851_v8 }
 0x24e   : > { %4298 = vpow2.f32 %v3835_v2  ;;  %v3838_v25 = vmul.f32 -1.442695, %v797_v5  ;;  %v3840_v31 = vmul.f32 -1.442695, %v799_v35 }
 0x24f   : > { %v3839_v3 = vmul.f32 -1.442695, %v798_v16  ;;  %4300 = vpow2.f32 %v3836_v12 }
 0x250   : > { %4302 = vpow2.f32 %v3838_v25 }
 0x251   : > { %4304 = vpow2.f32 %v3839_v3 }
 0x252   : > { %4306 = vtanh.f32 %v796_v24 }
 0x253   : > { %4308 = vpow2.f32 %v3837_v20 }
 0x254   : > { %4310 = vpow2.f32 %v3840_v31 }
 0x258   : > { %v4299_v19 = vpop.eup %4298 }
 0x259   : > { %v819_v27 = vadd.f32 1.0, %v4299_v19  ;;  %v4301_v32 = vpop.eup %4300 }
 0x25a   : > { %v4303_v2 = vpop.eup %4302  ;;  %v820_v5 = vadd.f32 1.0, %v4301_v32 }
 0x25b   : > { %4312 = vrcp.f32 %v819_v27  ;;  %v822_v26 = vadd.f32 1.0, %v4303_v2  ;;  %v4305_v1 = vpop.eup %4304 }
 0x25c   : > { %4314 = vtanh.f32 %v800_v39  ;;  %v823_v3 = vadd.f32 1.0, %v4305_v1  ;;  %v4307_v34 = vpop.eup %4306 }
 0x25d   : > { %4316 = vrcp.f32 %v820_v5  ;;  %v4309_v15 = vpop.eup %4308 }
 0x25e   : > { %4318 = vrcp.f32 %v822_v26  ;;  %v4311_v13 = vpop.eup %4310  ;;  %v821_v16 = vadd.f32 1.0, %v4309_v15 }
 0x25f   : > { %4320 = vrcp.f32 %v823_v3  ;;  %v824_v23 = vadd.f32 1.0, %v4311_v13 }
 0x260   : > { %4322 = vrcp.f32 %v821_v16 }
 0x265   : > { %v4313_v21 = vpop.eup %4312 }
 0x266   : > { %v4315_v6 = vpop.eup %4314  ;;  %v841_v7 = vmul.f32 %v4313_v21, %v4307_v34 }
 0x267   : > { %v4317_v12 = vpop.eup %4316 }
 0x268   : > { %v4319_v25 = vpop.eup %4318  ;;  %v839_v30 = vmul.f32 %v4317_v12, %v5306_v10 }
 0x269   : > { %v842_v22 = vmul.f32 %v4319_v25, %v4315_v6  ;;  %v4321_v35 = vpop.eup %4320  ;;  %v3846_v25 = vld [vmem:[%s4979_s16 + $0x48] sm:$0xff] }
 0x26a   : > { %v843_v24 = vadd.f32 %v841_v7, %v839_v30  ;;  %v840_v20 = vmul.f32 %v4321_v35, %v5308_v9  ;;  %v4323_v32 = vpop.eup %4322 }
 0x26c   : > { %4324 = vtanh.f32 %v843_v24  ;;  %v5371_v31 = vsel %vm5362_vm2, %v843_v24, %v5306_v10  ;;  %v844_v19 = vadd.f32 %v842_v22, %v840_v20  ;;  %v3848_v24 = vld [vmem:[%s4979_s16 + $0x58] sm:$0xff] }
 0x26d   : > { %4326 = vrcp.f32 %v824_v23 }
 0x26e   : > { %4328 = vtanh.f32 %v844_v19  ;;  %v5374_v27 = vsel %vm853_vm3, %v844_v19, %v5308_v9  ;;  %v6567_v9 = vld [vmem:[#allocation45_spill] sm:$0xff] }
 0x276   : > { %v4325_v2 = vpop.eup %4324 }
 0x277   : > { %v847_v5 = vmul.f32 %v4325_v2, %v4323_v32  ;;  %v4327_v26 = vpop.eup %4326 }
 0x278   : > { %v4329_v1 = vpop.eup %4328 }
 0x279   : > { %v848_v3 = vmul.f32 %v4329_v1, %v4327_v26  ;;  %v5379_v34 = vsel %vm5362_vm2, %v847_v5, %v5313_v14  ;;  %v3845_v14 = vld [vmem:[%s4979_s16 + $0x40] sm:$0xff]  ;;  %v876_v5 = vunpack.c.l.bf16 %v3846_v25 }
 0x27a   : > { %v874_v13 = vunpack.c.l.bf16 %v3845_v14  ;;  %v875_v21 = vunpack.c.h.bf16 %v3845_v14 }
 0x27b   : > { %v5382_v10 = vsel %vm853_vm3, %v848_v3, %v5316_v17  ;;  %v3847_v17 = vld [vmem:[%s4979_s16 + $0x50] sm:$0xff] }
 0x27c   : > { %v858_v15 = vpack.c.bf16 %v5382_v10, %v5379_v34  ;;  %v878_v6 = vunpack.c.l.bf16 %v3847_v17  ;;  %v879_v12 = vunpack.c.h.bf16 %v3847_v17  ;;  %v877_v17 = vunpack.c.h.bf16 %v3846_v25 }
 0x27e   : > { %4192 = vst [vmem:[%s4981_s7 + $0x8] sm:$0xff] %v858_v15   ;;  %915 = vmatmul.mubr.bf16.vlgmr.msra.gmra.mrb[8].mxu0 %v858_v15  ;;  %958 = vmatmul.mubr.bf16.vlgmr.msra.gmra.mrb[8].mxu1 %v858_v15  ;;  %v880_v15 = vunpack.c.l.bf16 %v3848_v24 }
 0x27f   : > { %1058 = vmatpush1.bf16.msra.mxu0 %v5092_v37  ;;  %1101 = vmatpush1.bf16.msra.mxu1 %v5105_v40 }
 0x280   : > { %1059 = vmatprep.subr.bf16.mxu0 %v5096_v38  ;;  %1102 = vmatprep.subr.bf16.mxu1 %v5109_v41 }
 0x281   : > { %1089 = vmatprep.mubr.bf16.mxu0 %v6562_v33  ;;  %1132 = vmatprep.mubr.bf16.mxu1 %v6562_v33 }
 0x283   : > { %1060 = vmatpush1.bf16.msra.mxu0 %v5114_v42  ;;  %1103 = vmatpush1.bf16.msra.mxu1 %v5125_v44 }
 0x284   : > { %1061 = vmatprep.subr.bf16.mxu0 %v5120_v43  ;;  %1104 = vmatprep.subr.bf16.mxu1 %v5130_v45 }
 0x287   : > { %1062 = vmatpush1.bf16.msra.mxu0 %v5136_v47  ;;  %1105 = vmatpush1.bf16.msra.mxu1 %v5146_v49 }
 0x288   : > { %1063 = vmatprep.subr.bf16.mxu0 %v5141_v48  ;;  %1106 = vmatprep.subr.bf16.mxu1 %v5151_v50 }
 0x28b   : > { %1064 = vmatpush1.bf16.msra.mxu0 %v5157_v51  ;;  %1107 = vmatpush1.bf16.msra.mxu1 %v5167_v53 }
 0x28c   : > { %1065 = vmatprep.subr.bf16.mxu0 %v5162_v52  ;;  %1108 = vmatprep.subr.bf16.mxu1 %v5172_v54 }
 0x28f   : > { %1066 = vmatpush1.bf16.msra.mxu0 %v5177_v55  ;;  %1109 = vmatpush1.bf16.msra.mxu1 %v5187_v57 }
 0x290   : > { %1067 = vmatprep.subr.bf16.mxu0 %v5182_v56  ;;  %1110 = vmatprep.subr.bf16.mxu1 %v5192_v58 }
 0x293   : > { %1068 = vmatpush1.bf16.msra.mxu0 %v5197_v59  ;;  %1111 = vmatpush1.bf16.msra.mxu1 %v5207_v61 }
 0x294   : > { %1069 = vmatprep.subr.bf16.mxu0 %v5202_v60  ;;  %1112 = vmatprep.subr.bf16.mxu1 %v5212_v62 }
 0x297   : > { %1070 = vmatpush1.bf16.msra.mxu0 %v5217_v63  ;;  %1113 = vmatpush1.bf16.msra.mxu1 %v5227_v4 }
 0x298   : > { %1071 = vmatprep.subr.bf16.mxu0 %v5222_v0  ;;  %1114 = vmatprep.subr.bf16.mxu1 %v5232_v46 }
 0x29b   : > { %1072 = vmatpush1.bf16.msra.mxu0 %v5237_v28  ;;  %1115 = vmatpush1.bf16.msra.mxu1 %v5247_v29 }
 0x29c   : > { %1232 = vmatprep.subr.bf16.mxu0 %v5088_v36  ;;  %1275 = vmatprep.subr.bf16.mxu1 %v6567_v9 }
 0x351   : > { %v916_v7 = vpop.f32.mrb[8].mxu0  ;;  %v959_v8 = vpop.f32.mrb[8].mxu1 }
 0x352   : > { %v968_v16 = vadd.f32 %v916_v7, %v874_v13  ;;  %v918_v30 = vpop.f32.mrb[9].mxu0  ;;  %v961_v22 = vpop.f32.mrb[9].mxu1  ;;  %v970_v13 = vadd.f32 %v959_v8, %v876_v5 }
 0x353   : > { %v969_v39 = vadd.f32 %v918_v30, %v875_v21  ;;  %v920_v35 = vpop.f32.mrb[10].mxu0  ;;  %v963_v23 = vpop.f32.mrb[10].mxu1  ;;  %v971_v21 = vadd.f32 %v961_v22, %v877_v17  ;;  %v881_v30 = vunpack.c.h.bf16 %v3848_v24 }
 0x354   : > { %v3849_v20 = vmul.f32 -1.442695, %v968_v16  ;;  %v972_v19 = vadd.f32 %v920_v35, %v878_v6  ;;  %v922_v32 = vpop.f32.mrb[11].mxu0  ;;  %v965_v2 = vpop.f32.mrb[11].mxu1  ;;  %v974_v7 = vadd.f32 %v963_v23, %v880_v15  ;;  %v3851_v16 = vmul.f32 -1.442695, %v970_v13 }
 0x355   : > { %v3850_v26 = vmul.f32 -1.442695, %v969_v39  ;;  %v973_v1 = vadd.f32 %v922_v32, %v879_v12  ;;  %v975_v9 = vadd.f32 %v965_v2, %v881_v30 }
 0x356   : > { %4330 = vpow2.f32 %v3849_v20  ;;  %v3852_v3 = vmul.f32 -1.442695, %v972_v19  ;;  %v3854_v6 = vmul.f32 -1.442695, %v974_v7 }
 0x357   : > { %v3853_v14 = vmul.f32 -1.442695, %v973_v1  ;;  %4332 = vpow2.f32 %v3850_v26  ;;  %v1026_v1 = vstv %s1025_s22 }
 0x358   : > { %4334 = vpow2.f32 %v3852_v3  ;;  %vm5428_vm4 = vcmp.lt.s32.totalorder %v5011_v11, %v1026_v1  ;;  %vm1028_vm5 = vcmp.lt.s32.totalorder %v5032_v18, %v1026_v1 }
 0x359   : > { %4336 = vpow2.f32 %v3853_v14 }
 0x35a   : > { %4338 = vtanh.f32 %v971_v21 }
 0x35b   : > { %4340 = vpow2.f32 %v3851_v16 }
 0x35c   : > { %4342 = vpow2.f32 %v3854_v6 }
 0x360   : > { %v4331_v35 = vpop.eup %4330 }
 0x361   : > { %v994_v39 = vadd.f32 1.0, %v4331_v35  ;;  %v4333_v12 = vpop.eup %4332 }
 0x362   : > { %v4335_v20 = vpop.eup %4334  ;;  %v995_v19 = vadd.f32 1.0, %v4333_v12 }
 0x363   : > { %4344 = vrcp.f32 %v994_v39  ;;  %v997_v8 = vadd.f32 1.0, %v4335_v20  ;;  %v4337_v25 = vpop.eup %4336 }
 0x364   : > { %4346 = vtanh.f32 %v975_v9  ;;  %v998_v22 = vadd.f32 1.0, %v4337_v25  ;;  %v4339_v24 = vpop.eup %4338 }
 0x365   : > { %4348 = vrcp.f32 %v995_v19  ;;  %v4341_v23 = vpop.eup %4340 }
 0x366   : > { %4350 = vrcp.f32 %v997_v8  ;;  %v4343_v32 = vpop.eup %4342  ;;  %v996_v15 = vadd.f32 1.0, %v4341_v23 }
 0x367   : > { %4352 = vrcp.f32 %v998_v22  ;;  %v999_v30 = vadd.f32 1.0, %v4343_v32 }
 0x368   : > { %4354 = vrcp.f32 %v996_v15 }
 0x36d   : > { %v4345_v2 = vpop.eup %4344 }
 0x36e   : > { %v4347_v5 = vpop.eup %4346  ;;  %v1016_v26 = vmul.f32 %v4345_v2, %v4339_v24 }
 0x36f   : > { %v4349_v3 = vpop.eup %4348 }
 0x370   : > { %v4351_v14 = vpop.eup %4350  ;;  %v1014_v17 = vmul.f32 %v4349_v3, %v5371_v31 }
 0x371   : > { %v1017_v13 = vmul.f32 %v4351_v14, %v4347_v5  ;;  %v4353_v7 = vpop.eup %4352  ;;  %v3860_v14 = vld [vmem:[%s4979_s16 + $0x68] sm:$0xff] }
 0x372   : > { %v1018_v21 = vadd.f32 %v1016_v26, %v1014_v17  ;;  %v1015_v16 = vmul.f32 %v4353_v7, %v5374_v27  ;;  %v4355_v12 = vpop.eup %4354 }
 0x374   : > { %4356 = vtanh.f32 %v1018_v21  ;;  %v5437_v6 = vsel %vm5428_vm4, %v1018_v21, %v5371_v31  ;;  %v1019_v35 = vadd.f32 %v1017_v13, %v1015_v16  ;;  %v3862_v21 = vld [vmem:[%s4979_s16 + $0x78] sm:$0xff] }
 0x375   : > { %4358 = vrcp.f32 %v999_v30 }
 0x376   : > { %4360 = vtanh.f32 %v1019_v35  ;;  %v5440_v39 = vsel %vm1028_vm5, %v1019_v35, %v5374_v27  ;;  %v6570_v27 = vld [vmem:[#allocation45_spill] sm:$0xff] }
 0x37e   : > { %v4357_v20 = vpop.eup %4356 }
 0x37f   : > { %v1022_v19 = vmul.f32 %v4357_v20, %v4355_v12  ;;  %v4359_v8 = vpop.eup %4358 }
 0x380   : > { %v4361_v25 = vpop.eup %4360 }
 0x381   : > { %v1023_v22 = vmul.f32 %v4361_v25, %v4359_v8  ;;  %v5445_v24 = vsel %vm5428_vm4, %v1022_v19, %v5379_v34  ;;  %v3859_v34 = vld [vmem:[%s4979_s16 + $0x60] sm:$0xff]  ;;  %v1051_v19 = vunpack.c.l.bf16 %v3860_v14 }
 0x382   : > { %v1049_v32 = vunpack.c.l.bf16 %v3859_v34  ;;  %v1050_v2 = vunpack.c.h.bf16 %v3859_v34 }
 0x383   : > { %v5448_v31 = vsel %vm1028_vm5, %v1023_v22, %v5382_v10  ;;  %v3861_v10 = vld [vmem:[%s4979_s16 + $0x70] sm:$0xff] }
 0x384   : > { %v1033_v23 = vpack.c.bf16 %v5448_v31, %v5445_v24  ;;  %v1053_v5 = vunpack.c.l.bf16 %v3861_v10  ;;  %v1054_v3 = vunpack.c.h.bf16 %v3861_v10  ;;  %v1052_v10 = vunpack.c.h.bf16 %v3860_v14 }
 0x386   : > { %4193 = vst [vmem:[%s4981_s7 + $0x10] sm:$0xff] %v1033_v23   ;;  %1090 = vmatmul.mubr.bf16.vlgmr.msra.gmra.mrb[12].mxu0 %v1033_v23  ;;  %1133 = vmatmul.mubr.bf16.vlgmr.msra.gmra.mrb[12].mxu1 %v1033_v23  ;;  %v1055_v23 = vunpack.c.l.bf16 %v3862_v21 }
 0x387   : > { %1233 = vmatpush1.bf16.msra.mxu0 %v5092_v37  ;;  %1276 = vmatpush1.bf16.msra.mxu1 %v5105_v40 }
 0x388   : > { %1234 = vmatprep.subr.bf16.mxu0 %v5096_v38  ;;  %1277 = vmatprep.subr.bf16.mxu1 %v5109_v41 }
 0x389   : > { %1264 = vmatprep.mubr.bf16.mxu0 %v6562_v33  ;;  %1307 = vmatprep.mubr.bf16.mxu1 %v6562_v33 }
 0x38b   : > { %1235 = vmatpush1.bf16.msra.mxu0 %v5114_v42  ;;  %1278 = vmatpush1.bf16.msra.mxu1 %v5125_v44 }
 0x38c   : > { %1236 = vmatprep.subr.bf16.mxu0 %v5120_v43  ;;  %1279 = vmatprep.subr.bf16.mxu1 %v5130_v45 }
 0x38f   : > { %1237 = vmatpush1.bf16.msra.mxu0 %v5136_v47  ;;  %1280 = vmatpush1.bf16.msra.mxu1 %v5146_v49 }
 0x390   : > { %1238 = vmatprep.subr.bf16.mxu0 %v5141_v48  ;;  %1281 = vmatprep.subr.bf16.mxu1 %v5151_v50 }
 0x393   : > { %1239 = vmatpush1.bf16.msra.mxu0 %v5157_v51  ;;  %1282 = vmatpush1.bf16.msra.mxu1 %v5167_v53 }
 0x394   : > { %1240 = vmatprep.subr.bf16.mxu0 %v5162_v52  ;;  %1283 = vmatprep.subr.bf16.mxu1 %v5172_v54 }
 0x397   : > { %1241 = vmatpush1.bf16.msra.mxu0 %v5177_v55  ;;  %1284 = vmatpush1.bf16.msra.mxu1 %v5187_v57 }
 0x398   : > { %1242 = vmatprep.subr.bf16.mxu0 %v5182_v56  ;;  %1285 = vmatprep.subr.bf16.mxu1 %v5192_v58 }
 0x39b   : > { %1243 = vmatpush1.bf16.msra.mxu0 %v5197_v59  ;;  %1286 = vmatpush1.bf16.msra.mxu1 %v5207_v61 }
 0x39c   : > { %1244 = vmatprep.subr.bf16.mxu0 %v5202_v60  ;;  %1287 = vmatprep.subr.bf16.mxu1 %v5212_v62 }
 0x39f   : > { %1245 = vmatpush1.bf16.msra.mxu0 %v5217_v63  ;;  %1288 = vmatpush1.bf16.msra.mxu1 %v5227_v4 }
 0x3a0   : > { %1246 = vmatprep.subr.bf16.mxu0 %v5222_v0  ;;  %1289 = vmatprep.subr.bf16.mxu1 %v5232_v46 }
 0x3a3   : > { %1247 = vmatpush1.bf16.msra.mxu0 %v5237_v28  ;;  %1290 = vmatpush1.bf16.msra.mxu1 %v5247_v29 }
 0x3a4   : > { %1407 = vmatprep.subr.bf16.mxu0 %v5088_v36  ;;  %1450 = vmatprep.subr.bf16.mxu1 %v6570_v27 }
 0x459   : > { %v1091_v26 = vpop.f32.mrb[12].mxu0  ;;  %v1134_v1 = vpop.f32.mrb[12].mxu1 }
 0x45a   : > { %v1143_v15 = vadd.f32 %v1091_v26, %v1049_v32  ;;  %v1093_v17 = vpop.f32.mrb[13].mxu0  ;;  %v1136_v13 = vpop.f32.mrb[13].mxu1  ;;  %v1145_v32 = vadd.f32 %v1134_v1, %v1051_v19 }
 0x45b   : > { %v1144_v9 = vadd.f32 %v1093_v17, %v1050_v2  ;;  %v1095_v7 = vpop.f32.mrb[14].mxu0  ;;  %v1138_v30 = vpop.f32.mrb[14].mxu1  ;;  %v1146_v2 = vadd.f32 %v1136_v13, %v1052_v10  ;;  %v1056_v17 = vunpack.c.h.bf16 %v3862_v21 }
 0x45c   : > { %v3863_v16 = vmul.f32 -1.442695, %v1143_v15  ;;  %v1147_v35 = vadd.f32 %v1095_v7, %v1053_v5  ;;  %v1097_v12 = vpop.f32.mrb[15].mxu0  ;;  %v1140_v20 = vpop.f32.mrb[15].mxu1  ;;  %v1149_v26 = vadd.f32 %v1138_v30, %v1055_v23  ;;  %v3865_v15 = vmul.f32 -1.442695, %v1145_v32 }
 0x45d   : > { %v3864_v8 = vmul.f32 -1.442695, %v1144_v9  ;;  %v1148_v25 = vadd.f32 %v1097_v12, %v1054_v3  ;;  %v1150_v27 = vadd.f32 %v1140_v20, %v1056_v17 }
 0x45e   : > { %4362 = vpow2.f32 %v3863_v16  ;;  %v3866_v22 = vmul.f32 -1.442695, %v1147_v35  ;;  %v3868_v5 = vmul.f32 -1.442695, %v1149_v26 }
 0x45f   : > { %v3867_v34 = vmul.f32 -1.442695, %v1148_v25  ;;  %4364 = vpow2.f32 %v3864_v8  ;;  %v1201_v25 = vstv %s1200_s8 }
 0x460   : > { %4366 = vpow2.f32 %v3866_v22  ;;  %vm5494_vm6 = vcmp.lt.s32.totalorder %v5011_v11, %v1201_v25  ;;  %vm1203_vm7 = vcmp.lt.s32.totalorder %v5032_v18, %v1201_v25 }
 0x461   : > { %4368 = vpow2.f32 %v3867_v34 }
 0x462   : > { %4370 = vtanh.f32 %v1146_v2 }
 0x463   : > { %4372 = vpow2.f32 %v3865_v15 }
 0x464   : > { %4374 = vpow2.f32 %v3868_v5 }
 0x468   : > { %v4363_v7 = vpop.eup %4362 }
 0x469   : > { %v1169_v9 = vadd.f32 1.0, %v4363_v7  ;;  %v4365_v3 = vpop.eup %4364 }
 0x46a   : > { %v4367_v16 = vpop.eup %4366  ;;  %v1170_v35 = vadd.f32 1.0, %v4365_v3 }
 0x46b   : > { %4376 = vrcp.f32 %v1169_v9  ;;  %v1172_v1 = vadd.f32 1.0, %v4367_v16  ;;  %v4369_v14 = vpop.eup %4368 }
 0x46c   : > { %4378 = vtanh.f32 %v1150_v27  ;;  %v1173_v13 = vadd.f32 1.0, %v4369_v14  ;;  %v4371_v21 = vpop.eup %4370 }
 0x46d   : > { %4380 = vrcp.f32 %v1170_v35  ;;  %v4373_v30 = vpop.eup %4372 }
 0x46e   : > { %4382 = vrcp.f32 %v1172_v1  ;;  %v4375_v12 = vpop.eup %4374  ;;  %v1171_v23 = vadd.f32 1.0, %v4373_v30 }
 0x46f   : > { %4384 = vrcp.f32 %v1173_v13  ;;  %v1174_v17 = vadd.f32 1.0, %v4375_v12 }
 0x470   : > { %4386 = vrcp.f32 %v1171_v23 }
 0x475   : > { %v4377_v20 = vpop.eup %4376 }
 0x476   : > { %v4379_v19 = vpop.eup %4378  ;;  %v1191_v8 = vmul.f32 %v4377_v20, %v4371_v21 }
 0x477   : > { %v4381_v22 = vpop.eup %4380 }
 0x478   : > { %v4383_v34 = vpop.eup %4382  ;;  %v1189_v10 = vmul.f32 %v4381_v22, %v5437_v6 }
 0x479   : > { %v1192_v32 = vmul.f32 %v4383_v34, %v4379_v19  ;;  %v4385_v26 = vpop.eup %4384  ;;  %v3874_v34 = vld [vmem:[%s4979_s16 + $0x88] sm:$0xff] }
 0x47a   : > { %v1193_v2 = vadd.f32 %v1191_v8, %v1189_v10  ;;  %v1190_v15 = vmul.f32 %v4385_v26, %v5440_v39  ;;  %v4387_v3 = vpop.eup %4386 }
 0x47c   : > { %4388 = vtanh.f32 %v1193_v2  ;;  %v5503_v5 = vsel %vm5494_vm6, %v1193_v2, %v5437_v6  ;;  %v1194_v7 = vadd.f32 %v1192_v32, %v1190_v15  ;;  %v3876_v2 = vld [vmem:[%s4979_s16 + $0x98] sm:$0xff] }
 0x47d   : > { %4390 = vrcp.f32 %v1174_v17 }
 0x47e   : > { %4392 = vtanh.f32 %v1194_v7  ;;  %v5506_v9 = vsel %vm1203_vm7, %v1194_v7, %v5440_v39  ;;  %v6573_v39 = vld [vmem:[#allocation45_spill] sm:$0xff] }
 0x486   : > { %v4389_v16 = vpop.eup %4388 }
 0x487   : > { %v1197_v35 = vmul.f32 %v4389_v16, %v4387_v3  ;;  %v4391_v1 = vpop.eup %4390 }
 0x488   : > { %v4393_v14 = vpop.eup %4392 }
 0x489   : > { %v1198_v13 = vmul.f32 %v4393_v14, %v4391_v1  ;;  %v5511_v21 = vsel %vm5494_vm6, %v1197_v35, %v5445_v24  ;;  %v3873_v24 = vld [vmem:[%s4979_s16 + $0x80] sm:$0xff]  ;;  %v1226_v35 = vunpack.c.l.bf16 %v3874_v34 }
 0x48a   : > { %v1224_v12 = vunpack.c.l.bf16 %v3873_v24  ;;  %v1225_v20 = vunpack.c.h.bf16 %v3873_v24 }
 0x48b   : > { %v5514_v6 = vsel %vm1203_vm7, %v1198_v13, %v5448_v31  ;;  %v3875_v31 = vld [vmem:[%s4979_s16 + $0x90] sm:$0xff] }
 0x48c   : > { %v1208_v30 = vpack.c.bf16 %v5514_v6, %v5511_v21  ;;  %v1228_v19 = vunpack.c.l.bf16 %v3875_v31  ;;  %v1229_v22 = vunpack.c.h.bf16 %v3875_v31  ;;  %v1227_v31 = vunpack.c.h.bf16 %v3874_v34 }
 0x48e   : > { %4194 = vst [vmem:[%s4981_s7 + $0x18] sm:$0xff] %v1208_v30   ;;  %1265 = vmatmul.mubr.bf16.vlgmr.msra.gmra.mrb[16].mxu0 %v1208_v30  ;;  %1308 = vmatmul.mubr.bf16.vlgmr.msra.gmra.mrb[16].mxu1 %v1208_v30  ;;  %v1230_v30 = vunpack.c.l.bf16 %v3876_v2 }
 0x48f   : > { %1408 = vmatpush1.bf16.msra.mxu0 %v5092_v37  ;;  %1451 = vmatpush1.bf16.msra.mxu1 %v5105_v40 }
 0x490   : > { %1409 = vmatprep.subr.bf16.mxu0 %v5096_v38  ;;  %1452 = vmatprep.subr.bf16.mxu1 %v5109_v41 }
 0x491   : > { %1439 = vmatprep.mubr.bf16.mxu0 %v6562_v33  ;;  %1482 = vmatprep.mubr.bf16.mxu1 %v6562_v33 }
 0x493   : > { %1410 = vmatpush1.bf16.msra.mxu0 %v5114_v42  ;;  %1453 = vmatpush1.bf16.msra.mxu1 %v5125_v44 }
 0x494   : > { %1411 = vmatprep.subr.bf16.mxu0 %v5120_v43  ;;  %1454 = vmatprep.subr.bf16.mxu1 %v5130_v45 }
 0x497   : > { %1412 = vmatpush1.bf16.msra.mxu0 %v5136_v47  ;;  %1455 = vmatpush1.bf16.msra.mxu1 %v5146_v49 }
 0x498   : > { %1413 = vmatprep.subr.bf16.mxu0 %v5141_v48  ;;  %1456 = vmatprep.subr.bf16.mxu1 %v5151_v50 }
 0x49b   : > { %1414 = vmatpush1.bf16.msra.mxu0 %v5157_v51  ;;  %1457 = vmatpush1.bf16.msra.mxu1 %v5167_v53 }
 0x49c   : > { %1415 = vmatprep.subr.bf16.mxu0 %v5162_v52  ;;  %1458 = vmatprep.subr.bf16.mxu1 %v5172_v54 }
 0x49f   : > { %1416 = vmatpush1.bf16.msra.mxu0 %v5177_v55  ;;  %1459 = vmatpush1.bf16.msra.mxu1 %v5187_v57 }
 0x4a0   : > { %1417 = vmatprep.subr.bf16.mxu0 %v5182_v56  ;;  %1460 = vmatprep.subr.bf16.mxu1 %v5192_v58 }
 0x4a3   : > { %1418 = vmatpush1.bf16.msra.mxu0 %v5197_v59  ;;  %1461 = vmatpush1.bf16.msra.mxu1 %v5207_v61 }
 0x4a4   : > { %1419 = vmatprep.subr.bf16.mxu0 %v5202_v60  ;;  %1462 = vmatprep.subr.bf16.mxu1 %v5212_v62 }
 0x4a7   : > { %1420 = vmatpush1.bf16.msra.mxu0 %v5217_v63  ;;  %1463 = vmatpush1.bf16.msra.mxu1 %v5227_v4 }
 0x4a8   : > { %1421 = vmatprep.subr.bf16.mxu0 %v5222_v0  ;;  %1464 = vmatprep.subr.bf16.mxu1 %v5232_v46 }
 0x4ab   : > { %1422 = vmatpush1.bf16.msra.mxu0 %v5237_v28  ;;  %1465 = vmatpush1.bf16.msra.mxu1 %v5247_v29 }
 0x4ac   : > { %1582 = vmatprep.subr.bf16.mxu0 %v5088_v36  ;;  %1625 = vmatprep.subr.bf16.mxu1 %v6573_v39 }
 0x561   : > { %v1266_v8 = vpop.f32.mrb[16].mxu0  ;;  %v1309_v25 = vpop.f32.mrb[16].mxu1 }
 0x562   : > { %v1318_v23 = vadd.f32 %v1266_v8, %v1224_v12  ;;  %v1268_v10 = vpop.f32.mrb[17].mxu0  ;;  %v1311_v32 = vpop.f32.mrb[17].mxu1  ;;  %v1320_v12 = vadd.f32 %v1309_v25, %v1226_v35 }
 0x563   : > { %v1319_v27 = vadd.f32 %v1268_v10, %v1225_v20  ;;  %v1270_v26 = vpop.f32.mrb[18].mxu0  ;;  %v1313_v17 = vpop.f32.mrb[18].mxu1  ;;  %v1321_v20 = vadd.f32 %v1311_v32, %v1227_v31  ;;  %v1231_v10 = vunpack.c.h.bf16 %v3876_v2 }
 0x564   : > { %v3877_v15 = vmul.f32 -1.442695, %v1318_v23  ;;  %v1322_v7 = vadd.f32 %v1270_v26, %v1228_v19  ;;  %v1272_v3 = vpop.f32.mrb[19].mxu0  ;;  %v1315_v16 = vpop.f32.mrb[19].mxu1  ;;  %v1324_v8 = vadd.f32 %v1313_v17, %v1230_v30  ;;  %v3879_v23 = vmul.f32 -1.442695, %v1320_v12 }
 0x565   : > { %v3878_v1 = vmul.f32 -1.442695, %v1319_v27  ;;  %v1323_v14 = vadd.f32 %v1272_v3, %v1229_v22  ;;  %v1325_v39 = vadd.f32 %v1315_v16, %v1231_v10 }
 0x566   : > { %4394 = vpow2.f32 %v3877_v15  ;;  %v3880_v13 = vmul.f32 -1.442695, %v1322_v7  ;;  %v3882_v19 = vmul.f32 -1.442695, %v1324_v8 }
 0x567   : > { %v3881_v24 = vmul.f32 -1.442695, %v1323_v14  ;;  %4396 = vpow2.f32 %v3878_v1  ;;  %v1376_v14 = vstv %s1375_s10 }
 0x568   : > { %4398 = vpow2.f32 %v3880_v13  ;;  %vm5560_vm8 = vcmp.lt.s32.totalorder %v5011_v11, %v1376_v14  ;;  %vm1378_vm9 = vcmp.lt.s32.totalorder %v5032_v18, %v1376_v14 }
 0x569   : > { %4400 = vpow2.f32 %v3881_v24 }
 0x56a   : > { %4402 = vtanh.f32 %v1321_v20 }
 0x56b   : > { %4404 = vpow2.f32 %v3879_v23 }
 0x56c   : > { %4406 = vpow2.f32 %v3882_v19 }
 0x570   : > { %v4395_v26 = vpop.eup %4394 }
 0x571   : > { %v1344_v27 = vadd.f32 1.0, %v4395_v26  ;;  %v4397_v22 = vpop.eup %4396 }
 0x572   : > { %v4399_v15 = vpop.eup %4398  ;;  %v1345_v7 = vadd.f32 1.0, %v4397_v22 }
 0x573   : > { %4408 = vrcp.f32 %v1344_v27  ;;  %v1347_v25 = vadd.f32 1.0, %v4399_v15  ;;  %v4401_v34 = vpop.eup %4400 }
 0x574   : > { %4410 = vtanh.f32 %v1325_v39  ;;  %v1348_v32 = vadd.f32 1.0, %v4401_v34  ;;  %v4403_v2 = vpop.eup %4402 }
 0x575   : > { %4412 = vrcp.f32 %v1345_v7  ;;  %v4405_v17 = vpop.eup %4404 }
 0x576   : > { %4414 = vrcp.f32 %v1347_v25  ;;  %v4407_v3 = vpop.eup %4406  ;;  %v1346_v30 = vadd.f32 1.0, %v4405_v17 }
 0x577   : > { %4416 = vrcp.f32 %v1348_v32  ;;  %v1349_v10 = vadd.f32 1.0, %v4407_v3 }
 0x578   : > { %4418 = vrcp.f32 %v1346_v30 }
 0x57d   : > { %v4409_v16 = vpop.eup %4408 }
 0x57e   : > { %v4411_v35 = vpop.eup %4410  ;;  %v1366_v1 = vmul.f32 %v4409_v16, %v4403_v2 }
 0x57f   : > { %v4413_v13 = vpop.eup %4412 }
 0x580   : > { %v4415_v24 = vpop.eup %4414  ;;  %v1364_v31 = vmul.f32 %v4413_v13, %v5503_v5 }
 0x581   : > { %v1367_v12 = vmul.f32 %v4415_v24, %v4411_v35  ;;  %v4417_v8 = vpop.eup %4416  ;;  %v3888_v24 = vld [vmem:[%s4979_s16 + $0xa8] sm:$0xff] }
 0x582   : > { %v1368_v20 = vadd.f32 %v1366_v1, %v1364_v31  ;;  %v1365_v23 = vmul.f32 %v4417_v8, %v5506_v9  ;;  %v4419_v22 = vpop.eup %4418 }
 0x584   : > { %4420 = vtanh.f32 %v1368_v20  ;;  %v5569_v19 = vsel %vm5560_vm8, %v1368_v20, %v5503_v5  ;;  %v1369_v26 = vadd.f32 %v1367_v12, %v1365_v23  ;;  %v3890_v20 = vld [vmem:[%s4979_s16 + $0xb8] sm:$0xff] }
 0x585   : > { %4422 = vrcp.f32 %v1349_v10 }
 0x586   : > { %4424 = vtanh.f32 %v1369_v26  ;;  %v5572_v27 = vsel %vm1378_vm9, %v1369_v26, %v5506_v9  ;;  %v6576_v9 = vld [vmem:[#allocation45_spill] sm:$0xff] }
 0x58e   : > { %v4421_v15 = vpop.eup %4420 }
 0x58f   : > { %v1372_v7 = vmul.f32 %v4421_v15, %v4419_v22  ;;  %v4423_v25 = vpop.eup %4422  ;;  %v1401_v15 = vunpack.c.l.bf16 %v3888_v24 }
 0x590   : > { %v4425_v34 = vpop.eup %4424 }
 0x591   : > { %v1373_v32 = vmul.f32 %v4425_v34, %v4423_v25  ;;  %v5577_v2 = vsel %vm5560_vm8, %v1372_v7, %v5511_v21  ;;  %v3887_v21 = vld [vmem:[%s4979_s16 + $0xa0] sm:$0xff] }
 0x592   : > { %v1399_v3 = vunpack.c.l.bf16 %v3887_v21  ;;  %v1400_v16 = vunpack.c.h.bf16 %v3887_v21 }
 0x593   : > { %v5580_v5 = vsel %vm1378_vm9, %v1373_v32, %v5514_v6  ;;  %v3889_v6 = vld [vmem:[%s4979_s16 + $0xb0] sm:$0xff]  ;;  %v1405_v32 = vunpack.c.l.bf16 %v3890_v20 }
 0x594   : > { %v1383_v17 = vpack.c.bf16 %v5580_v5, %v5577_v2  ;;  %v1403_v35 = vunpack.c.l.bf16 %v3889_v6  ;;  %v1404_v13 = vunpack.c.h.bf16 %v3889_v6 }
 0x596   : > { %4195 = vst [vmem:[%s4981_s7 + $0x20] sm:$0xff] %v1383_v17   ;;  %1440 = vmatmul.mubr.bf16.vlgmr.msra.gmra.mrb[20].mxu0 %v1383_v17  ;;  %1483 = vmatmul.mubr.bf16.vlgmr.msra.gmra.mrb[20].mxu1 %v1383_v17 }
 0x597   : > { %1583 = vmatpush1.bf16.msra.mxu0 %v5092_v37  ;;  %1626 = vmatpush1.bf16.msra.mxu1 %v5105_v40 }
 0x598   : > { %1584 = vmatprep.subr.bf16.mxu0 %v5096_v38  ;;  %1627 = vmatprep.subr.bf16.mxu1 %v5109_v41 }
 0x599   : > { %1614 = vmatprep.mubr.bf16.mxu0 %v6562_v33  ;;  %1657 = vmatprep.mubr.bf16.mxu1 %v6562_v33 }
 0x59b   : > { %1585 = vmatpush1.bf16.msra.mxu0 %v5114_v42  ;;  %1628 = vmatpush1.bf16.msra.mxu1 %v5125_v44 }
 0x59c   : > { %1586 = vmatprep.subr.bf16.mxu0 %v5120_v43  ;;  %1629 = vmatprep.subr.bf16.mxu1 %v5130_v45 }
 0x59f   : > { %1587 = vmatpush1.bf16.msra.mxu0 %v5136_v47  ;;  %1630 = vmatpush1.bf16.msra.mxu1 %v5146_v49 }
 0x5a0   : > { %1588 = vmatprep.subr.bf16.mxu0 %v5141_v48  ;;  %1631 = vmatprep.subr.bf16.mxu1 %v5151_v50 }
 0x5a3   : > { %1589 = vmatpush1.bf16.msra.mxu0 %v5157_v51  ;;  %1632 = vmatpush1.bf16.msra.mxu1 %v5167_v53 }
 0x5a4   : > { %1590 = vmatprep.subr.bf16.mxu0 %v5162_v52  ;;  %1633 = vmatprep.subr.bf16.mxu1 %v5172_v54 }
 0x5a7   : > { %1591 = vmatpush1.bf16.msra.mxu0 %v5177_v55  ;;  %1634 = vmatpush1.bf16.msra.mxu1 %v5187_v57 }
 0x5a8   : > { %1592 = vmatprep.subr.bf16.mxu0 %v5182_v56  ;;  %1635 = vmatprep.subr.bf16.mxu1 %v5192_v58 }
 0x5ab   : > { %1593 = vmatpush1.bf16.msra.mxu0 %v5197_v59  ;;  %1636 = vmatpush1.bf16.msra.mxu1 %v5207_v61 }
 0x5ac   : > { %1594 = vmatprep.subr.bf16.mxu0 %v5202_v60  ;;  %1637 = vmatprep.subr.bf16.mxu1 %v5212_v62 }
 0x5af   : > { %1595 = vmatpush1.bf16.msra.mxu0 %v5217_v63  ;;  %1638 = vmatpush1.bf16.msra.mxu1 %v5227_v4 }
 0x5b0   : > { %1596 = vmatprep.subr.bf16.mxu0 %v5222_v0  ;;  %1639 = vmatprep.subr.bf16.mxu1 %v5232_v46 }
 0x5b3   : > { %1597 = vmatpush1.bf16.msra.mxu0 %v5237_v28  ;;  %1640 = vmatpush1.bf16.msra.mxu1 %v5247_v29 }
 0x5b4   : > { %1757 = vmatprep.subr.bf16.mxu0 %v5088_v36  ;;  %1800 = vmatprep.subr.bf16.mxu1 %v6576_v9  ;;  %v1402_v9 = vunpack.c.h.bf16 %v3888_v24 }
 0x669   : > { %v1441_v1 = vpop.f32.mrb[20].mxu0  ;;  %v1484_v14 = vpop.f32.mrb[20].mxu1 }
 0x66a   : > { %v1493_v30 = vadd.f32 %v1441_v1, %v1399_v3  ;;  %v1443_v31 = vpop.f32.mrb[21].mxu0  ;;  %v1486_v12 = vpop.f32.mrb[21].mxu1  ;;  %v1495_v21 = vadd.f32 %v1484_v14, %v1401_v15 }
 0x66b   : > { %v1494_v39 = vadd.f32 %v1443_v31, %v1400_v16  ;;  %v1445_v8 = vpop.f32.mrb[22].mxu0  ;;  %v1488_v10 = vpop.f32.mrb[22].mxu1  ;;  %v1496_v3 = vadd.f32 %v1486_v12, %v1402_v9  ;;  %v1406_v16 = vunpack.c.h.bf16 %v3890_v20 }
 0x66c   : > { %v3891_v36 = vmul.f32 -1.442695, %v1493_v30  ;;  %v1497_v23 = vadd.f32 %v1445_v8, %v1403_v35  ;;  %v1447_v26 = vpop.f32.mrb[23].mxu0  ;;  %v1490_v22 = vpop.f32.mrb[23].mxu1  ;;  %v1499_v6 = vadd.f32 %v1488_v10, %v1405_v32  ;;  %v3893_v1 = vmul.f32 -1.442695, %v1495_v21 }
 0x66d   : > { %v3892_v7 = vmul.f32 -1.442695, %v1494_v39  ;;  %v1498_v25 = vadd.f32 %v1447_v26, %v1404_v13  ;;  %v1500_v31 = vadd.f32 %v1490_v22, %v1406_v16 }
 0x66e   : > { %4426 = vpow2.f32 %v3891_v36  ;;  %v3894_v34 = vmul.f32 -1.442695, %v1497_v23  ;;  %v3896_v35 = vmul.f32 -1.442695, %v1499_v6 }
 0x66f   : > { %v3895_v17 = vmul.f32 -1.442695, %v1498_v25  ;;  %4428 = vpow2.f32 %v3892_v7  ;;  %v1551_v7 = vstv %s1550_s12 }
 0x670   : > { %4430 = vpow2.f32 %v3894_v34  ;;  %vm5626_vm10 = vcmp.lt.s32.totalorder %v5011_v11, %v1551_v7  ;;  %vm1553_vm11 = vcmp.lt.s32.totalorder %v5032_v18, %v1551_v7 }
 0x671   : > { %4432 = vpow2.f32 %v3895_v17 }
 0x672   : > { %4434 = vtanh.f32 %v1496_v3 }
 0x673   : > { %4436 = vpow2.f32 %v3893_v1 }
 0x674   : > { %4438 = vpow2.f32 %v3896_v35 }
 0x678   : > { %v4427_v30 = vpop.eup %4426 }
 0x679   : > { %v1519_v39 = vadd.f32 1.0, %v4427_v30  ;;  %v4429_v13 = vpop.eup %4428 }
 0x67a   : > { %v4431_v8 = vpop.eup %4430  ;;  %v1520_v36 = vadd.f32 1.0, %v4429_v13 }
 0x67b   : > { %4440 = vrcp.f32 %v1519_v39  ;;  %v1522_v14 = vadd.f32 1.0, %v4431_v8  ;;  %v4433_v24 = vpop.eup %4432 }
 0x67c   : > { %4442 = vtanh.f32 %v1500_v31  ;;  %v1523_v12 = vadd.f32 1.0, %v4433_v24  ;;  %v4435_v20 = vpop.eup %4434 }
 0x67d   : > { %4444 = vrcp.f32 %v1520_v36  ;;  %v4437_v10 = vpop.eup %4436 }
 0x67e   : > { %4446 = vrcp.f32 %v1522_v14  ;;  %v4439_v23 = vpop.eup %4438  ;;  %v1521_v34 = vadd.f32 1.0, %v4437_v10 }
 0x67f   : > { %4448 = vrcp.f32 %v1523_v12  ;;  %v1524_v16 = vadd.f32 1.0, %v4439_v23 }
 0x680   : > { %4450 = vrcp.f32 %v1521_v34 }
 0x685   : > { %v4441_v26 = vpop.eup %4440 }
 0x686   : > { %v4443_v22 = vpop.eup %4442  ;;  %v1541_v15 = vmul.f32 %v4441_v26, %v4435_v20 }
 0x687   : > { %v4445_v25 = vpop.eup %4444 }
 0x688   : > { %v4447_v32 = vpop.eup %4446  ;;  %v1539_v17 = vmul.f32 %v4445_v25, %v5569_v19 }
 0x689   : > { %v1542_v9 = vmul.f32 %v4447_v32, %v4443_v22  ;;  %v4449_v6 = vpop.eup %4448 }
 0x68a   : > { %v1543_v3 = vadd.f32 %v1541_v15, %v1539_v17  ;;  %v1540_v1 = vmul.f32 %v4449_v6, %v5572_v27  ;;  %v4451_v39 = vpop.eup %4450 }
 0x68c   : > { %4452 = vtanh.f32 %v1543_v3  ;;  %v5635_v35 = vsel %vm5626_vm10, %v1543_v3, %v5569_v19  ;;  %v1544_v30 = vadd.f32 %v1542_v9, %v1540_v1 }
 0x68d   : > { %4454 = vrcp.f32 %v1524_v16  ;;  %v1726_v16 = vstv %s1725_s15 }
 0x68e   : > { %4456 = vtanh.f32 %v1544_v30  ;;  %v5638_v31 = vsel %vm1553_vm11, %v1544_v30, %v5572_v27  ;;  %vm5690_vm12 = vcmp.lt.s32.totalorder %v5011_v11, %v1726_v16  ;;  %vm1728_vm13 = vcmp.lt.s32.totalorder %v5032_v18, %v1726_v16 }
 0x696   : > { %v4453_v13 = vpop.eup %4452 }
 0x697   : > { %v1547_v8 = vmul.f32 %v4453_v13, %v4451_v39  ;;  %v4455_v36 = vpop.eup %4454 }
 0x698   : > { %v4457_v14 = vpop.eup %4456 }
 0x699   : > { %v1548_v24 = vmul.f32 %v4457_v14, %v4455_v36  ;;  %v5643_v12 = vsel %vm5626_vm10, %v1547_v8, %v5577_v2 }
 0x69b   : > { %v5646_v19 = vsel %vm1553_vm11, %v1548_v24, %v5580_v5 }
 0x69c   : > { %v1558_v20 = vpack.c.bf16 %v5646_v19, %v5643_v12 }
 0x69e   : > { %4196 = vst [vmem:[%s4981_s7 + $0x28] sm:$0xff] %v1558_v20   ;;  %1615 = vmatmul.mubr.bf16.vlgmr.msra.gmra.mrb[24].mxu0 %v1558_v20  ;;  %1658 = vmatmul.mubr.bf16.vlgmr.msra.gmra.mrb[24].mxu1 %v1558_v20 }
 0x69f   : > { %1758 = vmatpush1.bf16.msra.mxu0 %v5092_v37  ;;  %1801 = vmatpush1.bf16.msra.mxu1 %v5105_v40  ;;  %v3903_v37 = vld [vmem:[%s4979_s16 + $0xd0] sm:$0xff] }
 0x6a0   : > { %1759 = vmatprep.subr.bf16.mxu0 %v5096_v38  ;;  %1802 = vmatprep.subr.bf16.mxu1 %v5109_v41  ;;  %v1578_v41 = vunpack.c.l.bf16 %v3903_v37 }
 0x6a1   : > { %1789 = vmatprep.mubr.bf16.mxu0 %v6562_v33  ;;  %1832 = vmatprep.mubr.bf16.mxu1 %v6562_v33  ;;  %v3901_v33 = vld [vmem:[%s4979_s16 + $0xc0] sm:$0xff] }
 0x6a2   : > { %v1574_v38 = vunpack.c.l.bf16 %v3901_v33  ;;  %v1575_v40 = vunpack.c.h.bf16 %v3901_v33 }
 0x6a3   : > { %1760 = vmatpush1.bf16.msra.mxu0 %v5114_v42  ;;  %1803 = vmatpush1.bf16.msra.mxu1 %v5125_v44  ;;  %v1579_v44 = vunpack.c.h.bf16 %v3903_v37 }
 0x6a4   : > { %1761 = vmatprep.subr.bf16.mxu0 %v5120_v43  ;;  %1804 = vmatprep.subr.bf16.mxu1 %v5130_v45 }
 0x6a7   : > { %1762 = vmatpush1.bf16.msra.mxu0 %v5136_v47  ;;  %1805 = vmatpush1.bf16.msra.mxu1 %v5146_v49  ;;  %v3902_v47 = vld [vmem:[%s4979_s16 + $0xc8] sm:$0xff] }
 0x6a8   : > { %1763 = vmatprep.subr.bf16.mxu0 %v5141_v48  ;;  %1806 = vmatprep.subr.bf16.mxu1 %v5151_v50 }
 0x6ab   : > { %1764 = vmatpush1.bf16.msra.mxu0 %v5157_v51  ;;  %1807 = vmatpush1.bf16.msra.mxu1 %v5167_v53 }
 0x6ac   : > { %1765 = vmatprep.subr.bf16.mxu0 %v5162_v52  ;;  %1808 = vmatprep.subr.bf16.mxu1 %v5172_v54 }
 0x6af   : > { %1766 = vmatpush1.bf16.msra.mxu0 %v5177_v55  ;;  %1809 = vmatpush1.bf16.msra.mxu1 %v5187_v57  ;;  %v1576_v55 = vunpack.c.l.bf16 %v3902_v47 }
 0x6b0   : > { %1767 = vmatprep.subr.bf16.mxu0 %v5182_v56  ;;  %1810 = vmatprep.subr.bf16.mxu1 %v5192_v58 }
 0x6b3   : > { %1768 = vmatpush1.bf16.msra.mxu0 %v5197_v59  ;;  %1811 = vmatpush1.bf16.msra.mxu1 %v5207_v61  ;;  %v1577_v61 = vunpack.c.h.bf16 %v3902_v47 }
 0x6b4   : > { %1769 = vmatprep.subr.bf16.mxu0 %v5202_v60  ;;  %1812 = vmatprep.subr.bf16.mxu1 %v5212_v62 }
 0x6b7   : > { %1770 = vmatpush1.bf16.msra.mxu0 %v5217_v63  ;;  %1813 = vmatpush1.bf16.msra.mxu1 %v5227_v4 }
 0x6b8   : > { %1771 = vmatprep.subr.bf16.mxu0 %v5222_v0  ;;  %1814 = vmatprep.subr.bf16.mxu1 %v5232_v46  ;;  %v3904_v46 = vld [vmem:[%s4979_s16 + $0xd8] sm:$0xff] }
 0x6b9   : > { %v1580_v59 = vunpack.c.l.bf16 %v3904_v46  ;;  %v1581_v4 = vunpack.c.h.bf16 %v3904_v46 }
 0x6bb   : > { %1772 = vmatpush1.bf16.msra.mxu0 %v5237_v28  ;;  %1815 = vmatpush1.bf16.msra.mxu1 %v5247_v29 }
 0x771   : > { %v1616_v42 = vpop.f32.mrb[24].mxu0  ;;  %v1659_v43 = vpop.f32.mrb[24].mxu1 }
 0x772   : > { %v1668_v45 = vadd.f32 %v1616_v42, %v1574_v38  ;;  %v1618_v48 = vpop.f32.mrb[25].mxu0  ;;  %v1661_v49 = vpop.f32.mrb[25].mxu1  ;;  %v1670_v62 = vadd.f32 %v1659_v43, %v1576_v55 }
 0x773   : > { %v1669_v50 = vadd.f32 %v1618_v48, %v1575_v40  ;;  %v1620_v51 = vpop.f32.mrb[26].mxu0  ;;  %v1663_v52 = vpop.f32.mrb[26].mxu1  ;;  %v1671_v0 = vadd.f32 %v1661_v49, %v1577_v61 }
 0x774   : > { %v3905_v28 = vmul.f32 -1.442695, %v1668_v45  ;;  %v1672_v53 = vadd.f32 %v1620_v51, %v1578_v41  ;;  %v1622_v54 = vpop.f32.mrb[27].mxu0  ;;  %v1665_v29 = vpop.f32.mrb[27].mxu1  ;;  %v1674_v63 = vadd.f32 %v1663_v52, %v1580_v59  ;;  %v3907_v27 = vmul.f32 -1.442695, %v1670_v62 }
 0x775   : > { %v3906_v56 = vmul.f32 -1.442695, %v1669_v50  ;;  %v1673_v57 = vadd.f32 %v1622_v54, %v1579_v44  ;;  %v1675_v10 = vadd.f32 %v1665_v29, %v1581_v4  ;;  %v3917_v50 = vld [vmem:[%s4979_s16 + $0xf0] sm:$0xff]  ;;  %v3916_v29 = vld [vmem:[%s4979_s16 + $0xe8] sm:$0xff] }
 0x776   : > { %4458 = vpow2.f32 %v3905_v28  ;;  %v3908_v58 = vmul.f32 -1.442695, %v1672_v53  ;;  %v3910_v2 = vmul.f32 -1.442695, %v1674_v63  ;;  %v1753_v52 = vunpack.c.l.bf16 %v3917_v50 }
 0x777   : > { %v3909_v60 = vmul.f32 -1.442695, %v1673_v57  ;;  %4460 = vpow2.f32 %v3906_v56  ;;  %v1754_v54 = vunpack.c.h.bf16 %v3917_v50 }
 0x778   : > { %4462 = vpow2.f32 %v3908_v58  ;;  %v3918_v58 = vld [vmem:[%s4979_s16 + $0xf8] sm:$0xff] }
 0x779   : > { %4464 = vpow2.f32 %v3909_v60 }
 0x77a   : > { %4466 = vtanh.f32 %v1671_v0  ;;  %v1751_v0 = vunpack.c.l.bf16 %v3916_v29 }
 0x77b   : > { %4468 = vpow2.f32 %v3907_v27 }
 0x77c   : > { %4470 = vpow2.f32 %v3910_v2 }
 0x780   : > { %v4459_v5 = vpop.eup %4458 }
 0x781   : > { %v1694_v23 = vadd.f32 1.0, %v4459_v5  ;;  %v4461_v26 = vpop.eup %4460  ;;  %v1755_v5 = vunpack.c.l.bf16 %v3918_v58 }
 0x782   : > { %v4463_v22 = vpop.eup %4462  ;;  %v1695_v15 = vadd.f32 1.0, %v4461_v26 }
 0x783   : > { %4472 = vrcp.f32 %v1694_v23  ;;  %v1697_v7 = vadd.f32 1.0, %v4463_v22  ;;  %v4465_v25 = vpop.eup %4464  ;;  %v1752_v23 = vunpack.c.h.bf16 %v3916_v29 }
 0x784   : > { %4474 = vtanh.f32 %v1675_v10  ;;  %v1698_v34 = vadd.f32 1.0, %v4465_v25  ;;  %v4467_v32 = vpop.eup %4466 }
 0x785   : > { %4476 = vrcp.f32 %v1695_v15  ;;  %v4469_v17 = vpop.eup %4468 }
 0x786   : > { %4478 = vrcp.f32 %v1697_v7  ;;  %v4471_v9 = vpop.eup %4470  ;;  %v1696_v30 = vadd.f32 1.0, %v4469_v17  ;;  %v1756_v7 = vunpack.c.h.bf16 %v3918_v58 }
 0x787   : > { %4480 = vrcp.f32 %v1698_v34  ;;  %v1699_v20 = vadd.f32 1.0, %v4471_v9 }
 0x788   : > { %4482 = vrcp.f32 %v1696_v30 }
 0x78d   : > { %v4473_v21 = vpop.eup %4472 }
 0x78e   : > { %v4475_v6 = vpop.eup %4474  ;;  %v1716_v3 = vmul.f32 %v4473_v21, %v4467_v32 }
 0x78f   : > { %v4477_v1 = vpop.eup %4476 }
 0x790   : > { %v4479_v39 = vpop.eup %4478  ;;  %v1714_v13 = vmul.f32 %v4477_v1, %v5635_v35 }
 0x791   : > { %v1717_v8 = vmul.f32 %v4479_v39, %v4475_v6  ;;  %v4481_v14 = vpop.eup %4480 }
 0x792   : > { %v1718_v24 = vadd.f32 %v1716_v3, %v1714_v13  ;;  %v1715_v33 = vmul.f32 %v4481_v14, %v5638_v31  ;;  %v4483_v41 = vpop.eup %4482 }
 0x794   : > { %4484 = vtanh.f32 %v1718_v24  ;;  %v5699_v37 = vsel %vm5690_vm12, %v1718_v24, %v5635_v35  ;;  %v1719_v38 = vadd.f32 %v1717_v8, %v1715_v33 }
 0x795   : > { %4486 = vrcp.f32 %v1699_v20  ;;  %v1901_v20 = vstv %s1900_s21 }
 0x796   : > { %4488 = vtanh.f32 %v1719_v38  ;;  %v5702_v40 = vsel %vm1728_vm13, %v1719_v38, %v5638_v31  ;;  %v3915_v31 = vld [vmem:[%s4979_s16 + $0xe0] sm:$0xff]  ;;  %vm5722_vm14 = vcmp.lt.s32.totalorder %v5011_v11, %v1901_v20  ;;  %vm1903_vm15 = vcmp.lt.s32.totalorder %v5032_v18, %v1901_v20 }
 0x797   : > { %v1749_v51 = vunpack.c.l.bf16 %v3915_v31  ;;  %v1750_v46 = vunpack.c.h.bf16 %v3915_v31 }
 0x79e   : > { %v4485_v42 = vpop.eup %4484 }
 0x79f   : > { %v1722_v43 = vmul.f32 %v4485_v42, %v4483_v41  ;;  %v4487_v44 = vpop.eup %4486 }
 0x7a0   : > { %v4489_v45 = vpop.eup %4488 }
 0x7a1   : > { %v1723_v47 = vmul.f32 %v4489_v45, %v4487_v44  ;;  %v5707_v35 = vsel %vm5690_vm12, %v1722_v43, %v5643_v12 }
 0x7a3   : > { %v5710_v48 = vsel %vm1728_vm13, %v1723_v47, %v5646_v19 }
 0x7a4   : > { %v1733_v49 = vpack.c.bf16 %v5710_v48, %v5707_v35 }
 0x7a6   : > { %4197 = vst [vmem:[%s4981_s7 + $0x30] sm:$0xff] %v1733_v49   ;;  %1790 = vmatmul.mubr.bf16.vlgmr.msra.gmra.mrb[28].mxu0 %v1733_v49  ;;  %1833 = vmatmul.mubr.bf16.vlgmr.msra.gmra.mrb[28].mxu1 %v1733_v49 }
 0x879   : > { %v1791_v28 = vpop.f32.mrb[28].mxu0  ;;  %v1834_v53 = vpop.f32.mrb[28].mxu1 }
 0x87a   : > { %v1843_v12 = vadd.f32 %v1791_v28, %v1749_v51  ;;  %v1793_v55 = vpop.f32.mrb[29].mxu0  ;;  %v1836_v19 = vpop.f32.mrb[29].mxu1  ;;  %v1845_v26 = vadd.f32 %v1834_v53, %v1751_v0 }
 0x87b   : > { %v1844_v56 = vadd.f32 %v1793_v55, %v1750_v46  ;;  %v1795_v57 = vpop.f32.mrb[30].mxu0  ;;  %v1838_v59 = vpop.f32.mrb[30].mxu1  ;;  %v1846_v15 = vadd.f32 %v1836_v19, %v1752_v23 }
 0x87c   : > { %v3919_v60 = vmul.f32 -1.442695, %v1843_v12  ;;  %v1847_v61 = vadd.f32 %v1795_v57, %v1753_v52  ;;  %v1797_v62 = vpop.f32.mrb[31].mxu0  ;;  %v1840_v63 = vpop.f32.mrb[31].mxu1  ;;  %v1849_v22 = vadd.f32 %v1838_v59, %v1755_v5  ;;  %v3921_v25 = vmul.f32 -1.442695, %v1845_v26 }
 0x87d   : > { %v3920_v4 = vmul.f32 -1.442695, %v1844_v56  ;;  %v1848_v27 = vadd.f32 %v1797_v62, %v1754_v54  ;;  %v1850_v17 = vadd.f32 %v1840_v63, %v1756_v7 }
 0x87e   : > { %4490 = vpow2.f32 %v3919_v60  ;;  %v3922_v2 = vmul.f32 -1.442695, %v1847_v61  ;;  %v3924_v34 = vmul.f32 -1.442695, %v1849_v22 }
 0x87f   : > { %v3923_v10 = vmul.f32 -1.442695, %v1848_v27  ;;  %4492 = vpow2.f32 %v3920_v4 }
 0x880   : > { %4494 = vpow2.f32 %v3922_v2 }
 0x881   : > { %4496 = vpow2.f32 %v3923_v10 }
 0x882   : > { %4498 = vtanh.f32 %v1846_v15 }
 0x883   : > { %4500 = vpow2.f32 %v3921_v25 }
 0x884   : > { %4502 = vpow2.f32 %v3924_v34 }
 0x888   : > { %v4491_v32 = vpop.eup %4490 }
 0x889   : > { %v1869_v9 = vadd.f32 1.0, %v4491_v32  ;;  %v4493_v21 = vpop.eup %4492 }
 0x88a   : > { %v4495_v6 = vpop.eup %4494  ;;  %v1870_v3 = vadd.f32 1.0, %v4493_v21 }
 0x88b   : > { %4504 = vrcp.f32 %v1869_v9  ;;  %v1872_v16 = vadd.f32 1.0, %v4495_v6  ;;  %v4497_v1 = vpop.eup %4496 }
 0x88c   : > { %4506 = vtanh.f32 %v1850_v17  ;;  %v1873_v30 = vadd.f32 1.0, %v4497_v1  ;;  %v4499_v39 = vpop.eup %4498 }
 0x88d   : > { %4508 = vrcp.f32 %v1870_v3  ;;  %v4501_v13 = vpop.eup %4500 }
 0x88e   : > { %4510 = vrcp.f32 %v1872_v16  ;;  %v4503_v8 = vpop.eup %4502  ;;  %v1871_v38 = vadd.f32 1.0, %v4501_v13 }
 0x88f   : > { %4512 = vrcp.f32 %v1873_v30  ;;  %v1874_v49 = vadd.f32 1.0, %v4503_v8 }
 0x890   : > { %4514 = vrcp.f32 %v1871_v38 }
 0x895   : > { %v4505_v36 = vpop.eup %4504 }
 0x896   : > { %v4507_v14 = vpop.eup %4506  ;;  %v1891_v24 = vmul.f32 %v4505_v36, %v4499_v39 }
 0x897   : > { %v4509_v33 = vpop.eup %4508 }
 0x898   : > { %v4511_v41 = vpop.eup %4510  ;;  %v1889_v42 = vmul.f32 %v4509_v33, %v5699_v37 }
 0x899   : > { %v1892_v44 = vmul.f32 %v4511_v41, %v4507_v14  ;;  %v4513_v45 = vpop.eup %4512 }
 0x89a   : > { %v1893_v47 = vadd.f32 %v1891_v24, %v1889_v42  ;;  %v1890_v31 = vmul.f32 %v4513_v45, %v5702_v40  ;;  %v4515_v52 = vpop.eup %4514 }
 0x89c   : > { %4516 = vtanh.f32 %v1893_v47  ;;  %v1906_v50 = vsel %vm5722_vm14, %v1893_v47, %v5699_v37  ;;  %v1894_v51 = vadd.f32 %v1892_v44, %v1890_v31 }
 0x89d   : > { %1921 = vst [vmem:[#allocation3] sm:$0xff] %v1906_v50  ;;  %4518 = vrcp.f32 %v1874_v49 }
 0x89e   : > { %4520 = vtanh.f32 %v1894_v51  ;;  %v1907_v46 = vsel %vm1903_vm15, %v1894_v51, %v5702_v40 }
 0x89f   : > { %1922 = vst [vmem:[#allocation3 + $0x8] sm:$0xff] %v1907_v46 }
 0x8a6   : > { %v4517_v28 = vpop.eup %4516 }
 0x8a7   : > { %v1897_v53 = vmul.f32 %v4517_v28, %v4515_v52  ;;  %v4519_v54 = vpop.eup %4518 }
 0x8a8   : > { %v4521_v12 = vpop.eup %4520 }
 0x8a9   : > { %v1904_v29 = vsel %vm5722_vm14, %v1897_v53, %v5707_v35  ;;  %v1898_v37 = vmul.f32 %v4521_v12, %v4519_v54 }
 0x8aa   : > { %1919 = vst [vmem:[#allocation2] sm:$0xff] %v1904_v29 }
 0x8ab   : > { %v1905_v55 = vsel %vm1903_vm15, %v1898_v37, %v5710_v48 }
 0x8ac   : > { %v4150_v19 = vpack.c.bf16 %v1905_v55, %v1904_v29  ;;  %1920 = vst [vmem:[#allocation2 + $0x8] sm:$0xff] %v1905_v55 }
 0x8ae   : > { %4198 = vst [vmem:[%s4981_s7 + $0x38] sm:$0xff] %v4150_v19  }
 0x8af PF: > { %1926 = sbr.rel (%p272_p2) target bundleno = 4377 (0x1119), region = 40 }
 0x8b6   : > { %v6583_v40 = vld [vmem:[#allocation15_spill] sm:$0xff]  ;;  %v6584_v56 = vld [vmem:[#allocation13_spill] sm:$0xff]  ;;  %v6587_v48 = vld [vmem:[#allocation16_spill] sm:$0xff]  ;;  %v6519_v25 = vmov 0   ;;  %s6616_s26 = ssub.s32 1, %s4830_s25 }
 0x8b7   : > { %v5741_v57 = vcombine.high %v6584_v56, %v6583_v40  ;;  %v5745_v58 = vcombine.low %v6584_v56, %v6583_v40  ;;  %v6585_v35 = vld [vmem:[#allocation19_spill] sm:$0xff]  ;;  %v6586_v59 = vld [vmem:[#allocation17_spill] sm:$0xff]  ;;  %v6588_v61 = vld [vmem:[#allocation14_spill] sm:$0xff]  ;;  %2139 = vmatprep.mubr.bf16.mxu0 %v6519_v25  ;;  %2182 = vmatprep.mubr.bf16.mxu1 %v6519_v25  ;;  %s5949_s27 = sshll.u32 %s6616_s26, 3 }
 0x8b8   : > { %v5749_v60 = vcombine.high %v6586_v59, %v6585_v35  ;;  %v5753_v62 = vcombine.high %v6588_v61, %v6587_v48  ;;  %v5758_v63 = vcombine.low %v6588_v61, %v6587_v48  ;;  %v6590_v0 = vld [vmem:[#allocation20_spill] sm:$0xff]  ;;  %v6591_v4 = vld [vmem:[#allocation18_spill] sm:$0xff]  ;;  %v5767_v2 = vcombine.low %v6586_v59, %v6585_v35  ;;  %v6592_v5 = vld [vmem:[#allocation23_spill] sm:$0xff]  ;;  %s2249_s29 = sadd.s32 7, %s5949_s27  ;;  %s2424_s19 = sadd.s32 6, %s5949_s27 }
 0x8b9   : > { %2107 = vmatprep.subr.bf16.mxu0 %v5741_v57  ;;  %v5762_v27 = vcombine.high %v6591_v4, %v6590_v0  ;;  %v6593_v10 = vld [vmem:[#allocation21_spill] sm:$0xff]  ;;  %v5778_v26 = vcombine.low %v6591_v4, %v6590_v0  ;;  %v6594_v22 = vld [vmem:[#allocation24_spill] sm:$0xff]  ;;  %v6595_v15 = vld [vmem:[#allocation22_spill] sm:$0xff]  ;;  %s2250_s18 = sld [smem:[#allocation5 + %s2249_s29]]  ;;  %s2599_s6 = sadd.s32 5, %s5949_s27 }
 0x8ba   : > { %6589 = vst [vmem:[#allocation46_spill] sm:$0xff] %v5753_v62  ;;  %2108 = vmatpush1.bf16.msra.mxu0 %v5745_v58  ;;  %2150 = vmatprep.subr.bf16.mxu1 %v5753_v62  ;;  %v5773_v23 = vcombine.high %v6593_v10, %v6592_v5  ;;  %v5783_v7 = vcombine.high %v6595_v15, %v6594_v22  ;;  %v6596_v32 = vld [vmem:[#allocation27_spill] sm:$0xff]  ;;  %v6597_v17 = vld [vmem:[#allocation25_spill] sm:$0xff]  ;;  %v6598_v6 = vld [vmem:[#allocation28_spill] sm:$0xff]  ;;  %s2425_s22 = sld [smem:[#allocation5 + %s2424_s19]]  ;;  %s2774_s9 = sadd.s32 4, %s5949_s27 }
 0x8bb   : > { %2109 = vmatprep.subr.bf16.mxu0 %v5749_v60  ;;  %2151 = vmatpush1.bf16.msra.mxu1 %v5758_v63  ;;  %v5789_v34 = vcombine.low %v6593_v10, %v6592_v5  ;;  %v5794_v9 = vcombine.high %v6597_v17, %v6596_v32  ;;  %v5799_v21 = vcombine.low %v6595_v15, %v6594_v22  ;;  %v6599_v3 = vld [vmem:[#allocation26_spill] sm:$0xff]  ;;  %v6600_v30 = vld [vmem:[#allocation31_spill] sm:$0xff]  ;;  %v6601_v39 = vld [vmem:[#allocation29_spill] sm:$0xff]  ;;  %s2600_s8 = sld [smem:[#allocation5 + %s2599_s6]]  ;;  %s2949_s23 = sadd.s32 3, %s5949_s27 }
 0x8bc   : > { %2152 = vmatprep.subr.bf16.mxu1 %v5762_v27  ;;  %v5804_v16 = vcombine.high %v6599_v3, %v6598_v6  ;;  %v5810_v1 = vcombine.low %v6597_v17, %v6596_v32  ;;  %v5815_v13 = vcombine.high %v6601_v39, %v6600_v30  ;;  %v5820_v8 = vcombine.low %v6599_v3, %v6598_v6  ;;  %v6602_v36 = vld [vmem:[#allocation32_spill] sm:$0xff]  ;;  %v6603_v14 = vld [vmem:[#allocation30_spill] sm:$0xff]  ;;  %v6604_v33 = vld [vmem:[#allocation35_spill] sm:$0xff]  ;;  %s2775_s10 = sld [smem:[#allocation5 + %s2774_s9]]  ;;  %s3124_s13 = sadd.s32 2, %s5949_s27 }
 0x8bd   : > { %v5825_v24 = vcombine.high %v6603_v14, %v6602_v36  ;;  %v5830_v20 = vcombine.low %v6601_v39, %v6600_v30  ;;  %v6605_v38 = vld [vmem:[#allocation33_spill] sm:$0xff]  ;;  %v5840_v42 = vcombine.low %v6603_v14, %v6602_v36  ;;  %v6606_v43 = vld [vmem:[#allocation36_spill] sm:$0xff]  ;;  %v6607_v44 = vld [vmem:[#allocation34_spill] sm:$0xff]  ;;  %s2950_s12 = sld [smem:[#allocation5 + %s2949_s23]]  ;;  %s3299_s17 = sadd.s32 1, %s5949_s27 }
 0x8be   : > { %2110 = vmatpush1.bf16.msra.mxu0 %v5767_v2  ;;  %v5835_v41 = vcombine.high %v6605_v38, %v6604_v33  ;;  %v5845_v45 = vcombine.high %v6607_v44, %v6606_v43  ;;  %v5850_v47 = vcombine.low %v6605_v38, %v6604_v33  ;;  %v6608_v49 = vld [vmem:[#allocation39_spill] sm:$0xff]  ;;  %v6609_v31 = vld [vmem:[#allocation37_spill] sm:$0xff]  ;;  %v5860_v51 = vcombine.low %v6607_v44, %v6606_v43  ;;  %v6610_v46 = vld [vmem:[#allocation40_spill] sm:$0xff]  ;;  %s3125_s15 = sld [smem:[#allocation5 + %s3124_s13]] }
 0x8bf   : > { %2111 = vmatprep.subr.bf16.mxu0 %v5773_v23  ;;  %2153 = vmatpush1.bf16.msra.mxu1 %v5778_v26  ;;  %v5855_v50 = vcombine.high %v6609_v31, %v6608_v49  ;;  %v6611_v52 = vld [vmem:[#allocation38_spill] sm:$0xff]  ;;  %v5870_v53 = vcombine.low %v6609_v31, %v6608_v49  ;;  %v6612_v54 = vld [vmem:[#allocation43_spill] sm:$0xff]  ;;  %v6613_v12 = vld [vmem:[#allocation41_spill] sm:$0xff]  ;;  %s3300_s21 = sld [smem:[#allocation5 + %s3299_s17]] }
 0x8c0   : > { %2154 = vmatprep.subr.bf16.mxu1 %v5783_v7  ;;  %v5865_v28 = vcombine.high %v6611_v52, %v6610_v46  ;;  %v5875_v29 = vcombine.high %v6613_v12, %v6612_v54  ;;  %v5880_v37 = vcombine.low %v6611_v52, %v6610_v46  ;;  %v6614_v55 = vld [vmem:[#allocation44_spill] sm:$0xff]  ;;  %v6615_v19 = vld [vmem:[#allocation42_spill] sm:$0xff]  ;;  %v5890_v56 = vcombine.low %v6613_v12, %v6612_v54  ;;  %v5892_v35 = vld [vmem:[#allocation2] sm:$0xff] }
 0x8c1   : > { %v5885_v40 = vcombine.high %v6615_v19, %v6614_v55  ;;  %v5894_v59 = vld [vmem:[#allocation2 + $0x8] sm:$0xff]  ;;  %v5900_v48 = vcombine.low %v6615_v19, %v6614_v55  ;;  %v3931_v0 = vld [vmem:[%s4979_s16 + $0xe0] sm:$0xff]  ;;  %v3933_v4 = vld [vmem:[%s4979_s16 + $0xf0] sm:$0xff] }
 0x8c2   : > { %2112 = vmatpush1.bf16.msra.mxu0 %v5789_v34  ;;  %v1946_v61 = vpack.c.bf16 %v5894_v59, %v5892_v35  ;;  %v1938_v5 = vunpack.c.l.bf16 %v3931_v0  ;;  %v1939_v10 = vunpack.c.h.bf16 %v3931_v0  ;;  %v1942_v22 = vunpack.c.l.bf16 %v3933_v4  ;;  %v3932_v15 = vld [vmem:[%s4979_s16 + $0xe8] sm:$0xff]  ;;  %v3934_v39 = vld [vmem:[%s4979_s16 + $0xf8] sm:$0xff] }
 0x8c3   : > { %2113 = vmatprep.subr.bf16.mxu0 %v5794_v9  ;;  %2155 = vmatpush1.bf16.msra.mxu1 %v5799_v21  ;;  %v1943_v17 = vunpack.c.h.bf16 %v3933_v4  ;;  %v1940_v33 = vunpack.c.l.bf16 %v3932_v15  ;;  %v1944_v54 = vunpack.c.l.bf16 %v3934_v39  ;;  %v1941_v0 = vunpack.c.h.bf16 %v3932_v15 }
 0x8c4   : > { %2156 = vmatprep.subr.bf16.mxu1 %v5804_v16 }
 0x8c6   : > { %2114 = vmatpush1.bf16.msra.mxu0 %v5810_v1 }
 0x8c7   : > { %2115 = vmatprep.subr.bf16.mxu0 %v5815_v13  ;;  %2157 = vmatpush1.bf16.msra.mxu1 %v5820_v8 }
 0x8c8   : > { %2158 = vmatprep.subr.bf16.mxu1 %v5825_v24 }
 0x8ca   : > { %2116 = vmatpush1.bf16.msra.mxu0 %v5830_v20 }
 0x8cb   : > { %2117 = vmatprep.subr.bf16.mxu0 %v5835_v41  ;;  %2159 = vmatpush1.bf16.msra.mxu1 %v5840_v42 }
 0x8cc   : > { %2160 = vmatprep.subr.bf16.mxu1 %v5845_v45 }
 0x8ce   : > { %2118 = vmatpush1.bf16.msra.mxu0 %v5850_v47 }
 0x8cf   : > { %2119 = vmatprep.subr.bf16.mxu0 %v5855_v50  ;;  %2161 = vmatpush1.bf16.msra.mxu1 %v5860_v51 }
 0x8d0   : > { %2162 = vmatprep.subr.bf16.mxu1 %v5865_v28 }
 0x8d2   : > { %2120 = vmatpush1.bf16.msra.mxu0 %v5870_v53 }
 0x8d3   : > { %2121 = vmatprep.subr.bf16.mxu0 %v5875_v29  ;;  %2163 = vmatpush1.bf16.msra.mxu1 %v5880_v37 }
 0x8d4   : > { %2164 = vmatprep.subr.bf16.mxu1 %v5885_v40 }
 0x8d6   : > { %2122 = vmatpush1.bf16.msra.mxu0 %v5890_v56 }
 0x8d7   : > { %2165 = vmatpush1.bf16.msra.mxu1 %v5900_v48  ;;  %2282 = vmatprep.subr.bf16.mxu0 %v5741_v57 }
 0x8d8   : > { %2325 = vmatprep.subr.bf16.mxu1 %v5753_v62 }
 0x8d9   : > { %2140 = vmatmul.mubr.bf16.vlgmr.msra.gmra.mrb[0].mxu0 %v1946_v61 }
 0x8da   : > { %2183 = vmatmul.mubr.bf16.vlgmr.msra.gmra.mrb[0].mxu1 %v1946_v61  ;;  %2283 = vmatpush1.bf16.msra.mxu0 %v5745_v58 }
 0x8db   : > { %2326 = vmatpush1.bf16.msra.mxu1 %v5758_v63  ;;  %2284 = vmatprep.subr.bf16.mxu0 %v5749_v60 }
 0x8dc   : > { %2327 = vmatprep.subr.bf16.mxu1 %v5762_v27  ;;  %2314 = vmatprep.mubr.bf16.mxu0 %v6519_v25 }
 0x8dd   : > { %2357 = vmatprep.mubr.bf16.mxu1 %v6519_v25 }
 0x8de   : > { %2285 = vmatpush1.bf16.msra.mxu0 %v5767_v2 }
 0x8df   : > { %2328 = vmatpush1.bf16.msra.mxu1 %v5778_v26  ;;  %2286 = vmatprep.subr.bf16.mxu0 %v5773_v23 }
 0x8e0   : > { %2329 = vmatprep.subr.bf16.mxu1 %v5783_v7 }
 0x8e2   : > { %2287 = vmatpush1.bf16.msra.mxu0 %v5789_v34 }
 0x8e3   : > { %2330 = vmatpush1.bf16.msra.mxu1 %v5799_v21  ;;  %2288 = vmatprep.subr.bf16.mxu0 %v5794_v9 }
 0x8e4   : > { %2331 = vmatprep.subr.bf16.mxu1 %v5804_v16 }
 0x8e6   : > { %2289 = vmatpush1.bf16.msra.mxu0 %v5810_v1 }
 0x8e7   : > { %2332 = vmatpush1.bf16.msra.mxu1 %v5820_v8  ;;  %2290 = vmatprep.subr.bf16.mxu0 %v5815_v13 }
 0x8e8   : > { %2333 = vmatprep.subr.bf16.mxu1 %v5825_v24 }
 0x8ea   : > { %2291 = vmatpush1.bf16.msra.mxu0 %v5830_v20 }
 0x8eb   : > { %2334 = vmatpush1.bf16.msra.mxu1 %v5840_v42  ;;  %2292 = vmatprep.subr.bf16.mxu0 %v5835_v41 }
 0x8ec   : > { %2335 = vmatprep.subr.bf16.mxu1 %v5845_v45 }
 0x8ee   : > { %2293 = vmatpush1.bf16.msra.mxu0 %v5850_v47 }
 0x8ef   : > { %2336 = vmatpush1.bf16.msra.mxu1 %v5860_v51  ;;  %2294 = vmatprep.subr.bf16.mxu0 %v5855_v50 }
 0x8f0   : > { %2337 = vmatprep.subr.bf16.mxu1 %v5865_v28 }
 0x8f2   : > { %2295 = vmatpush1.bf16.msra.mxu0 %v5870_v53 }
 0x8f3   : > { %2338 = vmatpush1.bf16.msra.mxu1 %v5880_v37  ;;  %2296 = vmatprep.subr.bf16.mxu0 %v5875_v29 }
 0x8f4   : > { %2339 = vmatprep.subr.bf16.mxu1 %v5885_v40 }
 0x8f6   : > { %2297 = vmatpush1.bf16.msra.mxu0 %v5890_v56 }
 0x8f7   : > { %2340 = vmatpush1.bf16.msra.mxu1 %v5900_v48  ;;  %2457 = vmatprep.subr.bf16.mxu0 %v5741_v57 }
 0x8f8   : > { %2500 = vmatprep.subr.bf16.mxu1 %v5753_v62 }
 0x9ac   : > { %v2141_v32 = vpop.f32.mrb[0].mxu0 }
 0x9ad   : > { %v2193_v6 = vadd.f32 %v2141_v32, %v1938_v5  ;;  %v2143_v3 = vpop.f32.mrb[1].mxu0  ;;  %v2184_v30 = vpop.f32.mrb[0].mxu1  ;;  %v1945_v5 = vunpack.c.h.bf16 %v3934_v39 }
 0x9ae   : > { %v2194_v36 = vadd.f32 %v2143_v3, %v1939_v10  ;;  %v2145_v14 = vpop.f32.mrb[2].mxu0  ;;  %v2186_v38 = vpop.f32.mrb[1].mxu1  ;;  %v2195_v61 = vadd.f32 %v2184_v30, %v1940_v33 }
 0x9af   : > { %v3967_v43 = vmul.f32 -1.442695, %v2193_v6  ;;  %v2197_v44 = vadd.f32 %v2145_v14, %v1942_v22  ;;  %v2147_v49 = vpop.f32.mrb[3].mxu0  ;;  %v2188_v31 = vpop.f32.mrb[2].mxu1  ;;  %v2196_v32 = vadd.f32 %v2186_v38, %v1941_v0 }
 0x9b0   : > { %v3968_v46 = vmul.f32 -1.442695, %v2194_v36  ;;  %v2198_v52 = vadd.f32 %v2147_v49, %v1943_v17  ;;  %v2190_v12 = vpop.f32.mrb[3].mxu1  ;;  %v2199_v4 = vadd.f32 %v2188_v31, %v1944_v54  ;;  %v3969_v10 = vmul.f32 -1.442695, %v2195_v61  ;;  %v1931_v31 = vld [vmem:[#allocation3] sm:$0xff] }
 0x9b1   : > { %4522 = vpow2.f32 %v3967_v43  ;;  %v3970_v55 = vmul.f32 -1.442695, %v2197_v44  ;;  %v2200_v6 = vadd.f32 %v2190_v12, %v1945_v5  ;;  %v2251_v54 = vstv %s2250_s18 }
 0x9b2   : > { %4524 = vpow2.f32 %v3968_v46  ;;  %v3971_v19 = vmul.f32 -1.442695, %v2198_v52  ;;  %v3972_v22 = vmul.f32 -1.442695, %v2199_v4  ;;  %vm5953_vm0 = vcmp.lt.s32.totalorder %v5011_v11, %v2251_v54 }
 0x9b3   : > { %4526 = vpow2.f32 %v3970_v55  ;;  %vm2253_vm1 = vcmp.lt.s32.totalorder %v5032_v18, %v2251_v54 }
 0x9b4   : > { %4528 = vpow2.f32 %v3971_v19  ;;  %v1932_v19 = vld [vmem:[#allocation3 + $0x8] sm:$0xff] }
 0x9b5   : > { %4530 = vpow2.f32 %v3969_v10 }
 0x9b6   : > { %4532 = vtanh.f32 %v2196_v32  ;;  %v3980_v32 = vld [vmem:[%s4979_s16 + $0xd8] sm:$0xff] }
 0x9b7   : > { %4534 = vpow2.f32 %v3972_v22 }
 0x9b8   : > { %4536 = vtanh.f32 %v2200_v6 }
 0x9bb   : > { %v4523_v17 = vpop.eup %4522 }
 0x9bc   : > { %v4525_v3 = vpop.eup %4524  ;;  %v2219_v36 = vadd.f32 1.0, %v4523_v17 }
 0x9bd   : > { %v4527_v30 = vpop.eup %4526  ;;  %v2220_v14 = vadd.f32 1.0, %v4525_v3 }
 0x9be   : > { %v4529_v15 = vpop.eup %4528  ;;  %4538 = vrcp.f32 %v2219_v36  ;;  %v2222_v39 = vadd.f32 1.0, %v4527_v30 }
 0x9bf   : > { %4540 = vrcp.f32 %v2220_v14  ;;  %v2223_v33 = vadd.f32 1.0, %v4529_v15  ;;  %v4531_v38 = vpop.eup %4530 }
 0x9c0   : > { %4542 = vrcp.f32 %v2222_v39  ;;  %v4533_v43 = vpop.eup %4532  ;;  %v2221_v52 = vadd.f32 1.0, %v4531_v38 }
 0x9c1   : > { %4544 = vrcp.f32 %v2223_v33  ;;  %v4535_v44 = vpop.eup %4534 }
 0x9c2   : > { %v4537_v49 = vpop.eup %4536  ;;  %v2224_v5 = vadd.f32 1.0, %v4535_v44  ;;  %4546 = vrcp.f32 %v2221_v52 }
 0x9c8   : > { %v4539_v46 = vpop.eup %4538 }
 0x9c9   : > { %v4541_v12 = vpop.eup %4540  ;;  %v2241_v55 = vmul.f32 %v4539_v46, %v4533_v43 }
 0x9ca   : > { %v4543_v61 = vpop.eup %4542  ;;  %v2239_v0 = vmul.f32 %v4541_v12, %v1931_v31 }
 0x9cb   : > { %v4545_v4 = vpop.eup %4544  ;;  %v2242_v10 = vmul.f32 %v4543_v61, %v4537_v49  ;;  %v3978_v61 = vld [vmem:[%s4979_s16 + $0xc8] sm:$0xff] }
 0x9cc   : > { %v2243_v22 = vadd.f32 %v2241_v55, %v2239_v0  ;;  %v2240_v6 = vmul.f32 %v4545_v4, %v1932_v19  ;;  %v4547_v30 = vpop.eup %4546 }
 0x9ce   : > { %4548 = vtanh.f32 %v2243_v22  ;;  %v2244_v17 = vadd.f32 %v2242_v10, %v2240_v6  ;;  %v5960_v3 = vsel %vm5953_vm0, %v2243_v22, %v1931_v31 }
 0x9cf   : > { %4550 = vrcp.f32 %v2224_v5 }
 0x9d0   : > { %4552 = vtanh.f32 %v2244_v17  ;;  %v5962_v36 = vsel %vm2253_vm1, %v2244_v17, %v1932_v19 }
 0x9d8   : > { %v4549_v14 = vpop.eup %4548 }
 0x9d9   : > { %v4551_v15 = vpop.eup %4550  ;;  %v2247_v39 = vmul.f32 %v4549_v14, %v4547_v30 }
 0x9da   : > { %v4553_v33 = vpop.eup %4552 }
 0x9db   : > { %v2248_v38 = vmul.f32 %v4553_v33, %v4551_v15  ;;  %v5967_v43 = vsel %vm5953_vm0, %v2247_v39, %v5892_v35  ;;  %v3977_v35 = vld [vmem:[%s4979_s16 + $0xc0] sm:$0xff]  ;;  %v2276_v15 = vunpack.c.l.bf16 %v3978_v61 }
 0x9dc   : > { %v2274_v31 = vunpack.c.l.bf16 %v3977_v35  ;;  %v2275_v46 = vunpack.c.h.bf16 %v3977_v35 }
 0x9dd   : > { %v5970_v44 = vsel %vm2253_vm1, %v2248_v38, %v5894_v59  ;;  %v3979_v59 = vld [vmem:[%s4979_s16 + $0xd0] sm:$0xff] }
 0x9de   : > { %v2258_v49 = vpack.c.bf16 %v5970_v44, %v5967_v43  ;;  %v2278_v52 = vunpack.c.l.bf16 %v3979_v59  ;;  %v2279_v55 = vunpack.c.h.bf16 %v3979_v59  ;;  %v2277_v59 = vunpack.c.h.bf16 %v3978_v61 }
 0x9e0   : > { %4199 = vst [vmem:[%s4981_s7 + $0x38] sm:$0xff] %v2258_v49   ;;  %2315 = vmatmul.mubr.bf16.vlgmr.msra.gmra.mrb[4].mxu0 %v2258_v49  ;;  %2358 = vmatmul.mubr.bf16.vlgmr.msra.gmra.mrb[4].mxu1 %v2258_v49  ;;  %v2280_v49 = vunpack.c.l.bf16 %v3980_v32 }
 0x9e1   : > { %2458 = vmatpush1.bf16.msra.mxu0 %v5745_v58  ;;  %2501 = vmatpush1.bf16.msra.mxu1 %v5758_v63 }
 0x9e2   : > { %2459 = vmatprep.subr.bf16.mxu0 %v5749_v60  ;;  %2502 = vmatprep.subr.bf16.mxu1 %v5762_v27 }
 0x9e3   : > { %2489 = vmatprep.mubr.bf16.mxu0 %v6519_v25  ;;  %2532 = vmatprep.mubr.bf16.mxu1 %v6519_v25 }
 0x9e5   : > { %2460 = vmatpush1.bf16.msra.mxu0 %v5767_v2  ;;  %2503 = vmatpush1.bf16.msra.mxu1 %v5778_v26 }
 0x9e6   : > { %2461 = vmatprep.subr.bf16.mxu0 %v5773_v23  ;;  %2504 = vmatprep.subr.bf16.mxu1 %v5783_v7 }
 0x9e9   : > { %2462 = vmatpush1.bf16.msra.mxu0 %v5789_v34  ;;  %2505 = vmatpush1.bf16.msra.mxu1 %v5799_v21 }
 0x9ea   : > { %2463 = vmatprep.subr.bf16.mxu0 %v5794_v9  ;;  %2506 = vmatprep.subr.bf16.mxu1 %v5804_v16 }
 0x9ed   : > { %2464 = vmatpush1.bf16.msra.mxu0 %v5810_v1  ;;  %2507 = vmatpush1.bf16.msra.mxu1 %v5820_v8 }
 0x9ee   : > { %2465 = vmatprep.subr.bf16.mxu0 %v5815_v13  ;;  %2508 = vmatprep.subr.bf16.mxu1 %v5825_v24 }
 0x9f1   : > { %2466 = vmatpush1.bf16.msra.mxu0 %v5830_v20  ;;  %2509 = vmatpush1.bf16.msra.mxu1 %v5840_v42 }
 0x9f2   : > { %2467 = vmatprep.subr.bf16.mxu0 %v5835_v41  ;;  %2510 = vmatprep.subr.bf16.mxu1 %v5845_v45 }
 0x9f5   : > { %2468 = vmatpush1.bf16.msra.mxu0 %v5850_v47  ;;  %2511 = vmatpush1.bf16.msra.mxu1 %v5860_v51 }
 0x9f6   : > { %2469 = vmatprep.subr.bf16.mxu0 %v5855_v50  ;;  %2512 = vmatprep.subr.bf16.mxu1 %v5865_v28 }
 0x9f9   : > { %2470 = vmatpush1.bf16.msra.mxu0 %v5870_v53  ;;  %2513 = vmatpush1.bf16.msra.mxu1 %v5880_v37 }
 0x9fa   : > { %2471 = vmatprep.subr.bf16.mxu0 %v5875_v29  ;;  %2514 = vmatprep.subr.bf16.mxu1 %v5885_v40 }
 0x9fd   : > { %2472 = vmatpush1.bf16.msra.mxu0 %v5890_v56  ;;  %2515 = vmatpush1.bf16.msra.mxu1 %v5900_v48 }
 0x9fe   : > { %2632 = vmatprep.subr.bf16.mxu0 %v5741_v57  ;;  %2675 = vmatprep.subr.bf16.mxu1 %v5753_v62 }
 0xab3   : > { %v2316_v54 = vpop.f32.mrb[4].mxu0  ;;  %v2359_v12 = vpop.f32.mrb[4].mxu1 }
 0xab4   : > { %v2368_v19 = vadd.f32 %v2316_v54, %v2274_v31  ;;  %v2318_v0 = vpop.f32.mrb[5].mxu0  ;;  %v2361_v4 = vpop.f32.mrb[5].mxu1  ;;  %v2370_v31 = vadd.f32 %v2359_v12, %v2276_v15 }
 0xab5   : > { %v2369_v5 = vadd.f32 %v2318_v0, %v2275_v46  ;;  %v2320_v10 = vpop.f32.mrb[6].mxu0  ;;  %v2363_v22 = vpop.f32.mrb[6].mxu1  ;;  %v2371_v46 = vadd.f32 %v2361_v4, %v2277_v59  ;;  %v2281_v0 = vunpack.c.h.bf16 %v3980_v32 }
 0xab6   : > { %v3981_v6 = vmul.f32 -1.442695, %v2368_v19  ;;  %v2372_v17 = vadd.f32 %v2320_v10, %v2278_v52  ;;  %v2322_v30 = vpop.f32.mrb[7].mxu0  ;;  %v2365_v14 = vpop.f32.mrb[7].mxu1  ;;  %v2374_v54 = vadd.f32 %v2363_v22, %v2280_v49  ;;  %v3983_v19 = vmul.f32 -1.442695, %v2370_v31 }
 0xab7   : > { %v3982_v39 = vmul.f32 -1.442695, %v2369_v5  ;;  %v2373_v33 = vadd.f32 %v2322_v30, %v2279_v55  ;;  %v2375_v25 = vadd.f32 %v2365_v14, %v2281_v0 }
 0xab8   : > { %4554 = vpow2.f32 %v3981_v6  ;;  %v3984_v38 = vmul.f32 -1.442695, %v2372_v17  ;;  %v3986_v52 = vmul.f32 -1.442695, %v2374_v54 }
 0xab9   : > { %v3985_v35 = vmul.f32 -1.442695, %v2373_v33  ;;  %4556 = vpow2.f32 %v3982_v39  ;;  %v2426_v33 = vstv %s2425_s22 }
 0xaba   : > { %4558 = vpow2.f32 %v3984_v38  ;;  %vm6016_vm2 = vcmp.lt.s32.totalorder %v5011_v11, %v2426_v33  ;;  %vm2428_vm3 = vcmp.lt.s32.totalorder %v5032_v18, %v2426_v33 }
 0xabb   : > { %4560 = vpow2.f32 %v3985_v35 }
 0xabc   : > { %4562 = vtanh.f32 %v2371_v46 }
 0xabd   : > { %4564 = vpow2.f32 %v3983_v19 }
 0xabe   : > { %4566 = vpow2.f32 %v3986_v52 }
 0xac2   : > { %v4555_v10 = vpop.eup %4554 }
 0xac3   : > { %v2394_v5 = vadd.f32 1.0, %v4555_v10  ;;  %v4557_v55 = vpop.eup %4556 }
 0xac4   : > { %v4559_v6 = vpop.eup %4558  ;;  %v2395_v17 = vadd.f32 1.0, %v4557_v55 }
 0xac5   : > { %4568 = vrcp.f32 %v2394_v5  ;;  %v2397_v12 = vadd.f32 1.0, %v4559_v6  ;;  %v4561_v61 = vpop.eup %4560 }
 0xac6   : > { %4570 = vtanh.f32 %v2375_v25  ;;  %v2398_v4 = vadd.f32 1.0, %v4561_v61  ;;  %v4563_v32 = vpop.eup %4562 }
 0xac7   : > { %4572 = vrcp.f32 %v2395_v17  ;;  %v4565_v22 = vpop.eup %4564 }
 0xac8   : > { %4574 = vrcp.f32 %v2397_v12  ;;  %v4567_v30 = vpop.eup %4566  ;;  %v2396_v49 = vadd.f32 1.0, %v4565_v22 }
 0xac9   : > { %4576 = vrcp.f32 %v2398_v4  ;;  %v2399_v0 = vadd.f32 1.0, %v4567_v30 }
 0xaca   : > { %4578 = vrcp.f32 %v2396_v49 }
 0xacf   : > { %v4569_v14 = vpop.eup %4568 }
 0xad0   : > { %v4571_v15 = vpop.eup %4570  ;;  %v2416_v39 = vmul.f32 %v4569_v14, %v4563_v32 }
 0xad1   : > { %v4573_v38 = vpop.eup %4572 }
 0xad2   : > { %v4575_v35 = vpop.eup %4574  ;;  %v2414_v59 = vmul.f32 %v4573_v38, %v5960_v3 }
 0xad3   : > { %v2417_v31 = vmul.f32 %v4575_v35, %v4571_v15  ;;  %v4577_v54 = vpop.eup %4576  ;;  %v3992_v35 = vld [vmem:[%s4979_s16 + $0xa8] sm:$0xff] }
 0xad4   : > { %v2418_v46 = vadd.f32 %v2416_v39, %v2414_v59  ;;  %v2415_v19 = vmul.f32 %v4577_v54, %v5962_v36  ;;  %v4579_v55 = vpop.eup %4578 }
 0xad6   : > { %4580 = vtanh.f32 %v2418_v46  ;;  %v6025_v52 = vsel %vm6016_vm2, %v2418_v46, %v5960_v3  ;;  %v2419_v10 = vadd.f32 %v2417_v31, %v2415_v19  ;;  %v3994_v46 = vld [vmem:[%s4979_s16 + $0xb8] sm:$0xff] }
 0xad7   : > { %4582 = vrcp.f32 %v2399_v0 }
 0xad8   : > { %4584 = vtanh.f32 %v2419_v10  ;;  %v6028_v5 = vsel %vm2428_vm3, %v2419_v10, %v5962_v36  ;;  %v6621_v36 = vmov 0  }
 0xae0   : > { %v4581_v6 = vpop.eup %4580 }
 0xae1   : > { %v2422_v17 = vmul.f32 %v4581_v6, %v4579_v55  ;;  %v4583_v12 = vpop.eup %4582 }
 0xae2   : > { %v4585_v61 = vpop.eup %4584 }
 0xae3   : > { %v2423_v4 = vmul.f32 %v4585_v61, %v4583_v12  ;;  %v6033_v32 = vsel %vm6016_vm2, %v2422_v17, %v5967_v43  ;;  %v3991_v43 = vld [vmem:[%s4979_s16 + $0xa0] sm:$0xff]  ;;  %v2451_v17 = vunpack.c.l.bf16 %v3992_v35 }
 0xae4   : > { %v2449_v30 = vunpack.c.l.bf16 %v3991_v43  ;;  %v2450_v14 = vunpack.c.h.bf16 %v3991_v43 }
 0xae5   : > { %v6036_v3 = vsel %vm2428_vm3, %v2423_v4, %v5970_v44  ;;  %v3993_v44 = vld [vmem:[%s4979_s16 + $0xb0] sm:$0xff] }
 0xae6   : > { %v2433_v22 = vpack.c.bf16 %v6036_v3, %v6033_v32  ;;  %v2453_v15 = vunpack.c.l.bf16 %v3993_v44  ;;  %v2454_v38 = vunpack.c.h.bf16 %v3993_v44  ;;  %v2452_v44 = vunpack.c.h.bf16 %v3992_v35 }
 0xae8   : > { %4200 = vst [vmem:[%s4981_s7 + $0x30] sm:$0xff] %v2433_v22   ;;  %2490 = vmatmul.mubr.bf16.vlgmr.msra.gmra.mrb[8].mxu0 %v2433_v22  ;;  %2533 = vmatmul.mubr.bf16.vlgmr.msra.gmra.mrb[8].mxu1 %v2433_v22  ;;  %v2455_v22 = vunpack.c.l.bf16 %v3994_v46 }
 0xae9   : > { %2633 = vmatpush1.bf16.msra.mxu0 %v5745_v58  ;;  %2676 = vmatpush1.bf16.msra.mxu1 %v5758_v63 }
 0xaea   : > { %2634 = vmatprep.subr.bf16.mxu0 %v5749_v60  ;;  %2677 = vmatprep.subr.bf16.mxu1 %v5762_v27 }
 0xaeb   : > { %2664 = vmatprep.mubr.bf16.mxu0 %v6621_v36  ;;  %2707 = vmatprep.mubr.bf16.mxu1 %v6621_v36 }
 0xaed   : > { %2635 = vmatpush1.bf16.msra.mxu0 %v5767_v2  ;;  %2678 = vmatpush1.bf16.msra.mxu1 %v5778_v26 }
 0xaee   : > { %2636 = vmatprep.subr.bf16.mxu0 %v5773_v23  ;;  %2679 = vmatprep.subr.bf16.mxu1 %v5783_v7 }
 0xaf1   : > { %2637 = vmatpush1.bf16.msra.mxu0 %v5789_v34  ;;  %2680 = vmatpush1.bf16.msra.mxu1 %v5799_v21 }
 0xaf2   : > { %2638 = vmatprep.subr.bf16.mxu0 %v5794_v9  ;;  %2681 = vmatprep.subr.bf16.mxu1 %v5804_v16 }
 0xaf5   : > { %2639 = vmatpush1.bf16.msra.mxu0 %v5810_v1  ;;  %2682 = vmatpush1.bf16.msra.mxu1 %v5820_v8 }
 0xaf6   : > { %2640 = vmatprep.subr.bf16.mxu0 %v5815_v13  ;;  %2683 = vmatprep.subr.bf16.mxu1 %v5825_v24 }
 0xaf9   : > { %2641 = vmatpush1.bf16.msra.mxu0 %v5830_v20  ;;  %2684 = vmatpush1.bf16.msra.mxu1 %v5840_v42 }
 0xafa   : > { %2642 = vmatprep.subr.bf16.mxu0 %v5835_v41  ;;  %2685 = vmatprep.subr.bf16.mxu1 %v5845_v45 }
 0xafd   : > { %2643 = vmatpush1.bf16.msra.mxu0 %v5850_v47  ;;  %2686 = vmatpush1.bf16.msra.mxu1 %v5860_v51 }
 0xafe   : > { %2644 = vmatprep.subr.bf16.mxu0 %v5855_v50  ;;  %2687 = vmatprep.subr.bf16.mxu1 %v5865_v28 }
 0xb01   : > { %2645 = vmatpush1.bf16.msra.mxu0 %v5870_v53  ;;  %2688 = vmatpush1.bf16.msra.mxu1 %v5880_v37 }
 0xb02   : > { %2646 = vmatprep.subr.bf16.mxu0 %v5875_v29  ;;  %2689 = vmatprep.subr.bf16.mxu1 %v5885_v40 }
 0xb05   : > { %2647 = vmatpush1.bf16.msra.mxu0 %v5890_v56  ;;  %2690 = vmatpush1.bf16.msra.mxu1 %v5900_v48 }
 0xb06   : > { %2807 = vmatprep.subr.bf16.mxu0 %v5741_v57  ;;  %2850 = vmatprep.subr.bf16.mxu1 %v5753_v62 }
 0xbbb   : > { %v2491_v39 = vpop.f32.mrb[8].mxu0  ;;  %v2534_v33 = vpop.f32.mrb[8].mxu1 }
 0xbbc   : > { %v2543_v49 = vadd.f32 %v2491_v39, %v2449_v30  ;;  %v2493_v59 = vpop.f32.mrb[9].mxu0  ;;  %v2536_v31 = vpop.f32.mrb[9].mxu1  ;;  %v2545_v30 = vadd.f32 %v2534_v33, %v2451_v17 }
 0xbbd   : > { %v2544_v25 = vadd.f32 %v2493_v59, %v2450_v14  ;;  %v2495_v54 = vpop.f32.mrb[10].mxu0  ;;  %v2538_v0 = vpop.f32.mrb[10].mxu1  ;;  %v2546_v14 = vadd.f32 %v2536_v31, %v2452_v44  ;;  %v2456_v59 = vunpack.c.h.bf16 %v3994_v46 }
 0xbbe   : > { %v3995_v19 = vmul.f32 -1.442695, %v2543_v49  ;;  %v2547_v10 = vadd.f32 %v2495_v54, %v2453_v15  ;;  %v2497_v55 = vpop.f32.mrb[11].mxu0  ;;  %v2540_v6 = vpop.f32.mrb[11].mxu1  ;;  %v2549_v39 = vadd.f32 %v2538_v0, %v2455_v22  ;;  %v3997_v49 = vmul.f32 -1.442695, %v2545_v30 }
 0xbbf   : > { %v3996_v12 = vmul.f32 -1.442695, %v2544_v25  ;;  %v2548_v61 = vadd.f32 %v2497_v55, %v2454_v38  ;;  %v2550_v62 = vadd.f32 %v2540_v6, %v2456_v59 }
 0xbc0   : > { %4586 = vpow2.f32 %v3995_v19  ;;  %v3998_v4 = vmul.f32 -1.442695, %v2547_v10  ;;  %v4000_v15 = vmul.f32 -1.442695, %v2549_v39 }
 0xbc1   : > { %v3999_v43 = vmul.f32 -1.442695, %v2548_v61  ;;  %4588 = vpow2.f32 %v3996_v12  ;;  %v2601_v61 = vstv %s2600_s8 }
 0xbc2   : > { %4590 = vpow2.f32 %v3998_v4  ;;  %vm6082_vm4 = vcmp.lt.s32.totalorder %v5011_v11, %v2601_v61  ;;  %vm2603_vm5 = vcmp.lt.s32.totalorder %v5032_v18, %v2601_v61 }
 0xbc3   : > { %4592 = vpow2.f32 %v3999_v43 }
 0xbc4   : > { %4594 = vtanh.f32 %v2546_v14 }
 0xbc5   : > { %4596 = vpow2.f32 %v3997_v49 }
 0xbc6   : > { %4598 = vpow2.f32 %v4000_v15 }
 0xbca   : > { %v4587_v54 = vpop.eup %4586 }
 0xbcb   : > { %v2569_v25 = vadd.f32 1.0, %v4587_v54  ;;  %v4589_v38 = vpop.eup %4588 }
 0xbcc   : > { %v4591_v19 = vpop.eup %4590  ;;  %v2570_v10 = vadd.f32 1.0, %v4589_v38 }
 0xbcd   : > { %4600 = vrcp.f32 %v2569_v25  ;;  %v2572_v33 = vadd.f32 1.0, %v4591_v19  ;;  %v4593_v35 = vpop.eup %4592 }
 0xbce   : > { %4602 = vtanh.f32 %v2550_v62  ;;  %v2573_v31 = vadd.f32 1.0, %v4593_v35  ;;  %v4595_v46 = vpop.eup %4594 }
 0xbcf   : > { %4604 = vrcp.f32 %v2570_v10  ;;  %v4597_v0 = vpop.eup %4596 }
 0xbd0   : > { %4606 = vrcp.f32 %v2572_v33  ;;  %v4599_v55 = vpop.eup %4598  ;;  %v2571_v22 = vadd.f32 1.0, %v4597_v0 }
 0xbd1   : > { %4608 = vrcp.f32 %v2573_v31  ;;  %v2574_v59 = vadd.f32 1.0, %v4599_v55 }
 0xbd2   : > { %4610 = vrcp.f32 %v2571_v22 }
 0xbd7   : > { %v4601_v6 = vpop.eup %4600 }
 0xbd8   : > { %v4603_v17 = vpop.eup %4602  ;;  %v2591_v12 = vmul.f32 %v4601_v6, %v4595_v46 }
 0xbd9   : > { %v4605_v4 = vpop.eup %4604 }
 0xbda   : > { %v4607_v43 = vpop.eup %4606  ;;  %v2589_v44 = vmul.f32 %v4605_v4, %v6025_v52 }
 0xbdb   : > { %v2592_v30 = vmul.f32 %v4607_v43, %v4603_v17  ;;  %v4609_v39 = vpop.eup %4608  ;;  %v4006_v43 = vld [vmem:[%s4979_s16 + $0x88] sm:$0xff] }
 0xbdc   : > { %v2593_v14 = vadd.f32 %v2591_v12, %v2589_v44  ;;  %v2590_v49 = vmul.f32 %v4609_v39, %v6028_v5  ;;  %v4611_v38 = vpop.eup %4610 }
 0xbde   : > { %4612 = vtanh.f32 %v2593_v14  ;;  %v6091_v15 = vsel %vm6082_vm4, %v2593_v14, %v6025_v52  ;;  %v2594_v54 = vadd.f32 %v2592_v30, %v2590_v49  ;;  %v4008_v14 = vld [vmem:[%s4979_s16 + $0x98] sm:$0xff] }
 0xbdf   : > { %4614 = vrcp.f32 %v2574_v59 }
 0xbe0   : > { %4616 = vtanh.f32 %v2594_v54  ;;  %v6094_v25 = vsel %vm2603_vm5, %v2594_v54, %v6028_v5  ;;  %v6624_v5 = vld [vmem:[#allocation46_spill] sm:$0xff] }
 0xbe8   : > { %v4613_v19 = vpop.eup %4612 }
 0xbe9   : > { %v2597_v10 = vmul.f32 %v4613_v19, %v4611_v38  ;;  %v4615_v33 = vpop.eup %4614 }
 0xbea   : > { %v4617_v35 = vpop.eup %4616 }
 0xbeb   : > { %v2598_v31 = vmul.f32 %v4617_v35, %v4615_v33  ;;  %v6099_v46 = vsel %vm6082_vm4, %v2597_v10, %v6033_v32  ;;  %v4005_v32 = vld [vmem:[%s4979_s16 + $0x80] sm:$0xff]  ;;  %v2626_v10 = vunpack.c.l.bf16 %v4006_v43 }
 0xbec   : > { %v2624_v55 = vunpack.c.l.bf16 %v4005_v32  ;;  %v2625_v6 = vunpack.c.h.bf16 %v4005_v32 }
 0xbed   : > { %v6102_v52 = vsel %vm2603_vm5, %v2598_v31, %v6036_v3  ;;  %v4007_v3 = vld [vmem:[%s4979_s16 + $0x90] sm:$0xff] }
 0xbee   : > { %v2608_v0 = vpack.c.bf16 %v6102_v52, %v6099_v46  ;;  %v2628_v17 = vunpack.c.l.bf16 %v4007_v3  ;;  %v2629_v4 = vunpack.c.h.bf16 %v4007_v3  ;;  %v2627_v3 = vunpack.c.h.bf16 %v4006_v43 }
 0xbf0   : > { %4201 = vst [vmem:[%s4981_s7 + $0x28] sm:$0xff] %v2608_v0   ;;  %2665 = vmatmul.mubr.bf16.vlgmr.msra.gmra.mrb[12].mxu0 %v2608_v0  ;;  %2708 = vmatmul.mubr.bf16.vlgmr.msra.gmra.mrb[12].mxu1 %v2608_v0  ;;  %v2630_v0 = vunpack.c.l.bf16 %v4008_v14 }
 0xbf1   : > { %2808 = vmatpush1.bf16.msra.mxu0 %v5745_v58  ;;  %2851 = vmatpush1.bf16.msra.mxu1 %v5758_v63 }
 0xbf2   : > { %2809 = vmatprep.subr.bf16.mxu0 %v5749_v60  ;;  %2852 = vmatprep.subr.bf16.mxu1 %v5762_v27 }
 0xbf3   : > { %2839 = vmatprep.mubr.bf16.mxu0 %v6621_v36  ;;  %2882 = vmatprep.mubr.bf16.mxu1 %v6621_v36 }
 0xbf5   : > { %2810 = vmatpush1.bf16.msra.mxu0 %v5767_v2  ;;  %2853 = vmatpush1.bf16.msra.mxu1 %v5778_v26 }
 0xbf6   : > { %2811 = vmatprep.subr.bf16.mxu0 %v5773_v23  ;;  %2854 = vmatprep.subr.bf16.mxu1 %v5783_v7 }
 0xbf9   : > { %2812 = vmatpush1.bf16.msra.mxu0 %v5789_v34  ;;  %2855 = vmatpush1.bf16.msra.mxu1 %v5799_v21 }
 0xbfa   : > { %2813 = vmatprep.subr.bf16.mxu0 %v5794_v9  ;;  %2856 = vmatprep.subr.bf16.mxu1 %v5804_v16 }
 0xbfd   : > { %2814 = vmatpush1.bf16.msra.mxu0 %v5810_v1  ;;  %2857 = vmatpush1.bf16.msra.mxu1 %v5820_v8 }
 0xbfe   : > { %2815 = vmatprep.subr.bf16.mxu0 %v5815_v13  ;;  %2858 = vmatprep.subr.bf16.mxu1 %v5825_v24 }
 0xc01   : > { %2816 = vmatpush1.bf16.msra.mxu0 %v5830_v20  ;;  %2859 = vmatpush1.bf16.msra.mxu1 %v5840_v42 }
 0xc02   : > { %2817 = vmatprep.subr.bf16.mxu0 %v5835_v41  ;;  %2860 = vmatprep.subr.bf16.mxu1 %v5845_v45 }
 0xc05   : > { %2818 = vmatpush1.bf16.msra.mxu0 %v5850_v47  ;;  %2861 = vmatpush1.bf16.msra.mxu1 %v5860_v51 }
 0xc06   : > { %2819 = vmatprep.subr.bf16.mxu0 %v5855_v50  ;;  %2862 = vmatprep.subr.bf16.mxu1 %v5865_v28 }
 0xc09   : > { %2820 = vmatpush1.bf16.msra.mxu0 %v5870_v53  ;;  %2863 = vmatpush1.bf16.msra.mxu1 %v5880_v37 }
 0xc0a   : > { %2821 = vmatprep.subr.bf16.mxu0 %v5875_v29  ;;  %2864 = vmatprep.subr.bf16.mxu1 %v5885_v40 }
 0xc0d   : > { %2822 = vmatpush1.bf16.msra.mxu0 %v5890_v56  ;;  %2865 = vmatpush1.bf16.msra.mxu1 %v5900_v48 }
 0xc0e   : > { %2982 = vmatprep.subr.bf16.mxu0 %v5741_v57  ;;  %3025 = vmatprep.subr.bf16.mxu1 %v6624_v5 }
 0xcc3   : > { %v2666_v12 = vpop.f32.mrb[12].mxu0  ;;  %v2709_v61 = vpop.f32.mrb[12].mxu1 }
 0xcc4   : > { %v2718_v22 = vadd.f32 %v2666_v12, %v2624_v55  ;;  %v2668_v44 = vpop.f32.mrb[13].mxu0  ;;  %v2711_v30 = vpop.f32.mrb[13].mxu1  ;;  %v2720_v55 = vadd.f32 %v2709_v61, %v2626_v10 }
 0xcc5   : > { %v2719_v62 = vadd.f32 %v2668_v44, %v2625_v6  ;;  %v2670_v39 = vpop.f32.mrb[14].mxu0  ;;  %v2713_v59 = vpop.f32.mrb[14].mxu1  ;;  %v2721_v6 = vadd.f32 %v2711_v30, %v2627_v3  ;;  %v2631_v44 = vunpack.c.h.bf16 %v4008_v14 }
 0xcc6   : > { %v4009_v49 = vmul.f32 -1.442695, %v2718_v22  ;;  %v2722_v54 = vadd.f32 %v2670_v39, %v2628_v17  ;;  %v2672_v38 = vpop.f32.mrb[15].mxu0  ;;  %v2715_v19 = vpop.f32.mrb[15].mxu1  ;;  %v2724_v12 = vadd.f32 %v2713_v59, %v2630_v0  ;;  %v4011_v22 = vmul.f32 -1.442695, %v2720_v55 }
 0xcc7   : > { %v4010_v33 = vmul.f32 -1.442695, %v2719_v62  ;;  %v2723_v35 = vadd.f32 %v2672_v38, %v2629_v4  ;;  %v2725_v5 = vadd.f32 %v2715_v19, %v2631_v44 }
 0xcc8   : > { %4618 = vpow2.f32 %v4009_v49  ;;  %v4012_v31 = vmul.f32 -1.442695, %v2722_v54  ;;  %v4014_v17 = vmul.f32 -1.442695, %v2724_v12 }
 0xcc9   : > { %v4013_v32 = vmul.f32 -1.442695, %v2723_v35  ;;  %4620 = vpow2.f32 %v4010_v33  ;;  %v2776_v35 = vstv %s2775_s10 }
 0xcca   : > { %4622 = vpow2.f32 %v4012_v31  ;;  %vm6148_vm6 = vcmp.lt.s32.totalorder %v5011_v11, %v2776_v35  ;;  %vm2778_vm7 = vcmp.lt.s32.totalorder %v5032_v18, %v2776_v35 }
 0xccb   : > { %4624 = vpow2.f32 %v4013_v32 }
 0xccc   : > { %4626 = vtanh.f32 %v2721_v6 }
 0xccd   : > { %4628 = vpow2.f32 %v4011_v22 }
 0xcce   : > { %4630 = vpow2.f32 %v4014_v17 }
 0xcd2   : > { %v4619_v39 = vpop.eup %4618 }
 0xcd3   : > { %v2744_v62 = vadd.f32 1.0, %v4619_v39  ;;  %v4621_v4 = vpop.eup %4620 }
 0xcd4   : > { %v4623_v49 = vpop.eup %4622  ;;  %v2745_v54 = vadd.f32 1.0, %v4621_v4 }
 0xcd5   : > { %4632 = vrcp.f32 %v2744_v62  ;;  %v2747_v61 = vadd.f32 1.0, %v4623_v49  ;;  %v4625_v43 = vpop.eup %4624 }
 0xcd6   : > { %4634 = vtanh.f32 %v2725_v5  ;;  %v2748_v30 = vadd.f32 1.0, %v4625_v43  ;;  %v4627_v14 = vpop.eup %4626 }
 0xcd7   : > { %4636 = vrcp.f32 %v2745_v54  ;;  %v4629_v59 = vpop.eup %4628 }
 0xcd8   : > { %4638 = vrcp.f32 %v2747_v61  ;;  %v4631_v38 = vpop.eup %4630  ;;  %v2746_v0 = vadd.f32 1.0, %v4629_v59 }
 0xcd9   : > { %4640 = vrcp.f32 %v2748_v30  ;;  %v2749_v44 = vadd.f32 1.0, %v4631_v38 }
 0xcda   : > { %4642 = vrcp.f32 %v2746_v0 }
 0xcdf   : > { %v4633_v19 = vpop.eup %4632 }
 0xce0   : > { %v4635_v10 = vpop.eup %4634  ;;  %v2766_v33 = vmul.f32 %v4633_v19, %v4627_v14 }
 0xce1   : > { %v4637_v31 = vpop.eup %4636 }
 0xce2   : > { %v4639_v32 = vpop.eup %4638  ;;  %v2764_v3 = vmul.f32 %v4637_v31, %v6091_v15 }
 0xce3   : > { %v2767_v55 = vmul.f32 %v4639_v32, %v4635_v10  ;;  %v4641_v12 = vpop.eup %4640  ;;  %v4020_v32 = vld [vmem:[%s4979_s16 + $0x68] sm:$0xff] }
 0xce4   : > { %v2768_v6 = vadd.f32 %v2766_v33, %v2764_v3  ;;  %v2765_v22 = vmul.f32 %v4641_v12, %v6094_v25  ;;  %v4643_v4 = vpop.eup %4642 }
 0xce6   : > { %4644 = vtanh.f32 %v2768_v6  ;;  %v6157_v17 = vsel %vm6148_vm6, %v2768_v6, %v6091_v15  ;;  %v2769_v39 = vadd.f32 %v2767_v55, %v2765_v22  ;;  %v4022_v6 = vld [vmem:[%s4979_s16 + $0x78] sm:$0xff] }
 0xce7   : > { %4646 = vrcp.f32 %v2749_v44 }
 0xce8   : > { %4648 = vtanh.f32 %v2769_v39  ;;  %v6160_v62 = vsel %vm2778_vm7, %v2769_v39, %v6094_v25  ;;  %v6627_v25 = vld [vmem:[#allocation46_spill] sm:$0xff] }
 0xcf0   : > { %v4645_v49 = vpop.eup %4644 }
 0xcf1   : > { %v2772_v54 = vmul.f32 %v4645_v49, %v4643_v4  ;;  %v4647_v61 = vpop.eup %4646 }
 0xcf2   : > { %v4649_v43 = vpop.eup %4648 }
 0xcf3   : > { %v2773_v30 = vmul.f32 %v4649_v43, %v4647_v61  ;;  %v6165_v14 = vsel %vm6148_vm6, %v2772_v54, %v6099_v46  ;;  %v4019_v46 = vld [vmem:[%s4979_s16 + $0x60] sm:$0xff]  ;;  %v2801_v54 = vunpack.c.l.bf16 %v4020_v32 }
 0xcf4   : > { %v2799_v38 = vunpack.c.l.bf16 %v4019_v46  ;;  %v2800_v19 = vunpack.c.h.bf16 %v4019_v46 }
 0xcf5   : > { %v6168_v15 = vsel %vm2778_vm7, %v2773_v30, %v6102_v52  ;;  %v4021_v52 = vld [vmem:[%s4979_s16 + $0x70] sm:$0xff] }
 0xcf6   : > { %v2783_v59 = vpack.c.bf16 %v6168_v15, %v6165_v14  ;;  %v2803_v10 = vunpack.c.l.bf16 %v4021_v52  ;;  %v2804_v31 = vunpack.c.h.bf16 %v4021_v52  ;;  %v2802_v52 = vunpack.c.h.bf16 %v4020_v32 }
 0xcf8   : > { %4202 = vst [vmem:[%s4981_s7 + $0x20] sm:$0xff] %v2783_v59   ;;  %2840 = vmatmul.mubr.bf16.vlgmr.msra.gmra.mrb[16].mxu0 %v2783_v59  ;;  %2883 = vmatmul.mubr.bf16.vlgmr.msra.gmra.mrb[16].mxu1 %v2783_v59  ;;  %v2805_v59 = vunpack.c.l.bf16 %v4022_v6 }
 0xcf9   : > { %2983 = vmatpush1.bf16.msra.mxu0 %v5745_v58  ;;  %3026 = vmatpush1.bf16.msra.mxu1 %v5758_v63 }
 0xcfa   : > { %2984 = vmatprep.subr.bf16.mxu0 %v5749_v60  ;;  %3027 = vmatprep.subr.bf16.mxu1 %v5762_v27 }
 0xcfb   : > { %3014 = vmatprep.mubr.bf16.mxu0 %v6621_v36  ;;  %3057 = vmatprep.mubr.bf16.mxu1 %v6621_v36 }
 0xcfd   : > { %2985 = vmatpush1.bf16.msra.mxu0 %v5767_v2  ;;  %3028 = vmatpush1.bf16.msra.mxu1 %v5778_v26 }
 0xcfe   : > { %2986 = vmatprep.subr.bf16.mxu0 %v5773_v23  ;;  %3029 = vmatprep.subr.bf16.mxu1 %v5783_v7 }
 0xd01   : > { %2987 = vmatpush1.bf16.msra.mxu0 %v5789_v34  ;;  %3030 = vmatpush1.bf16.msra.mxu1 %v5799_v21 }
 0xd02   : > { %2988 = vmatprep.subr.bf16.mxu0 %v5794_v9  ;;  %3031 = vmatprep.subr.bf16.mxu1 %v5804_v16 }
 0xd05   : > { %2989 = vmatpush1.bf16.msra.mxu0 %v5810_v1  ;;  %3032 = vmatpush1.bf16.msra.mxu1 %v5820_v8 }
 0xd06   : > { %2990 = vmatprep.subr.bf16.mxu0 %v5815_v13  ;;  %3033 = vmatprep.subr.bf16.mxu1 %v5825_v24 }
 0xd09   : > { %2991 = vmatpush1.bf16.msra.mxu0 %v5830_v20  ;;  %3034 = vmatpush1.bf16.msra.mxu1 %v5840_v42 }
 0xd0a   : > { %2992 = vmatprep.subr.bf16.mxu0 %v5835_v41  ;;  %3035 = vmatprep.subr.bf16.mxu1 %v5845_v45 }
 0xd0d   : > { %2993 = vmatpush1.bf16.msra.mxu0 %v5850_v47  ;;  %3036 = vmatpush1.bf16.msra.mxu1 %v5860_v51 }
 0xd0e   : > { %2994 = vmatprep.subr.bf16.mxu0 %v5855_v50  ;;  %3037 = vmatprep.subr.bf16.mxu1 %v5865_v28 }
 0xd11   : > { %2995 = vmatpush1.bf16.msra.mxu0 %v5870_v53  ;;  %3038 = vmatpush1.bf16.msra.mxu1 %v5880_v37 }
 0xd12   : > { %2996 = vmatprep.subr.bf16.mxu0 %v5875_v29  ;;  %3039 = vmatprep.subr.bf16.mxu1 %v5885_v40 }
 0xd15   : > { %2997 = vmatpush1.bf16.msra.mxu0 %v5890_v56  ;;  %3040 = vmatpush1.bf16.msra.mxu1 %v5900_v48 }
 0xd16   : > { %3157 = vmatprep.subr.bf16.mxu0 %v5741_v57  ;;  %3200 = vmatprep.subr.bf16.mxu1 %v6627_v25 }
 0xdcb   : > { %v2841_v33 = vpop.f32.mrb[16].mxu0  ;;  %v2884_v35 = vpop.f32.mrb[16].mxu1 }
 0xdcc   : > { %v2893_v0 = vadd.f32 %v2841_v33, %v2799_v38  ;;  %v2843_v3 = vpop.f32.mrb[17].mxu0  ;;  %v2886_v55 = vpop.f32.mrb[17].mxu1  ;;  %v2895_v38 = vadd.f32 %v2884_v35, %v2801_v54 }
 0xdcd   : > { %v2894_v5 = vadd.f32 %v2843_v3, %v2800_v19  ;;  %v2845_v12 = vpop.f32.mrb[18].mxu0  ;;  %v2888_v44 = vpop.f32.mrb[18].mxu1  ;;  %v2896_v19 = vadd.f32 %v2886_v55, %v2802_v52  ;;  %v2806_v3 = vunpack.c.h.bf16 %v4022_v6 }
 0xdce   : > { %v4023_v22 = vmul.f32 -1.442695, %v2893_v0  ;;  %v2897_v39 = vadd.f32 %v2845_v12, %v2803_v10  ;;  %v2847_v4 = vpop.f32.mrb[19].mxu0  ;;  %v2890_v49 = vpop.f32.mrb[19].mxu1  ;;  %v2899_v33 = vadd.f32 %v2888_v44, %v2805_v59  ;;  %v4025_v0 = vmul.f32 -1.442695, %v2895_v38 }
 0xdcf   : > { %v4024_v61 = vmul.f32 -1.442695, %v2894_v5  ;;  %v2898_v43 = vadd.f32 %v2847_v4, %v2804_v31  ;;  %v2900_v25 = vadd.f32 %v2890_v49, %v2806_v3 }
 0xdd0   : > { %4650 = vpow2.f32 %v4023_v22  ;;  %v4026_v30 = vmul.f32 -1.442695, %v2897_v39  ;;  %v4028_v10 = vmul.f32 -1.442695, %v2899_v33 }
 0xdd1   : > { %v4027_v46 = vmul.f32 -1.442695, %v2898_v43  ;;  %4652 = vpow2.f32 %v4024_v61  ;;  %v2951_v43 = vstv %s2950_s12 }
 0xdd2   : > { %4654 = vpow2.f32 %v4026_v30  ;;  %vm6214_vm8 = vcmp.lt.s32.totalorder %v5011_v11, %v2951_v43  ;;  %vm2953_vm9 = vcmp.lt.s32.totalorder %v5032_v18, %v2951_v43 }
 0xdd3   : > { %4656 = vpow2.f32 %v4027_v46 }
 0xdd4   : > { %4658 = vtanh.f32 %v2896_v19 }
 0xdd5   : > { %4660 = vpow2.f32 %v4025_v0 }
 0xdd6   : > { %4662 = vpow2.f32 %v4028_v10 }
 0xdda   : > { %v4651_v12 = vpop.eup %4650 }
 0xddb   : > { %v2919_v5 = vadd.f32 1.0, %v4651_v12  ;;  %v4653_v31 = vpop.eup %4652 }
 0xddc   : > { %v4655_v22 = vpop.eup %4654  ;;  %v2920_v39 = vadd.f32 1.0, %v4653_v31 }
 0xddd   : > { %4664 = vrcp.f32 %v2919_v5  ;;  %v2922_v35 = vadd.f32 1.0, %v4655_v22  ;;  %v4657_v32 = vpop.eup %4656 }
 0xdde   : > { %4666 = vtanh.f32 %v2900_v25  ;;  %v2923_v55 = vadd.f32 1.0, %v4657_v32  ;;  %v4659_v6 = vpop.eup %4658 }
 0xddf   : > { %4668 = vrcp.f32 %v2920_v39  ;;  %v4661_v44 = vpop.eup %4660 }
 0xde0   : > { %4670 = vrcp.f32 %v2922_v35  ;;  %v4663_v4 = vpop.eup %4662  ;;  %v2921_v59 = vadd.f32 1.0, %v4661_v44 }
 0xde1   : > { %4672 = vrcp.f32 %v2923_v55  ;;  %v2924_v3 = vadd.f32 1.0, %v4663_v4 }
 0xde2   : > { %4674 = vrcp.f32 %v2921_v59 }
 0xde7   : > { %v4665_v49 = vpop.eup %4664 }
 0xde8   : > { %v4667_v54 = vpop.eup %4666  ;;  %v2941_v61 = vmul.f32 %v4665_v49, %v4659_v6 }
 0xde9   : > { %v4669_v30 = vpop.eup %4668 }
 0xdea   : > { %v4671_v46 = vpop.eup %4670  ;;  %v2939_v52 = vmul.f32 %v4669_v30, %v6157_v17 }
 0xdeb   : > { %v2942_v38 = vmul.f32 %v4671_v46, %v4667_v54  ;;  %v4673_v33 = vpop.eup %4672  ;;  %v4034_v46 = vld [vmem:[%s4979_s16 + $0x48] sm:$0xff] }
 0xdec   : > { %v2943_v19 = vadd.f32 %v2941_v61, %v2939_v52  ;;  %v2940_v0 = vmul.f32 %v4673_v33, %v6160_v62  ;;  %v4675_v31 = vpop.eup %4674 }
 0xdee   : > { %4676 = vtanh.f32 %v2943_v19  ;;  %v6223_v10 = vsel %vm6214_vm8, %v2943_v19, %v6157_v17  ;;  %v2944_v12 = vadd.f32 %v2942_v38, %v2940_v0  ;;  %v4036_v19 = vld [vmem:[%s4979_s16 + $0x58] sm:$0xff] }
 0xdef   : > { %4678 = vrcp.f32 %v2924_v3 }
 0xdf0   : > { %4680 = vtanh.f32 %v2944_v12  ;;  %v6226_v5 = vsel %vm2953_vm9, %v2944_v12, %v6160_v62  ;;  %v6630_v62 = vld [vmem:[#allocation46_spill] sm:$0xff] }
 0xdf8   : > { %v4677_v22 = vpop.eup %4676 }
 0xdf9   : > { %v2947_v39 = vmul.f32 %v4677_v22, %v4675_v31  ;;  %v4679_v35 = vpop.eup %4678  ;;  %v2976_v22 = vunpack.c.l.bf16 %v4034_v46 }
 0xdfa   : > { %v4681_v32 = vpop.eup %4680 }
 0xdfb   : > { %v2948_v55 = vmul.f32 %v4681_v32, %v4679_v35  ;;  %v6231_v6 = vsel %vm6214_vm8, %v2947_v39, %v6165_v14  ;;  %v4033_v14 = vld [vmem:[%s4979_s16 + $0x40] sm:$0xff] }
 0xdfc   : > { %v2974_v4 = vunpack.c.l.bf16 %v4033_v14  ;;  %v2975_v49 = vunpack.c.h.bf16 %v4033_v14 }
 0xdfd   : > { %v6234_v17 = vsel %vm2953_vm9, %v2948_v55, %v6168_v15  ;;  %v4035_v15 = vld [vmem:[%s4979_s16 + $0x50] sm:$0xff]  ;;  %v2980_v55 = vunpack.c.l.bf16 %v4036_v19 }
 0xdfe   : > { %v2958_v44 = vpack.c.bf16 %v6234_v17, %v6231_v6  ;;  %v2978_v54 = vunpack.c.l.bf16 %v4035_v15  ;;  %v2979_v30 = vunpack.c.h.bf16 %v4035_v15 }
 0xe00   : > { %4203 = vst [vmem:[%s4981_s7 + $0x18] sm:$0xff] %v2958_v44   ;;  %3015 = vmatmul.mubr.bf16.vlgmr.msra.gmra.mrb[20].mxu0 %v2958_v44  ;;  %3058 = vmatmul.mubr.bf16.vlgmr.msra.gmra.mrb[20].mxu1 %v2958_v44 }
 0xe01   : > { %3158 = vmatpush1.bf16.msra.mxu0 %v5745_v58  ;;  %3201 = vmatpush1.bf16.msra.mxu1 %v5758_v63 }
 0xe02   : > { %3159 = vmatprep.subr.bf16.mxu0 %v5749_v60  ;;  %3202 = vmatprep.subr.bf16.mxu1 %v5762_v27 }
 0xe03   : > { %3189 = vmatprep.mubr.bf16.mxu0 %v6621_v36  ;;  %3232 = vmatprep.mubr.bf16.mxu1 %v6621_v36 }
 0xe05   : > { %3160 = vmatpush1.bf16.msra.mxu0 %v5767_v2  ;;  %3203 = vmatpush1.bf16.msra.mxu1 %v5778_v26 }
 0xe06   : > { %3161 = vmatprep.subr.bf16.mxu0 %v5773_v23  ;;  %3204 = vmatprep.subr.bf16.mxu1 %v5783_v7 }
 0xe09   : > { %3162 = vmatpush1.bf16.msra.mxu0 %v5789_v34  ;;  %3205 = vmatpush1.bf16.msra.mxu1 %v5799_v21 }
 0xe0a   : > { %3163 = vmatprep.subr.bf16.mxu0 %v5794_v9  ;;  %3206 = vmatprep.subr.bf16.mxu1 %v5804_v16 }
 0xe0d   : > { %3164 = vmatpush1.bf16.msra.mxu0 %v5810_v1  ;;  %3207 = vmatpush1.bf16.msra.mxu1 %v5820_v8 }
 0xe0e   : > { %3165 = vmatprep.subr.bf16.mxu0 %v5815_v13  ;;  %3208 = vmatprep.subr.bf16.mxu1 %v5825_v24 }
 0xe11   : > { %3166 = vmatpush1.bf16.msra.mxu0 %v5830_v20  ;;  %3209 = vmatpush1.bf16.msra.mxu1 %v5840_v42 }
 0xe12   : > { %3167 = vmatprep.subr.bf16.mxu0 %v5835_v41  ;;  %3210 = vmatprep.subr.bf16.mxu1 %v5845_v45 }
 0xe15   : > { %3168 = vmatpush1.bf16.msra.mxu0 %v5850_v47  ;;  %3211 = vmatpush1.bf16.msra.mxu1 %v5860_v51 }
 0xe16   : > { %3169 = vmatprep.subr.bf16.mxu0 %v5855_v50  ;;  %3212 = vmatprep.subr.bf16.mxu1 %v5865_v28 }
 0xe19   : > { %3170 = vmatpush1.bf16.msra.mxu0 %v5870_v53  ;;  %3213 = vmatpush1.bf16.msra.mxu1 %v5880_v37 }
 0xe1a   : > { %3171 = vmatprep.subr.bf16.mxu0 %v5875_v29  ;;  %3214 = vmatprep.subr.bf16.mxu1 %v5885_v40 }
 0xe1d   : > { %3172 = vmatpush1.bf16.msra.mxu0 %v5890_v56  ;;  %3215 = vmatpush1.bf16.msra.mxu1 %v5900_v48 }
 0xe1e   : > { %3331 = vmatprep.subr.bf16.mxu0 %v5741_v57  ;;  %3374 = vmatprep.subr.bf16.mxu1 %v6630_v62  ;;  %v2977_v62 = vunpack.c.h.bf16 %v4034_v46 }
 0xed3   : > { %v3016_v61 = vpop.f32.mrb[20].mxu0  ;;  %v3059_v43 = vpop.f32.mrb[20].mxu1 }
 0xed4   : > { %v3068_v59 = vadd.f32 %v3016_v61, %v2974_v4  ;;  %v3018_v52 = vpop.f32.mrb[21].mxu0  ;;  %v3061_v38 = vpop.f32.mrb[21].mxu1  ;;  %v3070_v14 = vadd.f32 %v3059_v43, %v2976_v22 }
 0xed5   : > { %v3069_v25 = vadd.f32 %v3018_v52, %v2975_v49  ;;  %v3020_v33 = vpop.f32.mrb[22].mxu0  ;;  %v3063_v3 = vpop.f32.mrb[22].mxu1  ;;  %v3071_v4 = vadd.f32 %v3061_v38, %v2977_v62  ;;  %v2981_v49 = vunpack.c.h.bf16 %v4036_v19 }
 0xed6   : > { %v4037_v57 = vmul.f32 -1.442695, %v3068_v59  ;;  %v3072_v0 = vadd.f32 %v3020_v33, %v2978_v54  ;;  %v3022_v12 = vpop.f32.mrb[23].mxu0  ;;  %v3065_v31 = vpop.f32.mrb[23].mxu1  ;;  %v3074_v15 = vadd.f32 %v3063_v3, %v2980_v55  ;;  %v4039_v61 = vmul.f32 -1.442695, %v3070_v14 }
 0xed7   : > { %v4038_v39 = vmul.f32 -1.442695, %v3069_v25  ;;  %v3073_v35 = vadd.f32 %v3022_v12, %v2979_v30  ;;  %v3075_v52 = vadd.f32 %v3065_v31, %v2981_v49 }
 0xed8   : > { %4682 = vpow2.f32 %v4037_v57  ;;  %v4040_v32 = vmul.f32 -1.442695, %v3072_v0  ;;  %v4042_v54 = vmul.f32 -1.442695, %v3074_v15 }
 0xed9   : > { %v4041_v44 = vmul.f32 -1.442695, %v3073_v35  ;;  %4684 = vpow2.f32 %v4038_v39  ;;  %v3126_v39 = vstv %s3125_s15 }
 0xeda   : > { %4686 = vpow2.f32 %v4040_v32  ;;  %vm6280_vm10 = vcmp.lt.s32.totalorder %v5011_v11, %v3126_v39  ;;  %vm3128_vm11 = vcmp.lt.s32.totalorder %v5032_v18, %v3126_v39 }
 0xedb   : > { %4688 = vpow2.f32 %v4041_v44 }
 0xedc   : > { %4690 = vtanh.f32 %v3071_v4 }
 0xedd   : > { %4692 = vpow2.f32 %v4039_v61 }
 0xede   : > { %4694 = vpow2.f32 %v4042_v54 }
 0xee2   : > { %v4683_v59 = vpop.eup %4682 }
 0xee3   : > { %v3094_v25 = vadd.f32 1.0, %v4683_v59  ;;  %v4685_v30 = vpop.eup %4684 }
 0xee4   : > { %v4687_v33 = vpop.eup %4686  ;;  %v3095_v57 = vadd.f32 1.0, %v4685_v30 }
 0xee5   : > { %4696 = vrcp.f32 %v3094_v25  ;;  %v3097_v43 = vadd.f32 1.0, %v4687_v33  ;;  %v4689_v46 = vpop.eup %4688 }
 0xee6   : > { %4698 = vtanh.f32 %v3075_v52  ;;  %v3098_v38 = vadd.f32 1.0, %v4689_v46  ;;  %v4691_v19 = vpop.eup %4690 }
 0xee7   : > { %4700 = vrcp.f32 %v3095_v57  ;;  %v4693_v3 = vpop.eup %4692 }
 0xee8   : > { %4702 = vrcp.f32 %v3097_v43  ;;  %v4695_v0 = vpop.eup %4694  ;;  %v3096_v32 = vadd.f32 1.0, %v4693_v3 }
 0xee9   : > { %4704 = vrcp.f32 %v3098_v38  ;;  %v3099_v49 = vadd.f32 1.0, %v4695_v0 }
 0xeea   : > { %4706 = vrcp.f32 %v3096_v32 }
 0xeef   : > { %v4697_v12 = vpop.eup %4696 }
 0xef0   : > { %v4699_v31 = vpop.eup %4698  ;;  %v3116_v22 = vmul.f32 %v4697_v12, %v4691_v19 }
 0xef1   : > { %v4701_v35 = vpop.eup %4700 }
 0xef2   : > { %v4703_v55 = vpop.eup %4702  ;;  %v3114_v44 = vmul.f32 %v4701_v35, %v6223_v10 }
 0xef3   : > { %v3117_v62 = vmul.f32 %v4703_v55, %v4699_v31  ;;  %v4705_v15 = vpop.eup %4704 }
 0xef4   : > { %v3118_v4 = vadd.f32 %v3116_v22, %v3114_v44  ;;  %v3115_v61 = vmul.f32 %v4705_v15, %v6226_v5  ;;  %v4707_v25 = vpop.eup %4706 }
 0xef6   : > { %4708 = vtanh.f32 %v3118_v4  ;;  %v6289_v54 = vsel %vm6280_vm10, %v3118_v4, %v6223_v10  ;;  %v3119_v59 = vadd.f32 %v3117_v62, %v3115_v61 }
 0xef7   : > { %4710 = vrcp.f32 %v3099_v49  ;;  %v3301_v49 = vstv %s3300_s21 }
 0xef8   : > { %4712 = vtanh.f32 %v3119_v59  ;;  %v6292_v52 = vsel %vm3128_vm11, %v3119_v59, %v6226_v5  ;;  %vm6344_vm12 = vcmp.lt.s32.totalorder %v5011_v11, %v3301_v49  ;;  %vm3303_vm13 = vcmp.lt.s32.totalorder %v5032_v18, %v3301_v49 }
 0xf00   : > { %v4709_v30 = vpop.eup %4708 }
 0xf01   : > { %v3122_v33 = vmul.f32 %v4709_v30, %v4707_v25  ;;  %v4711_v57 = vpop.eup %4710 }
 0xf02   : > { %v4713_v43 = vpop.eup %4712 }
 0xf03   : > { %v3123_v46 = vmul.f32 %v4713_v43, %v4711_v57  ;;  %v6297_v38 = vsel %vm6280_vm10, %v3122_v33, %v6231_v6 }
 0xf05   : > { %v6300_v10 = vsel %vm3128_vm11, %v3123_v46, %v6234_v17 }
 0xf06   : > { %v3133_v19 = vpack.c.bf16 %v6300_v10, %v6297_v38 }
 0xf08   : > { %4204 = vst [vmem:[%s4981_s7 + $0x10] sm:$0xff] %v3133_v19   ;;  %3190 = vmatmul.mubr.bf16.vlgmr.msra.gmra.mrb[24].mxu0 %v3133_v19  ;;  %3233 = vmatmul.mubr.bf16.vlgmr.msra.gmra.mrb[24].mxu1 %v3133_v19 }
 0xf09   : > { %3332 = vmatpush1.bf16.msra.mxu0 %v5745_v58  ;;  %3375 = vmatpush1.bf16.msra.mxu1 %v5758_v63  ;;  %v4047_v58 = vld [vmem:[%s4979_s16 + $0x20] sm:$0xff] }
 0xf0a   : > { %3333 = vmatprep.subr.bf16.mxu0 %v5749_v60  ;;  %3376 = vmatprep.subr.bf16.mxu1 %v5762_v27  ;;  %v4049_v60 = vld [vmem:[%s4979_s16 + $0x30] sm:$0xff]  ;;  %v3149_v63 = vunpack.c.l.bf16 %v4047_v58  ;;  %v3150_v27 = vunpack.c.h.bf16 %v4047_v58 }
 0xf0b   : > { %3363 = vmatprep.mubr.bf16.mxu0 %v6621_v36  ;;  %3406 = vmatprep.mubr.bf16.mxu1 %v6621_v36 }
 0xf0d   : > { %3334 = vmatpush1.bf16.msra.mxu0 %v5767_v2  ;;  %3377 = vmatpush1.bf16.msra.mxu1 %v5778_v26  ;;  %v3153_v2 = vunpack.c.l.bf16 %v4049_v60 }
 0xf0e   : > { %3335 = vmatprep.subr.bf16.mxu0 %v5773_v23  ;;  %3378 = vmatprep.subr.bf16.mxu1 %v5783_v7  ;;  %v3154_v7 = vunpack.c.h.bf16 %v4049_v60 }
 0xf11   : > { %3336 = vmatpush1.bf16.msra.mxu0 %v5789_v34  ;;  %3379 = vmatpush1.bf16.msra.mxu1 %v5799_v21 }
 0xf12   : > { %3337 = vmatprep.subr.bf16.mxu0 %v5794_v9  ;;  %3380 = vmatprep.subr.bf16.mxu1 %v5804_v16  ;;  %v4048_v9 = vld [vmem:[%s4979_s16 + $0x28] sm:$0xff] }
 0xf15   : > { %3338 = vmatpush1.bf16.msra.mxu0 %v5810_v1  ;;  %3381 = vmatpush1.bf16.msra.mxu1 %v5820_v8  ;;  %v4050_v8 = vld [vmem:[%s4979_s16 + $0x38] sm:$0xff] }
 0xf16   : > { %3339 = vmatprep.subr.bf16.mxu0 %v5815_v13  ;;  %3382 = vmatprep.subr.bf16.mxu1 %v5825_v24  ;;  %v3156_v36 = vunpack.c.h.bf16 %v4050_v8 }
 0xf19   : > { %3340 = vmatpush1.bf16.msra.mxu0 %v5830_v20  ;;  %3383 = vmatpush1.bf16.msra.mxu1 %v5840_v42 }
 0xf1a   : > { %3341 = vmatprep.subr.bf16.mxu0 %v5835_v41  ;;  %3384 = vmatprep.subr.bf16.mxu1 %v5845_v45 }
 0xf1d   : > { %3342 = vmatpush1.bf16.msra.mxu0 %v5850_v47  ;;  %3385 = vmatpush1.bf16.msra.mxu1 %v5860_v51  ;;  %v3151_v47 = vunpack.c.l.bf16 %v4048_v9 }
 0xf1e   : > { %3343 = vmatprep.subr.bf16.mxu0 %v5855_v50  ;;  %3386 = vmatprep.subr.bf16.mxu1 %v5865_v28 }
 0xf21   : > { %3344 = vmatpush1.bf16.msra.mxu0 %v5870_v53  ;;  %3387 = vmatpush1.bf16.msra.mxu1 %v5880_v37  ;;  %v3155_v53 = vunpack.c.l.bf16 %v4050_v8  ;;  %v3152_v37 = vunpack.c.h.bf16 %v4048_v9 }
 0xf22   : > { %3345 = vmatprep.subr.bf16.mxu0 %v5875_v29  ;;  %3388 = vmatprep.subr.bf16.mxu1 %v5885_v40 }
 0xf25   : > { %3346 = vmatpush1.bf16.msra.mxu0 %v5890_v56  ;;  %3389 = vmatpush1.bf16.msra.mxu1 %v5900_v48 }
 0xfdb   : > { %v3191_v23 = vpop.f32.mrb[24].mxu0  ;;  %v3234_v26 = vpop.f32.mrb[24].mxu1 }
 0xfdc   : > { %v3243_v34 = vadd.f32 %v3191_v23, %v3149_v63  ;;  %v3193_v21 = vpop.f32.mrb[25].mxu0  ;;  %v3236_v16 = vpop.f32.mrb[25].mxu1  ;;  %v3245_v40 = vadd.f32 %v3234_v26, %v3151_v47 }
 0xfdd   : > { %v3244_v1 = vadd.f32 %v3193_v21, %v3150_v27  ;;  %v3195_v13 = vpop.f32.mrb[26].mxu0  ;;  %v3238_v24 = vpop.f32.mrb[26].mxu1  ;;  %v3246_v48 = vadd.f32 %v3236_v16, %v3152_v37 }
 0xfde   : > { %v4051_v20 = vmul.f32 -1.442695, %v3243_v34  ;;  %v3247_v41 = vadd.f32 %v3195_v13, %v3153_v2  ;;  %v3197_v42 = vpop.f32.mrb[27].mxu0  ;;  %v3240_v45 = vpop.f32.mrb[27].mxu1  ;;  %v3249_v56 = vadd.f32 %v3238_v24, %v3155_v53  ;;  %v4053_v5 = vmul.f32 -1.442695, %v3245_v40 }
 0xfdf   : > { %v4052_v50 = vmul.f32 -1.442695, %v3244_v1  ;;  %v3248_v51 = vadd.f32 %v3197_v42, %v3154_v7  ;;  %v3250_v3 = vadd.f32 %v3240_v45, %v3156_v36  ;;  %v3321_v1 = vld [vmem:[%s4979_s16 + $0x10] sm:$0xff]  ;;  %v3320_v45 = vld [vmem:[%s4979_s16 + $0x8] sm:$0xff] }
 0xfe0   : > { %4714 = vpow2.f32 %v4051_v20  ;;  %v4054_v28 = vmul.f32 -1.442695, %v3247_v41  ;;  %v4056_v6 = vmul.f32 -1.442695, %v3249_v56  ;;  %v3327_v24 = vunpack.c.l.bf16 %v3321_v1 }
 0xfe1   : > { %v4055_v29 = vmul.f32 -1.442695, %v3248_v51  ;;  %4716 = vpow2.f32 %v4052_v50  ;;  %v3328_v42 = vunpack.c.h.bf16 %v3321_v1 }
 0xfe2   : > { %4718 = vpow2.f32 %v4054_v28  ;;  %v3322_v28 = vld [vmem:[%s4979_s16 + $0x18] sm:$0xff] }
 0xfe3   : > { %4720 = vpow2.f32 %v4055_v29 }
 0xfe4   : > { %4722 = vtanh.f32 %v3246_v48  ;;  %v3325_v48 = vunpack.c.l.bf16 %v3320_v45 }
 0xfe5   : > { %4724 = vpow2.f32 %v4053_v5 }
 0xfe6   : > { %4726 = vpow2.f32 %v4056_v6 }
 0xfea   : > { %v4715_v17 = vpop.eup %4714 }
 0xfeb   : > { %v3269_v0 = vadd.f32 1.0, %v4715_v17  ;;  %v4717_v12 = vpop.eup %4716  ;;  %v3329_v17 = vunpack.c.l.bf16 %v3322_v28 }
 0xfec   : > { %v4719_v31 = vpop.eup %4718  ;;  %v3270_v22 = vadd.f32 1.0, %v4717_v12 }
 0xfed   : > { %4728 = vrcp.f32 %v3269_v0  ;;  %v3272_v39 = vadd.f32 1.0, %v4719_v31  ;;  %v4721_v35 = vpop.eup %4720  ;;  %v3326_v0 = vunpack.c.h.bf16 %v3320_v45 }
 0xfee   : > { %4730 = vtanh.f32 %v3250_v3  ;;  %v3273_v32 = vadd.f32 1.0, %v4721_v35  ;;  %v4723_v55 = vpop.eup %4722 }
 0xfef   : > { %4732 = vrcp.f32 %v3270_v22  ;;  %v4725_v44 = vpop.eup %4724 }
 0xff0   : > { %4734 = vrcp.f32 %v3272_v39  ;;  %v4727_v62 = vpop.eup %4726  ;;  %v3271_v59 = vadd.f32 1.0, %v4725_v44  ;;  %v3330_v39 = vunpack.c.h.bf16 %v3322_v28 }
 0xff1   : > { %4736 = vrcp.f32 %v3273_v32  ;;  %v3274_v19 = vadd.f32 1.0, %v4727_v62 }
 0xff2   : > { %4738 = vrcp.f32 %v3271_v59 }
 0xff7   : > { %v4729_v14 = vpop.eup %4728 }
 0xff8   : > { %v4731_v15 = vpop.eup %4730  ;;  %v3291_v4 = vmul.f32 %v4729_v14, %v4723_v55 }
 0xff9   : > { %v4733_v61 = vpop.eup %4732 }
 0xffa   : > { %v4735_v25 = vpop.eup %4734  ;;  %v3289_v30 = vmul.f32 %v4733_v61, %v6289_v54 }
 0xffb   : > { %v3292_v33 = vmul.f32 %v4735_v25, %v4731_v15  ;;  %v4737_v43 = vpop.eup %4736 }
 0xffc   : > { %v3293_v46 = vadd.f32 %v3291_v4, %v3289_v30  ;;  %v3290_v58 = vmul.f32 %v4737_v43, %v6292_v52  ;;  %v4739_v2 = vpop.eup %4738 }
 0xffe   : > { %4740 = vtanh.f32 %v3293_v46  ;;  %v6353_v60 = vsel %vm6344_vm12, %v3293_v46, %v6289_v54  ;;  %v3294_v63 = vadd.f32 %v3292_v33, %v3290_v58 }
 0xfff   : > { %4742 = vrcp.f32 %v3274_v19 }
0x1000   : > { %4744 = vtanh.f32 %v3294_v63  ;;  %v6356_v27 = vsel %vm3303_vm13, %v3294_v63, %v6292_v52  ;;  %v3319_v52 = vld [vmem:[%s4979_s16] sm:$0xff]  ;;  %s3473_s16 = sld [smem:[#allocation5 + %s5949_s27]] }
0x1001   : > { %v3323_v13 = vunpack.c.l.bf16 %v3319_v52  ;;  %v3324_v8 = vunpack.c.h.bf16 %v3319_v52 }
0x1006   : > { %v3474_v19 = vstv %s3473_s16 }
0x1007   : > { %vm6376_vm14 = vcmp.lt.s32.totalorder %v5011_v11, %v3474_v19  ;;  %vm3476_vm15 = vcmp.lt.s32.totalorder %v5032_v18, %v3474_v19 }
0x1008   : > { %v4741_v23 = vpop.eup %4740 }
0x1009   : > { %v3297_v26 = vmul.f32 %v4741_v23, %v4739_v2  ;;  %v4743_v7 = vpop.eup %4742 }
0x100a   : > { %v4745_v34 = vpop.eup %4744 }
0x100b   : > { %v3298_v9 = vmul.f32 %v4745_v34, %v4743_v7  ;;  %v6361_v54 = vsel %vm6344_vm12, %v3297_v26, %v6297_v38 }
0x100d   : > { %v6364_v21 = vsel %vm3303_vm13, %v3298_v9, %v6300_v10 }
0x100e   : > { %v3308_v16 = vpack.c.bf16 %v6364_v21, %v6361_v54 }
0x1010   : > { %4205 = vst [vmem:[%s4981_s7 + $0x8] sm:$0xff] %v3308_v16   ;;  %3364 = vmatmul.mubr.bf16.vlgmr.msra.gmra.mrb[28].mxu0 %v3308_v16  ;;  %3407 = vmatmul.mubr.bf16.vlgmr.msra.gmra.mrb[28].mxu1 %v3308_v16 }
0x10e3   : > { %v3365_v20 = vpop.f32.mrb[28].mxu0  ;;  %v3408_v41 = vpop.f32.mrb[28].mxu1 }
0x10e4   : > { %v3417_v38 = vadd.f32 %v3365_v20, %v3323_v13  ;;  %v3367_v47 = vpop.f32.mrb[29].mxu0  ;;  %v3410_v10 = vpop.f32.mrb[29].mxu1  ;;  %v3419_v12 = vadd.f32 %v3408_v41, %v3325_v48 }
0x10e5   : > { %v3418_v50 = vadd.f32 %v3367_v47, %v3324_v8  ;;  %v3369_v51 = vpop.f32.mrb[30].mxu0  ;;  %v3412_v53 = vpop.f32.mrb[30].mxu1  ;;  %v3420_v22 = vadd.f32 %v3410_v10, %v3326_v0 }
0x10e6   : > { %v4061_v29 = vmul.f32 -1.442695, %v3417_v38  ;;  %v3421_v37 = vadd.f32 %v3369_v51, %v3327_v24  ;;  %v3371_v40 = vpop.f32.mrb[31].mxu0  ;;  %v3414_v56 = vpop.f32.mrb[31].mxu1  ;;  %v3423_v31 = vadd.f32 %v3412_v53, %v3329_v17  ;;  %v4063_v35 = vmul.f32 -1.442695, %v3419_v12 }
0x10e7   : > { %v4062_v36 = vmul.f32 -1.442695, %v3418_v50  ;;  %v3422_v5 = vadd.f32 %v3371_v40, %v3328_v42  ;;  %v3424_v44 = vadd.f32 %v3414_v56, %v3330_v39 }
0x10e8   : > { %4746 = vpow2.f32 %v4061_v29  ;;  %v4064_v6 = vmul.f32 -1.442695, %v3421_v37  ;;  %v4066_v32 = vmul.f32 -1.442695, %v3423_v31 }
0x10e9   : > { %v4065_v3 = vmul.f32 -1.442695, %v3422_v5  ;;  %4748 = vpow2.f32 %v4062_v36 }
0x10ea   : > { %4750 = vpow2.f32 %v4064_v6 }
0x10eb   : > { %4752 = vpow2.f32 %v4065_v3 }
0x10ec   : > { %4754 = vtanh.f32 %v3420_v22 }
0x10ed   : > { %4756 = vpow2.f32 %v4063_v35 }
0x10ee   : > { %4758 = vpow2.f32 %v4066_v32 }
0x10f2   : > { %v4747_v55 = vpop.eup %4746 }
0x10f3   : > { %v3443_v62 = vadd.f32 1.0, %v4747_v55  ;;  %v4749_v14 = vpop.eup %4748 }
0x10f4   : > { %v4751_v15 = vpop.eup %4750  ;;  %v3444_v4 = vadd.f32 1.0, %v4749_v14 }
0x10f5   : > { %4760 = vrcp.f32 %v3443_v62  ;;  %v3446_v49 = vadd.f32 1.0, %v4751_v15  ;;  %v4753_v61 = vpop.eup %4752 }
0x10f6   : > { %4762 = vtanh.f32 %v3424_v44  ;;  %v3447_v59 = vadd.f32 1.0, %v4753_v61  ;;  %v4755_v25 = vpop.eup %4754 }
0x10f7   : > { %4764 = vrcp.f32 %v3444_v4  ;;  %v4757_v30 = vpop.eup %4756 }
0x10f8   : > { %4766 = vrcp.f32 %v3446_v49  ;;  %v4759_v33 = vpop.eup %4758  ;;  %v3445_v63 = vadd.f32 1.0, %v4757_v30 }
0x10f9   : > { %4768 = vrcp.f32 %v3447_v59  ;;  %v3448_v16 = vadd.f32 1.0, %v4759_v33 }
0x10fa   : > { %4770 = vrcp.f32 %v3445_v63 }
0x10ff   : > { %v4761_v57 = vpop.eup %4760 }
0x1100   : > { %v4763_v43 = vpop.eup %4762  ;;  %v3465_v46 = vmul.f32 %v4761_v57, %v4755_v25 }
0x1101   : > { %v4765_v58 = vpop.eup %4764 }
0x1102   : > { %v4767_v2 = vpop.eup %4766  ;;  %v3463_v23 = vmul.f32 %v4765_v58, %v6353_v60 }
0x1103   : > { %v3466_v7 = vmul.f32 %v4767_v2, %v4763_v43  ;;  %v4769_v34 = vpop.eup %4768 }
0x1104   : > { %v3467_v9 = vadd.f32 %v3465_v46, %v3463_v23  ;;  %v3464_v52 = vmul.f32 %v4769_v34, %v6356_v27  ;;  %v4771_v8 = vpop.eup %4770 }
0x1106   : > { %4772 = vtanh.f32 %v3467_v9  ;;  %v3479_v1 = vsel %vm6376_vm14, %v3467_v9, %v6353_v60  ;;  %v3468_v13 = vadd.f32 %v3466_v7, %v3464_v52 }
0x1107   : > { %3493 = vst [vmem:[#allocation3] sm:$0xff] %v3479_v1  ;;  %4774 = vrcp.f32 %v3448_v16 }
0x1108   : > { %4776 = vtanh.f32 %v3468_v13  ;;  %v3480_v11 = vsel %vm3476_vm15, %v3468_v13, %v6356_v27 }
0x1109   : > { %3494 = vst [vmem:[#allocation3 + $0x8] sm:$0xff] %v3480_v11 }
0x1110   : > { %v4773_v24 = vpop.eup %4772 }
0x1111   : > { %v3471_v20 = vmul.f32 %v4773_v24, %v4771_v8  ;;  %v4775_v41 = vpop.eup %4774 }
0x1112   : > { %v4777_v42 = vpop.eup %4776 }
0x1113   : > { %v3477_v38 = vsel %vm6376_vm14, %v3471_v20, %v6361_v54  ;;  %v3472_v60 = vmul.f32 %v4777_v42, %v4775_v41 }
0x1114   : > { %3491 = vst [vmem:[#allocation2] sm:$0xff] %v3477_v38 }
0x1115   : > { %v3478_v18 = vsel %vm3476_vm15, %v3472_v60, %v6364_v21 }
0x1116   : > { %v4190_v45 = vpack.c.bf16 %v3478_v18, %v3477_v38  ;;  %3492 = vst [vmem:[#allocation2 + $0x8] sm:$0xff] %v3478_v18 }
0x1118   : > { %4191 = vst [vmem:[%s4981_s7] sm:$0xff] %v4190_v45  }
0x1119 PF: > { %p4069_p7 = scmp.ne.s32.totalorder %s4830_s25, 1 }
0x111a   : > { %v3503_v10 = vld [vmem:[#allocation3] sm:$0xff] (!%p4069_p7)  ;;  %v3504_v54 = vld [vmem:[#allocation3 + $0x8] sm:$0xff] (!%p4069_p7) }
0x111b   : > { %3498 = sbr.rel (%p4069_p7) target bundleno = 4386 (0x1122), region = 44  ;;  %v3499_v27 = vld [vmem:[#allocation2] sm:$0xff] (!%p4069_p7)  ;;  %3505 = vst [vmem:[%s4974_s30] sm:$0xff] (!%p4069_p7), %v3503_v10  ;;  %3506 = vst [vmem:[%s4974_s30 + $0x8] sm:$0xff] (!%p4069_p7), %v3504_v54 }
0x111c   : > { %3501 = vst [vmem:[%s4969_s14] sm:$0xff] (!%p4069_p7), %v3499_v27 }
0x111d   : > { %v3500_v47 = vld [vmem:[#allocation2 + $0x8] sm:$0xff] (!%p4069_p7) }
0x111e   : > { %3502 = vst [vmem:[%s4969_s14 + $0x8] sm:$0xff] (!%p4069_p7), %v3500_v47 }
0x1122 PF: > { %3523 = sbr.rel (!%p4938_p12) target bundleno = 4398 (0x112e), region = 48  ;;  %s4111_s25 = sshll.u32 (%p4938_p12), %s4957_s20, 5  ;;  %v3547_v21 = vld [vmem:[%s4981_s7] sm:$0xf] (%p4938_p12)  ;;  %v3549_v50 = vld [vmem:[%s4981_s7 + $0x4] sm:$0xf] (%p4938_p12) }
0x1123   : > { %s3529_s30 = sadd.s32 (%p4938_p12), %s4834_s0, %s4111_s25  ;;  %v3551_v51 = vld [vmem:[%s4981_s7 + $0x8] sm:$0xf] (%p4938_p12)  ;;  %v3553_v28 = vld [vmem:[%s4981_s7 + $0xc] sm:$0xf] (%p4938_p12)  ;;  %v3555_v53 = vld [vmem:[%s4981_s7 + $0x10] sm:$0xf] (%p4938_p12) }
0x1124   : > { %s4073_s11 = sshll.u32 (%p4938_p12), %s3529_s30, 2  ;;  %v3557_v29 = vld [vmem:[%s4981_s7 + $0x14] sm:$0xf] (%p4938_p12)  ;;  %v3559_v37 = vld [vmem:[%s4981_s7 + $0x18] sm:$0xf] (%p4938_p12) }
0x1125   : > { %s3531_s27 = scalar_lea.vmem (%p4938_p12), %s6443_s3, %s4073_s11  ;;  %v3561_v40 = vld [vmem:[%s4981_s7 + $0x1c] sm:$0xf] (%p4938_p12)  ;;  %v3563_v56 = vld [vmem:[%s4981_s7 + $0x20] sm:$0xf] (%p4938_p12)  ;;  %v3565_v48 = vld [vmem:[%s4981_s7 + $0x24] sm:$0xf] (%p4938_p12) }
0x1126   : > { %3548 = vst [vmem:[%s3531_s27] sm:$0xf] (%p4938_p12), %v3547_v21  ;;  %3550 = vst [vmem:[%s3531_s27 + $0x8] sm:$0xf] (%p4938_p12), %v3549_v50  ;;  %v3567_v36 = vld [vmem:[%s4981_s7 + $0x28] sm:$0xf] (%p4938_p12) }
0x1127   : > { %3552 = vst [vmem:[%s3531_s27 + $0x10] sm:$0xf] (%p4938_p12), %v3551_v51  ;;  %3554 = vst [vmem:[%s3531_s27 + $0x18] sm:$0xf] (%p4938_p12), %v3553_v28  ;;  %v3569_v5 = vld [vmem:[%s4981_s7 + $0x2c] sm:$0xf] (%p4938_p12) }
0x1128   : > { %3556 = vst [vmem:[%s3531_s27 + $0x20] sm:$0xf] (%p4938_p12), %v3555_v53  ;;  %3558 = vst [vmem:[%s3531_s27 + $0x28] sm:$0xf] (%p4938_p12), %v3557_v29  ;;  %v3571_v6 = vld [vmem:[%s4981_s7 + $0x30] sm:$0xf] (%p4938_p12) }
0x1129   : > { %3560 = vst [vmem:[%s3531_s27 + $0x30] sm:$0xf] %v3559_v37  ;;  %3562 = vst [vmem:[%s3531_s27 + $0x38] sm:$0xf] %v3561_v40  ;;  %v3573_v17 = vld [vmem:[%s4981_s7 + $0x34] sm:$0xf] }
0x112a   : > { %3564 = vst [vmem:[%s3531_s27 + $0x40] sm:$0xf] %v3563_v56  ;;  %3566 = vst [vmem:[%s3531_s27 + $0x48] sm:$0xf] %v3565_v48  ;;  %v3575_v3 = vld [vmem:[%s4981_s7 + $0x38] sm:$0xf] }
0x112b   : > { %3568 = vst [vmem:[%s3531_s27 + $0x50] sm:$0xf] %v3567_v36  ;;  %3570 = vst [vmem:[%s3531_s27 + $0x58] sm:$0xf] %v3569_v5  ;;  %v3577_v0 = vld [vmem:[%s4981_s7 + $0x3c] sm:$0xf] }
0x112c   : > { %3572 = vst [vmem:[%s3531_s27 + $0x60] sm:$0xf] %v3571_v6  ;;  %3574 = vst [vmem:[%s3531_s27 + $0x68] sm:$0xf] %v3573_v17 }
0x112d   : > { %3576 = vst [vmem:[%s3531_s27 + $0x70] sm:$0xf] %v3575_v3  ;;  %3578 = vst [vmem:[%s3531_s27 + $0x78] sm:$0xf] %v3577_v0 }
0x112e PF: > { %s22_s28 = sadd.s32 1, %s4846_s28   ;;  %s6637_s0 = sld [smem:[#allocation12_spill]] }
0x112f   : > { %p19_p8 = scmp.ge.s32.totalorder %s22_s28, 6   ;;  %s6638_s25 = sld [smem:[#allocation8_spill]] }
0x1130   : > { %s6639_s20 = sld [smem:[#allocation9_spill]]  ;;  %s6640_s26 = sld [smem:[#allocation10_spill]] }
0x1131   : > { %s6641_s27 = sld [smem:[#allocation11_spill]]  ;;  %s6642_s23 = smov %s4826_s24 }
0x1132   :  { %21 = sbr.rel (!%p19_p8) target bundleno = 19 (0x13), region = 170 }
0x1134   : > { %s6643_s24 = smov %s6637_s0 }
0x1136   : > { %s6644_s0 = smov %s6639_s20 }

// kernel: bilstm_forward.2
= control target key start
LH: loop header
LB: loop body
LE: loop exit
PB: predicated region body
PF: predicated region fallthrough
CT: control target
= control target key end

     0   :  { %s6093_s0 = inlined_call_operand.vmem [shape: s32[16], index: 0, kind: input, shape index: {}]   ;;  %s6094_s1 = inlined_call_operand.vmem [shape: bf16[2,16,16,512], index: 1, kind: input, shape index: {}]   ;;  %s6095_s2 = inlined_call_operand.vmem [shape: bf16[2,128,512], index: 2, kind: input, shape index: {}]   ;;  %s6096_s3 = inlined_call_operand.vmem [shape: bf16[16,16,256], index: 3, kind: output, shape index: {0}]   ;;  %s6097_s4 = inlined_call_operand.vmem [shape: f32[2,16,128], index: 4, kind: output, shape index: {1}]   ;;  %s6098_s5 = inlined_call_operand.vmem [shape: f32[2,16,128], index: 5, kind: output, shape index: {2}]  }
   0x1   :  { %s11_s20 = sshll.u32 %s6093_s0, 4  ;;  %s12_s20 = int_to_ptr.vmem [resolvable:$true] %s11_s20 }
   0x2   :  { %s4439_s21 = scalar_lea.vmem %s12_s20, 16  ;;  %p4444_p1 = scmp.lt.s32.totalorder %s12_s20, %s12_s20 }
   0x3   :  { %p4440_p0 = scmp.ne.s32.totalorder %s12_s20, %s4439_s21  ;;  %p4445_p2 = scmp.lt.s32.totalorder %s4439_s21, %s4439_s21 }
   0x5   :  { %p4446_p3 = por %p4445_p2, %p4444_p1 }
   0x7   :  { %p4447_p4 = pnand %p4446_p3, %p4440_p0 }
   0x9   :  { %4450 = shalt.err (!%p4447_p4)  }
   0xa   :  { %s4509_s22 = smov [#allocation5]  }
   0xb   :  { %14 = dma.vmem_to_smem %s12_s20, 16, %s4509_s22, [#allocation4] }
   0xc   :  { %4479 = dma.done.wait [#allocation4], 16 }
   0xd   :  { %4480 = vsyncadd [#allocation4], 4294967280 }
   0xe   :  { %16 = sfence }
   0xf   :  { %s4546_s23 = smov 0   ;;  %s4548_s24 = smov 0  }
  0x10   :  { %s4550_s25 = smov 0   ;;  %s4552_s0 = smov 0  }
  0x11   :  { %s4554_s26 = smov 0   ;;  %s4556_s27 = smov 0  }
  0x12   :  { %s4558_s28 = smov 0  }
  0x13 LB: > { %6176 = sst [smem:[#allocation8_spill]] %s4499_s26  ;;  %s31_s29 = sadd.s32 1, %s4499_s26  ;;  %s4507_s28 = sphi %s4558_s28, %s22_s28   ;;  %s4503_s27 = sphi %s4556_s27, %s6294_s27   ;;  %s4499_s26 = sphi %s4554_s26, %s6293_s26   ;;  %s4495_s0 = sphi %s4552_s0, %s6297_s0   ;;  %s4491_s25 = sphi %s4550_s25, %s6291_s25   ;;  %s4487_s24 = sphi %s4548_s24, %s6296_s24   ;;  %s4483_s23 = sphi %s4546_s23, %s6295_s23  }
  0x14   : > { %6177 = sst [smem:[#allocation9_spill]] %s4503_s27  ;;  %p32_p5 = scmp.ge.s32.totalorder %s31_s29, 2 }
  0x15   : > { %s34_s30 = sadd.s32 1, %s4503_s27  ;;  %p98_p6 = scmp.eq.s32.totalorder %s4503_s27, 0 }
  0x16   : > { %s99_s6 = ssub.s32 1, %s4499_s26  ;;  %s6299_s29 = smov (%p32_p5, %s31_s29), 0 }
  0x17   : > { %6178 = sst [smem:[#allocation10_spill]] %s6299_s29  ;;  %s6301_s30 = smov (!%p32_p5, %s34_s30), %s4503_s27 }
  0x18   : > { %s100_s7 = scalar_select %p98_p6, %s4499_s26, %s99_s6 }
  0x19   : > { %s3605_s8 = sadd.s32 4294967295, %s4507_s28   ;;  %p36_p7 = scmp.ge.s32.totalorder %s6301_s30, 2 }
  0x1a   : > { %s102_s9 = ssub.s32 1, %s6299_s29  ;;  %p119_p8 = scmp.ne.s32.totalorder %s4487_s24, %s4483_s23 }
  0x1b   : > { %s6303_s30 = smov (%p36_p7, %s6301_s30), 0  ;;  %p120_p9 = scmp.eq.s32.totalorder %s3605_s8, 3 }
  0x1c   : > { %6179 = sst [smem:[#allocation11_spill]] %s6303_s30  ;;  %p3609_p10 = scmp.ge.s32.totalorder %s4507_s28, 1 }
  0x1d   : > { %p101_p11 = scmp.eq.s32.totalorder %s6303_s30, 0  ;;  %s105_s10 = ssub.s32 %s4503_s27, %s6303_s30 }
  0x1e   : > { %p4599_p12 = por %p120_p9, %p119_p8  ;;  %p224_p13 = scmp.lt.s32.totalorder %s4507_s28, 5 }
  0x1f   : > { %s103_s12 = scalar_select %p101_p11, %s6299_s29, %s102_s9 }
  0x20   : > { %p225_p0 = pnand %p3609_p10, %p224_p13  ;;  %s109_s15 = sadd.s32 1, %s4487_s24 }
  0x21   : > { %s104_s13 = ssub.s32 %s100_s7, %s103_s12 }
  0x22   : > { %s106_s14 = sor.u32 %s105_s10, %s104_s13  ;;  %228 = sbr.rel (%p225_p0) target bundleno = 4394 (0x112a), region = 28 }
  0x23   : > { %p107_p1 = scmp.eq.s32.totalorder %s106_s14, 0 }
  0x25   : > { %s4607_s16 = scalar_select %p107_p1, %s4487_s24, %s109_s15  }
  0x27   : > { %6181 = sst [smem:[#allocation12_spill]] %s4607_s16 }
  0x29   : > { %s255_s17 = sand.u32 1, %s4483_s23   ;;  %p272_p2 = scmp.eq.s32.totalorder %s4495_s0, 0 }
  0x2a   : > { %s3610_s18 = sshll.u32 %s255_s17, 6  ;;  %s6099_s19 = ssub.s32 1, %s4491_s25 }
  0x2b   : > { %p276_p3 = scmp.lt.s32.totalorder %s4495_s0, 1  ;;  %p3621_p5 = scmp.ne.s32.totalorder %s4491_s25, 0 }
  0x2c   : > { %s4618_s20 = scalar_select %p272_p2, %s4491_s25, %s6099_s19 }
  0x2d   : > { %s277_s21 = scalar_select %p276_p3, %s4495_s0, 1 }
  0x2e   : > { %s3611_s22 = sshll.u32 %s4618_s20, 3  ;;  %v4510_v0 = vmov (!%p3621_p5), 0.0  }
  0x2f   : > { %p278_p4 = scmp.lt.s32.totalorder %s3611_s22, 15  ;;  %s3613_s6 = sshll.u32 %s277_s21, 7  ;;  %313 = vst [vmem:[#allocation2] sm:$0xff] (!%p3621_p5), %v4510_v0  ;;  %314 = vst [vmem:[#allocation2 + $0x8] sm:$0xff] (!%p3621_p5), %v4510_v0 }
  0x30   : > { %s3863_s7 = sshll.u32 %s277_s21, 8  ;;  %s3864_s8 = sshll.u32 %s277_s21, 4  ;;  %315 = vst [vmem:[#allocation3] sm:$0xff] (!%p3621_p5), %v4510_v0  ;;  %316 = vst [vmem:[#allocation3 + $0x8] sm:$0xff] (!%p3621_p5), %v4510_v0 }
  0x31   : > { %s6305_s22 = smov (!%p278_p4, %s3611_s22), 15  ;;  %s4625_s23 = scalar_lea.vmem %s6095_s2, %s3863_s7 }
  0x32   : > { %s4630_s14 = scalar_lea.vmem %s6097_s4, %s3864_s8  ;;  %s3612_s15 = sshll.u32 %s6305_s22, 3 }
  0x33   : > { %s4635_s30 = scalar_lea.vmem %s6098_s5, %s3864_s8  ;;  %s282_s29 = sadd.s32 %s3613_s6, %s3612_s15 }
  0x34   : > { %s3614_s27 = sshll.u32 %s282_s29, 2  ;;  %s4642_s7 = scalar_lea.vmem [#allocation6], %s3610_s18 }
  0x35   : > { %s4640_s16 = scalar_lea.vmem %s6094_s1, %s3614_s27  ;;  %312 = sbr.rel (%p3621_p5) target bundleno = 60 (0x3c), region = 32 }
  0x3c PF: > { %v4646_v1 = vld [vmem:[%s4625_s23] sm:$0xff]  ;;  %v4649_v2 = vld [vmem:[%s4625_s23 + $0x8] sm:$0xff]  ;;  %v4652_v3 = vld [vmem:[%s4625_s23 + $0x10] sm:$0xff]  ;;  %v349_v4 = vlaneseq  ;;  %p3622_p6 = scmp.ne.s32.totalorder %s4495_s0, 0 }
  0x3d   : > { %6182 = vst [vmem:[#allocation13_spill] sm:$0xff] %v4646_v1  ;;  %6183 = vst [vmem:[#allocation14_spill] sm:$0xff] %v4649_v2  ;;  %v4655_v5 = vld [vmem:[%s4625_s23 + $0x18] sm:$0xff]  ;;  %v4658_v6 = vld [vmem:[%s4625_s23 + $0x20] sm:$0xff] }
  0x3e   : > { %6184 = vst [vmem:[#allocation15_spill] sm:$0xff] %v4652_v3  ;;  %6185 = vst [vmem:[#allocation16_spill] sm:$0xff] %v4655_v5  ;;  %v4661_v7 = vld [vmem:[%s4625_s23 + $0x28] sm:$0xff]  ;;  %v4664_v8 = vld [vmem:[%s4625_s23 + $0x30] sm:$0xff]  ;;  %v4672_v11 = vshrl.u32 %v349_v4, 7 }
  0x3f   : > { %6186 = vst [vmem:[#allocation17_spill] sm:$0xff] %v4658_v6  ;;  %6187 = vst [vmem:[#allocation18_spill] sm:$0xff] %v4661_v7  ;;  %v4667_v9 = vld [vmem:[%s4625_s23 + $0x38] sm:$0xff]  ;;  %v4670_v10 = vld [vmem:[%s4625_s23 + $0x40] sm:$0xff] }
  0x40   : > { %6188 = vst [vmem:[#allocation19_spill] sm:$0xff] %v4664_v8  ;;  %6189 = vst [vmem:[#allocation20_spill] sm:$0xff] %v4667_v9  ;;  %v4675_v12 = vld [vmem:[%s4625_s23 + $0x48] sm:$0xff]  ;;  %v4678_v13 = vld [vmem:[%s4625_s23 + $0x50] sm:$0xff]  ;;  %v4693_v18 = vadd.s32 8, %v4672_v11 }
  0x41   : > { %6190 = vst [vmem:[#allocation21_spill] sm:$0xff] %v4670_v10  ;;  %6191 = vst [vmem:[#allocation22_spill] sm:$0xff] %v4675_v12  ;;  %v4681_v14 = vld [vmem:[%s4625_s23 + $0x58] sm:$0xff]  ;;  %v4684_v15 = vld [vmem:[%s4625_s23 + $0x60] sm:$0xff] }
  0x42   : > { %6192 = vst [vmem:[#allocation23_spill] sm:$0xff] %v4678_v13  ;;  %6193 = vst [vmem:[#allocation24_spill] sm:$0xff] %v4681_v14  ;;  %v4687_v16 = vld [vmem:[%s4625_s23 + $0x68] sm:$0xff]  ;;  %v4690_v17 = vld [vmem:[%s4625_s23 + $0x70] sm:$0xff] }
  0x43   : > { %6194 = vst [vmem:[#allocation25_spill] sm:$0xff] %v4684_v15  ;;  %6195 = vst [vmem:[#allocation26_spill] sm:$0xff] %v4687_v16  ;;  %v4696_v19 = vld [vmem:[%s4625_s23 + $0x78] sm:$0xff]  ;;  %v4699_v20 = vld [vmem:[%s4625_s23 + $0x80] sm:$0xff] }
  0x44   : > { %6196 = vst [vmem:[#allocation27_spill] sm:$0xff] %v4690_v17  ;;  %6197 = vst [vmem:[#allocation28_spill] sm:$0xff] %v4696_v19  ;;  %v4702_v21 = vld [vmem:[%s4625_s23 + $0x88] sm:$0xff]  ;;  %v4705_v22 = vld [vmem:[%s4625_s23 + $0x90] sm:$0xff] }
  0x45   : > { %6198 = vst [vmem:[#allocation29_spill] sm:$0xff] %v4699_v20  ;;  %6199 = vst [vmem:[#allocation30_spill] sm:$0xff] %v4702_v21  ;;  %v4708_v23 = vld [vmem:[%s4625_s23 + $0x98] sm:$0xff]  ;;  %v4711_v24 = vld [vmem:[%s4625_s23 + $0xa0] sm:$0xff] }
  0x46   : > { %6200 = vst [vmem:[#allocation31_spill] sm:$0xff] %v4705_v22  ;;  %6201 = vst [vmem:[#allocation32_spill] sm:$0xff] %v4708_v23  ;;  %v4714_v25 = vld [vmem:[%s4625_s23 + $0xa8] sm:$0xff]  ;;  %v4717_v26 = vld [vmem:[%s4625_s23 + $0xb0] sm:$0xff]  ;;  %355 = sbr.rel (%p3622_p6) target bundleno = 2223 (0x8af), region = 36 }
  0x47   : > { %6202 = vst [vmem:[#allocation33_spill] sm:$0xff] %v4711_v24  ;;  %6203 = vst [vmem:[#allocation34_spill] sm:$0xff] %v4714_v25  ;;  %v4720_v27 = vld [vmem:[%s4625_s23 + $0xb8] sm:$0xff]  ;;  %v4723_v28 = vld [vmem:[%s4625_s23 + $0xc0] sm:$0xff] }
  0x48   : > { %6204 = vst [vmem:[#allocation35_spill] sm:$0xff] %v4717_v26  ;;  %6205 = vst [vmem:[#allocation36_spill] sm:$0xff] %v4720_v27  ;;  %v4726_v29 = vld [vmem:[%s4625_s23 + $0xc8] sm:$0xff]  ;;  %v4729_v30 = vld [vmem:[%s4625_s23 + $0xd0] sm:$0xff] }
  0x49   : > { %6206 = vst [vmem:[#allocation37_spill] sm:$0xff] %v4723_v28  ;;  %6207 = vst [vmem:[#allocation38_spill] sm:$0xff] %v4726_v29  ;;  %v4732_v31 = vld [vmem:[%s4625_s23 + $0xd8] sm:$0xff]  ;;  %v4735_v32 = vld [vmem:[%s4625_s23 + $0xe0] sm:$0xff] }
  0x4a   : > { %6208 = vst [vmem:[#allocation39_spill] sm:$0xff] %v4729_v30  ;;  %6209 = vst [vmem:[#allocation40_spill] sm:$0xff] %v4732_v31  ;;  %v4738_v33 = vld [vmem:[%s4625_s23 + $0xe8] sm:$0xff]  ;;  %v4741_v34 = vld [vmem:[%s4625_s23 + $0xf0] sm:$0xff] }
  0x4b   : > { %6210 = vst [vmem:[#allocation41_spill] sm:$0xff] %v4735_v32  ;;  %6211 = vst [vmem:[#allocation42_spill] sm:$0xff] %v4738_v33  ;;  %v4744_v35 = vld [vmem:[%s4625_s23 + $0xf8] sm:$0xff] }
  0x4c   : > { %6212 = vst [vmem:[#allocation43_spill] sm:$0xff] %v4741_v34  ;;  %6213 = vst [vmem:[#allocation44_spill] sm:$0xff] %v4744_v35 }
  0x4d   : > { %v4749_v36 = vcombine.high %v4646_v1, %v4652_v3  ;;  %v4753_v37 = vcombine.low %v4646_v1, %v4652_v3  ;;  %v4757_v38 = vcombine.high %v4658_v6, %v4664_v8  ;;  %v4761_v39 = vcombine.high %v4649_v2, %v4655_v5  ;;  %s4956_s26 = sshll.u32 %s4491_s25, 3 }
  0x4e   : > { %v4766_v40 = vcombine.low %v4649_v2, %v4655_v5  ;;  %v4770_v41 = vcombine.high %v4661_v7, %v4667_v9  ;;  %v4775_v42 = vcombine.low %v4658_v6, %v4664_v8  ;;  %v4781_v43 = vcombine.high %v4670_v10, %v4678_v13  ;;  %s676_s27 = sld [smem:[#allocation5 + %s4956_s26]]  ;;  %s841_s29 = sadd.s32 1, %s4956_s26 }
  0x4f   : > { %6214 = vst [vmem:[#allocation45_spill] sm:$0xff] %v4761_v39  ;;  %534 = vmatprep.subr.bf16.mxu0 %v4749_v36  ;;  %577 = vmatprep.subr.bf16.mxu1 %v4761_v39  ;;  %v4786_v44 = vcombine.low %v4661_v7, %v4667_v9  ;;  %v4791_v45 = vcombine.high %v4675_v12, %v4681_v14  ;;  %v6104_v46 = vmov 0   ;;  %s842_s18 = sld [smem:[#allocation5 + %s841_s29]]  ;;  %s1008_s19 = sadd.s32 2, %s4956_s26 }
  0x50   : > { %535 = vmatpush1.bf16.msra.mxu0 %v4753_v37  ;;  %578 = vmatpush1.bf16.msra.mxu1 %v4766_v40  ;;  %v4797_v47 = vcombine.low %v4670_v10, %v4678_v13  ;;  %v4802_v48 = vcombine.high %v4684_v15, %v4690_v17  ;;  %v4807_v49 = vcombine.low %v4675_v12, %v4681_v14  ;;  %s1009_s22 = sld [smem:[#allocation5 + %s1008_s19]]  ;;  %s1175_s6 = sadd.s32 3, %s4956_s26 }
  0x51   : > { %536 = vmatprep.subr.bf16.mxu0 %v4757_v38  ;;  %579 = vmatprep.subr.bf16.mxu1 %v4770_v41  ;;  %v4812_v50 = vcombine.high %v4687_v16, %v4696_v19  ;;  %v4818_v51 = vcombine.low %v4684_v15, %v4690_v17  ;;  %v4823_v52 = vcombine.high %v4699_v20, %v4705_v22  ;;  %s1176_s8 = sld [smem:[#allocation5 + %s1175_s6]]  ;;  %s1342_s9 = sadd.s32 4, %s4956_s26 }
  0x52   : > { %566 = vmatprep.mubr.bf16.mxu0 %v6104_v46  ;;  %609 = vmatprep.mubr.bf16.mxu1 %v6104_v46  ;;  %v4828_v53 = vcombine.low %v4687_v16, %v4696_v19  ;;  %v4833_v54 = vcombine.high %v4702_v21, %v4708_v23  ;;  %v4838_v55 = vcombine.low %v4699_v20, %v4705_v22  ;;  %v364_v16 = vld [vmem:[%s4640_s16 + $0x18] sm:$0xff]  ;;  %s1343_s10 = sld [smem:[#allocation5 + %s1342_s9]]  ;;  %s1509_s23 = sadd.s32 5, %s4956_s26 }
  0x53   : > { %v4843_v56 = vcombine.high %v4711_v24, %v4717_v26  ;;  %v4848_v57 = vcombine.low %v4702_v21, %v4708_v23  ;;  %v4853_v58 = vcombine.high %v4714_v25, %v4720_v27  ;;  %v4858_v59 = vcombine.low %v4711_v24, %v4717_v26  ;;  %v362_v24 = vld [vmem:[%s4640_s16 + $0x8] sm:$0xff]  ;;  %s1510_s12 = sld [smem:[#allocation5 + %s1509_s23]]  ;;  %s1676_s13 = sadd.s32 6, %s4956_s26 }
  0x54   : > { %537 = vmatpush1.bf16.msra.mxu0 %v4775_v42  ;;  %580 = vmatpush1.bf16.msra.mxu1 %v4786_v44  ;;  %v4863_v60 = vcombine.high %v4723_v28, %v4729_v30  ;;  %v4868_v61 = vcombine.low %v4714_v25, %v4720_v27  ;;  %v4873_v62 = vcombine.high %v4726_v29, %v4732_v31  ;;  %v4902_v25 = vld [vmem:[#allocation2 + $0x8] sm:$0xff]  ;;  %v367_v17 = vunpack.c.l.bf16 %v362_v24  ;;  %s1677_s15 = sld [smem:[#allocation5 + %s1676_s13]]  ;;  %s1843_s17 = sadd.s32 7, %s4956_s26 }
  0x55   : > { %538 = vmatprep.subr.bf16.mxu0 %v4781_v43  ;;  %581 = vmatprep.subr.bf16.mxu1 %v4791_v45  ;;  %v4878_v63 = vcombine.low %v4723_v28, %v4729_v30  ;;  %v4883_v0 = vcombine.high %v4735_v32, %v4741_v34  ;;  %v4888_v4 = vcombine.low %v4726_v29, %v4732_v31  ;;  %v4900_v30 = vld [vmem:[#allocation2] sm:$0xff]  ;;  %v371_v5 = vunpack.c.l.bf16 %v364_v16  ;;  %s1844_s21 = sld [smem:[#allocation5 + %s1843_s17]] }
  0x56   : > { %v4893_v46 = vcombine.high %v4738_v33, %v4744_v35  ;;  %v4898_v28 = vcombine.low %v4735_v32, %v4741_v34  ;;  %v4908_v29 = vcombine.low %v4738_v33, %v4744_v35  ;;  %v373_v31 = vpack.c.bf16 %v4902_v25, %v4900_v30  ;;  %v363_v35 = vld [vmem:[%s4640_s16 + $0x10] sm:$0xff] }
  0x57   : > { %v6215_v33 = vmov 0   ;;  %v369_v27 = vunpack.c.l.bf16 %v363_v35  ;;  %v370_v21 = vunpack.c.h.bf16 %v363_v35 }
  0x58   : > { %539 = vmatpush1.bf16.msra.mxu0 %v4797_v47  ;;  %582 = vmatpush1.bf16.msra.mxu1 %v4807_v49 }
  0x59   : > { %540 = vmatprep.subr.bf16.mxu0 %v4802_v48  ;;  %583 = vmatprep.subr.bf16.mxu1 %v4812_v50 }
  0x5c   : > { %541 = vmatpush1.bf16.msra.mxu0 %v4818_v51  ;;  %584 = vmatpush1.bf16.msra.mxu1 %v4828_v53 }
  0x5d   : > { %542 = vmatprep.subr.bf16.mxu0 %v4823_v52  ;;  %585 = vmatprep.subr.bf16.mxu1 %v4833_v54 }
  0x60   : > { %543 = vmatpush1.bf16.msra.mxu0 %v4838_v55  ;;  %586 = vmatpush1.bf16.msra.mxu1 %v4848_v57 }
  0x61   : > { %544 = vmatprep.subr.bf16.mxu0 %v4843_v56  ;;  %587 = vmatprep.subr.bf16.mxu1 %v4853_v58 }
  0x64   : > { %545 = vmatpush1.bf16.msra.mxu0 %v4858_v59  ;;  %588 = vmatpush1.bf16.msra.mxu1 %v4868_v61 }
  0x65   : > { %546 = vmatprep.subr.bf16.mxu0 %v4863_v60  ;;  %589 = vmatprep.subr.bf16.mxu1 %v4873_v62 }
  0x68   : > { %547 = vmatpush1.bf16.msra.mxu0 %v4878_v63  ;;  %590 = vmatpush1.bf16.msra.mxu1 %v4888_v4 }
  0x69   : > { %548 = vmatprep.subr.bf16.mxu0 %v4883_v0  ;;  %591 = vmatprep.subr.bf16.mxu1 %v4893_v46 }
  0x6c   : > { %549 = vmatpush1.bf16.msra.mxu0 %v4898_v28  ;;  %592 = vmatpush1.bf16.msra.mxu1 %v4908_v29 }
  0x6d   : > { %699 = vmatprep.subr.bf16.mxu0 %v4749_v36  ;;  %742 = vmatprep.subr.bf16.mxu1 %v4761_v39 }
  0x6f   : > { %567 = vmatmul.mubr.bf16.vlgmr.msra.gmra.mrb[0].mxu0 %v373_v31  ;;  %610 = vmatmul.mubr.bf16.vlgmr.msra.gmra.mrb[0].mxu1 %v373_v31  ;;  %v361_v31 = vld [vmem:[%s4640_s16] sm:$0xff] }
  0x70   : > { %700 = vmatpush1.bf16.msra.mxu0 %v4753_v37  ;;  %743 = vmatpush1.bf16.msra.mxu1 %v4766_v40  ;;  %v365_v32 = vunpack.c.l.bf16 %v361_v31  ;;  %v366_v34 = vunpack.c.h.bf16 %v361_v31 }
  0x71   : > { %701 = vmatprep.subr.bf16.mxu0 %v4757_v38  ;;  %744 = vmatprep.subr.bf16.mxu1 %v4770_v41 }
  0x72   : > { %731 = vmatprep.mubr.bf16.mxu0 %v6215_v33  ;;  %774 = vmatprep.mubr.bf16.mxu1 %v6215_v33 }
  0x74   : > { %702 = vmatpush1.bf16.msra.mxu0 %v4775_v42  ;;  %745 = vmatpush1.bf16.msra.mxu1 %v4786_v44 }
  0x75   : > { %703 = vmatprep.subr.bf16.mxu0 %v4781_v43  ;;  %746 = vmatprep.subr.bf16.mxu1 %v4791_v45 }
  0x78   : > { %704 = vmatpush1.bf16.msra.mxu0 %v4797_v47  ;;  %747 = vmatpush1.bf16.msra.mxu1 %v4807_v49 }
  0x79   : > { %705 = vmatprep.subr.bf16.mxu0 %v4802_v48  ;;  %748 = vmatprep.subr.bf16.mxu1 %v4812_v50 }
  0x7c   : > { %706 = vmatpush1.bf16.msra.mxu0 %v4818_v51  ;;  %749 = vmatpush1.bf16.msra.mxu1 %v4828_v53 }
  0x7d   : > { %707 = vmatprep.subr.bf16.mxu0 %v4823_v52  ;;  %750 = vmatprep.subr.bf16.mxu1 %v4833_v54 }
  0x80   : > { %708 = vmatpush1.bf16.msra.mxu0 %v4838_v55  ;;  %751 = vmatpush1.bf16.msra.mxu1 %v4848_v57 }
  0x81   : > { %709 = vmatprep.subr.bf16.mxu0 %v4843_v56  ;;  %752 = vmatprep.subr.bf16.mxu1 %v4853_v58 }
  0x84   : > { %710 = vmatpush1.bf16.msra.mxu0 %v4858_v59  ;;  %753 = vmatpush1.bf16.msra.mxu1 %v4868_v61 }
  0x85   : > { %711 = vmatprep.subr.bf16.mxu0 %v4863_v60  ;;  %754 = vmatprep.subr.bf16.mxu1 %v4873_v62 }
  0x88   : > { %712 = vmatpush1.bf16.msra.mxu0 %v4878_v63  ;;  %755 = vmatpush1.bf16.msra.mxu1 %v4888_v4 }
  0x89   : > { %713 = vmatprep.subr.bf16.mxu0 %v4883_v0  ;;  %756 = vmatprep.subr.bf16.mxu1 %v4893_v46 }
  0x8c   : > { %714 = vmatpush1.bf16.msra.mxu0 %v4898_v28  ;;  %757 = vmatpush1.bf16.msra.mxu1 %v4908_v29 }
  0x8d   : > { %866 = vmatprep.subr.bf16.mxu0 %v4749_v36  ;;  %909 = vmatprep.subr.bf16.mxu1 %v4761_v39 }
 0x142   : > { %v568_v26 = vpop.f32.mrb[0].mxu0  ;;  %v611_v22 = vpop.f32.mrb[0].mxu1 }
 0x143   : > { %v620_v23 = vadd.f32 %v568_v26, %v365_v32  ;;  %v570_v20 = vpop.f32.mrb[1].mxu0  ;;  %v613_v12 = vpop.f32.mrb[1].mxu1  ;;  %v622_v26 = vadd.f32 %v611_v22, %v367_v17  ;;  %v368_v32 = vunpack.c.h.bf16 %v362_v24  ;;  %v677_v24 = vstv %s676_s27 }
 0x144   : > { %v621_v19 = vadd.f32 %v570_v20, %v366_v34  ;;  %v572_v15 = vpop.f32.mrb[2].mxu0  ;;  %v615_v7 = vpop.f32.mrb[2].mxu1  ;;  %v372_v34 = vunpack.c.h.bf16 %v364_v16  ;;  %v359_v16 = vld [vmem:[#allocation3] sm:$0xff]  ;;  %vm4960_vm0 = vcmp.lt.s32.totalorder %v4672_v11, %v677_v24  ;;  %vm679_vm1 = vcmp.lt.s32.totalorder %v4693_v18, %v677_v24 }
 0x145   : > { %v3656_v14 = vmul.f32 -1.442695, %v620_v23  ;;  %v624_v10 = vadd.f32 %v572_v15, %v369_v27  ;;  %v574_v13 = vpop.f32.mrb[3].mxu0  ;;  %v617_v31 = vpop.f32.mrb[3].mxu1  ;;  %v626_v20 = vadd.f32 %v615_v7, %v371_v5  ;;  %v3658_v8 = vmul.f32 -1.442695, %v622_v26 }
 0x146   : > { %v3657_v9 = vmul.f32 -1.442695, %v621_v19  ;;  %v625_v2 = vadd.f32 %v574_v13, %v370_v21  ;;  %v623_v23 = vadd.f32 %v613_v12, %v368_v32  ;;  %v627_v27 = vadd.f32 %v617_v31, %v372_v34  ;;  %v360_v26 = vld [vmem:[#allocation3 + $0x8] sm:$0xff] }
 0x147   : > { %3927 = vpow2.f32 %v3656_v14  ;;  %v3659_v6 = vmul.f32 -1.442695, %v624_v10  ;;  %v3661_v15 = vmul.f32 -1.442695, %v626_v20 }
 0x148   : > { %3929 = vpow2.f32 %v3657_v9  ;;  %v3660_v35 = vmul.f32 -1.442695, %v625_v2 }
 0x149   : > { %3931 = vpow2.f32 %v3659_v6 }
 0x14a   : > { %3933 = vpow2.f32 %v3660_v35 }
 0x14b   : > { %3935 = vpow2.f32 %v3658_v8 }
 0x14c   : > { %3937 = vtanh.f32 %v623_v23 }
 0x14d   : > { %3939 = vpow2.f32 %v3661_v15 }
 0x14e   : > { %3941 = vtanh.f32 %v627_v27 }
 0x151   : > { %v3928_v19 = vpop.eup %3927 }
 0x152   : > { %v3930_v13 = vpop.eup %3929  ;;  %v646_v21 = vadd.f32 1.0, %v3928_v19 }
 0x153   : > { %v3932_v10 = vpop.eup %3931  ;;  %v647_v9 = vadd.f32 1.0, %v3930_v13 }
 0x154   : > { %v3934_v2 = vpop.eup %3933  ;;  %3943 = vrcp.f32 %v646_v21  ;;  %v649_v5 = vadd.f32 1.0, %v3932_v10 }
 0x155   : > { %3945 = vrcp.f32 %v647_v9  ;;  %v650_v6 = vadd.f32 1.0, %v3934_v2  ;;  %v3936_v7 = vpop.eup %3935 }
 0x156   : > { %3947 = vrcp.f32 %v649_v5  ;;  %v3938_v8 = vpop.eup %3937  ;;  %v648_v22 = vadd.f32 1.0, %v3936_v7 }
 0x157   : > { %3949 = vrcp.f32 %v650_v6  ;;  %v3940_v12 = vpop.eup %3939 }
 0x158   : > { %v3942_v14 = vpop.eup %3941  ;;  %v651_v23 = vadd.f32 1.0, %v3940_v12  ;;  %3951 = vrcp.f32 %v648_v22 }
 0x15e   : > { %v3944_v17 = vpop.eup %3943 }
 0x15f   : > { %v3946_v31 = vpop.eup %3945  ;;  %v668_v35 = vmul.f32 %v3944_v17, %v3938_v8 }
 0x160   : > { %v3948_v32 = vpop.eup %3947  ;;  %v666_v20 = vmul.f32 %v3946_v31, %v359_v16 }
 0x161   : > { %v3950_v34 = vpop.eup %3949  ;;  %v669_v15 = vmul.f32 %v3948_v32, %v3942_v14 }
 0x162   : > { %v670_v19 = vadd.f32 %v668_v35, %v666_v20  ;;  %v667_v13 = vmul.f32 %v3950_v34, %v360_v26  ;;  %v3952_v2 = vpop.eup %3951  ;;  %v3663_v34 = vld [vmem:[%s4640_s16 + $0x28] sm:$0xff] }
 0x164   : > { %3953 = vtanh.f32 %v670_v19  ;;  %v671_v21 = vadd.f32 %v669_v15, %v667_v13  ;;  %v4967_v10 = vsel %vm4960_vm0, %v670_v19, %v359_v16  ;;  %v3665_v13 = vld [vmem:[%s4640_s16 + $0x38] sm:$0xff] }
 0x165   : > { %3955 = vrcp.f32 %v651_v23  ;;  %v697_v1 = vunpack.c.l.bf16 %v3665_v13 }
 0x166   : > { %3957 = vtanh.f32 %v671_v21  ;;  %v4969_v9 = vsel %vm679_vm1, %v671_v21, %v360_v26 }
 0x16e   : > { %v3954_v5 = vpop.eup %3953 }
 0x16f   : > { %v3956_v6 = vpop.eup %3955  ;;  %v674_v7 = vmul.f32 %v3954_v5, %v3952_v2 }
 0x170   : > { %v3958_v8 = vpop.eup %3957 }
 0x171   : > { %v675_v12 = vmul.f32 %v3958_v8, %v3956_v6  ;;  %v4974_v14 = vsel %vm4960_vm0, %v674_v7, %v4900_v30  ;;  %v3664_v30 = vld [vmem:[%s4640_s16 + $0x30] sm:$0xff]  ;;  %v693_v8 = vunpack.c.l.bf16 %v3663_v34 }
 0x172   : > { %v695_v31 = vunpack.c.l.bf16 %v3664_v30  ;;  %v696_v32 = vunpack.c.h.bf16 %v3664_v30  ;;  %v694_v30 = vunpack.c.h.bf16 %v3663_v34 }
 0x173   : > { %v4977_v17 = vsel %vm679_vm1, %v675_v12, %v4902_v25  ;;  %v3662_v25 = vld [vmem:[%s4640_s16 + $0x20] sm:$0xff] }
 0x174   : > { %v684_v16 = vpack.c.bf16 %v4977_v17, %v4974_v14  ;;  %v691_v22 = vunpack.c.l.bf16 %v3662_v25  ;;  %v692_v24 = vunpack.c.h.bf16 %v3662_v25 }
 0x176   : > { %685 = vst [vmem:[%s4642_s7] sm:$0xff] %v684_v16  ;;  %732 = vmatmul.mubr.bf16.vlgmr.msra.gmra.mrb[4].mxu0 %v684_v16  ;;  %775 = vmatmul.mubr.bf16.vlgmr.msra.gmra.mrb[4].mxu1 %v684_v16 }
 0x177   : > { %867 = vmatpush1.bf16.msra.mxu0 %v4753_v37  ;;  %910 = vmatpush1.bf16.msra.mxu1 %v4766_v40 }
 0x178   : > { %868 = vmatprep.subr.bf16.mxu0 %v4757_v38  ;;  %911 = vmatprep.subr.bf16.mxu1 %v4770_v41 }
 0x179   : > { %898 = vmatprep.mubr.bf16.mxu0 %v6215_v33  ;;  %941 = vmatprep.mubr.bf16.mxu1 %v6215_v33 }
 0x17b   : > { %869 = vmatpush1.bf16.msra.mxu0 %v4775_v42  ;;  %912 = vmatpush1.bf16.msra.mxu1 %v4786_v44 }
 0x17c   : > { %870 = vmatprep.subr.bf16.mxu0 %v4781_v43  ;;  %913 = vmatprep.subr.bf16.mxu1 %v4791_v45 }
 0x17f   : > { %871 = vmatpush1.bf16.msra.mxu0 %v4797_v47  ;;  %914 = vmatpush1.bf16.msra.mxu1 %v4807_v49 }
 0x180   : > { %872 = vmatprep.subr.bf16.mxu0 %v4802_v48  ;;  %915 = vmatprep.subr.bf16.mxu1 %v4812_v50 }
 0x183   : > { %873 = vmatpush1.bf16.msra.mxu0 %v4818_v51  ;;  %916 = vmatpush1.bf16.msra.mxu1 %v4828_v53 }
 0x184   : > { %874 = vmatprep.subr.bf16.mxu0 %v4823_v52  ;;  %917 = vmatprep.subr.bf16.mxu1 %v4833_v54 }
 0x187   : > { %875 = vmatpush1.bf16.msra.mxu0 %v4838_v55  ;;  %918 = vmatpush1.bf16.msra.mxu1 %v4848_v57 }
 0x188   : > { %876 = vmatprep.subr.bf16.mxu0 %v4843_v56  ;;  %919 = vmatprep.subr.bf16.mxu1 %v4853_v58 }
 0x18b   : > { %877 = vmatpush1.bf16.msra.mxu0 %v4858_v59  ;;  %920 = vmatpush1.bf16.msra.mxu1 %v4868_v61 }
 0x18c   : > { %878 = vmatprep.subr.bf16.mxu0 %v4863_v60  ;;  %921 = vmatprep.subr.bf16.mxu1 %v4873_v62 }
 0x18f   : > { %879 = vmatpush1.bf16.msra.mxu0 %v4878_v63  ;;  %922 = vmatpush1.bf16.msra.mxu1 %v4888_v4 }
 0x190   : > { %880 = vmatprep.subr.bf16.mxu0 %v4883_v0  ;;  %923 = vmatprep.subr.bf16.mxu1 %v4893_v46 }
 0x193   : > { %881 = vmatpush1.bf16.msra.mxu0 %v4898_v28  ;;  %924 = vmatpush1.bf16.msra.mxu1 %v4908_v29 }
 0x194   : > { %1033 = vmatprep.subr.bf16.mxu0 %v4749_v36  ;;  %1076 = vmatprep.subr.bf16.mxu1 %v4761_v39 }
 0x249   : > { %v733_v35 = vpop.f32.mrb[4].mxu0  ;;  %v776_v26 = vpop.f32.mrb[4].mxu1 }
 0x24a   : > { %v785_v20 = vadd.f32 %v733_v35, %v691_v22  ;;  %v735_v23 = vpop.f32.mrb[5].mxu0  ;;  %v778_v15 = vpop.f32.mrb[5].mxu1  ;;  %v787_v22 = vadd.f32 %v776_v26, %v693_v8  ;;  %v843_v8 = vstv %s842_s18 }
 0x24b   : > { %v786_v27 = vadd.f32 %v735_v23, %v692_v24  ;;  %v737_v19 = vpop.f32.mrb[6].mxu0  ;;  %v780_v21 = vpop.f32.mrb[6].mxu1  ;;  %v788_v24 = vadd.f32 %v778_v15, %v694_v30  ;;  %v698_v23 = vunpack.c.h.bf16 %v3665_v13  ;;  %vm5023_vm2 = vcmp.lt.s32.totalorder %v4672_v11, %v843_v8 }
 0x24c   : > { %v3666_v2 = vmul.f32 -1.442695, %v785_v20  ;;  %v789_v5 = vadd.f32 %v737_v19, %v695_v31  ;;  %v739_v6 = vpop.f32.mrb[7].mxu0  ;;  %v782_v7 = vpop.f32.mrb[7].mxu1  ;;  %v791_v35 = vadd.f32 %v780_v21, %v697_v1  ;;  %v3668_v20 = vmul.f32 -1.442695, %v787_v22 }
 0x24d   : > { %v3667_v12 = vmul.f32 -1.442695, %v786_v27  ;;  %v790_v16 = vadd.f32 %v739_v6, %v696_v32  ;;  %v792_v39 = vadd.f32 %v782_v7, %v698_v23  ;;  %vm845_vm3 = vcmp.lt.s32.totalorder %v4693_v18, %v843_v8 }
 0x24e   : > { %3959 = vpow2.f32 %v3666_v2  ;;  %v3669_v25 = vmul.f32 -1.442695, %v789_v5  ;;  %v3671_v31 = vmul.f32 -1.442695, %v791_v35 }
 0x24f   : > { %v3670_v3 = vmul.f32 -1.442695, %v790_v16  ;;  %3961 = vpow2.f32 %v3667_v12 }
 0x250   : > { %3963 = vpow2.f32 %v3669_v25 }
 0x251   : > { %3965 = vpow2.f32 %v3670_v3 }
 0x252   : > { %3967 = vtanh.f32 %v788_v24 }
 0x253   : > { %3969 = vpow2.f32 %v3668_v20 }
 0x254   : > { %3971 = vpow2.f32 %v3671_v31 }
 0x258   : > { %v3960_v19 = vpop.eup %3959 }
 0x259   : > { %v811_v27 = vadd.f32 1.0, %v3960_v19  ;;  %v3962_v32 = vpop.eup %3961 }
 0x25a   : > { %v3964_v2 = vpop.eup %3963  ;;  %v812_v5 = vadd.f32 1.0, %v3962_v32 }
 0x25b   : > { %3973 = vrcp.f32 %v811_v27  ;;  %v814_v26 = vadd.f32 1.0, %v3964_v2  ;;  %v3966_v1 = vpop.eup %3965 }
 0x25c   : > { %3975 = vtanh.f32 %v792_v39  ;;  %v815_v3 = vadd.f32 1.0, %v3966_v1  ;;  %v3968_v34 = vpop.eup %3967 }
 0x25d   : > { %3977 = vrcp.f32 %v812_v5  ;;  %v3970_v15 = vpop.eup %3969 }
 0x25e   : > { %3979 = vrcp.f32 %v814_v26  ;;  %v3972_v13 = vpop.eup %3971  ;;  %v813_v16 = vadd.f32 1.0, %v3970_v15 }
 0x25f   : > { %3981 = vrcp.f32 %v815_v3  ;;  %v816_v23 = vadd.f32 1.0, %v3972_v13 }
 0x260   : > { %3983 = vrcp.f32 %v813_v16 }
 0x265   : > { %v3974_v21 = vpop.eup %3973 }
 0x266   : > { %v3976_v6 = vpop.eup %3975  ;;  %v833_v7 = vmul.f32 %v3974_v21, %v3968_v34 }
 0x267   : > { %v3978_v12 = vpop.eup %3977 }
 0x268   : > { %v3980_v25 = vpop.eup %3979  ;;  %v831_v30 = vmul.f32 %v3978_v12, %v4967_v10 }
 0x269   : > { %v834_v22 = vmul.f32 %v3980_v25, %v3976_v6  ;;  %v3982_v35 = vpop.eup %3981  ;;  %v3674_v25 = vld [vmem:[%s4640_s16 + $0x48] sm:$0xff] }
 0x26a   : > { %v835_v24 = vadd.f32 %v833_v7, %v831_v30  ;;  %v832_v20 = vmul.f32 %v3982_v35, %v4969_v9  ;;  %v3984_v32 = vpop.eup %3983 }
 0x26c   : > { %3985 = vtanh.f32 %v835_v24  ;;  %v5032_v31 = vsel %vm5023_vm2, %v835_v24, %v4967_v10  ;;  %v836_v19 = vadd.f32 %v834_v22, %v832_v20  ;;  %v3676_v24 = vld [vmem:[%s4640_s16 + $0x58] sm:$0xff] }
 0x26d   : > { %3987 = vrcp.f32 %v816_v23 }
 0x26e   : > { %3989 = vtanh.f32 %v836_v19  ;;  %v5035_v27 = vsel %vm845_vm3, %v836_v19, %v4969_v9  ;;  %v6220_v9 = vld [vmem:[#allocation45_spill] sm:$0xff] }
 0x276   : > { %v3986_v2 = vpop.eup %3985 }
 0x277   : > { %v839_v5 = vmul.f32 %v3986_v2, %v3984_v32  ;;  %v3988_v26 = vpop.eup %3987 }
 0x278   : > { %v3990_v1 = vpop.eup %3989 }
 0x279   : > { %v840_v3 = vmul.f32 %v3990_v1, %v3988_v26  ;;  %v5040_v34 = vsel %vm5023_vm2, %v839_v5, %v4974_v14  ;;  %v3673_v14 = vld [vmem:[%s4640_s16 + $0x40] sm:$0xff]  ;;  %v860_v5 = vunpack.c.l.bf16 %v3674_v25 }
 0x27a   : > { %v858_v13 = vunpack.c.l.bf16 %v3673_v14  ;;  %v859_v21 = vunpack.c.h.bf16 %v3673_v14 }
 0x27b   : > { %v5043_v10 = vsel %vm845_vm3, %v840_v3, %v4977_v17  ;;  %v3675_v17 = vld [vmem:[%s4640_s16 + $0x50] sm:$0xff] }
 0x27c   : > { %v850_v15 = vpack.c.bf16 %v5043_v10, %v5040_v34  ;;  %v862_v6 = vunpack.c.l.bf16 %v3675_v17  ;;  %v863_v12 = vunpack.c.h.bf16 %v3675_v17  ;;  %v861_v17 = vunpack.c.h.bf16 %v3674_v25 }
 0x27e   : > { %3672 = vst [vmem:[%s4642_s7 + $0x8] sm:$0xff] %v850_v15  ;;  %899 = vmatmul.mubr.bf16.vlgmr.msra.gmra.mrb[8].mxu0 %v850_v15  ;;  %942 = vmatmul.mubr.bf16.vlgmr.msra.gmra.mrb[8].mxu1 %v850_v15  ;;  %v864_v15 = vunpack.c.l.bf16 %v3676_v24 }
 0x27f   : > { %1034 = vmatpush1.bf16.msra.mxu0 %v4753_v37  ;;  %1077 = vmatpush1.bf16.msra.mxu1 %v4766_v40 }
 0x280   : > { %1035 = vmatprep.subr.bf16.mxu0 %v4757_v38  ;;  %1078 = vmatprep.subr.bf16.mxu1 %v4770_v41 }
 0x281   : > { %1065 = vmatprep.mubr.bf16.mxu0 %v6215_v33  ;;  %1108 = vmatprep.mubr.bf16.mxu1 %v6215_v33 }
 0x283   : > { %1036 = vmatpush1.bf16.msra.mxu0 %v4775_v42  ;;  %1079 = vmatpush1.bf16.msra.mxu1 %v4786_v44 }
 0x284   : > { %1037 = vmatprep.subr.bf16.mxu0 %v4781_v43  ;;  %1080 = vmatprep.subr.bf16.mxu1 %v4791_v45 }
 0x287   : > { %1038 = vmatpush1.bf16.msra.mxu0 %v4797_v47  ;;  %1081 = vmatpush1.bf16.msra.mxu1 %v4807_v49 }
 0x288   : > { %1039 = vmatprep.subr.bf16.mxu0 %v4802_v48  ;;  %1082 = vmatprep.subr.bf16.mxu1 %v4812_v50 }
 0x28b   : > { %1040 = vmatpush1.bf16.msra.mxu0 %v4818_v51  ;;  %1083 = vmatpush1.bf16.msra.mxu1 %v4828_v53 }
 0x28c   : > { %1041 = vmatprep.subr.bf16.mxu0 %v4823_v52  ;;  %1084 = vmatprep.subr.bf16.mxu1 %v4833_v54 }
 0x28f   : > { %1042 = vmatpush1.bf16.msra.mxu0 %v4838_v55  ;;  %1085 = vmatpush1.bf16.msra.mxu1 %v4848_v57 }
 0x290   : > { %1043 = vmatprep.subr.bf16.mxu0 %v4843_v56  ;;  %1086 = vmatprep.subr.bf16.mxu1 %v4853_v58 }
 0x293   : > { %1044 = vmatpush1.bf16.msra.mxu0 %v4858_v59  ;;  %1087 = vmatpush1.bf16.msra.mxu1 %v4868_v61 }
 0x294   : > { %1045 = vmatprep.subr.bf16.mxu0 %v4863_v60  ;;  %1088 = vmatprep.subr.bf16.mxu1 %v4873_v62 }
 0x297   : > { %1046 = vmatpush1.bf16.msra.mxu0 %v4878_v63  ;;  %1089 = vmatpush1.bf16.msra.mxu1 %v4888_v4 }
 0x298   : > { %1047 = vmatprep.subr.bf16.mxu0 %v4883_v0  ;;  %1090 = vmatprep.subr.bf16.mxu1 %v4893_v46 }
 0x29b   : > { %1048 = vmatpush1.bf16.msra.mxu0 %v4898_v28  ;;  %1091 = vmatpush1.bf16.msra.mxu1 %v4908_v29 }
 0x29c   : > { %1200 = vmatprep.subr.bf16.mxu0 %v4749_v36  ;;  %1243 = vmatprep.subr.bf16.mxu1 %v6220_v9 }
 0x351   : > { %v900_v7 = vpop.f32.mrb[8].mxu0  ;;  %v943_v8 = vpop.f32.mrb[8].mxu1 }
 0x352   : > { %v952_v16 = vadd.f32 %v900_v7, %v858_v13  ;;  %v902_v30 = vpop.f32.mrb[9].mxu0  ;;  %v945_v22 = vpop.f32.mrb[9].mxu1  ;;  %v954_v13 = vadd.f32 %v943_v8, %v860_v5 }
 0x353   : > { %v953_v39 = vadd.f32 %v902_v30, %v859_v21  ;;  %v904_v35 = vpop.f32.mrb[10].mxu0  ;;  %v947_v23 = vpop.f32.mrb[10].mxu1  ;;  %v955_v21 = vadd.f32 %v945_v22, %v861_v17  ;;  %v865_v30 = vunpack.c.h.bf16 %v3676_v24 }
 0x354   : > { %v3677_v20 = vmul.f32 -1.442695, %v952_v16  ;;  %v956_v19 = vadd.f32 %v904_v35, %v862_v6  ;;  %v906_v32 = vpop.f32.mrb[11].mxu0  ;;  %v949_v2 = vpop.f32.mrb[11].mxu1  ;;  %v958_v7 = vadd.f32 %v947_v23, %v864_v15  ;;  %v3679_v16 = vmul.f32 -1.442695, %v954_v13 }
 0x355   : > { %v3678_v26 = vmul.f32 -1.442695, %v953_v39  ;;  %v957_v1 = vadd.f32 %v906_v32, %v863_v12  ;;  %v959_v9 = vadd.f32 %v949_v2, %v865_v30 }
 0x356   : > { %3991 = vpow2.f32 %v3677_v20  ;;  %v3680_v3 = vmul.f32 -1.442695, %v956_v19  ;;  %v3682_v6 = vmul.f32 -1.442695, %v958_v7 }
 0x357   : > { %v3681_v14 = vmul.f32 -1.442695, %v957_v1  ;;  %3993 = vpow2.f32 %v3678_v26  ;;  %v1010_v1 = vstv %s1009_s22 }
 0x358   : > { %3995 = vpow2.f32 %v3680_v3  ;;  %vm5089_vm4 = vcmp.lt.s32.totalorder %v4672_v11, %v1010_v1  ;;  %vm1012_vm5 = vcmp.lt.s32.totalorder %v4693_v18, %v1010_v1 }
 0x359   : > { %3997 = vpow2.f32 %v3681_v14 }
 0x35a   : > { %3999 = vtanh.f32 %v955_v21 }
 0x35b   : > { %4001 = vpow2.f32 %v3679_v16 }
 0x35c   : > { %4003 = vpow2.f32 %v3682_v6 }
 0x360   : > { %v3992_v35 = vpop.eup %3991 }
 0x361   : > { %v978_v39 = vadd.f32 1.0, %v3992_v35  ;;  %v3994_v12 = vpop.eup %3993 }
 0x362   : > { %v3996_v20 = vpop.eup %3995  ;;  %v979_v19 = vadd.f32 1.0, %v3994_v12 }
 0x363   : > { %4005 = vrcp.f32 %v978_v39  ;;  %v981_v8 = vadd.f32 1.0, %v3996_v20  ;;  %v3998_v25 = vpop.eup %3997 }
 0x364   : > { %4007 = vtanh.f32 %v959_v9  ;;  %v982_v22 = vadd.f32 1.0, %v3998_v25  ;;  %v4000_v24 = vpop.eup %3999 }
 0x365   : > { %4009 = vrcp.f32 %v979_v19  ;;  %v4002_v23 = vpop.eup %4001 }
 0x366   : > { %4011 = vrcp.f32 %v981_v8  ;;  %v4004_v32 = vpop.eup %4003  ;;  %v980_v15 = vadd.f32 1.0, %v4002_v23 }
 0x367   : > { %4013 = vrcp.f32 %v982_v22  ;;  %v983_v30 = vadd.f32 1.0, %v4004_v32 }
 0x368   : > { %4015 = vrcp.f32 %v980_v15 }
 0x36d   : > { %v4006_v2 = vpop.eup %4005 }
 0x36e   : > { %v4008_v5 = vpop.eup %4007  ;;  %v1000_v26 = vmul.f32 %v4006_v2, %v4000_v24 }
 0x36f   : > { %v4010_v3 = vpop.eup %4009 }
 0x370   : > { %v4012_v14 = vpop.eup %4011  ;;  %v998_v17 = vmul.f32 %v4010_v3, %v5032_v31 }
 0x371   : > { %v1001_v13 = vmul.f32 %v4012_v14, %v4008_v5  ;;  %v4014_v7 = vpop.eup %4013  ;;  %v3685_v14 = vld [vmem:[%s4640_s16 + $0x68] sm:$0xff] }
 0x372   : > { %v1002_v21 = vadd.f32 %v1000_v26, %v998_v17  ;;  %v999_v16 = vmul.f32 %v4014_v7, %v5035_v27  ;;  %v4016_v12 = vpop.eup %4015 }
 0x374   : > { %4017 = vtanh.f32 %v1002_v21  ;;  %v5098_v6 = vsel %vm5089_vm4, %v1002_v21, %v5032_v31  ;;  %v1003_v35 = vadd.f32 %v1001_v13, %v999_v16  ;;  %v3687_v21 = vld [vmem:[%s4640_s16 + $0x78] sm:$0xff] }
 0x375   : > { %4019 = vrcp.f32 %v983_v30 }
 0x376   : > { %4021 = vtanh.f32 %v1003_v35  ;;  %v5101_v39 = vsel %vm1012_vm5, %v1003_v35, %v5035_v27  ;;  %v6223_v27 = vld [vmem:[#allocation45_spill] sm:$0xff] }
 0x37e   : > { %v4018_v20 = vpop.eup %4017 }
 0x37f   : > { %v1006_v19 = vmul.f32 %v4018_v20, %v4016_v12  ;;  %v4020_v8 = vpop.eup %4019 }
 0x380   : > { %v4022_v25 = vpop.eup %4021 }
 0x381   : > { %v1007_v22 = vmul.f32 %v4022_v25, %v4020_v8  ;;  %v5106_v24 = vsel %vm5089_vm4, %v1006_v19, %v5040_v34  ;;  %v3684_v34 = vld [vmem:[%s4640_s16 + $0x60] sm:$0xff]  ;;  %v1027_v19 = vunpack.c.l.bf16 %v3685_v14 }
 0x382   : > { %v1025_v32 = vunpack.c.l.bf16 %v3684_v34  ;;  %v1026_v2 = vunpack.c.h.bf16 %v3684_v34 }
 0x383   : > { %v5109_v31 = vsel %vm1012_vm5, %v1007_v22, %v5043_v10  ;;  %v3686_v10 = vld [vmem:[%s4640_s16 + $0x70] sm:$0xff] }
 0x384   : > { %v1017_v23 = vpack.c.bf16 %v5109_v31, %v5106_v24  ;;  %v1029_v5 = vunpack.c.l.bf16 %v3686_v10  ;;  %v1030_v3 = vunpack.c.h.bf16 %v3686_v10  ;;  %v1028_v10 = vunpack.c.h.bf16 %v3685_v14 }
 0x386   : > { %3683 = vst [vmem:[%s4642_s7 + $0x10] sm:$0xff] %v1017_v23  ;;  %1066 = vmatmul.mubr.bf16.vlgmr.msra.gmra.mrb[12].mxu0 %v1017_v23  ;;  %1109 = vmatmul.mubr.bf16.vlgmr.msra.gmra.mrb[12].mxu1 %v1017_v23  ;;  %v1031_v23 = vunpack.c.l.bf16 %v3687_v21 }
 0x387   : > { %1201 = vmatpush1.bf16.msra.mxu0 %v4753_v37  ;;  %1244 = vmatpush1.bf16.msra.mxu1 %v4766_v40 }
 0x388   : > { %1202 = vmatprep.subr.bf16.mxu0 %v4757_v38  ;;  %1245 = vmatprep.subr.bf16.mxu1 %v4770_v41 }
 0x389   : > { %1232 = vmatprep.mubr.bf16.mxu0 %v6215_v33  ;;  %1275 = vmatprep.mubr.bf16.mxu1 %v6215_v33 }
 0x38b   : > { %1203 = vmatpush1.bf16.msra.mxu0 %v4775_v42  ;;  %1246 = vmatpush1.bf16.msra.mxu1 %v4786_v44 }
 0x38c   : > { %1204 = vmatprep.subr.bf16.mxu0 %v4781_v43  ;;  %1247 = vmatprep.subr.bf16.mxu1 %v4791_v45 }
 0x38f   : > { %1205 = vmatpush1.bf16.msra.mxu0 %v4797_v47  ;;  %1248 = vmatpush1.bf16.msra.mxu1 %v4807_v49 }
 0x390   : > { %1206 = vmatprep.subr.bf16.mxu0 %v4802_v48  ;;  %1249 = vmatprep.subr.bf16.mxu1 %v4812_v50 }
 0x393   : > { %1207 = vmatpush1.bf16.msra.mxu0 %v4818_v51  ;;  %1250 = vmatpush1.bf16.msra.mxu1 %v4828_v53 }
 0x394   : > { %1208 = vmatprep.subr.bf16.mxu0 %v4823_v52  ;;  %1251 = vmatprep.subr.bf16.mxu1 %v4833_v54 }
 0x397   : > { %1209 = vmatpush1.bf16.msra.mxu0 %v4838_v55  ;;  %1252 = vmatpush1.bf16.msra.mxu1 %v4848_v57 }
 0x398   : > { %1210 = vmatprep.subr.bf16.mxu0 %v4843_v56  ;;  %1253 = vmatprep.subr.bf16.mxu1 %v4853_v58 }
 0x39b   : > { %1211 = vmatpush1.bf16.msra.mxu0 %v4858_v59  ;;  %1254 = vmatpush1.bf16.msra.mxu1 %v4868_v61 }
 0x39c   : > { %1212 = vmatprep.subr.bf16.mxu0 %v4863_v60  ;;  %1255 = vmatprep.subr.bf16.mxu1 %v4873_v62 }
 0x39f   : > { %1213 = vmatpush1.bf16.msra.mxu0 %v4878_v63  ;;  %1256 = vmatpush1.bf16.msra.mxu1 %v4888_v4 }
 0x3a0   : > { %1214 = vmatprep.subr.bf16.mxu0 %v4883_v0  ;;  %1257 = vmatprep.subr.bf16.mxu1 %v4893_v46 }
 0x3a3   : > { %1215 = vmatpush1.bf16.msra.mxu0 %v4898_v28  ;;  %1258 = vmatpush1.bf16.msra.mxu1 %v4908_v29 }
 0x3a4   : > { %1367 = vmatprep.subr.bf16.mxu0 %v4749_v36  ;;  %1410 = vmatprep.subr.bf16.mxu1 %v6223_v27 }
 0x459   : > { %v1067_v26 = vpop.f32.mrb[12].mxu0  ;;  %v1110_v1 = vpop.f32.mrb[12].mxu1 }
 0x45a   : > { %v1119_v15 = vadd.f32 %v1067_v26, %v1025_v32  ;;  %v1069_v17 = vpop.f32.mrb[13].mxu0  ;;  %v1112_v13 = vpop.f32.mrb[13].mxu1  ;;  %v1121_v32 = vadd.f32 %v1110_v1, %v1027_v19 }
 0x45b   : > { %v1120_v9 = vadd.f32 %v1069_v17, %v1026_v2  ;;  %v1071_v7 = vpop.f32.mrb[14].mxu0  ;;  %v1114_v30 = vpop.f32.mrb[14].mxu1  ;;  %v1122_v2 = vadd.f32 %v1112_v13, %v1028_v10  ;;  %v1032_v17 = vunpack.c.h.bf16 %v3687_v21 }
 0x45c   : > { %v3688_v16 = vmul.f32 -1.442695, %v1119_v15  ;;  %v1123_v35 = vadd.f32 %v1071_v7, %v1029_v5  ;;  %v1073_v12 = vpop.f32.mrb[15].mxu0  ;;  %v1116_v20 = vpop.f32.mrb[15].mxu1  ;;  %v1125_v26 = vadd.f32 %v1114_v30, %v1031_v23  ;;  %v3690_v15 = vmul.f32 -1.442695, %v1121_v32 }
 0x45d   : > { %v3689_v8 = vmul.f32 -1.442695, %v1120_v9  ;;  %v1124_v25 = vadd.f32 %v1073_v12, %v1030_v3  ;;  %v1126_v27 = vadd.f32 %v1116_v20, %v1032_v17 }
 0x45e   : > { %4023 = vpow2.f32 %v3688_v16  ;;  %v3691_v22 = vmul.f32 -1.442695, %v1123_v35  ;;  %v3693_v5 = vmul.f32 -1.442695, %v1125_v26 }
 0x45f   : > { %v3692_v34 = vmul.f32 -1.442695, %v1124_v25  ;;  %4025 = vpow2.f32 %v3689_v8  ;;  %v1177_v25 = vstv %s1176_s8 }
 0x460   : > { %4027 = vpow2.f32 %v3691_v22  ;;  %vm5155_vm6 = vcmp.lt.s32.totalorder %v4672_v11, %v1177_v25  ;;  %vm1179_vm7 = vcmp.lt.s32.totalorder %v4693_v18, %v1177_v25 }
 0x461   : > { %4029 = vpow2.f32 %v3692_v34 }
 0x462   : > { %4031 = vtanh.f32 %v1122_v2 }
 0x463   : > { %4033 = vpow2.f32 %v3690_v15 }
 0x464   : > { %4035 = vpow2.f32 %v3693_v5 }
 0x468   : > { %v4024_v7 = vpop.eup %4023 }
 0x469   : > { %v1145_v9 = vadd.f32 1.0, %v4024_v7  ;;  %v4026_v3 = vpop.eup %4025 }
 0x46a   : > { %v4028_v16 = vpop.eup %4027  ;;  %v1146_v35 = vadd.f32 1.0, %v4026_v3 }
 0x46b   : > { %4037 = vrcp.f32 %v1145_v9  ;;  %v1148_v1 = vadd.f32 1.0, %v4028_v16  ;;  %v4030_v14 = vpop.eup %4029 }
 0x46c   : > { %4039 = vtanh.f32 %v1126_v27  ;;  %v1149_v13 = vadd.f32 1.0, %v4030_v14  ;;  %v4032_v21 = vpop.eup %4031 }
 0x46d   : > { %4041 = vrcp.f32 %v1146_v35  ;;  %v4034_v30 = vpop.eup %4033 }
 0x46e   : > { %4043 = vrcp.f32 %v1148_v1  ;;  %v4036_v12 = vpop.eup %4035  ;;  %v1147_v23 = vadd.f32 1.0, %v4034_v30 }
 0x46f   : > { %4045 = vrcp.f32 %v1149_v13  ;;  %v1150_v17 = vadd.f32 1.0, %v4036_v12 }
 0x470   : > { %4047 = vrcp.f32 %v1147_v23 }
 0x475   : > { %v4038_v20 = vpop.eup %4037 }
 0x476   : > { %v4040_v19 = vpop.eup %4039  ;;  %v1167_v8 = vmul.f32 %v4038_v20, %v4032_v21 }
 0x477   : > { %v4042_v22 = vpop.eup %4041 }
 0x478   : > { %v4044_v34 = vpop.eup %4043  ;;  %v1165_v10 = vmul.f32 %v4042_v22, %v5098_v6 }
 0x479   : > { %v1168_v32 = vmul.f32 %v4044_v34, %v4040_v19  ;;  %v4046_v26 = vpop.eup %4045  ;;  %v3696_v34 = vld [vmem:[%s4640_s16 + $0x88] sm:$0xff] }
 0x47a   : > { %v1169_v2 = vadd.f32 %v1167_v8, %v1165_v10  ;;  %v1166_v15 = vmul.f32 %v4046_v26, %v5101_v39  ;;  %v4048_v3 = vpop.eup %4047 }
 0x47c   : > { %4049 = vtanh.f32 %v1169_v2  ;;  %v5164_v5 = vsel %vm5155_vm6, %v1169_v2, %v5098_v6  ;;  %v1170_v7 = vadd.f32 %v1168_v32, %v1166_v15  ;;  %v3698_v2 = vld [vmem:[%s4640_s16 + $0x98] sm:$0xff] }
 0x47d   : > { %4051 = vrcp.f32 %v1150_v17 }
 0x47e   : > { %4053 = vtanh.f32 %v1170_v7  ;;  %v5167_v9 = vsel %vm1179_vm7, %v1170_v7, %v5101_v39  ;;  %v6226_v39 = vld [vmem:[#allocation45_spill] sm:$0xff] }
 0x486   : > { %v4050_v16 = vpop.eup %4049 }
 0x487   : > { %v1173_v35 = vmul.f32 %v4050_v16, %v4048_v3  ;;  %v4052_v1 = vpop.eup %4051 }
 0x488   : > { %v4054_v14 = vpop.eup %4053 }
 0x489   : > { %v1174_v13 = vmul.f32 %v4054_v14, %v4052_v1  ;;  %v5172_v21 = vsel %vm5155_vm6, %v1173_v35, %v5106_v24  ;;  %v3695_v24 = vld [vmem:[%s4640_s16 + $0x80] sm:$0xff]  ;;  %v1194_v35 = vunpack.c.l.bf16 %v3696_v34 }
 0x48a   : > { %v1192_v12 = vunpack.c.l.bf16 %v3695_v24  ;;  %v1193_v20 = vunpack.c.h.bf16 %v3695_v24 }
 0x48b   : > { %v5175_v6 = vsel %vm1179_vm7, %v1174_v13, %v5109_v31  ;;  %v3697_v31 = vld [vmem:[%s4640_s16 + $0x90] sm:$0xff] }
 0x48c   : > { %v1184_v30 = vpack.c.bf16 %v5175_v6, %v5172_v21  ;;  %v1196_v19 = vunpack.c.l.bf16 %v3697_v31  ;;  %v1197_v22 = vunpack.c.h.bf16 %v3697_v31  ;;  %v1195_v31 = vunpack.c.h.bf16 %v3696_v34 }
 0x48e   : > { %3694 = vst [vmem:[%s4642_s7 + $0x18] sm:$0xff] %v1184_v30  ;;  %1233 = vmatmul.mubr.bf16.vlgmr.msra.gmra.mrb[16].mxu0 %v1184_v30  ;;  %1276 = vmatmul.mubr.bf16.vlgmr.msra.gmra.mrb[16].mxu1 %v1184_v30  ;;  %v1198_v30 = vunpack.c.l.bf16 %v3698_v2 }
 0x48f   : > { %1368 = vmatpush1.bf16.msra.mxu0 %v4753_v37  ;;  %1411 = vmatpush1.bf16.msra.mxu1 %v4766_v40 }
 0x490   : > { %1369 = vmatprep.subr.bf16.mxu0 %v4757_v38  ;;  %1412 = vmatprep.subr.bf16.mxu1 %v4770_v41 }
 0x491   : > { %1399 = vmatprep.mubr.bf16.mxu0 %v6215_v33  ;;  %1442 = vmatprep.mubr.bf16.mxu1 %v6215_v33 }
 0x493   : > { %1370 = vmatpush1.bf16.msra.mxu0 %v4775_v42  ;;  %1413 = vmatpush1.bf16.msra.mxu1 %v4786_v44 }
 0x494   : > { %1371 = vmatprep.subr.bf16.mxu0 %v4781_v43  ;;  %1414 = vmatprep.subr.bf16.mxu1 %v4791_v45 }
 0x497   : > { %1372 = vmatpush1.bf16.msra.mxu0 %v4797_v47  ;;  %1415 = vmatpush1.bf16.msra.mxu1 %v4807_v49 }
 0x498   : > { %1373 = vmatprep.subr.bf16.mxu0 %v4802_v48  ;;  %1416 = vmatprep.subr.bf16.mxu1 %v4812_v50 }
 0x49b   : > { %1374 = vmatpush1.bf16.msra.mxu0 %v4818_v51  ;;  %1417 = vmatpush1.bf16.msra.mxu1 %v4828_v53 }
 0x49c   : > { %1375 = vmatprep.subr.bf16.mxu0 %v4823_v52  ;;  %1418 = vmatprep.subr.bf16.mxu1 %v4833_v54 }
 0x49f   : > { %1376 = vmatpush1.bf16.msra.mxu0 %v4838_v55  ;;  %1419 = vmatpush1.bf16.msra.mxu1 %v4848_v57 }
 0x4a0   : > { %1377 = vmatprep.subr.bf16.mxu0 %v4843_v56  ;;  %1420 = vmatprep.subr.bf16.mxu1 %v4853_v58 }
 0x4a3   : > { %1378 = vmatpush1.bf16.msra.mxu0 %v4858_v59  ;;  %1421 = vmatpush1.bf16.msra.mxu1 %v4868_v61 }
 0x4a4   : > { %1379 = vmatprep.subr.bf16.mxu0 %v4863_v60  ;;  %1422 = vmatprep.subr.bf16.mxu1 %v4873_v62 }
 0x4a7   : > { %1380 = vmatpush1.bf16.msra.mxu0 %v4878_v63  ;;  %1423 = vmatpush1.bf16.msra.mxu1 %v4888_v4 }
 0x4a8   : > { %1381 = vmatprep.subr.bf16.mxu0 %v4883_v0  ;;  %1424 = vmatprep.subr.bf16.mxu1 %v4893_v46 }
 0x4ab   : > { %1382 = vmatpush1.bf16.msra.mxu0 %v4898_v28  ;;  %1425 = vmatpush1.bf16.msra.mxu1 %v4908_v29 }
 0x4ac   : > { %1534 = vmatprep.subr.bf16.mxu0 %v4749_v36  ;;  %1577 = vmatprep.subr.bf16.mxu1 %v6226_v39 }
 0x561   : > { %v1234_v8 = vpop.f32.mrb[16].mxu0  ;;  %v1277_v25 = vpop.f32.mrb[16].mxu1 }
 0x562   : > { %v1286_v23 = vadd.f32 %v1234_v8, %v1192_v12  ;;  %v1236_v10 = vpop.f32.mrb[17].mxu0  ;;  %v1279_v32 = vpop.f32.mrb[17].mxu1  ;;  %v1288_v12 = vadd.f32 %v1277_v25, %v1194_v35 }
 0x563   : > { %v1287_v27 = vadd.f32 %v1236_v10, %v1193_v20  ;;  %v1238_v26 = vpop.f32.mrb[18].mxu0  ;;  %v1281_v17 = vpop.f32.mrb[18].mxu1  ;;  %v1289_v20 = vadd.f32 %v1279_v32, %v1195_v31  ;;  %v1199_v10 = vunpack.c.h.bf16 %v3698_v2 }
 0x564   : > { %v3699_v15 = vmul.f32 -1.442695, %v1286_v23  ;;  %v1290_v7 = vadd.f32 %v1238_v26, %v1196_v19  ;;  %v1240_v3 = vpop.f32.mrb[19].mxu0  ;;  %v1283_v16 = vpop.f32.mrb[19].mxu1  ;;  %v1292_v8 = vadd.f32 %v1281_v17, %v1198_v30  ;;  %v3701_v23 = vmul.f32 -1.442695, %v1288_v12 }
 0x565   : > { %v3700_v1 = vmul.f32 -1.442695, %v1287_v27  ;;  %v1291_v14 = vadd.f32 %v1240_v3, %v1197_v22  ;;  %v1293_v39 = vadd.f32 %v1283_v16, %v1199_v10 }
 0x566   : > { %4055 = vpow2.f32 %v3699_v15  ;;  %v3702_v13 = vmul.f32 -1.442695, %v1290_v7  ;;  %v3704_v19 = vmul.f32 -1.442695, %v1292_v8 }
 0x567   : > { %v3703_v24 = vmul.f32 -1.442695, %v1291_v14  ;;  %4057 = vpow2.f32 %v3700_v1  ;;  %v1344_v14 = vstv %s1343_s10 }
 0x568   : > { %4059 = vpow2.f32 %v3702_v13  ;;  %vm5221_vm8 = vcmp.lt.s32.totalorder %v4672_v11, %v1344_v14  ;;  %vm1346_vm9 = vcmp.lt.s32.totalorder %v4693_v18, %v1344_v14 }
 0x569   : > { %4061 = vpow2.f32 %v3703_v24 }
 0x56a   : > { %4063 = vtanh.f32 %v1289_v20 }
 0x56b   : > { %4065 = vpow2.f32 %v3701_v23 }
 0x56c   : > { %4067 = vpow2.f32 %v3704_v19 }
 0x570   : > { %v4056_v26 = vpop.eup %4055 }
 0x571   : > { %v1312_v27 = vadd.f32 1.0, %v4056_v26  ;;  %v4058_v22 = vpop.eup %4057 }
 0x572   : > { %v4060_v15 = vpop.eup %4059  ;;  %v1313_v7 = vadd.f32 1.0, %v4058_v22 }
 0x573   : > { %4069 = vrcp.f32 %v1312_v27  ;;  %v1315_v25 = vadd.f32 1.0, %v4060_v15  ;;  %v4062_v34 = vpop.eup %4061 }
 0x574   : > { %4071 = vtanh.f32 %v1293_v39  ;;  %v1316_v32 = vadd.f32 1.0, %v4062_v34  ;;  %v4064_v2 = vpop.eup %4063 }
 0x575   : > { %4073 = vrcp.f32 %v1313_v7  ;;  %v4066_v17 = vpop.eup %4065 }
 0x576   : > { %4075 = vrcp.f32 %v1315_v25  ;;  %v4068_v3 = vpop.eup %4067  ;;  %v1314_v30 = vadd.f32 1.0, %v4066_v17 }
 0x577   : > { %4077 = vrcp.f32 %v1316_v32  ;;  %v1317_v10 = vadd.f32 1.0, %v4068_v3 }
 0x578   : > { %4079 = vrcp.f32 %v1314_v30 }
 0x57d   : > { %v4070_v16 = vpop.eup %4069 }
 0x57e   : > { %v4072_v35 = vpop.eup %4071  ;;  %v1334_v1 = vmul.f32 %v4070_v16, %v4064_v2 }
 0x57f   : > { %v4074_v13 = vpop.eup %4073 }
 0x580   : > { %v4076_v24 = vpop.eup %4075  ;;  %v1332_v31 = vmul.f32 %v4074_v13, %v5164_v5 }
 0x581   : > { %v1335_v12 = vmul.f32 %v4076_v24, %v4072_v35  ;;  %v4078_v8 = vpop.eup %4077  ;;  %v3707_v24 = vld [vmem:[%s4640_s16 + $0xa8] sm:$0xff] }
 0x582   : > { %v1336_v20 = vadd.f32 %v1334_v1, %v1332_v31  ;;  %v1333_v23 = vmul.f32 %v4078_v8, %v5167_v9  ;;  %v4080_v22 = vpop.eup %4079 }
 0x584   : > { %4081 = vtanh.f32 %v1336_v20  ;;  %v5230_v19 = vsel %vm5221_vm8, %v1336_v20, %v5164_v5  ;;  %v1337_v26 = vadd.f32 %v1335_v12, %v1333_v23  ;;  %v3709_v20 = vld [vmem:[%s4640_s16 + $0xb8] sm:$0xff] }
 0x585   : > { %4083 = vrcp.f32 %v1317_v10 }
 0x586   : > { %4085 = vtanh.f32 %v1337_v26  ;;  %v5233_v27 = vsel %vm1346_vm9, %v1337_v26, %v5167_v9  ;;  %v6229_v9 = vld [vmem:[#allocation45_spill] sm:$0xff] }
 0x58e   : > { %v4082_v15 = vpop.eup %4081 }
 0x58f   : > { %v1340_v7 = vmul.f32 %v4082_v15, %v4080_v22  ;;  %v4084_v25 = vpop.eup %4083  ;;  %v1361_v15 = vunpack.c.l.bf16 %v3707_v24 }
 0x590   : > { %v4086_v34 = vpop.eup %4085 }
 0x591   : > { %v1341_v32 = vmul.f32 %v4086_v34, %v4084_v25  ;;  %v5238_v2 = vsel %vm5221_vm8, %v1340_v7, %v5172_v21  ;;  %v3706_v21 = vld [vmem:[%s4640_s16 + $0xa0] sm:$0xff] }
 0x592   : > { %v1359_v3 = vunpack.c.l.bf16 %v3706_v21  ;;  %v1360_v16 = vunpack.c.h.bf16 %v3706_v21 }
 0x593   : > { %v5241_v5 = vsel %vm1346_vm9, %v1341_v32, %v5175_v6  ;;  %v3708_v6 = vld [vmem:[%s4640_s16 + $0xb0] sm:$0xff]  ;;  %v1365_v32 = vunpack.c.l.bf16 %v3709_v20 }
 0x594   : > { %v1351_v17 = vpack.c.bf16 %v5241_v5, %v5238_v2  ;;  %v1363_v35 = vunpack.c.l.bf16 %v3708_v6  ;;  %v1364_v13 = vunpack.c.h.bf16 %v3708_v6 }
 0x596   : > { %3705 = vst [vmem:[%s4642_s7 + $0x20] sm:$0xff] %v1351_v17  ;;  %1400 = vmatmul.mubr.bf16.vlgmr.msra.gmra.mrb[20].mxu0 %v1351_v17  ;;  %1443 = vmatmul.mubr.bf16.vlgmr.msra.gmra.mrb[20].mxu1 %v1351_v17 }
 0x597   : > { %1535 = vmatpush1.bf16.msra.mxu0 %v4753_v37  ;;  %1578 = vmatpush1.bf16.msra.mxu1 %v4766_v40 }
 0x598   : > { %1536 = vmatprep.subr.bf16.mxu0 %v4757_v38  ;;  %1579 = vmatprep.subr.bf16.mxu1 %v4770_v41 }
 0x599   : > { %1566 = vmatprep.mubr.bf16.mxu0 %v6215_v33  ;;  %1609 = vmatprep.mubr.bf16.mxu1 %v6215_v33 }
 0x59b   : > { %1537 = vmatpush1.bf16.msra.mxu0 %v4775_v42  ;;  %1580 = vmatpush1.bf16.msra.mxu1 %v4786_v44 }
 0x59c   : > { %1538 = vmatprep.subr.bf16.mxu0 %v4781_v43  ;;  %1581 = vmatprep.subr.bf16.mxu1 %v4791_v45 }
 0x59f   : > { %1539 = vmatpush1.bf16.msra.mxu0 %v4797_v47  ;;  %1582 = vmatpush1.bf16.msra.mxu1 %v4807_v49 }
 0x5a0   : > { %1540 = vmatprep.subr.bf16.mxu0 %v4802_v48  ;;  %1583 = vmatprep.subr.bf16.mxu1 %v4812_v50 }
 0x5a3   : > { %1541 = vmatpush1.bf16.msra.mxu0 %v4818_v51  ;;  %1584 = vmatpush1.bf16.msra.mxu1 %v4828_v53 }
 0x5a4   : > { %1542 = vmatprep.subr.bf16.mxu0 %v4823_v52  ;;  %1585 = vmatprep.subr.bf16.mxu1 %v4833_v54 }
 0x5a7   : > { %1543 = vmatpush1.bf16.msra.mxu0 %v4838_v55  ;;  %1586 = vmatpush1.bf16.msra.mxu1 %v4848_v57 }
 0x5a8   : > { %1544 = vmatprep.subr.bf16.mxu0 %v4843_v56  ;;  %1587 = vmatprep.subr.bf16.mxu1 %v4853_v58 }
 0x5ab   : > { %1545 = vmatpush1.bf16.msra.mxu0 %v4858_v59  ;;  %1588 = vmatpush1.bf16.msra.mxu1 %v4868_v61 }
 0x5ac   : > { %1546 = vmatprep.subr.bf16.mxu0 %v4863_v60  ;;  %1589 = vmatprep.subr.bf16.mxu1 %v4873_v62 }
 0x5af   : > { %1547 = vmatpush1.bf16.msra.mxu0 %v4878_v63  ;;  %1590 = vmatpush1.bf16.msra.mxu1 %v4888_v4 }
 0x5b0   : > { %1548 = vmatprep.subr.bf16.mxu0 %v4883_v0  ;;  %1591 = vmatprep.subr.bf16.mxu1 %v4893_v46 }
 0x5b3   : > { %1549 = vmatpush1.bf16.msra.mxu0 %v4898_v28  ;;  %1592 = vmatpush1.bf16.msra.mxu1 %v4908_v29 }
 0x5b4   : > { %1701 = vmatprep.subr.bf16.mxu0 %v4749_v36  ;;  %1744 = vmatprep.subr.bf16.mxu1 %v6229_v9  ;;  %v1362_v9 = vunpack.c.h.bf16 %v3707_v24 }
 0x669   : > { %v1401_v1 = vpop.f32.mrb[20].mxu0  ;;  %v1444_v14 = vpop.f32.mrb[20].mxu1 }
 0x66a   : > { %v1453_v30 = vadd.f32 %v1401_v1, %v1359_v3  ;;  %v1403_v31 = vpop.f32.mrb[21].mxu0  ;;  %v1446_v12 = vpop.f32.mrb[21].mxu1  ;;  %v1455_v21 = vadd.f32 %v1444_v14, %v1361_v15 }
 0x66b   : > { %v1454_v39 = vadd.f32 %v1403_v31, %v1360_v16  ;;  %v1405_v8 = vpop.f32.mrb[22].mxu0  ;;  %v1448_v10 = vpop.f32.mrb[22].mxu1  ;;  %v1456_v3 = vadd.f32 %v1446_v12, %v1362_v9  ;;  %v1366_v16 = vunpack.c.h.bf16 %v3709_v20 }
 0x66c   : > { %v3710_v36 = vmul.f32 -1.442695, %v1453_v30  ;;  %v1457_v23 = vadd.f32 %v1405_v8, %v1363_v35  ;;  %v1407_v26 = vpop.f32.mrb[23].mxu0  ;;  %v1450_v22 = vpop.f32.mrb[23].mxu1  ;;  %v1459_v6 = vadd.f32 %v1448_v10, %v1365_v32  ;;  %v3712_v1 = vmul.f32 -1.442695, %v1455_v21 }
 0x66d   : > { %v3711_v7 = vmul.f32 -1.442695, %v1454_v39  ;;  %v1458_v25 = vadd.f32 %v1407_v26, %v1364_v13  ;;  %v1460_v31 = vadd.f32 %v1450_v22, %v1366_v16 }
 0x66e   : > { %4087 = vpow2.f32 %v3710_v36  ;;  %v3713_v34 = vmul.f32 -1.442695, %v1457_v23  ;;  %v3715_v35 = vmul.f32 -1.442695, %v1459_v6 }
 0x66f   : > { %v3714_v17 = vmul.f32 -1.442695, %v1458_v25  ;;  %4089 = vpow2.f32 %v3711_v7  ;;  %v1511_v7 = vstv %s1510_s12 }
 0x670   : > { %4091 = vpow2.f32 %v3713_v34  ;;  %vm5287_vm10 = vcmp.lt.s32.totalorder %v4672_v11, %v1511_v7  ;;  %vm1513_vm11 = vcmp.lt.s32.totalorder %v4693_v18, %v1511_v7 }
 0x671   : > { %4093 = vpow2.f32 %v3714_v17 }
 0x672   : > { %4095 = vtanh.f32 %v1456_v3 }
 0x673   : > { %4097 = vpow2.f32 %v3712_v1 }
 0x674   : > { %4099 = vpow2.f32 %v3715_v35 }
 0x678   : > { %v4088_v30 = vpop.eup %4087 }
 0x679   : > { %v1479_v39 = vadd.f32 1.0, %v4088_v30  ;;  %v4090_v13 = vpop.eup %4089 }
 0x67a   : > { %v4092_v8 = vpop.eup %4091  ;;  %v1480_v36 = vadd.f32 1.0, %v4090_v13 }
 0x67b   : > { %4101 = vrcp.f32 %v1479_v39  ;;  %v1482_v14 = vadd.f32 1.0, %v4092_v8  ;;  %v4094_v24 = vpop.eup %4093 }
 0x67c   : > { %4103 = vtanh.f32 %v1460_v31  ;;  %v1483_v12 = vadd.f32 1.0, %v4094_v24  ;;  %v4096_v20 = vpop.eup %4095 }
 0x67d   : > { %4105 = vrcp.f32 %v1480_v36  ;;  %v4098_v10 = vpop.eup %4097 }
 0x67e   : > { %4107 = vrcp.f32 %v1482_v14  ;;  %v4100_v23 = vpop.eup %4099  ;;  %v1481_v34 = vadd.f32 1.0, %v4098_v10 }
 0x67f   : > { %4109 = vrcp.f32 %v1483_v12  ;;  %v1484_v16 = vadd.f32 1.0, %v4100_v23 }
 0x680   : > { %4111 = vrcp.f32 %v1481_v34 }
 0x685   : > { %v4102_v26 = vpop.eup %4101 }
 0x686   : > { %v4104_v22 = vpop.eup %4103  ;;  %v1501_v15 = vmul.f32 %v4102_v26, %v4096_v20 }
 0x687   : > { %v4106_v25 = vpop.eup %4105 }
 0x688   : > { %v4108_v32 = vpop.eup %4107  ;;  %v1499_v17 = vmul.f32 %v4106_v25, %v5230_v19 }
 0x689   : > { %v1502_v9 = vmul.f32 %v4108_v32, %v4104_v22  ;;  %v4110_v6 = vpop.eup %4109 }
 0x68a   : > { %v1503_v3 = vadd.f32 %v1501_v15, %v1499_v17  ;;  %v1500_v1 = vmul.f32 %v4110_v6, %v5233_v27  ;;  %v4112_v39 = vpop.eup %4111 }
 0x68c   : > { %4113 = vtanh.f32 %v1503_v3  ;;  %v5296_v35 = vsel %vm5287_vm10, %v1503_v3, %v5230_v19  ;;  %v1504_v30 = vadd.f32 %v1502_v9, %v1500_v1 }
 0x68d   : > { %4115 = vrcp.f32 %v1484_v16  ;;  %v1678_v16 = vstv %s1677_s15 }
 0x68e   : > { %4117 = vtanh.f32 %v1504_v30  ;;  %v5299_v31 = vsel %vm1513_vm11, %v1504_v30, %v5233_v27  ;;  %vm5351_vm12 = vcmp.lt.s32.totalorder %v4672_v11, %v1678_v16  ;;  %vm1680_vm13 = vcmp.lt.s32.totalorder %v4693_v18, %v1678_v16 }
 0x696   : > { %v4114_v13 = vpop.eup %4113 }
 0x697   : > { %v1507_v8 = vmul.f32 %v4114_v13, %v4112_v39  ;;  %v4116_v36 = vpop.eup %4115 }
 0x698   : > { %v4118_v14 = vpop.eup %4117 }
 0x699   : > { %v1508_v24 = vmul.f32 %v4118_v14, %v4116_v36  ;;  %v5304_v12 = vsel %vm5287_vm10, %v1507_v8, %v5238_v2 }
 0x69b   : > { %v5307_v19 = vsel %vm1513_vm11, %v1508_v24, %v5241_v5 }
 0x69c   : > { %v1518_v20 = vpack.c.bf16 %v5307_v19, %v5304_v12 }
 0x69e   : > { %3716 = vst [vmem:[%s4642_s7 + $0x28] sm:$0xff] %v1518_v20  ;;  %1567 = vmatmul.mubr.bf16.vlgmr.msra.gmra.mrb[24].mxu0 %v1518_v20  ;;  %1610 = vmatmul.mubr.bf16.vlgmr.msra.gmra.mrb[24].mxu1 %v1518_v20 }
 0x69f   : > { %1702 = vmatpush1.bf16.msra.mxu0 %v4753_v37  ;;  %1745 = vmatpush1.bf16.msra.mxu1 %v4766_v40  ;;  %v3719_v37 = vld [vmem:[%s4640_s16 + $0xd0] sm:$0xff] }
 0x6a0   : > { %1703 = vmatprep.subr.bf16.mxu0 %v4757_v38  ;;  %1746 = vmatprep.subr.bf16.mxu1 %v4770_v41  ;;  %v1530_v41 = vunpack.c.l.bf16 %v3719_v37 }
 0x6a1   : > { %1733 = vmatprep.mubr.bf16.mxu0 %v6215_v33  ;;  %1776 = vmatprep.mubr.bf16.mxu1 %v6215_v33  ;;  %v3717_v33 = vld [vmem:[%s4640_s16 + $0xc0] sm:$0xff] }
 0x6a2   : > { %v1526_v38 = vunpack.c.l.bf16 %v3717_v33  ;;  %v1527_v40 = vunpack.c.h.bf16 %v3717_v33 }
 0x6a3   : > { %1704 = vmatpush1.bf16.msra.mxu0 %v4775_v42  ;;  %1747 = vmatpush1.bf16.msra.mxu1 %v4786_v44  ;;  %v1531_v44 = vunpack.c.h.bf16 %v3719_v37 }
 0x6a4   : > { %1705 = vmatprep.subr.bf16.mxu0 %v4781_v43  ;;  %1748 = vmatprep.subr.bf16.mxu1 %v4791_v45 }
 0x6a7   : > { %1706 = vmatpush1.bf16.msra.mxu0 %v4797_v47  ;;  %1749 = vmatpush1.bf16.msra.mxu1 %v4807_v49  ;;  %v3718_v47 = vld [vmem:[%s4640_s16 + $0xc8] sm:$0xff] }
 0x6a8   : > { %1707 = vmatprep.subr.bf16.mxu0 %v4802_v48  ;;  %1750 = vmatprep.subr.bf16.mxu1 %v4812_v50 }
 0x6ab   : > { %1708 = vmatpush1.bf16.msra.mxu0 %v4818_v51  ;;  %1751 = vmatpush1.bf16.msra.mxu1 %v4828_v53 }
 0x6ac   : > { %1709 = vmatprep.subr.bf16.mxu0 %v4823_v52  ;;  %1752 = vmatprep.subr.bf16.mxu1 %v4833_v54 }
 0x6af   : > { %1710 = vmatpush1.bf16.msra.mxu0 %v4838_v55  ;;  %1753 = vmatpush1.bf16.msra.mxu1 %v4848_v57  ;;  %v1528_v55 = vunpack.c.l.bf16 %v3718_v47 }
 0x6b0   : > { %1711 = vmatprep.subr.bf16.mxu0 %v4843_v56  ;;  %1754 = vmatprep.subr.bf16.mxu1 %v4853_v58 }
 0x6b3   : > { %1712 = vmatpush1.bf16.msra.mxu0 %v4858_v59  ;;  %1755 = vmatpush1.bf16.msra.mxu1 %v4868_v61  ;;  %v1529_v61 = vunpack.c.h.bf16 %v3718_v47 }
 0x6b4   : > { %1713 = vmatprep.subr.bf16.mxu0 %v4863_v60  ;;  %1756 = vmatprep.subr.bf16.mxu1 %v4873_v62 }
 0x6b7   : > { %1714 = vmatpush1.bf16.msra.mxu0 %v4878_v63  ;;  %1757 = vmatpush1.bf16.msra.mxu1 %v4888_v4 }
 0x6b8   : > { %1715 = vmatprep.subr.bf16.mxu0 %v4883_v0  ;;  %1758 = vmatprep.subr.bf16.mxu1 %v4893_v46  ;;  %v3720_v46 = vld [vmem:[%s4640_s16 + $0xd8] sm:$0xff] }
 0x6b9   : > { %v1532_v59 = vunpack.c.l.bf16 %v3720_v46  ;;  %v1533_v4 = vunpack.c.h.bf16 %v3720_v46 }
 0x6bb   : > { %1716 = vmatpush1.bf16.msra.mxu0 %v4898_v28  ;;  %1759 = vmatpush1.bf16.msra.mxu1 %v4908_v29 }
 0x771   : > { %v1568_v42 = vpop.f32.mrb[24].mxu0  ;;  %v1611_v43 = vpop.f32.mrb[24].mxu1 }
 0x772   : > { %v1620_v45 = vadd.f32 %v1568_v42, %v1526_v38  ;;  %v1570_v48 = vpop.f32.mrb[25].mxu0  ;;  %v1613_v49 = vpop.f32.mrb[25].mxu1  ;;  %v1622_v62 = vadd.f32 %v1611_v43, %v1528_v55 }
 0x773   : > { %v1621_v50 = vadd.f32 %v1570_v48, %v1527_v40  ;;  %v1572_v51 = vpop.f32.mrb[26].mxu0  ;;  %v1615_v52 = vpop.f32.mrb[26].mxu1  ;;  %v1623_v0 = vadd.f32 %v1613_v49, %v1529_v61 }
 0x774   : > { %v3721_v28 = vmul.f32 -1.442695, %v1620_v45  ;;  %v1624_v53 = vadd.f32 %v1572_v51, %v1530_v41  ;;  %v1574_v54 = vpop.f32.mrb[27].mxu0  ;;  %v1617_v29 = vpop.f32.mrb[27].mxu1  ;;  %v1626_v63 = vadd.f32 %v1615_v52, %v1532_v59  ;;  %v3723_v27 = vmul.f32 -1.442695, %v1622_v62 }
 0x775   : > { %v3722_v56 = vmul.f32 -1.442695, %v1621_v50  ;;  %v1625_v57 = vadd.f32 %v1574_v54, %v1531_v44  ;;  %v1627_v10 = vadd.f32 %v1617_v29, %v1533_v4  ;;  %v3730_v50 = vld [vmem:[%s4640_s16 + $0xf0] sm:$0xff]  ;;  %v3729_v29 = vld [vmem:[%s4640_s16 + $0xe8] sm:$0xff] }
 0x776   : > { %4119 = vpow2.f32 %v3721_v28  ;;  %v3724_v58 = vmul.f32 -1.442695, %v1624_v53  ;;  %v3726_v2 = vmul.f32 -1.442695, %v1626_v63  ;;  %v1697_v52 = vunpack.c.l.bf16 %v3730_v50 }
 0x777   : > { %v3725_v60 = vmul.f32 -1.442695, %v1625_v57  ;;  %4121 = vpow2.f32 %v3722_v56  ;;  %v1698_v54 = vunpack.c.h.bf16 %v3730_v50 }
 0x778   : > { %4123 = vpow2.f32 %v3724_v58  ;;  %v3731_v58 = vld [vmem:[%s4640_s16 + $0xf8] sm:$0xff] }
 0x779   : > { %4125 = vpow2.f32 %v3725_v60 }
 0x77a   : > { %4127 = vtanh.f32 %v1623_v0  ;;  %v1695_v0 = vunpack.c.l.bf16 %v3729_v29 }
 0x77b   : > { %4129 = vpow2.f32 %v3723_v27 }
 0x77c   : > { %4131 = vpow2.f32 %v3726_v2 }
 0x780   : > { %v4120_v5 = vpop.eup %4119 }
 0x781   : > { %v1646_v23 = vadd.f32 1.0, %v4120_v5  ;;  %v4122_v26 = vpop.eup %4121  ;;  %v1699_v5 = vunpack.c.l.bf16 %v3731_v58 }
 0x782   : > { %v4124_v22 = vpop.eup %4123  ;;  %v1647_v15 = vadd.f32 1.0, %v4122_v26 }
 0x783   : > { %4133 = vrcp.f32 %v1646_v23  ;;  %v1649_v7 = vadd.f32 1.0, %v4124_v22  ;;  %v4126_v25 = vpop.eup %4125  ;;  %v1696_v23 = vunpack.c.h.bf16 %v3729_v29 }
 0x784   : > { %4135 = vtanh.f32 %v1627_v10  ;;  %v1650_v34 = vadd.f32 1.0, %v4126_v25  ;;  %v4128_v32 = vpop.eup %4127 }
 0x785   : > { %4137 = vrcp.f32 %v1647_v15  ;;  %v4130_v17 = vpop.eup %4129 }
 0x786   : > { %4139 = vrcp.f32 %v1649_v7  ;;  %v4132_v9 = vpop.eup %4131  ;;  %v1648_v30 = vadd.f32 1.0, %v4130_v17  ;;  %v1700_v7 = vunpack.c.h.bf16 %v3731_v58 }
 0x787   : > { %4141 = vrcp.f32 %v1650_v34  ;;  %v1651_v20 = vadd.f32 1.0, %v4132_v9 }
 0x788   : > { %4143 = vrcp.f32 %v1648_v30 }
 0x78d   : > { %v4134_v21 = vpop.eup %4133 }
 0x78e   : > { %v4136_v6 = vpop.eup %4135  ;;  %v1668_v3 = vmul.f32 %v4134_v21, %v4128_v32 }
 0x78f   : > { %v4138_v1 = vpop.eup %4137 }
 0x790   : > { %v4140_v39 = vpop.eup %4139  ;;  %v1666_v13 = vmul.f32 %v4138_v1, %v5296_v35 }
 0x791   : > { %v1669_v8 = vmul.f32 %v4140_v39, %v4136_v6  ;;  %v4142_v14 = vpop.eup %4141 }
 0x792   : > { %v1670_v24 = vadd.f32 %v1668_v3, %v1666_v13  ;;  %v1667_v33 = vmul.f32 %v4142_v14, %v5299_v31  ;;  %v4144_v41 = vpop.eup %4143 }
 0x794   : > { %4145 = vtanh.f32 %v1670_v24  ;;  %v5360_v37 = vsel %vm5351_vm12, %v1670_v24, %v5296_v35  ;;  %v1671_v38 = vadd.f32 %v1669_v8, %v1667_v33 }
 0x795   : > { %4147 = vrcp.f32 %v1651_v20  ;;  %v1845_v20 = vstv %s1844_s21 }
 0x796   : > { %4149 = vtanh.f32 %v1671_v38  ;;  %v5363_v40 = vsel %vm1680_vm13, %v1671_v38, %v5299_v31  ;;  %v3728_v31 = vld [vmem:[%s4640_s16 + $0xe0] sm:$0xff]  ;;  %vm5383_vm14 = vcmp.lt.s32.totalorder %v4672_v11, %v1845_v20  ;;  %vm1847_vm15 = vcmp.lt.s32.totalorder %v4693_v18, %v1845_v20 }
 0x797   : > { %v1693_v51 = vunpack.c.l.bf16 %v3728_v31  ;;  %v1694_v46 = vunpack.c.h.bf16 %v3728_v31 }
 0x79e   : > { %v4146_v42 = vpop.eup %4145 }
 0x79f   : > { %v1674_v43 = vmul.f32 %v4146_v42, %v4144_v41  ;;  %v4148_v44 = vpop.eup %4147 }
 0x7a0   : > { %v4150_v45 = vpop.eup %4149 }
 0x7a1   : > { %v1675_v47 = vmul.f32 %v4150_v45, %v4148_v44  ;;  %v5368_v35 = vsel %vm5351_vm12, %v1674_v43, %v5304_v12 }
 0x7a3   : > { %v5371_v48 = vsel %vm1680_vm13, %v1675_v47, %v5307_v19 }
 0x7a4   : > { %v1685_v49 = vpack.c.bf16 %v5371_v48, %v5368_v35 }
 0x7a6   : > { %3727 = vst [vmem:[%s4642_s7 + $0x30] sm:$0xff] %v1685_v49  ;;  %1734 = vmatmul.mubr.bf16.vlgmr.msra.gmra.mrb[28].mxu0 %v1685_v49  ;;  %1777 = vmatmul.mubr.bf16.vlgmr.msra.gmra.mrb[28].mxu1 %v1685_v49 }
 0x879   : > { %v1735_v28 = vpop.f32.mrb[28].mxu0  ;;  %v1778_v53 = vpop.f32.mrb[28].mxu1 }
 0x87a   : > { %v1787_v12 = vadd.f32 %v1735_v28, %v1693_v51  ;;  %v1737_v55 = vpop.f32.mrb[29].mxu0  ;;  %v1780_v19 = vpop.f32.mrb[29].mxu1  ;;  %v1789_v26 = vadd.f32 %v1778_v53, %v1695_v0 }
 0x87b   : > { %v1788_v56 = vadd.f32 %v1737_v55, %v1694_v46  ;;  %v1739_v57 = vpop.f32.mrb[30].mxu0  ;;  %v1782_v59 = vpop.f32.mrb[30].mxu1  ;;  %v1790_v15 = vadd.f32 %v1780_v19, %v1696_v23 }
 0x87c   : > { %v3732_v60 = vmul.f32 -1.442695, %v1787_v12  ;;  %v1791_v61 = vadd.f32 %v1739_v57, %v1697_v52  ;;  %v1741_v62 = vpop.f32.mrb[31].mxu0  ;;  %v1784_v63 = vpop.f32.mrb[31].mxu1  ;;  %v1793_v22 = vadd.f32 %v1782_v59, %v1699_v5  ;;  %v3734_v25 = vmul.f32 -1.442695, %v1789_v26 }
 0x87d   : > { %v3733_v4 = vmul.f32 -1.442695, %v1788_v56  ;;  %v1792_v27 = vadd.f32 %v1741_v62, %v1698_v54  ;;  %v1794_v17 = vadd.f32 %v1784_v63, %v1700_v7 }
 0x87e   : > { %4151 = vpow2.f32 %v3732_v60  ;;  %v3735_v2 = vmul.f32 -1.442695, %v1791_v61  ;;  %v3737_v34 = vmul.f32 -1.442695, %v1793_v22 }
 0x87f   : > { %v3736_v10 = vmul.f32 -1.442695, %v1792_v27  ;;  %4153 = vpow2.f32 %v3733_v4 }
 0x880   : > { %4155 = vpow2.f32 %v3735_v2 }
 0x881   : > { %4157 = vpow2.f32 %v3736_v10 }
 0x882   : > { %4159 = vtanh.f32 %v1790_v15 }
 0x883   : > { %4161 = vpow2.f32 %v3734_v25 }
 0x884   : > { %4163 = vpow2.f32 %v3737_v34 }
 0x888   : > { %v4152_v32 = vpop.eup %4151 }
 0x889   : > { %v1813_v9 = vadd.f32 1.0, %v4152_v32  ;;  %v4154_v21 = vpop.eup %4153 }
 0x88a   : > { %v4156_v6 = vpop.eup %4155  ;;  %v1814_v3 = vadd.f32 1.0, %v4154_v21 }
 0x88b   : > { %4165 = vrcp.f32 %v1813_v9  ;;  %v1816_v16 = vadd.f32 1.0, %v4156_v6  ;;  %v4158_v1 = vpop.eup %4157 }
 0x88c   : > { %4167 = vtanh.f32 %v1794_v17  ;;  %v1817_v30 = vadd.f32 1.0, %v4158_v1  ;;  %v4160_v39 = vpop.eup %4159 }
 0x88d   : > { %4169 = vrcp.f32 %v1814_v3  ;;  %v4162_v13 = vpop.eup %4161 }
 0x88e   : > { %4171 = vrcp.f32 %v1816_v16  ;;  %v4164_v8 = vpop.eup %4163  ;;  %v1815_v38 = vadd.f32 1.0, %v4162_v13 }
 0x88f   : > { %4173 = vrcp.f32 %v1817_v30  ;;  %v1818_v49 = vadd.f32 1.0, %v4164_v8 }
 0x890   : > { %4175 = vrcp.f32 %v1815_v38 }
 0x895   : > { %v4166_v36 = vpop.eup %4165 }
 0x896   : > { %v4168_v14 = vpop.eup %4167  ;;  %v1835_v24 = vmul.f32 %v4166_v36, %v4160_v39 }
 0x897   : > { %v4170_v33 = vpop.eup %4169 }
 0x898   : > { %v4172_v41 = vpop.eup %4171  ;;  %v1833_v42 = vmul.f32 %v4170_v33, %v5360_v37 }
 0x899   : > { %v1836_v44 = vmul.f32 %v4172_v41, %v4168_v14  ;;  %v4174_v45 = vpop.eup %4173 }
 0x89a   : > { %v1837_v47 = vadd.f32 %v1835_v24, %v1833_v42  ;;  %v1834_v31 = vmul.f32 %v4174_v45, %v5363_v40  ;;  %v4176_v52 = vpop.eup %4175 }
 0x89c   : > { %4177 = vtanh.f32 %v1837_v47  ;;  %v1850_v50 = vsel %vm5383_vm14, %v1837_v47, %v5360_v37  ;;  %v1838_v51 = vadd.f32 %v1836_v44, %v1834_v31 }
 0x89d   : > { %1857 = vst [vmem:[#allocation3] sm:$0xff] %v1850_v50  ;;  %4179 = vrcp.f32 %v1818_v49 }
 0x89e   : > { %4181 = vtanh.f32 %v1838_v51  ;;  %v1851_v46 = vsel %vm1847_vm15, %v1838_v51, %v5363_v40 }
 0x89f   : > { %1858 = vst [vmem:[#allocation3 + $0x8] sm:$0xff] %v1851_v46 }
 0x8a6   : > { %v4178_v28 = vpop.eup %4177 }
 0x8a7   : > { %v1841_v53 = vmul.f32 %v4178_v28, %v4176_v52  ;;  %v4180_v54 = vpop.eup %4179 }
 0x8a8   : > { %v4182_v12 = vpop.eup %4181 }
 0x8a9   : > { %v1848_v29 = vsel %vm5383_vm14, %v1841_v53, %v5368_v35  ;;  %v1842_v37 = vmul.f32 %v4182_v12, %v4180_v54 }
 0x8aa   : > { %1855 = vst [vmem:[#allocation2] sm:$0xff] %v1848_v29 }
 0x8ab   : > { %v1849_v55 = vsel %vm1847_vm15, %v1842_v37, %v5371_v48 }
 0x8ac   : > { %v1852_v19 = vpack.c.bf16 %v1849_v55, %v1848_v29  ;;  %1856 = vst [vmem:[#allocation2 + $0x8] sm:$0xff] %v1849_v55 }
 0x8ae   : > { %3738 = vst [vmem:[%s4642_s7 + $0x38] sm:$0xff] %v1852_v19 }
 0x8af PF: > { %1862 = sbr.rel (%p272_p2) target bundleno = 4377 (0x1119), region = 40 }
 0x8b6   : > { %v6236_v40 = vld [vmem:[#allocation15_spill] sm:$0xff]  ;;  %v6237_v56 = vld [vmem:[#allocation13_spill] sm:$0xff]  ;;  %v6240_v48 = vld [vmem:[#allocation16_spill] sm:$0xff]  ;;  %v6172_v25 = vmov 0   ;;  %s6269_s26 = ssub.s32 1, %s4491_s25 }
 0x8b7   : > { %v5402_v57 = vcombine.high %v6237_v56, %v6236_v40  ;;  %v5406_v58 = vcombine.low %v6237_v56, %v6236_v40  ;;  %v6238_v35 = vld [vmem:[#allocation19_spill] sm:$0xff]  ;;  %v6239_v59 = vld [vmem:[#allocation17_spill] sm:$0xff]  ;;  %v6241_v61 = vld [vmem:[#allocation14_spill] sm:$0xff]  ;;  %2075 = vmatprep.mubr.bf16.mxu0 %v6172_v25  ;;  %2118 = vmatprep.mubr.bf16.mxu1 %v6172_v25  ;;  %s5610_s27 = sshll.u32 %s6269_s26, 3 }
 0x8b8   : > { %v5410_v60 = vcombine.high %v6239_v59, %v6238_v35  ;;  %v5414_v62 = vcombine.high %v6241_v61, %v6240_v48  ;;  %v5419_v63 = vcombine.low %v6241_v61, %v6240_v48  ;;  %v6243_v0 = vld [vmem:[#allocation20_spill] sm:$0xff]  ;;  %v6244_v4 = vld [vmem:[#allocation18_spill] sm:$0xff]  ;;  %v5428_v2 = vcombine.low %v6239_v59, %v6238_v35  ;;  %v6245_v5 = vld [vmem:[#allocation23_spill] sm:$0xff]  ;;  %s2185_s29 = sadd.s32 7, %s5610_s27  ;;  %s2352_s19 = sadd.s32 6, %s5610_s27 }
 0x8b9   : > { %2043 = vmatprep.subr.bf16.mxu0 %v5402_v57  ;;  %v5423_v27 = vcombine.high %v6244_v4, %v6243_v0  ;;  %v6246_v10 = vld [vmem:[#allocation21_spill] sm:$0xff]  ;;  %v5439_v26 = vcombine.low %v6244_v4, %v6243_v0  ;;  %v6247_v22 = vld [vmem:[#allocation24_spill] sm:$0xff]  ;;  %v6248_v15 = vld [vmem:[#allocation22_spill] sm:$0xff]  ;;  %s2186_s18 = sld [smem:[#allocation5 + %s2185_s29]]  ;;  %s2519_s6 = sadd.s32 5, %s5610_s27 }
 0x8ba   : > { %6242 = vst [vmem:[#allocation46_spill] sm:$0xff] %v5414_v62  ;;  %2044 = vmatpush1.bf16.msra.mxu0 %v5406_v58  ;;  %2086 = vmatprep.subr.bf16.mxu1 %v5414_v62  ;;  %v5434_v23 = vcombine.high %v6246_v10, %v6245_v5  ;;  %v5444_v7 = vcombine.high %v6248_v15, %v6247_v22  ;;  %v6249_v32 = vld [vmem:[#allocation27_spill] sm:$0xff]  ;;  %v6250_v17 = vld [vmem:[#allocation25_spill] sm:$0xff]  ;;  %v6251_v6 = vld [vmem:[#allocation28_spill] sm:$0xff]  ;;  %s2353_s22 = sld [smem:[#allocation5 + %s2352_s19]]  ;;  %s2686_s9 = sadd.s32 4, %s5610_s27 }
 0x8bb   : > { %2045 = vmatprep.subr.bf16.mxu0 %v5410_v60  ;;  %2087 = vmatpush1.bf16.msra.mxu1 %v5419_v63  ;;  %v5450_v34 = vcombine.low %v6246_v10, %v6245_v5  ;;  %v5455_v9 = vcombine.high %v6250_v17, %v6249_v32  ;;  %v5460_v21 = vcombine.low %v6248_v15, %v6247_v22  ;;  %v6252_v3 = vld [vmem:[#allocation26_spill] sm:$0xff]  ;;  %v6253_v30 = vld [vmem:[#allocation31_spill] sm:$0xff]  ;;  %v6254_v39 = vld [vmem:[#allocation29_spill] sm:$0xff]  ;;  %s2520_s8 = sld [smem:[#allocation5 + %s2519_s6]]  ;;  %s2853_s23 = sadd.s32 3, %s5610_s27 }
 0x8bc   : > { %2088 = vmatprep.subr.bf16.mxu1 %v5423_v27  ;;  %v5465_v16 = vcombine.high %v6252_v3, %v6251_v6  ;;  %v5471_v1 = vcombine.low %v6250_v17, %v6249_v32  ;;  %v5476_v13 = vcombine.high %v6254_v39, %v6253_v30  ;;  %v5481_v8 = vcombine.low %v6252_v3, %v6251_v6  ;;  %v6255_v36 = vld [vmem:[#allocation32_spill] sm:$0xff]  ;;  %v6256_v14 = vld [vmem:[#allocation30_spill] sm:$0xff]  ;;  %v6257_v33 = vld [vmem:[#allocation35_spill] sm:$0xff]  ;;  %s2687_s10 = sld [smem:[#allocation5 + %s2686_s9]]  ;;  %s3020_s13 = sadd.s32 2, %s5610_s27 }
 0x8bd   : > { %v5486_v24 = vcombine.high %v6256_v14, %v6255_v36  ;;  %v5491_v20 = vcombine.low %v6254_v39, %v6253_v30  ;;  %v6258_v38 = vld [vmem:[#allocation33_spill] sm:$0xff]  ;;  %v5501_v42 = vcombine.low %v6256_v14, %v6255_v36  ;;  %v6259_v43 = vld [vmem:[#allocation36_spill] sm:$0xff]  ;;  %v6260_v44 = vld [vmem:[#allocation34_spill] sm:$0xff]  ;;  %s2854_s12 = sld [smem:[#allocation5 + %s2853_s23]]  ;;  %s3187_s17 = sadd.s32 1, %s5610_s27 }
 0x8be   : > { %2046 = vmatpush1.bf16.msra.mxu0 %v5428_v2  ;;  %v5496_v41 = vcombine.high %v6258_v38, %v6257_v33  ;;  %v5506_v45 = vcombine.high %v6260_v44, %v6259_v43  ;;  %v5511_v47 = vcombine.low %v6258_v38, %v6257_v33  ;;  %v6261_v49 = vld [vmem:[#allocation39_spill] sm:$0xff]  ;;  %v6262_v31 = vld [vmem:[#allocation37_spill] sm:$0xff]  ;;  %v5521_v51 = vcombine.low %v6260_v44, %v6259_v43  ;;  %v6263_v46 = vld [vmem:[#allocation40_spill] sm:$0xff]  ;;  %s3021_s15 = sld [smem:[#allocation5 + %s3020_s13]] }
 0x8bf   : > { %2047 = vmatprep.subr.bf16.mxu0 %v5434_v23  ;;  %2089 = vmatpush1.bf16.msra.mxu1 %v5439_v26  ;;  %v5516_v50 = vcombine.high %v6262_v31, %v6261_v49  ;;  %v6264_v52 = vld [vmem:[#allocation38_spill] sm:$0xff]  ;;  %v5531_v53 = vcombine.low %v6262_v31, %v6261_v49  ;;  %v6265_v54 = vld [vmem:[#allocation43_spill] sm:$0xff]  ;;  %v6266_v12 = vld [vmem:[#allocation41_spill] sm:$0xff]  ;;  %s3188_s21 = sld [smem:[#allocation5 + %s3187_s17]] }
 0x8c0   : > { %2090 = vmatprep.subr.bf16.mxu1 %v5444_v7  ;;  %v5526_v28 = vcombine.high %v6264_v52, %v6263_v46  ;;  %v5536_v29 = vcombine.high %v6266_v12, %v6265_v54  ;;  %v5541_v37 = vcombine.low %v6264_v52, %v6263_v46  ;;  %v6267_v55 = vld [vmem:[#allocation44_spill] sm:$0xff]  ;;  %v6268_v19 = vld [vmem:[#allocation42_spill] sm:$0xff]  ;;  %v5551_v56 = vcombine.low %v6266_v12, %v6265_v54  ;;  %v5553_v35 = vld [vmem:[#allocation2] sm:$0xff] }
 0x8c1   : > { %v5546_v40 = vcombine.high %v6268_v19, %v6267_v55  ;;  %v5555_v59 = vld [vmem:[#allocation2 + $0x8] sm:$0xff]  ;;  %v5561_v48 = vcombine.low %v6268_v19, %v6267_v55  ;;  %v3741_v0 = vld [vmem:[%s4640_s16 + $0xe0] sm:$0xff]  ;;  %v3743_v4 = vld [vmem:[%s4640_s16 + $0xf0] sm:$0xff] }
 0x8c2   : > { %2048 = vmatpush1.bf16.msra.mxu0 %v5450_v34  ;;  %v1882_v61 = vpack.c.bf16 %v5555_v59, %v5553_v35  ;;  %v1874_v5 = vunpack.c.l.bf16 %v3741_v0  ;;  %v1875_v10 = vunpack.c.h.bf16 %v3741_v0  ;;  %v1878_v22 = vunpack.c.l.bf16 %v3743_v4  ;;  %v3742_v15 = vld [vmem:[%s4640_s16 + $0xe8] sm:$0xff]  ;;  %v3744_v39 = vld [vmem:[%s4640_s16 + $0xf8] sm:$0xff] }
 0x8c3   : > { %2049 = vmatprep.subr.bf16.mxu0 %v5455_v9  ;;  %2091 = vmatpush1.bf16.msra.mxu1 %v5460_v21  ;;  %v1879_v17 = vunpack.c.h.bf16 %v3743_v4  ;;  %v1876_v33 = vunpack.c.l.bf16 %v3742_v15  ;;  %v1880_v54 = vunpack.c.l.bf16 %v3744_v39  ;;  %v1877_v0 = vunpack.c.h.bf16 %v3742_v15 }
 0x8c4   : > { %2092 = vmatprep.subr.bf16.mxu1 %v5465_v16 }
 0x8c6   : > { %2050 = vmatpush1.bf16.msra.mxu0 %v5471_v1 }
 0x8c7   : > { %2051 = vmatprep.subr.bf16.mxu0 %v5476_v13  ;;  %2093 = vmatpush1.bf16.msra.mxu1 %v5481_v8 }
 0x8c8   : > { %2094 = vmatprep.subr.bf16.mxu1 %v5486_v24 }
 0x8ca   : > { %2052 = vmatpush1.bf16.msra.mxu0 %v5491_v20 }
 0x8cb   : > { %2053 = vmatprep.subr.bf16.mxu0 %v5496_v41  ;;  %2095 = vmatpush1.bf16.msra.mxu1 %v5501_v42 }
 0x8cc   : > { %2096 = vmatprep.subr.bf16.mxu1 %v5506_v45 }
 0x8ce   : > { %2054 = vmatpush1.bf16.msra.mxu0 %v5511_v47 }
 0x8cf   : > { %2055 = vmatprep.subr.bf16.mxu0 %v5516_v50  ;;  %2097 = vmatpush1.bf16.msra.mxu1 %v5521_v51 }
 0x8d0   : > { %2098 = vmatprep.subr.bf16.mxu1 %v5526_v28 }
 0x8d2   : > { %2056 = vmatpush1.bf16.msra.mxu0 %v5531_v53 }
 0x8d3   : > { %2057 = vmatprep.subr.bf16.mxu0 %v5536_v29  ;;  %2099 = vmatpush1.bf16.msra.mxu1 %v5541_v37 }
 0x8d4   : > { %2100 = vmatprep.subr.bf16.mxu1 %v5546_v40 }
 0x8d6   : > { %2058 = vmatpush1.bf16.msra.mxu0 %v5551_v56 }
 0x8d7   : > { %2101 = vmatpush1.bf16.msra.mxu1 %v5561_v48  ;;  %2210 = vmatprep.subr.bf16.mxu0 %v5402_v57 }
 0x8d8   : > { %2253 = vmatprep.subr.bf16.mxu1 %v5414_v62 }
 0x8d9   : > { %2076 = vmatmul.mubr.bf16.vlgmr.msra.gmra.mrb[0].mxu0 %v1882_v61 }
 0x8da   : > { %2119 = vmatmul.mubr.bf16.vlgmr.msra.gmra.mrb[0].mxu1 %v1882_v61  ;;  %2211 = vmatpush1.bf16.msra.mxu0 %v5406_v58 }
 0x8db   : > { %2254 = vmatpush1.bf16.msra.mxu1 %v5419_v63  ;;  %2212 = vmatprep.subr.bf16.mxu0 %v5410_v60 }
 0x8dc   : > { %2255 = vmatprep.subr.bf16.mxu1 %v5423_v27  ;;  %2242 = vmatprep.mubr.bf16.mxu0 %v6172_v25 }
 0x8dd   : > { %2285 = vmatprep.mubr.bf16.mxu1 %v6172_v25 }
 0x8de   : > { %2213 = vmatpush1.bf16.msra.mxu0 %v5428_v2 }
 0x8df   : > { %2256 = vmatpush1.bf16.msra.mxu1 %v5439_v26  ;;  %2214 = vmatprep.subr.bf16.mxu0 %v5434_v23 }
 0x8e0   : > { %2257 = vmatprep.subr.bf16.mxu1 %v5444_v7 }
 0x8e2   : > { %2215 = vmatpush1.bf16.msra.mxu0 %v5450_v34 }
 0x8e3   : > { %2258 = vmatpush1.bf16.msra.mxu1 %v5460_v21  ;;  %2216 = vmatprep.subr.bf16.mxu0 %v5455_v9 }
 0x8e4   : > { %2259 = vmatprep.subr.bf16.mxu1 %v5465_v16 }
 0x8e6   : > { %2217 = vmatpush1.bf16.msra.mxu0 %v5471_v1 }
 0x8e7   : > { %2260 = vmatpush1.bf16.msra.mxu1 %v5481_v8  ;;  %2218 = vmatprep.subr.bf16.mxu0 %v5476_v13 }
 0x8e8   : > { %2261 = vmatprep.subr.bf16.mxu1 %v5486_v24 }
 0x8ea   : > { %2219 = vmatpush1.bf16.msra.mxu0 %v5491_v20 }
 0x8eb   : > { %2262 = vmatpush1.bf16.msra.mxu1 %v5501_v42  ;;  %2220 = vmatprep.subr.bf16.mxu0 %v5496_v41 }
 0x8ec   : > { %2263 = vmatprep.subr.bf16.mxu1 %v5506_v45 }
 0x8ee   : > { %2221 = vmatpush1.bf16.msra.mxu0 %v5511_v47 }
 0x8ef   : > { %2264 = vmatpush1.bf16.msra.mxu1 %v5521_v51  ;;  %2222 = vmatprep.subr.bf16.mxu0 %v5516_v50 }
 0x8f0   : > { %2265 = vmatprep.subr.bf16.mxu1 %v5526_v28 }
 0x8f2   : > { %2223 = vmatpush1.bf16.msra.mxu0 %v5531_v53 }
 0x8f3   : > { %2266 = vmatpush1.bf16.msra.mxu1 %v5541_v37  ;;  %2224 = vmatprep.subr.bf16.mxu0 %v5536_v29 }
 0x8f4   : > { %2267 = vmatprep.subr.bf16.mxu1 %v5546_v40 }
 0x8f6   : > { %2225 = vmatpush1.bf16.msra.mxu0 %v5551_v56 }
 0x8f7   : > { %2268 = vmatpush1.bf16.msra.mxu1 %v5561_v48  ;;  %2377 = vmatprep.subr.bf16.mxu0 %v5402_v57 }
 0x8f8   : > { %2420 = vmatprep.subr.bf16.mxu1 %v5414_v62 }
 0x9ac   : > { %v2077_v32 = vpop.f32.mrb[0].mxu0 }
 0x9ad   : > { %v2129_v6 = vadd.f32 %v2077_v32, %v1874_v5  ;;  %v2079_v3 = vpop.f32.mrb[1].mxu0  ;;  %v2120_v30 = vpop.f32.mrb[0].mxu1  ;;  %v1881_v5 = vunpack.c.h.bf16 %v3744_v39 }
 0x9ae   : > { %v2130_v36 = vadd.f32 %v2079_v3, %v1875_v10  ;;  %v2081_v14 = vpop.f32.mrb[2].mxu0  ;;  %v2122_v38 = vpop.f32.mrb[1].mxu1  ;;  %v2131_v61 = vadd.f32 %v2120_v30, %v1876_v33 }
 0x9af   : > { %v3777_v43 = vmul.f32 -1.442695, %v2129_v6  ;;  %v2133_v44 = vadd.f32 %v2081_v14, %v1878_v22  ;;  %v2083_v49 = vpop.f32.mrb[3].mxu0  ;;  %v2124_v31 = vpop.f32.mrb[2].mxu1  ;;  %v2132_v32 = vadd.f32 %v2122_v38, %v1877_v0 }
 0x9b0   : > { %v3778_v46 = vmul.f32 -1.442695, %v2130_v36  ;;  %v2134_v52 = vadd.f32 %v2083_v49, %v1879_v17  ;;  %v2126_v12 = vpop.f32.mrb[3].mxu1  ;;  %v2135_v4 = vadd.f32 %v2124_v31, %v1880_v54  ;;  %v3779_v10 = vmul.f32 -1.442695, %v2131_v61  ;;  %v1867_v31 = vld [vmem:[#allocation3] sm:$0xff] }
 0x9b1   : > { %4183 = vpow2.f32 %v3777_v43  ;;  %v3780_v55 = vmul.f32 -1.442695, %v2133_v44  ;;  %v2136_v6 = vadd.f32 %v2126_v12, %v1881_v5  ;;  %v2187_v54 = vstv %s2186_s18 }
 0x9b2   : > { %4185 = vpow2.f32 %v3778_v46  ;;  %v3781_v19 = vmul.f32 -1.442695, %v2134_v52  ;;  %v3782_v22 = vmul.f32 -1.442695, %v2135_v4  ;;  %vm5614_vm0 = vcmp.lt.s32.totalorder %v4672_v11, %v2187_v54 }
 0x9b3   : > { %4187 = vpow2.f32 %v3780_v55  ;;  %vm2189_vm1 = vcmp.lt.s32.totalorder %v4693_v18, %v2187_v54 }
 0x9b4   : > { %4189 = vpow2.f32 %v3781_v19  ;;  %v1868_v19 = vld [vmem:[#allocation3 + $0x8] sm:$0xff] }
 0x9b5   : > { %4191 = vpow2.f32 %v3779_v10 }
 0x9b6   : > { %4193 = vtanh.f32 %v2132_v32  ;;  %v3787_v32 = vld [vmem:[%s4640_s16 + $0xd8] sm:$0xff] }
 0x9b7   : > { %4195 = vpow2.f32 %v3782_v22 }
 0x9b8   : > { %4197 = vtanh.f32 %v2136_v6 }
 0x9bb   : > { %v4184_v17 = vpop.eup %4183 }
 0x9bc   : > { %v4186_v3 = vpop.eup %4185  ;;  %v2155_v36 = vadd.f32 1.0, %v4184_v17 }
 0x9bd   : > { %v4188_v30 = vpop.eup %4187  ;;  %v2156_v14 = vadd.f32 1.0, %v4186_v3 }
 0x9be   : > { %v4190_v15 = vpop.eup %4189  ;;  %4199 = vrcp.f32 %v2155_v36  ;;  %v2158_v39 = vadd.f32 1.0, %v4188_v30 }
 0x9bf   : > { %4201 = vrcp.f32 %v2156_v14  ;;  %v2159_v33 = vadd.f32 1.0, %v4190_v15  ;;  %v4192_v38 = vpop.eup %4191 }
 0x9c0   : > { %4203 = vrcp.f32 %v2158_v39  ;;  %v4194_v43 = vpop.eup %4193  ;;  %v2157_v52 = vadd.f32 1.0, %v4192_v38 }
 0x9c1   : > { %4205 = vrcp.f32 %v2159_v33  ;;  %v4196_v44 = vpop.eup %4195 }
 0x9c2   : > { %v4198_v49 = vpop.eup %4197  ;;  %v2160_v5 = vadd.f32 1.0, %v4196_v44  ;;  %4207 = vrcp.f32 %v2157_v52 }
 0x9c8   : > { %v4200_v46 = vpop.eup %4199 }
 0x9c9   : > { %v4202_v12 = vpop.eup %4201  ;;  %v2177_v55 = vmul.f32 %v4200_v46, %v4194_v43 }
 0x9ca   : > { %v4204_v61 = vpop.eup %4203  ;;  %v2175_v0 = vmul.f32 %v4202_v12, %v1867_v31 }
 0x9cb   : > { %v4206_v4 = vpop.eup %4205  ;;  %v2178_v10 = vmul.f32 %v4204_v61, %v4198_v49  ;;  %v3785_v61 = vld [vmem:[%s4640_s16 + $0xc8] sm:$0xff] }
 0x9cc   : > { %v2179_v22 = vadd.f32 %v2177_v55, %v2175_v0  ;;  %v2176_v6 = vmul.f32 %v4206_v4, %v1868_v19  ;;  %v4208_v30 = vpop.eup %4207 }
 0x9ce   : > { %4209 = vtanh.f32 %v2179_v22  ;;  %v2180_v17 = vadd.f32 %v2178_v10, %v2176_v6  ;;  %v5621_v3 = vsel %vm5614_vm0, %v2179_v22, %v1867_v31 }
 0x9cf   : > { %4211 = vrcp.f32 %v2160_v5 }
 0x9d0   : > { %4213 = vtanh.f32 %v2180_v17  ;;  %v5623_v36 = vsel %vm2189_vm1, %v2180_v17, %v1868_v19 }
 0x9d8   : > { %v4210_v14 = vpop.eup %4209 }
 0x9d9   : > { %v4212_v15 = vpop.eup %4211  ;;  %v2183_v39 = vmul.f32 %v4210_v14, %v4208_v30 }
 0x9da   : > { %v4214_v33 = vpop.eup %4213 }
 0x9db   : > { %v2184_v38 = vmul.f32 %v4214_v33, %v4212_v15  ;;  %v5628_v43 = vsel %vm5614_vm0, %v2183_v39, %v5553_v35  ;;  %v3784_v35 = vld [vmem:[%s4640_s16 + $0xc0] sm:$0xff]  ;;  %v2204_v15 = vunpack.c.l.bf16 %v3785_v61 }
 0x9dc   : > { %v2202_v31 = vunpack.c.l.bf16 %v3784_v35  ;;  %v2203_v46 = vunpack.c.h.bf16 %v3784_v35 }
 0x9dd   : > { %v5631_v44 = vsel %vm2189_vm1, %v2184_v38, %v5555_v59  ;;  %v3786_v59 = vld [vmem:[%s4640_s16 + $0xd0] sm:$0xff] }
 0x9de   : > { %v2194_v49 = vpack.c.bf16 %v5631_v44, %v5628_v43  ;;  %v2206_v52 = vunpack.c.l.bf16 %v3786_v59  ;;  %v2207_v55 = vunpack.c.h.bf16 %v3786_v59  ;;  %v2205_v59 = vunpack.c.h.bf16 %v3785_v61 }
 0x9e0   : > { %3783 = vst [vmem:[%s4642_s7 + $0x38] sm:$0xff] %v2194_v49  ;;  %2243 = vmatmul.mubr.bf16.vlgmr.msra.gmra.mrb[4].mxu0 %v2194_v49  ;;  %2286 = vmatmul.mubr.bf16.vlgmr.msra.gmra.mrb[4].mxu1 %v2194_v49  ;;  %v2208_v49 = vunpack.c.l.bf16 %v3787_v32 }
 0x9e1   : > { %2378 = vmatpush1.bf16.msra.mxu0 %v5406_v58  ;;  %2421 = vmatpush1.bf16.msra.mxu1 %v5419_v63 }
 0x9e2   : > { %2379 = vmatprep.subr.bf16.mxu0 %v5410_v60  ;;  %2422 = vmatprep.subr.bf16.mxu1 %v5423_v27 }
 0x9e3   : > { %2409 = vmatprep.mubr.bf16.mxu0 %v6172_v25  ;;  %2452 = vmatprep.mubr.bf16.mxu1 %v6172_v25 }
 0x9e5   : > { %2380 = vmatpush1.bf16.msra.mxu0 %v5428_v2  ;;  %2423 = vmatpush1.bf16.msra.mxu1 %v5439_v26 }
 0x9e6   : > { %2381 = vmatprep.subr.bf16.mxu0 %v5434_v23  ;;  %2424 = vmatprep.subr.bf16.mxu1 %v5444_v7 }
 0x9e9   : > { %2382 = vmatpush1.bf16.msra.mxu0 %v5450_v34  ;;  %2425 = vmatpush1.bf16.msra.mxu1 %v5460_v21 }
 0x9ea   : > { %2383 = vmatprep.subr.bf16.mxu0 %v5455_v9  ;;  %2426 = vmatprep.subr.bf16.mxu1 %v5465_v16 }
 0x9ed   : > { %2384 = vmatpush1.bf16.msra.mxu0 %v5471_v1  ;;  %2427 = vmatpush1.bf16.msra.mxu1 %v5481_v8 }
 0x9ee   : > { %2385 = vmatprep.subr.bf16.mxu0 %v5476_v13  ;;  %2428 = vmatprep.subr.bf16.mxu1 %v5486_v24 }
 0x9f1   : > { %2386 = vmatpush1.bf16.msra.mxu0 %v5491_v20  ;;  %2429 = vmatpush1.bf16.msra.mxu1 %v5501_v42 }
 0x9f2   : > { %2387 = vmatprep.subr.bf16.mxu0 %v5496_v41  ;;  %2430 = vmatprep.subr.bf16.mxu1 %v5506_v45 }
 0x9f5   : > { %2388 = vmatpush1.bf16.msra.mxu0 %v5511_v47  ;;  %2431 = vmatpush1.bf16.msra.mxu1 %v5521_v51 }
 0x9f6   : > { %2389 = vmatprep.subr.bf16.mxu0 %v5516_v50  ;;  %2432 = vmatprep.subr.bf16.mxu1 %v5526_v28 }
 0x9f9   : > { %2390 = vmatpush1.bf16.msra.mxu0 %v5531_v53  ;;  %2433 = vmatpush1.bf16.msra.mxu1 %v5541_v37 }
 0x9fa   : > { %2391 = vmatprep.subr.bf16.mxu0 %v5536_v29  ;;  %2434 = vmatprep.subr.bf16.mxu1 %v5546_v40 }
 0x9fd   : > { %2392 = vmatpush1.bf16.msra.mxu0 %v5551_v56  ;;  %2435 = vmatpush1.bf16.msra.mxu1 %v5561_v48 }
 0x9fe   : > { %2544 = vmatprep.subr.bf16.mxu0 %v5402_v57  ;;  %2587 = vmatprep.subr.bf16.mxu1 %v5414_v62 }
 0xab3   : > { %v2244_v54 = vpop.f32.mrb[4].mxu0  ;;  %v2287_v12 = vpop.f32.mrb[4].mxu1 }
 0xab4   : > { %v2296_v19 = vadd.f32 %v2244_v54, %v2202_v31  ;;  %v2246_v0 = vpop.f32.mrb[5].mxu0  ;;  %v2289_v4 = vpop.f32.mrb[5].mxu1  ;;  %v2298_v31 = vadd.f32 %v2287_v12, %v2204_v15 }
 0xab5   : > { %v2297_v5 = vadd.f32 %v2246_v0, %v2203_v46  ;;  %v2248_v10 = vpop.f32.mrb[6].mxu0  ;;  %v2291_v22 = vpop.f32.mrb[6].mxu1  ;;  %v2299_v46 = vadd.f32 %v2289_v4, %v2205_v59  ;;  %v2209_v0 = vunpack.c.h.bf16 %v3787_v32 }
 0xab6   : > { %v3788_v6 = vmul.f32 -1.442695, %v2296_v19  ;;  %v2300_v17 = vadd.f32 %v2248_v10, %v2206_v52  ;;  %v2250_v30 = vpop.f32.mrb[7].mxu0  ;;  %v2293_v14 = vpop.f32.mrb[7].mxu1  ;;  %v2302_v54 = vadd.f32 %v2291_v22, %v2208_v49  ;;  %v3790_v19 = vmul.f32 -1.442695, %v2298_v31 }
 0xab7   : > { %v3789_v39 = vmul.f32 -1.442695, %v2297_v5  ;;  %v2301_v33 = vadd.f32 %v2250_v30, %v2207_v55  ;;  %v2303_v25 = vadd.f32 %v2293_v14, %v2209_v0 }
 0xab8   : > { %4215 = vpow2.f32 %v3788_v6  ;;  %v3791_v38 = vmul.f32 -1.442695, %v2300_v17  ;;  %v3793_v52 = vmul.f32 -1.442695, %v2302_v54 }
 0xab9   : > { %v3792_v35 = vmul.f32 -1.442695, %v2301_v33  ;;  %4217 = vpow2.f32 %v3789_v39  ;;  %v2354_v33 = vstv %s2353_s22 }
 0xaba   : > { %4219 = vpow2.f32 %v3791_v38  ;;  %vm5677_vm2 = vcmp.lt.s32.totalorder %v4672_v11, %v2354_v33  ;;  %vm2356_vm3 = vcmp.lt.s32.totalorder %v4693_v18, %v2354_v33 }
 0xabb   : > { %4221 = vpow2.f32 %v3792_v35 }
 0xabc   : > { %4223 = vtanh.f32 %v2299_v46 }
 0xabd   : > { %4225 = vpow2.f32 %v3790_v19 }
 0xabe   : > { %4227 = vpow2.f32 %v3793_v52 }
 0xac2   : > { %v4216_v10 = vpop.eup %4215 }
 0xac3   : > { %v2322_v5 = vadd.f32 1.0, %v4216_v10  ;;  %v4218_v55 = vpop.eup %4217 }
 0xac4   : > { %v4220_v6 = vpop.eup %4219  ;;  %v2323_v17 = vadd.f32 1.0, %v4218_v55 }
 0xac5   : > { %4229 = vrcp.f32 %v2322_v5  ;;  %v2325_v12 = vadd.f32 1.0, %v4220_v6  ;;  %v4222_v61 = vpop.eup %4221 }
 0xac6   : > { %4231 = vtanh.f32 %v2303_v25  ;;  %v2326_v4 = vadd.f32 1.0, %v4222_v61  ;;  %v4224_v32 = vpop.eup %4223 }
 0xac7   : > { %4233 = vrcp.f32 %v2323_v17  ;;  %v4226_v22 = vpop.eup %4225 }
 0xac8   : > { %4235 = vrcp.f32 %v2325_v12  ;;  %v4228_v30 = vpop.eup %4227  ;;  %v2324_v49 = vadd.f32 1.0, %v4226_v22 }
 0xac9   : > { %4237 = vrcp.f32 %v2326_v4  ;;  %v2327_v0 = vadd.f32 1.0, %v4228_v30 }
 0xaca   : > { %4239 = vrcp.f32 %v2324_v49 }
 0xacf   : > { %v4230_v14 = vpop.eup %4229 }
 0xad0   : > { %v4232_v15 = vpop.eup %4231  ;;  %v2344_v39 = vmul.f32 %v4230_v14, %v4224_v32 }
 0xad1   : > { %v4234_v38 = vpop.eup %4233 }
 0xad2   : > { %v4236_v35 = vpop.eup %4235  ;;  %v2342_v59 = vmul.f32 %v4234_v38, %v5621_v3 }
 0xad3   : > { %v2345_v31 = vmul.f32 %v4236_v35, %v4232_v15  ;;  %v4238_v54 = vpop.eup %4237  ;;  %v3796_v35 = vld [vmem:[%s4640_s16 + $0xa8] sm:$0xff] }
 0xad4   : > { %v2346_v46 = vadd.f32 %v2344_v39, %v2342_v59  ;;  %v2343_v19 = vmul.f32 %v4238_v54, %v5623_v36  ;;  %v4240_v55 = vpop.eup %4239 }
 0xad6   : > { %4241 = vtanh.f32 %v2346_v46  ;;  %v5686_v52 = vsel %vm5677_vm2, %v2346_v46, %v5621_v3  ;;  %v2347_v10 = vadd.f32 %v2345_v31, %v2343_v19  ;;  %v3798_v46 = vld [vmem:[%s4640_s16 + $0xb8] sm:$0xff] }
 0xad7   : > { %4243 = vrcp.f32 %v2327_v0 }
 0xad8   : > { %4245 = vtanh.f32 %v2347_v10  ;;  %v5689_v5 = vsel %vm2356_vm3, %v2347_v10, %v5623_v36  ;;  %v6274_v36 = vmov 0  }
 0xae0   : > { %v4242_v6 = vpop.eup %4241 }
 0xae1   : > { %v2350_v17 = vmul.f32 %v4242_v6, %v4240_v55  ;;  %v4244_v12 = vpop.eup %4243 }
 0xae2   : > { %v4246_v61 = vpop.eup %4245 }
 0xae3   : > { %v2351_v4 = vmul.f32 %v4246_v61, %v4244_v12  ;;  %v5694_v32 = vsel %vm5677_vm2, %v2350_v17, %v5628_v43  ;;  %v3795_v43 = vld [vmem:[%s4640_s16 + $0xa0] sm:$0xff]  ;;  %v2371_v17 = vunpack.c.l.bf16 %v3796_v35 }
 0xae4   : > { %v2369_v30 = vunpack.c.l.bf16 %v3795_v43  ;;  %v2370_v14 = vunpack.c.h.bf16 %v3795_v43 }
 0xae5   : > { %v5697_v3 = vsel %vm2356_vm3, %v2351_v4, %v5631_v44  ;;  %v3797_v44 = vld [vmem:[%s4640_s16 + $0xb0] sm:$0xff] }
 0xae6   : > { %v2361_v22 = vpack.c.bf16 %v5697_v3, %v5694_v32  ;;  %v2373_v15 = vunpack.c.l.bf16 %v3797_v44  ;;  %v2374_v38 = vunpack.c.h.bf16 %v3797_v44  ;;  %v2372_v44 = vunpack.c.h.bf16 %v3796_v35 }
 0xae8   : > { %3794 = vst [vmem:[%s4642_s7 + $0x30] sm:$0xff] %v2361_v22  ;;  %2410 = vmatmul.mubr.bf16.vlgmr.msra.gmra.mrb[8].mxu0 %v2361_v22  ;;  %2453 = vmatmul.mubr.bf16.vlgmr.msra.gmra.mrb[8].mxu1 %v2361_v22  ;;  %v2375_v22 = vunpack.c.l.bf16 %v3798_v46 }
 0xae9   : > { %2545 = vmatpush1.bf16.msra.mxu0 %v5406_v58  ;;  %2588 = vmatpush1.bf16.msra.mxu1 %v5419_v63 }
 0xaea   : > { %2546 = vmatprep.subr.bf16.mxu0 %v5410_v60  ;;  %2589 = vmatprep.subr.bf16.mxu1 %v5423_v27 }
 0xaeb   : > { %2576 = vmatprep.mubr.bf16.mxu0 %v6274_v36  ;;  %2619 = vmatprep.mubr.bf16.mxu1 %v6274_v36 }
 0xaed   : > { %2547 = vmatpush1.bf16.msra.mxu0 %v5428_v2  ;;  %2590 = vmatpush1.bf16.msra.mxu1 %v5439_v26 }
 0xaee   : > { %2548 = vmatprep.subr.bf16.mxu0 %v5434_v23  ;;  %2591 = vmatprep.subr.bf16.mxu1 %v5444_v7 }
 0xaf1   : > { %2549 = vmatpush1.bf16.msra.mxu0 %v5450_v34  ;;  %2592 = vmatpush1.bf16.msra.mxu1 %v5460_v21 }
 0xaf2   : > { %2550 = vmatprep.subr.bf16.mxu0 %v5455_v9  ;;  %2593 = vmatprep.subr.bf16.mxu1 %v5465_v16 }
 0xaf5   : > { %2551 = vmatpush1.bf16.msra.mxu0 %v5471_v1  ;;  %2594 = vmatpush1.bf16.msra.mxu1 %v5481_v8 }
 0xaf6   : > { %2552 = vmatprep.subr.bf16.mxu0 %v5476_v13  ;;  %2595 = vmatprep.subr.bf16.mxu1 %v5486_v24 }
 0xaf9   : > { %2553 = vmatpush1.bf16.msra.mxu0 %v5491_v20  ;;  %2596 = vmatpush1.bf16.msra.mxu1 %v5501_v42 }
 0xafa   : > { %2554 = vmatprep.subr.bf16.mxu0 %v5496_v41  ;;  %2597 = vmatprep.subr.bf16.mxu1 %v5506_v45 }
 0xafd   : > { %2555 = vmatpush1.bf16.msra.mxu0 %v5511_v47  ;;  %2598 = vmatpush1.bf16.msra.mxu1 %v5521_v51 }
 0xafe   : > { %2556 = vmatprep.subr.bf16.mxu0 %v5516_v50  ;;  %2599 = vmatprep.subr.bf16.mxu1 %v5526_v28 }
 0xb01   : > { %2557 = vmatpush1.bf16.msra.mxu0 %v5531_v53  ;;  %2600 = vmatpush1.bf16.msra.mxu1 %v5541_v37 }
 0xb02   : > { %2558 = vmatprep.subr.bf16.mxu0 %v5536_v29  ;;  %2601 = vmatprep.subr.bf16.mxu1 %v5546_v40 }
 0xb05   : > { %2559 = vmatpush1.bf16.msra.mxu0 %v5551_v56  ;;  %2602 = vmatpush1.bf16.msra.mxu1 %v5561_v48 }
 0xb06   : > { %2711 = vmatprep.subr.bf16.mxu0 %v5402_v57  ;;  %2754 = vmatprep.subr.bf16.mxu1 %v5414_v62 }
 0xbbb   : > { %v2411_v39 = vpop.f32.mrb[8].mxu0  ;;  %v2454_v33 = vpop.f32.mrb[8].mxu1 }
 0xbbc   : > { %v2463_v49 = vadd.f32 %v2411_v39, %v2369_v30  ;;  %v2413_v59 = vpop.f32.mrb[9].mxu0  ;;  %v2456_v31 = vpop.f32.mrb[9].mxu1  ;;  %v2465_v30 = vadd.f32 %v2454_v33, %v2371_v17 }
 0xbbd   : > { %v2464_v25 = vadd.f32 %v2413_v59, %v2370_v14  ;;  %v2415_v54 = vpop.f32.mrb[10].mxu0  ;;  %v2458_v0 = vpop.f32.mrb[10].mxu1  ;;  %v2466_v14 = vadd.f32 %v2456_v31, %v2372_v44  ;;  %v2376_v59 = vunpack.c.h.bf16 %v3798_v46 }
 0xbbe   : > { %v3799_v19 = vmul.f32 -1.442695, %v2463_v49  ;;  %v2467_v10 = vadd.f32 %v2415_v54, %v2373_v15  ;;  %v2417_v55 = vpop.f32.mrb[11].mxu0  ;;  %v2460_v6 = vpop.f32.mrb[11].mxu1  ;;  %v2469_v39 = vadd.f32 %v2458_v0, %v2375_v22  ;;  %v3801_v49 = vmul.f32 -1.442695, %v2465_v30 }
 0xbbf   : > { %v3800_v12 = vmul.f32 -1.442695, %v2464_v25  ;;  %v2468_v61 = vadd.f32 %v2417_v55, %v2374_v38  ;;  %v2470_v62 = vadd.f32 %v2460_v6, %v2376_v59 }
 0xbc0   : > { %4247 = vpow2.f32 %v3799_v19  ;;  %v3802_v4 = vmul.f32 -1.442695, %v2467_v10  ;;  %v3804_v15 = vmul.f32 -1.442695, %v2469_v39 }
 0xbc1   : > { %v3803_v43 = vmul.f32 -1.442695, %v2468_v61  ;;  %4249 = vpow2.f32 %v3800_v12  ;;  %v2521_v61 = vstv %s2520_s8 }
 0xbc2   : > { %4251 = vpow2.f32 %v3802_v4  ;;  %vm5743_vm4 = vcmp.lt.s32.totalorder %v4672_v11, %v2521_v61  ;;  %vm2523_vm5 = vcmp.lt.s32.totalorder %v4693_v18, %v2521_v61 }
 0xbc3   : > { %4253 = vpow2.f32 %v3803_v43 }
 0xbc4   : > { %4255 = vtanh.f32 %v2466_v14 }
 0xbc5   : > { %4257 = vpow2.f32 %v3801_v49 }
 0xbc6   : > { %4259 = vpow2.f32 %v3804_v15 }
 0xbca   : > { %v4248_v54 = vpop.eup %4247 }
 0xbcb   : > { %v2489_v25 = vadd.f32 1.0, %v4248_v54  ;;  %v4250_v38 = vpop.eup %4249 }
 0xbcc   : > { %v4252_v19 = vpop.eup %4251  ;;  %v2490_v10 = vadd.f32 1.0, %v4250_v38 }
 0xbcd   : > { %4261 = vrcp.f32 %v2489_v25  ;;  %v2492_v33 = vadd.f32 1.0, %v4252_v19  ;;  %v4254_v35 = vpop.eup %4253 }
 0xbce   : > { %4263 = vtanh.f32 %v2470_v62  ;;  %v2493_v31 = vadd.f32 1.0, %v4254_v35  ;;  %v4256_v46 = vpop.eup %4255 }
 0xbcf   : > { %4265 = vrcp.f32 %v2490_v10  ;;  %v4258_v0 = vpop.eup %4257 }
 0xbd0   : > { %4267 = vrcp.f32 %v2492_v33  ;;  %v4260_v55 = vpop.eup %4259  ;;  %v2491_v22 = vadd.f32 1.0, %v4258_v0 }
 0xbd1   : > { %4269 = vrcp.f32 %v2493_v31  ;;  %v2494_v59 = vadd.f32 1.0, %v4260_v55 }
 0xbd2   : > { %4271 = vrcp.f32 %v2491_v22 }
 0xbd7   : > { %v4262_v6 = vpop.eup %4261 }
 0xbd8   : > { %v4264_v17 = vpop.eup %4263  ;;  %v2511_v12 = vmul.f32 %v4262_v6, %v4256_v46 }
 0xbd9   : > { %v4266_v4 = vpop.eup %4265 }
 0xbda   : > { %v4268_v43 = vpop.eup %4267  ;;  %v2509_v44 = vmul.f32 %v4266_v4, %v5686_v52 }
 0xbdb   : > { %v2512_v30 = vmul.f32 %v4268_v43, %v4264_v17  ;;  %v4270_v39 = vpop.eup %4269  ;;  %v3807_v43 = vld [vmem:[%s4640_s16 + $0x88] sm:$0xff] }
 0xbdc   : > { %v2513_v14 = vadd.f32 %v2511_v12, %v2509_v44  ;;  %v2510_v49 = vmul.f32 %v4270_v39, %v5689_v5  ;;  %v4272_v38 = vpop.eup %4271 }
 0xbde   : > { %4273 = vtanh.f32 %v2513_v14  ;;  %v5752_v15 = vsel %vm5743_vm4, %v2513_v14, %v5686_v52  ;;  %v2514_v54 = vadd.f32 %v2512_v30, %v2510_v49  ;;  %v3809_v14 = vld [vmem:[%s4640_s16 + $0x98] sm:$0xff] }
 0xbdf   : > { %4275 = vrcp.f32 %v2494_v59 }
 0xbe0   : > { %4277 = vtanh.f32 %v2514_v54  ;;  %v5755_v25 = vsel %vm2523_vm5, %v2514_v54, %v5689_v5  ;;  %v6277_v5 = vld [vmem:[#allocation46_spill] sm:$0xff] }
 0xbe8   : > { %v4274_v19 = vpop.eup %4273 }
 0xbe9   : > { %v2517_v10 = vmul.f32 %v4274_v19, %v4272_v38  ;;  %v4276_v33 = vpop.eup %4275 }
 0xbea   : > { %v4278_v35 = vpop.eup %4277 }
 0xbeb   : > { %v2518_v31 = vmul.f32 %v4278_v35, %v4276_v33  ;;  %v5760_v46 = vsel %vm5743_vm4, %v2517_v10, %v5694_v32  ;;  %v3806_v32 = vld [vmem:[%s4640_s16 + $0x80] sm:$0xff]  ;;  %v2538_v10 = vunpack.c.l.bf16 %v3807_v43 }
 0xbec   : > { %v2536_v55 = vunpack.c.l.bf16 %v3806_v32  ;;  %v2537_v6 = vunpack.c.h.bf16 %v3806_v32 }
 0xbed   : > { %v5763_v52 = vsel %vm2523_vm5, %v2518_v31, %v5697_v3  ;;  %v3808_v3 = vld [vmem:[%s4640_s16 + $0x90] sm:$0xff] }
 0xbee   : > { %v2528_v0 = vpack.c.bf16 %v5763_v52, %v5760_v46  ;;  %v2540_v17 = vunpack.c.l.bf16 %v3808_v3  ;;  %v2541_v4 = vunpack.c.h.bf16 %v3808_v3  ;;  %v2539_v3 = vunpack.c.h.bf16 %v3807_v43 }
 0xbf0   : > { %3805 = vst [vmem:[%s4642_s7 + $0x28] sm:$0xff] %v2528_v0  ;;  %2577 = vmatmul.mubr.bf16.vlgmr.msra.gmra.mrb[12].mxu0 %v2528_v0  ;;  %2620 = vmatmul.mubr.bf16.vlgmr.msra.gmra.mrb[12].mxu1 %v2528_v0  ;;  %v2542_v0 = vunpack.c.l.bf16 %v3809_v14 }
 0xbf1   : > { %2712 = vmatpush1.bf16.msra.mxu0 %v5406_v58  ;;  %2755 = vmatpush1.bf16.msra.mxu1 %v5419_v63 }
 0xbf2   : > { %2713 = vmatprep.subr.bf16.mxu0 %v5410_v60  ;;  %2756 = vmatprep.subr.bf16.mxu1 %v5423_v27 }
 0xbf3   : > { %2743 = vmatprep.mubr.bf16.mxu0 %v6274_v36  ;;  %2786 = vmatprep.mubr.bf16.mxu1 %v6274_v36 }
 0xbf5   : > { %2714 = vmatpush1.bf16.msra.mxu0 %v5428_v2  ;;  %2757 = vmatpush1.bf16.msra.mxu1 %v5439_v26 }
 0xbf6   : > { %2715 = vmatprep.subr.bf16.mxu0 %v5434_v23  ;;  %2758 = vmatprep.subr.bf16.mxu1 %v5444_v7 }
 0xbf9   : > { %2716 = vmatpush1.bf16.msra.mxu0 %v5450_v34  ;;  %2759 = vmatpush1.bf16.msra.mxu1 %v5460_v21 }
 0xbfa   : > { %2717 = vmatprep.subr.bf16.mxu0 %v5455_v9  ;;  %2760 = vmatprep.subr.bf16.mxu1 %v5465_v16 }
 0xbfd   : > { %2718 = vmatpush1.bf16.msra.mxu0 %v5471_v1  ;;  %2761 = vmatpush1.bf16.msra.mxu1 %v5481_v8 }
 0xbfe   : > { %2719 = vmatprep.subr.bf16.mxu0 %v5476_v13  ;;  %2762 = vmatprep.subr.bf16.mxu1 %v5486_v24 }
 0xc01   : > { %2720 = vmatpush1.bf16.msra.mxu0 %v5491_v20  ;;  %2763 = vmatpush1.bf16.msra.mxu1 %v5501_v42 }
 0xc02   : > { %2721 = vmatprep.subr.bf16.mxu0 %v5496_v41  ;;  %2764 = vmatprep.subr.bf16.mxu1 %v5506_v45 }
 0xc05   : > { %2722 = vmatpush1.bf16.msra.mxu0 %v5511_v47  ;;  %2765 = vmatpush1.bf16.msra.mxu1 %v5521_v51 }
 0xc06   : > { %2723 = vmatprep.subr.bf16.mxu0 %v5516_v50  ;;  %2766 = vmatprep.subr.bf16.mxu1 %v5526_v28 }
 0xc09   : > { %2724 = vmatpush1.bf16.msra.mxu0 %v5531_v53  ;;  %2767 = vmatpush1.bf16.msra.mxu1 %v5541_v37 }
 0xc0a   : > { %2725 = vmatprep.subr.bf16.mxu0 %v5536_v29  ;;  %2768 = vmatprep.subr.bf16.mxu1 %v5546_v40 }
 0xc0d   : > { %2726 = vmatpush1.bf16.msra.mxu0 %v5551_v56  ;;  %2769 = vmatpush1.bf16.msra.mxu1 %v5561_v48 }
 0xc0e   : > { %2878 = vmatprep.subr.bf16.mxu0 %v5402_v57  ;;  %2921 = vmatprep.subr.bf16.mxu1 %v6277_v5 }
 0xcc3   : > { %v2578_v12 = vpop.f32.mrb[12].mxu0  ;;  %v2621_v61 = vpop.f32.mrb[12].mxu1 }
 0xcc4   : > { %v2630_v22 = vadd.f32 %v2578_v12, %v2536_v55  ;;  %v2580_v44 = vpop.f32.mrb[13].mxu0  ;;  %v2623_v30 = vpop.f32.mrb[13].mxu1  ;;  %v2632_v55 = vadd.f32 %v2621_v61, %v2538_v10 }
 0xcc5   : > { %v2631_v62 = vadd.f32 %v2580_v44, %v2537_v6  ;;  %v2582_v39 = vpop.f32.mrb[14].mxu0  ;;  %v2625_v59 = vpop.f32.mrb[14].mxu1  ;;  %v2633_v6 = vadd.f32 %v2623_v30, %v2539_v3  ;;  %v2543_v44 = vunpack.c.h.bf16 %v3809_v14 }
 0xcc6   : > { %v3810_v49 = vmul.f32 -1.442695, %v2630_v22  ;;  %v2634_v54 = vadd.f32 %v2582_v39, %v2540_v17  ;;  %v2584_v38 = vpop.f32.mrb[15].mxu0  ;;  %v2627_v19 = vpop.f32.mrb[15].mxu1  ;;  %v2636_v12 = vadd.f32 %v2625_v59, %v2542_v0  ;;  %v3812_v22 = vmul.f32 -1.442695, %v2632_v55 }
 0xcc7   : > { %v3811_v33 = vmul.f32 -1.442695, %v2631_v62  ;;  %v2635_v35 = vadd.f32 %v2584_v38, %v2541_v4  ;;  %v2637_v5 = vadd.f32 %v2627_v19, %v2543_v44 }
 0xcc8   : > { %4279 = vpow2.f32 %v3810_v49  ;;  %v3813_v31 = vmul.f32 -1.442695, %v2634_v54  ;;  %v3815_v17 = vmul.f32 -1.442695, %v2636_v12 }
 0xcc9   : > { %v3814_v32 = vmul.f32 -1.442695, %v2635_v35  ;;  %4281 = vpow2.f32 %v3811_v33  ;;  %v2688_v35 = vstv %s2687_s10 }
 0xcca   : > { %4283 = vpow2.f32 %v3813_v31  ;;  %vm5809_vm6 = vcmp.lt.s32.totalorder %v4672_v11, %v2688_v35  ;;  %vm2690_vm7 = vcmp.lt.s32.totalorder %v4693_v18, %v2688_v35 }
 0xccb   : > { %4285 = vpow2.f32 %v3814_v32 }
 0xccc   : > { %4287 = vtanh.f32 %v2633_v6 }
 0xccd   : > { %4289 = vpow2.f32 %v3812_v22 }
 0xcce   : > { %4291 = vpow2.f32 %v3815_v17 }
 0xcd2   : > { %v4280_v39 = vpop.eup %4279 }
 0xcd3   : > { %v2656_v62 = vadd.f32 1.0, %v4280_v39  ;;  %v4282_v4 = vpop.eup %4281 }
 0xcd4   : > { %v4284_v49 = vpop.eup %4283  ;;  %v2657_v54 = vadd.f32 1.0, %v4282_v4 }
 0xcd5   : > { %4293 = vrcp.f32 %v2656_v62  ;;  %v2659_v61 = vadd.f32 1.0, %v4284_v49  ;;  %v4286_v43 = vpop.eup %4285 }
 0xcd6   : > { %4295 = vtanh.f32 %v2637_v5  ;;  %v2660_v30 = vadd.f32 1.0, %v4286_v43  ;;  %v4288_v14 = vpop.eup %4287 }
 0xcd7   : > { %4297 = vrcp.f32 %v2657_v54  ;;  %v4290_v59 = vpop.eup %4289 }
 0xcd8   : > { %4299 = vrcp.f32 %v2659_v61  ;;  %v4292_v38 = vpop.eup %4291  ;;  %v2658_v0 = vadd.f32 1.0, %v4290_v59 }
 0xcd9   : > { %4301 = vrcp.f32 %v2660_v30  ;;  %v2661_v44 = vadd.f32 1.0, %v4292_v38 }
 0xcda   : > { %4303 = vrcp.f32 %v2658_v0 }
 0xcdf   : > { %v4294_v19 = vpop.eup %4293 }
 0xce0   : > { %v4296_v10 = vpop.eup %4295  ;;  %v2678_v33 = vmul.f32 %v4294_v19, %v4288_v14 }
 0xce1   : > { %v4298_v31 = vpop.eup %4297 }
 0xce2   : > { %v4300_v32 = vpop.eup %4299  ;;  %v2676_v3 = vmul.f32 %v4298_v31, %v5752_v15 }
 0xce3   : > { %v2679_v55 = vmul.f32 %v4300_v32, %v4296_v10  ;;  %v4302_v12 = vpop.eup %4301  ;;  %v3818_v32 = vld [vmem:[%s4640_s16 + $0x68] sm:$0xff] }
 0xce4   : > { %v2680_v6 = vadd.f32 %v2678_v33, %v2676_v3  ;;  %v2677_v22 = vmul.f32 %v4302_v12, %v5755_v25  ;;  %v4304_v4 = vpop.eup %4303 }
 0xce6   : > { %4305 = vtanh.f32 %v2680_v6  ;;  %v5818_v17 = vsel %vm5809_vm6, %v2680_v6, %v5752_v15  ;;  %v2681_v39 = vadd.f32 %v2679_v55, %v2677_v22  ;;  %v3820_v6 = vld [vmem:[%s4640_s16 + $0x78] sm:$0xff] }
 0xce7   : > { %4307 = vrcp.f32 %v2661_v44 }
 0xce8   : > { %4309 = vtanh.f32 %v2681_v39  ;;  %v5821_v62 = vsel %vm2690_vm7, %v2681_v39, %v5755_v25  ;;  %v6280_v25 = vld [vmem:[#allocation46_spill] sm:$0xff] }
 0xcf0   : > { %v4306_v49 = vpop.eup %4305 }
 0xcf1   : > { %v2684_v54 = vmul.f32 %v4306_v49, %v4304_v4  ;;  %v4308_v61 = vpop.eup %4307 }
 0xcf2   : > { %v4310_v43 = vpop.eup %4309 }
 0xcf3   : > { %v2685_v30 = vmul.f32 %v4310_v43, %v4308_v61  ;;  %v5826_v14 = vsel %vm5809_vm6, %v2684_v54, %v5760_v46  ;;  %v3817_v46 = vld [vmem:[%s4640_s16 + $0x60] sm:$0xff]  ;;  %v2705_v54 = vunpack.c.l.bf16 %v3818_v32 }
 0xcf4   : > { %v2703_v38 = vunpack.c.l.bf16 %v3817_v46  ;;  %v2704_v19 = vunpack.c.h.bf16 %v3817_v46 }
 0xcf5   : > { %v5829_v15 = vsel %vm2690_vm7, %v2685_v30, %v5763_v52  ;;  %v3819_v52 = vld [vmem:[%s4640_s16 + $0x70] sm:$0xff] }
 0xcf6   : > { %v2695_v59 = vpack.c.bf16 %v5829_v15, %v5826_v14  ;;  %v2707_v10 = vunpack.c.l.bf16 %v3819_v52  ;;  %v2708_v31 = vunpack.c.h.bf16 %v3819_v52  ;;  %v2706_v52 = vunpack.c.h.bf16 %v3818_v32 }
 0xcf8   : > { %3816 = vst [vmem:[%s4642_s7 + $0x20] sm:$0xff] %v2695_v59  ;;  %2744 = vmatmul.mubr.bf16.vlgmr.msra.gmra.mrb[16].mxu0 %v2695_v59  ;;  %2787 = vmatmul.mubr.bf16.vlgmr.msra.gmra.mrb[16].mxu1 %v2695_v59  ;;  %v2709_v59 = vunpack.c.l.bf16 %v3820_v6 }
 0xcf9   : > { %2879 = vmatpush1.bf16.msra.mxu0 %v5406_v58  ;;  %2922 = vmatpush1.bf16.msra.mxu1 %v5419_v63 }
 0xcfa   : > { %2880 = vmatprep.subr.bf16.mxu0 %v5410_v60  ;;  %2923 = vmatprep.subr.bf16.mxu1 %v5423_v27 }
 0xcfb   : > { %2910 = vmatprep.mubr.bf16.mxu0 %v6274_v36  ;;  %2953 = vmatprep.mubr.bf16.mxu1 %v6274_v36 }
 0xcfd   : > { %2881 = vmatpush1.bf16.msra.mxu0 %v5428_v2  ;;  %2924 = vmatpush1.bf16.msra.mxu1 %v5439_v26 }
 0xcfe   : > { %2882 = vmatprep.subr.bf16.mxu0 %v5434_v23  ;;  %2925 = vmatprep.subr.bf16.mxu1 %v5444_v7 }
 0xd01   : > { %2883 = vmatpush1.bf16.msra.mxu0 %v5450_v34  ;;  %2926 = vmatpush1.bf16.msra.mxu1 %v5460_v21 }
 0xd02   : > { %2884 = vmatprep.subr.bf16.mxu0 %v5455_v9  ;;  %2927 = vmatprep.subr.bf16.mxu1 %v5465_v16 }
 0xd05   : > { %2885 = vmatpush1.bf16.msra.mxu0 %v5471_v1  ;;  %2928 = vmatpush1.bf16.msra.mxu1 %v5481_v8 }
 0xd06   : > { %2886 = vmatprep.subr.bf16.mxu0 %v5476_v13  ;;  %2929 = vmatprep.subr.bf16.mxu1 %v5486_v24 }
 0xd09   : > { %2887 = vmatpush1.bf16.msra.mxu0 %v5491_v20  ;;  %2930 = vmatpush1.bf16.msra.mxu1 %v5501_v42 }
 0xd0a   : > { %2888 = vmatprep.subr.bf16.mxu0 %v5496_v41  ;;  %2931 = vmatprep.subr.bf16.mxu1 %v5506_v45 }
 0xd0d   : > { %2889 = vmatpush1.bf16.msra.mxu0 %v5511_v47  ;;  %2932 = vmatpush1.bf16.msra.mxu1 %v5521_v51 }
 0xd0e   : > { %2890 = vmatprep.subr.bf16.mxu0 %v5516_v50  ;;  %2933 = vmatprep.subr.bf16.mxu1 %v5526_v28 }
 0xd11   : > { %2891 = vmatpush1.bf16.msra.mxu0 %v5531_v53  ;;  %2934 = vmatpush1.bf16.msra.mxu1 %v5541_v37 }
 0xd12   : > { %2892 = vmatprep.subr.bf16.mxu0 %v5536_v29  ;;  %2935 = vmatprep.subr.bf16.mxu1 %v5546_v40 }
 0xd15   : > { %2893 = vmatpush1.bf16.msra.mxu0 %v5551_v56  ;;  %2936 = vmatpush1.bf16.msra.mxu1 %v5561_v48 }
 0xd16   : > { %3045 = vmatprep.subr.bf16.mxu0 %v5402_v57  ;;  %3088 = vmatprep.subr.bf16.mxu1 %v6280_v25 }
 0xdcb   : > { %v2745_v33 = vpop.f32.mrb[16].mxu0  ;;  %v2788_v35 = vpop.f32.mrb[16].mxu1 }
 0xdcc   : > { %v2797_v0 = vadd.f32 %v2745_v33, %v2703_v38  ;;  %v2747_v3 = vpop.f32.mrb[17].mxu0  ;;  %v2790_v55 = vpop.f32.mrb[17].mxu1  ;;  %v2799_v38 = vadd.f32 %v2788_v35, %v2705_v54 }
 0xdcd   : > { %v2798_v5 = vadd.f32 %v2747_v3, %v2704_v19  ;;  %v2749_v12 = vpop.f32.mrb[18].mxu0  ;;  %v2792_v44 = vpop.f32.mrb[18].mxu1  ;;  %v2800_v19 = vadd.f32 %v2790_v55, %v2706_v52  ;;  %v2710_v3 = vunpack.c.h.bf16 %v3820_v6 }
 0xdce   : > { %v3821_v22 = vmul.f32 -1.442695, %v2797_v0  ;;  %v2801_v39 = vadd.f32 %v2749_v12, %v2707_v10  ;;  %v2751_v4 = vpop.f32.mrb[19].mxu0  ;;  %v2794_v49 = vpop.f32.mrb[19].mxu1  ;;  %v2803_v33 = vadd.f32 %v2792_v44, %v2709_v59  ;;  %v3823_v0 = vmul.f32 -1.442695, %v2799_v38 }
 0xdcf   : > { %v3822_v61 = vmul.f32 -1.442695, %v2798_v5  ;;  %v2802_v43 = vadd.f32 %v2751_v4, %v2708_v31  ;;  %v2804_v25 = vadd.f32 %v2794_v49, %v2710_v3 }
 0xdd0   : > { %4311 = vpow2.f32 %v3821_v22  ;;  %v3824_v30 = vmul.f32 -1.442695, %v2801_v39  ;;  %v3826_v10 = vmul.f32 -1.442695, %v2803_v33 }
 0xdd1   : > { %v3825_v46 = vmul.f32 -1.442695, %v2802_v43  ;;  %4313 = vpow2.f32 %v3822_v61  ;;  %v2855_v43 = vstv %s2854_s12 }
 0xdd2   : > { %4315 = vpow2.f32 %v3824_v30  ;;  %vm5875_vm8 = vcmp.lt.s32.totalorder %v4672_v11, %v2855_v43  ;;  %vm2857_vm9 = vcmp.lt.s32.totalorder %v4693_v18, %v2855_v43 }
 0xdd3   : > { %4317 = vpow2.f32 %v3825_v46 }
 0xdd4   : > { %4319 = vtanh.f32 %v2800_v19 }
 0xdd5   : > { %4321 = vpow2.f32 %v3823_v0 }
 0xdd6   : > { %4323 = vpow2.f32 %v3826_v10 }
 0xdda   : > { %v4312_v12 = vpop.eup %4311 }
 0xddb   : > { %v2823_v5 = vadd.f32 1.0, %v4312_v12  ;;  %v4314_v31 = vpop.eup %4313 }
 0xddc   : > { %v4316_v22 = vpop.eup %4315  ;;  %v2824_v39 = vadd.f32 1.0, %v4314_v31 }
 0xddd   : > { %4325 = vrcp.f32 %v2823_v5  ;;  %v2826_v35 = vadd.f32 1.0, %v4316_v22  ;;  %v4318_v32 = vpop.eup %4317 }
 0xdde   : > { %4327 = vtanh.f32 %v2804_v25  ;;  %v2827_v55 = vadd.f32 1.0, %v4318_v32  ;;  %v4320_v6 = vpop.eup %4319 }
 0xddf   : > { %4329 = vrcp.f32 %v2824_v39  ;;  %v4322_v44 = vpop.eup %4321 }
 0xde0   : > { %4331 = vrcp.f32 %v2826_v35  ;;  %v4324_v4 = vpop.eup %4323  ;;  %v2825_v59 = vadd.f32 1.0, %v4322_v44 }
 0xde1   : > { %4333 = vrcp.f32 %v2827_v55  ;;  %v2828_v3 = vadd.f32 1.0, %v4324_v4 }
 0xde2   : > { %4335 = vrcp.f32 %v2825_v59 }
 0xde7   : > { %v4326_v49 = vpop.eup %4325 }
 0xde8   : > { %v4328_v54 = vpop.eup %4327  ;;  %v2845_v61 = vmul.f32 %v4326_v49, %v4320_v6 }
 0xde9   : > { %v4330_v30 = vpop.eup %4329 }
 0xdea   : > { %v4332_v46 = vpop.eup %4331  ;;  %v2843_v52 = vmul.f32 %v4330_v30, %v5818_v17 }
 0xdeb   : > { %v2846_v38 = vmul.f32 %v4332_v46, %v4328_v54  ;;  %v4334_v33 = vpop.eup %4333  ;;  %v3829_v46 = vld [vmem:[%s4640_s16 + $0x48] sm:$0xff] }
 0xdec   : > { %v2847_v19 = vadd.f32 %v2845_v61, %v2843_v52  ;;  %v2844_v0 = vmul.f32 %v4334_v33, %v5821_v62  ;;  %v4336_v31 = vpop.eup %4335 }
 0xdee   : > { %4337 = vtanh.f32 %v2847_v19  ;;  %v5884_v10 = vsel %vm5875_vm8, %v2847_v19, %v5818_v17  ;;  %v2848_v12 = vadd.f32 %v2846_v38, %v2844_v0  ;;  %v3831_v19 = vld [vmem:[%s4640_s16 + $0x58] sm:$0xff] }
 0xdef   : > { %4339 = vrcp.f32 %v2828_v3 }
 0xdf0   : > { %4341 = vtanh.f32 %v2848_v12  ;;  %v5887_v5 = vsel %vm2857_vm9, %v2848_v12, %v5821_v62  ;;  %v6283_v62 = vld [vmem:[#allocation46_spill] sm:$0xff] }
 0xdf8   : > { %v4338_v22 = vpop.eup %4337 }
 0xdf9   : > { %v2851_v39 = vmul.f32 %v4338_v22, %v4336_v31  ;;  %v4340_v35 = vpop.eup %4339  ;;  %v2872_v22 = vunpack.c.l.bf16 %v3829_v46 }
 0xdfa   : > { %v4342_v32 = vpop.eup %4341 }
 0xdfb   : > { %v2852_v55 = vmul.f32 %v4342_v32, %v4340_v35  ;;  %v5892_v6 = vsel %vm5875_vm8, %v2851_v39, %v5826_v14  ;;  %v3828_v14 = vld [vmem:[%s4640_s16 + $0x40] sm:$0xff] }
 0xdfc   : > { %v2870_v4 = vunpack.c.l.bf16 %v3828_v14  ;;  %v2871_v49 = vunpack.c.h.bf16 %v3828_v14 }
 0xdfd   : > { %v5895_v17 = vsel %vm2857_vm9, %v2852_v55, %v5829_v15  ;;  %v3830_v15 = vld [vmem:[%s4640_s16 + $0x50] sm:$0xff]  ;;  %v2876_v55 = vunpack.c.l.bf16 %v3831_v19 }
 0xdfe   : > { %v2862_v44 = vpack.c.bf16 %v5895_v17, %v5892_v6  ;;  %v2874_v54 = vunpack.c.l.bf16 %v3830_v15  ;;  %v2875_v30 = vunpack.c.h.bf16 %v3830_v15 }
 0xe00   : > { %3827 = vst [vmem:[%s4642_s7 + $0x18] sm:$0xff] %v2862_v44  ;;  %2911 = vmatmul.mubr.bf16.vlgmr.msra.gmra.mrb[20].mxu0 %v2862_v44  ;;  %2954 = vmatmul.mubr.bf16.vlgmr.msra.gmra.mrb[20].mxu1 %v2862_v44 }
 0xe01   : > { %3046 = vmatpush1.bf16.msra.mxu0 %v5406_v58  ;;  %3089 = vmatpush1.bf16.msra.mxu1 %v5419_v63 }
 0xe02   : > { %3047 = vmatprep.subr.bf16.mxu0 %v5410_v60  ;;  %3090 = vmatprep.subr.bf16.mxu1 %v5423_v27 }
 0xe03   : > { %3077 = vmatprep.mubr.bf16.mxu0 %v6274_v36  ;;  %3120 = vmatprep.mubr.bf16.mxu1 %v6274_v36 }
 0xe05   : > { %3048 = vmatpush1.bf16.msra.mxu0 %v5428_v2  ;;  %3091 = vmatpush1.bf16.msra.mxu1 %v5439_v26 }
 0xe06   : > { %3049 = vmatprep.subr.bf16.mxu0 %v5434_v23  ;;  %3092 = vmatprep.subr.bf16.mxu1 %v5444_v7 }
 0xe09   : > { %3050 = vmatpush1.bf16.msra.mxu0 %v5450_v34  ;;  %3093 = vmatpush1.bf16.msra.mxu1 %v5460_v21 }
 0xe0a   : > { %3051 = vmatprep.subr.bf16.mxu0 %v5455_v9  ;;  %3094 = vmatprep.subr.bf16.mxu1 %v5465_v16 }
 0xe0d   : > { %3052 = vmatpush1.bf16.msra.mxu0 %v5471_v1  ;;  %3095 = vmatpush1.bf16.msra.mxu1 %v5481_v8 }
 0xe0e   : > { %3053 = vmatprep.subr.bf16.mxu0 %v5476_v13  ;;  %3096 = vmatprep.subr.bf16.mxu1 %v5486_v24 }
 0xe11   : > { %3054 = vmatpush1.bf16.msra.mxu0 %v5491_v20  ;;  %3097 = vmatpush1.bf16.msra.mxu1 %v5501_v42 }
 0xe12   : > { %3055 = vmatprep.subr.bf16.mxu0 %v5496_v41  ;;  %3098 = vmatprep.subr.bf16.mxu1 %v5506_v45 }
 0xe15   : > { %3056 = vmatpush1.bf16.msra.mxu0 %v5511_v47  ;;  %3099 = vmatpush1.bf16.msra.mxu1 %v5521_v51 }
 0xe16   : > { %3057 = vmatprep.subr.bf16.mxu0 %v5516_v50  ;;  %3100 = vmatprep.subr.bf16.mxu1 %v5526_v28 }
 0xe19   : > { %3058 = vmatpush1.bf16.msra.mxu0 %v5531_v53  ;;  %3101 = vmatpush1.bf16.msra.mxu1 %v5541_v37 }
 0xe1a   : > { %3059 = vmatprep.subr.bf16.mxu0 %v5536_v29  ;;  %3102 = vmatprep.subr.bf16.mxu1 %v5546_v40 }
 0xe1d   : > { %3060 = vmatpush1.bf16.msra.mxu0 %v5551_v56  ;;  %3103 = vmatpush1.bf16.msra.mxu1 %v5561_v48 }
 0xe1e   : > { %3211 = vmatprep.subr.bf16.mxu0 %v5402_v57  ;;  %3254 = vmatprep.subr.bf16.mxu1 %v6283_v62  ;;  %v2873_v62 = vunpack.c.h.bf16 %v3829_v46 }
 0xed3   : > { %v2912_v61 = vpop.f32.mrb[20].mxu0  ;;  %v2955_v43 = vpop.f32.mrb[20].mxu1 }
 0xed4   : > { %v2964_v59 = vadd.f32 %v2912_v61, %v2870_v4  ;;  %v2914_v52 = vpop.f32.mrb[21].mxu0  ;;  %v2957_v38 = vpop.f32.mrb[21].mxu1  ;;  %v2966_v14 = vadd.f32 %v2955_v43, %v2872_v22 }
 0xed5   : > { %v2965_v25 = vadd.f32 %v2914_v52, %v2871_v49  ;;  %v2916_v33 = vpop.f32.mrb[22].mxu0  ;;  %v2959_v3 = vpop.f32.mrb[22].mxu1  ;;  %v2967_v4 = vadd.f32 %v2957_v38, %v2873_v62  ;;  %v2877_v49 = vunpack.c.h.bf16 %v3831_v19 }
 0xed6   : > { %v3832_v57 = vmul.f32 -1.442695, %v2964_v59  ;;  %v2968_v0 = vadd.f32 %v2916_v33, %v2874_v54  ;;  %v2918_v12 = vpop.f32.mrb[23].mxu0  ;;  %v2961_v31 = vpop.f32.mrb[23].mxu1  ;;  %v2970_v15 = vadd.f32 %v2959_v3, %v2876_v55  ;;  %v3834_v61 = vmul.f32 -1.442695, %v2966_v14 }
 0xed7   : > { %v3833_v39 = vmul.f32 -1.442695, %v2965_v25  ;;  %v2969_v35 = vadd.f32 %v2918_v12, %v2875_v30  ;;  %v2971_v52 = vadd.f32 %v2961_v31, %v2877_v49 }
 0xed8   : > { %4343 = vpow2.f32 %v3832_v57  ;;  %v3835_v32 = vmul.f32 -1.442695, %v2968_v0  ;;  %v3837_v54 = vmul.f32 -1.442695, %v2970_v15 }
 0xed9   : > { %v3836_v44 = vmul.f32 -1.442695, %v2969_v35  ;;  %4345 = vpow2.f32 %v3833_v39  ;;  %v3022_v39 = vstv %s3021_s15 }
 0xeda   : > { %4347 = vpow2.f32 %v3835_v32  ;;  %vm5941_vm10 = vcmp.lt.s32.totalorder %v4672_v11, %v3022_v39  ;;  %vm3024_vm11 = vcmp.lt.s32.totalorder %v4693_v18, %v3022_v39 }
 0xedb   : > { %4349 = vpow2.f32 %v3836_v44 }
 0xedc   : > { %4351 = vtanh.f32 %v2967_v4 }
 0xedd   : > { %4353 = vpow2.f32 %v3834_v61 }
 0xede   : > { %4355 = vpow2.f32 %v3837_v54 }
 0xee2   : > { %v4344_v59 = vpop.eup %4343 }
 0xee3   : > { %v2990_v25 = vadd.f32 1.0, %v4344_v59  ;;  %v4346_v30 = vpop.eup %4345 }
 0xee4   : > { %v4348_v33 = vpop.eup %4347  ;;  %v2991_v57 = vadd.f32 1.0, %v4346_v30 }
 0xee5   : > { %4357 = vrcp.f32 %v2990_v25  ;;  %v2993_v43 = vadd.f32 1.0, %v4348_v33  ;;  %v4350_v46 = vpop.eup %4349 }
 0xee6   : > { %4359 = vtanh.f32 %v2971_v52  ;;  %v2994_v38 = vadd.f32 1.0, %v4350_v46  ;;  %v4352_v19 = vpop.eup %4351 }
 0xee7   : > { %4361 = vrcp.f32 %v2991_v57  ;;  %v4354_v3 = vpop.eup %4353 }
 0xee8   : > { %4363 = vrcp.f32 %v2993_v43  ;;  %v4356_v0 = vpop.eup %4355  ;;  %v2992_v32 = vadd.f32 1.0, %v4354_v3 }
 0xee9   : > { %4365 = vrcp.f32 %v2994_v38  ;;  %v2995_v49 = vadd.f32 1.0, %v4356_v0 }
 0xeea   : > { %4367 = vrcp.f32 %v2992_v32 }
 0xeef   : > { %v4358_v12 = vpop.eup %4357 }
 0xef0   : > { %v4360_v31 = vpop.eup %4359  ;;  %v3012_v22 = vmul.f32 %v4358_v12, %v4352_v19 }
 0xef1   : > { %v4362_v35 = vpop.eup %4361 }
 0xef2   : > { %v4364_v55 = vpop.eup %4363  ;;  %v3010_v44 = vmul.f32 %v4362_v35, %v5884_v10 }
 0xef3   : > { %v3013_v62 = vmul.f32 %v4364_v55, %v4360_v31  ;;  %v4366_v15 = vpop.eup %4365 }
 0xef4   : > { %v3014_v4 = vadd.f32 %v3012_v22, %v3010_v44  ;;  %v3011_v61 = vmul.f32 %v4366_v15, %v5887_v5  ;;  %v4368_v25 = vpop.eup %4367 }
 0xef6   : > { %4369 = vtanh.f32 %v3014_v4  ;;  %v5950_v54 = vsel %vm5941_vm10, %v3014_v4, %v5884_v10  ;;  %v3015_v59 = vadd.f32 %v3013_v62, %v3011_v61 }
 0xef7   : > { %4371 = vrcp.f32 %v2995_v49  ;;  %v3189_v49 = vstv %s3188_s21 }
 0xef8   : > { %4373 = vtanh.f32 %v3015_v59  ;;  %v5953_v52 = vsel %vm3024_vm11, %v3015_v59, %v5887_v5  ;;  %vm6005_vm12 = vcmp.lt.s32.totalorder %v4672_v11, %v3189_v49  ;;  %vm3191_vm13 = vcmp.lt.s32.totalorder %v4693_v18, %v3189_v49 }
 0xf00   : > { %v4370_v30 = vpop.eup %4369 }
 0xf01   : > { %v3018_v33 = vmul.f32 %v4370_v30, %v4368_v25  ;;  %v4372_v57 = vpop.eup %4371 }
 0xf02   : > { %v4374_v43 = vpop.eup %4373 }
 0xf03   : > { %v3019_v46 = vmul.f32 %v4374_v43, %v4372_v57  ;;  %v5958_v38 = vsel %vm5941_vm10, %v3018_v33, %v5892_v6 }
 0xf05   : > { %v5961_v10 = vsel %vm3024_vm11, %v3019_v46, %v5895_v17 }
 0xf06   : > { %v3029_v19 = vpack.c.bf16 %v5961_v10, %v5958_v38 }
 0xf08   : > { %3838 = vst [vmem:[%s4642_s7 + $0x10] sm:$0xff] %v3029_v19  ;;  %3078 = vmatmul.mubr.bf16.vlgmr.msra.gmra.mrb[24].mxu0 %v3029_v19  ;;  %3121 = vmatmul.mubr.bf16.vlgmr.msra.gmra.mrb[24].mxu1 %v3029_v19 }
 0xf09   : > { %3212 = vmatpush1.bf16.msra.mxu0 %v5406_v58  ;;  %3255 = vmatpush1.bf16.msra.mxu1 %v5419_v63  ;;  %v3839_v58 = vld [vmem:[%s4640_s16 + $0x20] sm:$0xff] }
 0xf0a   : > { %3213 = vmatprep.subr.bf16.mxu0 %v5410_v60  ;;  %3256 = vmatprep.subr.bf16.mxu1 %v5423_v27  ;;  %v3841_v60 = vld [vmem:[%s4640_s16 + $0x30] sm:$0xff]  ;;  %v3037_v63 = vunpack.c.l.bf16 %v3839_v58  ;;  %v3038_v27 = vunpack.c.h.bf16 %v3839_v58 }
 0xf0b   : > { %3243 = vmatprep.mubr.bf16.mxu0 %v6274_v36  ;;  %3286 = vmatprep.mubr.bf16.mxu1 %v6274_v36 }
 0xf0d   : > { %3214 = vmatpush1.bf16.msra.mxu0 %v5428_v2  ;;  %3257 = vmatpush1.bf16.msra.mxu1 %v5439_v26  ;;  %v3041_v2 = vunpack.c.l.bf16 %v3841_v60 }
 0xf0e   : > { %3215 = vmatprep.subr.bf16.mxu0 %v5434_v23  ;;  %3258 = vmatprep.subr.bf16.mxu1 %v5444_v7  ;;  %v3042_v7 = vunpack.c.h.bf16 %v3841_v60 }
 0xf11   : > { %3216 = vmatpush1.bf16.msra.mxu0 %v5450_v34  ;;  %3259 = vmatpush1.bf16.msra.mxu1 %v5460_v21 }
 0xf12   : > { %3217 = vmatprep.subr.bf16.mxu0 %v5455_v9  ;;  %3260 = vmatprep.subr.bf16.mxu1 %v5465_v16  ;;  %v3840_v9 = vld [vmem:[%s4640_s16 + $0x28] sm:$0xff] }
 0xf15   : > { %3218 = vmatpush1.bf16.msra.mxu0 %v5471_v1  ;;  %3261 = vmatpush1.bf16.msra.mxu1 %v5481_v8  ;;  %v3842_v8 = vld [vmem:[%s4640_s16 + $0x38] sm:$0xff] }
 0xf16   : > { %3219 = vmatprep.subr.bf16.mxu0 %v5476_v13  ;;  %3262 = vmatprep.subr.bf16.mxu1 %v5486_v24  ;;  %v3044_v36 = vunpack.c.h.bf16 %v3842_v8 }
 0xf19   : > { %3220 = vmatpush1.bf16.msra.mxu0 %v5491_v20  ;;  %3263 = vmatpush1.bf16.msra.mxu1 %v5501_v42 }
 0xf1a   : > { %3221 = vmatprep.subr.bf16.mxu0 %v5496_v41  ;;  %3264 = vmatprep.subr.bf16.mxu1 %v5506_v45 }
 0xf1d   : > { %3222 = vmatpush1.bf16.msra.mxu0 %v5511_v47  ;;  %3265 = vmatpush1.bf16.msra.mxu1 %v5521_v51  ;;  %v3039_v47 = vunpack.c.l.bf16 %v3840_v9 }
 0xf1e   : > { %3223 = vmatprep.subr.bf16.mxu0 %v5516_v50  ;;  %3266 = vmatprep.subr.bf16.mxu1 %v5526_v28 }
 0xf21   : > { %3224 = vmatpush1.bf16.msra.mxu0 %v5531_v53  ;;  %3267 = vmatpush1.bf16.msra.mxu1 %v5541_v37  ;;  %v3043_v53 = vunpack.c.l.bf16 %v3842_v8  ;;  %v3040_v37 = vunpack.c.h.bf16 %v3840_v9 }
 0xf22   : > { %3225 = vmatprep.subr.bf16.mxu0 %v5536_v29  ;;  %3268 = vmatprep.subr.bf16.mxu1 %v5546_v40 }
 0xf25   : > { %3226 = vmatpush1.bf16.msra.mxu0 %v5551_v56  ;;  %3269 = vmatpush1.bf16.msra.mxu1 %v5561_v48 }
 0xfdb   : > { %v3079_v23 = vpop.f32.mrb[24].mxu0  ;;  %v3122_v26 = vpop.f32.mrb[24].mxu1 }
 0xfdc   : > { %v3131_v34 = vadd.f32 %v3079_v23, %v3037_v63  ;;  %v3081_v21 = vpop.f32.mrb[25].mxu0  ;;  %v3124_v16 = vpop.f32.mrb[25].mxu1  ;;  %v3133_v40 = vadd.f32 %v3122_v26, %v3039_v47 }
 0xfdd   : > { %v3132_v1 = vadd.f32 %v3081_v21, %v3038_v27  ;;  %v3083_v13 = vpop.f32.mrb[26].mxu0  ;;  %v3126_v24 = vpop.f32.mrb[26].mxu1  ;;  %v3134_v48 = vadd.f32 %v3124_v16, %v3040_v37 }
 0xfde   : > { %v3843_v20 = vmul.f32 -1.442695, %v3131_v34  ;;  %v3135_v41 = vadd.f32 %v3083_v13, %v3041_v2  ;;  %v3085_v42 = vpop.f32.mrb[27].mxu0  ;;  %v3128_v45 = vpop.f32.mrb[27].mxu1  ;;  %v3137_v56 = vadd.f32 %v3126_v24, %v3043_v53  ;;  %v3845_v5 = vmul.f32 -1.442695, %v3133_v40 }
 0xfdf   : > { %v3844_v50 = vmul.f32 -1.442695, %v3132_v1  ;;  %v3136_v51 = vadd.f32 %v3085_v42, %v3042_v7  ;;  %v3138_v3 = vadd.f32 %v3128_v45, %v3044_v36  ;;  %v3201_v1 = vld [vmem:[%s4640_s16 + $0x10] sm:$0xff]  ;;  %v3200_v45 = vld [vmem:[%s4640_s16 + $0x8] sm:$0xff] }
 0xfe0   : > { %4375 = vpow2.f32 %v3843_v20  ;;  %v3846_v28 = vmul.f32 -1.442695, %v3135_v41  ;;  %v3848_v6 = vmul.f32 -1.442695, %v3137_v56  ;;  %v3207_v24 = vunpack.c.l.bf16 %v3201_v1 }
 0xfe1   : > { %v3847_v29 = vmul.f32 -1.442695, %v3136_v51  ;;  %4377 = vpow2.f32 %v3844_v50  ;;  %v3208_v42 = vunpack.c.h.bf16 %v3201_v1 }
 0xfe2   : > { %4379 = vpow2.f32 %v3846_v28  ;;  %v3202_v28 = vld [vmem:[%s4640_s16 + $0x18] sm:$0xff] }
 0xfe3   : > { %4381 = vpow2.f32 %v3847_v29 }
 0xfe4   : > { %4383 = vtanh.f32 %v3134_v48  ;;  %v3205_v48 = vunpack.c.l.bf16 %v3200_v45 }
 0xfe5   : > { %4385 = vpow2.f32 %v3845_v5 }
 0xfe6   : > { %4387 = vpow2.f32 %v3848_v6 }
 0xfea   : > { %v4376_v17 = vpop.eup %4375 }
 0xfeb   : > { %v3157_v0 = vadd.f32 1.0, %v4376_v17  ;;  %v4378_v12 = vpop.eup %4377  ;;  %v3209_v17 = vunpack.c.l.bf16 %v3202_v28 }
 0xfec   : > { %v4380_v31 = vpop.eup %4379  ;;  %v3158_v22 = vadd.f32 1.0, %v4378_v12 }
 0xfed   : > { %4389 = vrcp.f32 %v3157_v0  ;;  %v3160_v39 = vadd.f32 1.0, %v4380_v31  ;;  %v4382_v35 = vpop.eup %4381  ;;  %v3206_v0 = vunpack.c.h.bf16 %v3200_v45 }
 0xfee   : > { %4391 = vtanh.f32 %v3138_v3  ;;  %v3161_v32 = vadd.f32 1.0, %v4382_v35  ;;  %v4384_v55 = vpop.eup %4383 }
 0xfef   : > { %4393 = vrcp.f32 %v3158_v22  ;;  %v4386_v44 = vpop.eup %4385 }
 0xff0   : > { %4395 = vrcp.f32 %v3160_v39  ;;  %v4388_v62 = vpop.eup %4387  ;;  %v3159_v59 = vadd.f32 1.0, %v4386_v44  ;;  %v3210_v39 = vunpack.c.h.bf16 %v3202_v28 }
 0xff1   : > { %4397 = vrcp.f32 %v3161_v32  ;;  %v3162_v19 = vadd.f32 1.0, %v4388_v62 }
 0xff2   : > { %4399 = vrcp.f32 %v3159_v59 }
 0xff7   : > { %v4390_v14 = vpop.eup %4389 }
 0xff8   : > { %v4392_v15 = vpop.eup %4391  ;;  %v3179_v4 = vmul.f32 %v4390_v14, %v4384_v55 }
 0xff9   : > { %v4394_v61 = vpop.eup %4393 }
 0xffa   : > { %v4396_v25 = vpop.eup %4395  ;;  %v3177_v30 = vmul.f32 %v4394_v61, %v5950_v54 }
 0xffb   : > { %v3180_v33 = vmul.f32 %v4396_v25, %v4392_v15  ;;  %v4398_v43 = vpop.eup %4397 }
 0xffc   : > { %v3181_v46 = vadd.f32 %v3179_v4, %v3177_v30  ;;  %v3178_v58 = vmul.f32 %v4398_v43, %v5953_v52  ;;  %v4400_v2 = vpop.eup %4399 }
 0xffe   : > { %4401 = vtanh.f32 %v3181_v46  ;;  %v6014_v60 = vsel %vm6005_vm12, %v3181_v46, %v5950_v54  ;;  %v3182_v63 = vadd.f32 %v3180_v33, %v3178_v58 }
 0xfff   : > { %4403 = vrcp.f32 %v3162_v19 }
0x1000   : > { %4405 = vtanh.f32 %v3182_v63  ;;  %v6017_v27 = vsel %vm3191_vm13, %v3182_v63, %v5953_v52  ;;  %v3199_v52 = vld [vmem:[%s4640_s16] sm:$0xff]  ;;  %s3353_s16 = sld [smem:[#allocation5 + %s5610_s27]] }
0x1001   : > { %v3203_v13 = vunpack.c.l.bf16 %v3199_v52  ;;  %v3204_v8 = vunpack.c.h.bf16 %v3199_v52 }
0x1006   : > { %v3354_v19 = vstv %s3353_s16 }
0x1007   : > { %vm6037_vm14 = vcmp.lt.s32.totalorder %v4672_v11, %v3354_v19  ;;  %vm3356_vm15 = vcmp.lt.s32.totalorder %v4693_v18, %v3354_v19 }
0x1008   : > { %v4402_v23 = vpop.eup %4401 }
0x1009   : > { %v3185_v26 = vmul.f32 %v4402_v23, %v4400_v2  ;;  %v4404_v7 = vpop.eup %4403 }
0x100a   : > { %v4406_v34 = vpop.eup %4405 }
0x100b   : > { %v3186_v9 = vmul.f32 %v4406_v34, %v4404_v7  ;;  %v6022_v54 = vsel %vm6005_vm12, %v3185_v26, %v5958_v38 }
0x100d   : > { %v6025_v21 = vsel %vm3191_vm13, %v3186_v9, %v5961_v10 }
0x100e   : > { %v3196_v16 = vpack.c.bf16 %v6025_v21, %v6022_v54 }
0x1010   : > { %3849 = vst [vmem:[%s4642_s7 + $0x8] sm:$0xff] %v3196_v16  ;;  %3244 = vmatmul.mubr.bf16.vlgmr.msra.gmra.mrb[28].mxu0 %v3196_v16  ;;  %3287 = vmatmul.mubr.bf16.vlgmr.msra.gmra.mrb[28].mxu1 %v3196_v16 }
0x10e3   : > { %v3245_v20 = vpop.f32.mrb[28].mxu0  ;;  %v3288_v41 = vpop.f32.mrb[28].mxu1 }
0x10e4   : > { %v3297_v38 = vadd.f32 %v3245_v20, %v3203_v13  ;;  %v3247_v47 = vpop.f32.mrb[29].mxu0  ;;  %v3290_v10 = vpop.f32.mrb[29].mxu1  ;;  %v3299_v12 = vadd.f32 %v3288_v41, %v3205_v48 }
0x10e5   : > { %v3298_v50 = vadd.f32 %v3247_v47, %v3204_v8  ;;  %v3249_v51 = vpop.f32.mrb[30].mxu0  ;;  %v3292_v53 = vpop.f32.mrb[30].mxu1  ;;  %v3300_v22 = vadd.f32 %v3290_v10, %v3206_v0 }
0x10e6   : > { %v3850_v29 = vmul.f32 -1.442695, %v3297_v38  ;;  %v3301_v37 = vadd.f32 %v3249_v51, %v3207_v24  ;;  %v3251_v40 = vpop.f32.mrb[31].mxu0  ;;  %v3294_v56 = vpop.f32.mrb[31].mxu1  ;;  %v3303_v31 = vadd.f32 %v3292_v53, %v3209_v17  ;;  %v3852_v35 = vmul.f32 -1.442695, %v3299_v12 }
0x10e7   : > { %v3851_v36 = vmul.f32 -1.442695, %v3298_v50  ;;  %v3302_v5 = vadd.f32 %v3251_v40, %v3208_v42  ;;  %v3304_v44 = vadd.f32 %v3294_v56, %v3210_v39 }
0x10e8   : > { %4407 = vpow2.f32 %v3850_v29  ;;  %v3853_v6 = vmul.f32 -1.442695, %v3301_v37  ;;  %v3855_v32 = vmul.f32 -1.442695, %v3303_v31 }
0x10e9   : > { %v3854_v3 = vmul.f32 -1.442695, %v3302_v5  ;;  %4409 = vpow2.f32 %v3851_v36 }
0x10ea   : > { %4411 = vpow2.f32 %v3853_v6 }
0x10eb   : > { %4413 = vpow2.f32 %v3854_v3 }
0x10ec   : > { %4415 = vtanh.f32 %v3300_v22 }
0x10ed   : > { %4417 = vpow2.f32 %v3852_v35 }
0x10ee   : > { %4419 = vpow2.f32 %v3855_v32 }
0x10f2   : > { %v4408_v55 = vpop.eup %4407 }
0x10f3   : > { %v3323_v62 = vadd.f32 1.0, %v4408_v55  ;;  %v4410_v14 = vpop.eup %4409 }
0x10f4   : > { %v4412_v15 = vpop.eup %4411  ;;  %v3324_v4 = vadd.f32 1.0, %v4410_v14 }
0x10f5   : > { %4421 = vrcp.f32 %v3323_v62  ;;  %v3326_v49 = vadd.f32 1.0, %v4412_v15  ;;  %v4414_v61 = vpop.eup %4413 }
0x10f6   : > { %4423 = vtanh.f32 %v3304_v44  ;;  %v3327_v59 = vadd.f32 1.0, %v4414_v61  ;;  %v4416_v25 = vpop.eup %4415 }
0x10f7   : > { %4425 = vrcp.f32 %v3324_v4  ;;  %v4418_v30 = vpop.eup %4417 }
0x10f8   : > { %4427 = vrcp.f32 %v3326_v49  ;;  %v4420_v33 = vpop.eup %4419  ;;  %v3325_v63 = vadd.f32 1.0, %v4418_v30 }
0x10f9   : > { %4429 = vrcp.f32 %v3327_v59  ;;  %v3328_v16 = vadd.f32 1.0, %v4420_v33 }
0x10fa   : > { %4431 = vrcp.f32 %v3325_v63 }
0x10ff   : > { %v4422_v57 = vpop.eup %4421 }
0x1100   : > { %v4424_v43 = vpop.eup %4423  ;;  %v3345_v46 = vmul.f32 %v4422_v57, %v4416_v25 }
0x1101   : > { %v4426_v58 = vpop.eup %4425 }
0x1102   : > { %v4428_v2 = vpop.eup %4427  ;;  %v3343_v23 = vmul.f32 %v4426_v58, %v6014_v60 }
0x1103   : > { %v3346_v7 = vmul.f32 %v4428_v2, %v4424_v43  ;;  %v4430_v34 = vpop.eup %4429 }
0x1104   : > { %v3347_v9 = vadd.f32 %v3345_v46, %v3343_v23  ;;  %v3344_v52 = vmul.f32 %v4430_v34, %v6017_v27  ;;  %v4432_v8 = vpop.eup %4431 }
0x1106   : > { %4433 = vtanh.f32 %v3347_v9  ;;  %v3359_v1 = vsel %vm6037_vm14, %v3347_v9, %v6014_v60  ;;  %v3348_v13 = vadd.f32 %v3346_v7, %v3344_v52 }
0x1107   : > { %3365 = vst [vmem:[#allocation3] sm:$0xff] %v3359_v1  ;;  %4435 = vrcp.f32 %v3328_v16 }
0x1108   : > { %4437 = vtanh.f32 %v3348_v13  ;;  %v3360_v11 = vsel %vm3356_vm15, %v3348_v13, %v6017_v27 }
0x1109   : > { %3366 = vst [vmem:[#allocation3 + $0x8] sm:$0xff] %v3360_v11 }
0x1110   : > { %v4434_v24 = vpop.eup %4433 }
0x1111   : > { %v3351_v20 = vmul.f32 %v4434_v24, %v4432_v8  ;;  %v4436_v41 = vpop.eup %4435 }
0x1112   : > { %v4438_v42 = vpop.eup %4437 }
0x1113   : > { %v3357_v38 = vsel %vm6037_vm14, %v3351_v20, %v6022_v54  ;;  %v3352_v60 = vmul.f32 %v4438_v42, %v4436_v41 }
0x1114   : > { %3363 = vst [vmem:[#allocation2] sm:$0xff] %v3357_v38 }
0x1115   : > { %v3358_v18 = vsel %vm3356_vm15, %v3352_v60, %v6025_v21 }
0x1116   : > { %v3361_v45 = vpack.c.bf16 %v3358_v18, %v3357_v38  ;;  %3364 = vst [vmem:[#allocation2 + $0x8] sm:$0xff] %v3358_v18 }
0x1118   : > { %3362 = vst [vmem:[%s4642_s7] sm:$0xff] %v3361_v45 }
0x1119 PF: > { %p3856_p7 = scmp.ne.s32.totalorder %s4491_s25, 1 }
0x111a   : > { %v3375_v10 = vld [vmem:[#allocation3] sm:$0xff] (!%p3856_p7)  ;;  %v3376_v54 = vld [vmem:[#allocation3 + $0x8] sm:$0xff] (!%p3856_p7) }
0x111b   : > { %3370 = sbr.rel (%p3856_p7) target bundleno = 4386 (0x1122), region = 44  ;;  %v3371_v27 = vld [vmem:[#allocation2] sm:$0xff] (!%p3856_p7)  ;;  %3377 = vst [vmem:[%s4635_s30] sm:$0xff] (!%p3856_p7), %v3375_v10  ;;  %3378 = vst [vmem:[%s4635_s30 + $0x8] sm:$0xff] (!%p3856_p7), %v3376_v54 }
0x111c   : > { %3373 = vst [vmem:[%s4630_s14] sm:$0xff] (!%p3856_p7), %v3371_v27 }
0x111d   : > { %v3372_v47 = vld [vmem:[#allocation2 + $0x8] sm:$0xff] (!%p3856_p7) }
0x111e   : > { %3374 = vst [vmem:[%s4630_s14 + $0x8] sm:$0xff] (!%p3856_p7), %v3372_v47 }
0x1122 PF: > { %3395 = sbr.rel (!%p4599_p12) target bundleno = 4394 (0x112a), region = 48  ;;  %s3866_s25 = sshll.u32 (%p4599_p12), %s4618_s20, 4  ;;  %v3445_v21 = vld [vmem:[%s4642_s7] sm:$0xff] (%p4599_p12)  ;;  %v3447_v50 = vld [vmem:[%s4642_s7 + $0x8] sm:$0xff] (%p4599_p12)  ;;  %v3449_v51 = vld [vmem:[%s4642_s7 + $0x10] sm:$0xff] (%p4599_p12) }
0x1123   : > { %s3401_s14 = sadd.s32 (%p4599_p12), %s4495_s0, %s3866_s25  ;;  %v3451_v28 = vld [vmem:[%s4642_s7 + $0x18] sm:$0xff] (%p4599_p12)  ;;  %v3453_v53 = vld [vmem:[%s4642_s7 + $0x20] sm:$0xff] (%p4599_p12)  ;;  %v3455_v29 = vld [vmem:[%s4642_s7 + $0x28] sm:$0xff] (%p4599_p12) }
0x1124   : > { %s3860_s30 = sshll.u32 (%p4599_p12), %s3401_s14, 3  ;;  %v3457_v37 = vld [vmem:[%s4642_s7 + $0x30] sm:$0xff] (%p4599_p12)  ;;  %v3459_v40 = vld [vmem:[%s4642_s7 + $0x38] sm:$0xff] (%p4599_p12) }
0x1125   : > { %s3403_s27 = scalar_lea.vmem (%p4599_p12), %s6096_s3, %s3860_s30 }
0x1126   : > { %3446 = vst [vmem:[%s3403_s27] sm:$0xff] (%p4599_p12), %v3445_v21  ;;  %3448 = vst [vmem:[%s3403_s27 + $0x10] sm:$0xff] (%p4599_p12), %v3447_v50 }
0x1127   : > { %3450 = vst [vmem:[%s3403_s27 + $0x20] sm:$0xff] (%p4599_p12), %v3449_v51  ;;  %3452 = vst [vmem:[%s3403_s27 + $0x30] sm:$0xff] (%p4599_p12), %v3451_v28 }
0x1128   : > { %3454 = vst [vmem:[%s3403_s27 + $0x40] sm:$0xff] (%p4599_p12), %v3453_v53  ;;  %3456 = vst [vmem:[%s3403_s27 + $0x50] sm:$0xff] (%p4599_p12), %v3455_v29 }
0x1129   : > { %3458 = vst [vmem:[%s3403_s27 + $0x60] sm:$0xff] %v3457_v37  ;;  %3460 = vst [vmem:[%s3403_s27 + $0x70] sm:$0xff] %v3459_v40 }
0x112a PF: > { %s22_s28 = sadd.s32 1, %s4507_s28   ;;  %s6290_s0 = sld [smem:[#allocation12_spill]] }
0x112b   : > { %p19_p8 = scmp.ge.s32.totalorder %s22_s28, 6   ;;  %s6291_s25 = sld [smem:[#allocation8_spill]] }
0x112c   : > { %s6292_s20 = sld [smem:[#allocation9_spill]]  ;;  %s6293_s26 = sld [smem:[#allocation10_spill]] }
0x112d   : > { %s6294_s27 = sld [smem:[#allocation11_spill]]  ;;  %s6295_s23 = smov %s4487_s24 }
0x112e   :  { %21 = sbr.rel (!%p19_p8) target bundleno = 19 (0x13), region = 167 }
0x1130   : > { %s6296_s24 = smov %s6290_s0 }
0x1132   : > { %s6297_s0 = smov %s6292_s20 }

</bundles_post_ra>
